<compile_context>
chip_gen: v7x
topology: tpu7x:2x2x1
jax: 0.10.0
libtpu: 0.0.40
codegen_flags: <defaults>
</compile_context>

<pallas_src>
import jax
import jax.numpy as jnp
from jax import lax
from jax.experimental import pallas as pl
from jax.experimental.pallas import tpu as pltpu


# ---------------------------------------------------------------------------
# Wrapper-side helpers (cheap, O(weights) / O(small operators))
# ---------------------------------------------------------------------------

def _bilinear_matrix(n_in: int, n_out: int) -> jnp.ndarray:
    """Dense (n_out, n_in) matrix A with A @ v == 1-D bilinear resize of v
    using PyTorch align_corners=True semantics."""
    if n_out == 1:
        src = jnp.zeros((1,), jnp.float32)
    else:
        src = jnp.arange(n_out, dtype=jnp.float32) * (n_in - 1) / (n_out - 1)
    j0 = jnp.clip(jnp.floor(src).astype(jnp.int32), 0, n_in - 1)
    j1 = jnp.clip(j0 + 1, 0, n_in - 1)
    w = src - j0.astype(jnp.float32)
    return ((1.0 - w)[:, None] * jax.nn.one_hot(j0, n_in, dtype=jnp.float32)
            + w[:, None] * jax.nn.one_hot(j1, n_in, dtype=jnp.float32))


def _fold_bn(w, b, gamma, beta, mean, var, eps=1e-5):
    """Fold eval-mode BatchNorm into the preceding conv weight/bias."""
    scale = gamma / jnp.sqrt(var + eps)                       # (Cout,)
    w_f = w * scale.reshape((-1,) + (1,) * (w.ndim - 1))
    b_f = (b - mean) * scale + beta
    return w_f, b_f


# ---------------------------------------------------------------------------
# Fused kernel: upsample ++ concat -> conv1x1+BN+ReLU -> conv3x3+BN+ReLU
# ---------------------------------------------------------------------------

def _make_fused_kernel(offsets, lslab):
    def kernel(s4_ref, s3_ref, bpad_ref, p_ref, mask_ref,
               w1a_ref, w1b_ref, b1_ref, w2_ref, sel_ref, b2_ref,
               o_ref, zpad_ref):
        # s4_ref  : (C4, Hin*Win)        s3_ref : (C3, H*W)
        # bpad_ref: (Hin*Win, Lp)   -- bilinear-upsample -> padded-slab operator
        # p_ref   : (H*W, Lp)       -- dense-pixel -> padded-slab scatter
        # mask_ref: (1, Lp)         -- 1 at interior slab positions, 0 at pads
        # w1a/w1b : (C1, C4)/(C1, C3)   b1: (C1, 1)
        # w2_ref  : (9, C2, C1)         b2: (C2, 1)
        # sel_ref : (Lslab, H*W)    -- drop-junk-columns selection
        # o_ref   : (C2, H*W)       zpad_ref: (C1, Lp) VMEM scratch
        f32 = jnp.float32

        # ---- conv1_2 (1x1) + folded BN + ReLU, directly in padded layout ----
        t4 = jnp.dot(w1a_ref[...], s4_ref[...], preferred_element_type=f32)
        t3 = jnp.dot(w1b_ref[...], s3_ref[...], preferred_element_type=f32)
        z = jnp.dot(t4, bpad_ref[...], preferred_element_type=f32)
        z = z + jnp.dot(t3, p_ref[...], preferred_element_type=f32)
        z = z + b1_ref[...] * mask_ref[...]       # bias masked -> pads stay 0
        zpad_ref[...] = jnp.maximum(z, 0.0)

        # ---- conv2_2 (3x3, pad=1) + folded BN + ReLU: 9 shifted flat slices -
        off0 = offsets[0]
        acc = jnp.dot(w2_ref[0], zpad_ref[:, off0:off0 + lslab],
                      preferred_element_type=f32)
        for t in range(1, 9):                      # static unroll over taps
            off = offsets[t]
            acc = acc + jnp.dot(w2_ref[t], zpad_ref[:, off:off + lslab],
                                preferred_element_type=f32)
        y = jnp.dot(acc, sel_ref[...], preferred_element_type=f32)  # drop pads
        o_ref[...] = jnp.maximum(y + b2_ref[...], 0.0)
    return kernel


# ---------------------------------------------------------------------------
# Forward wrapper
# ---------------------------------------------------------------------------

def base31_forward(s4, s3, params):
    N, C4, Hin, Win = s4.shape
    _, C3, H, W = s3.shape
    assert H == 2 * Hin and W == 2 * Win, "s3 must be 2x the s4 spatial size"
    f32 = jnp.float32

    # ---- parameter prep: fold BN, split/reshape conv weights ----------------
    w1, b1 = _fold_bn(params["w1"], params["b1"], params["bn1_gamma"],
                      params["bn1_beta"], params["bn1_mean"], params["bn1_var"])
    w2, b2 = _fold_bn(params["w2"], params["b2"], params["bn2_gamma"],
                      params["bn2_beta"], params["bn2_mean"], params["bn2_var"])
    C1 = w1.shape[0]
    C2 = w2.shape[0]

    w1 = w1[:, :, 0, 0]                          # (C1, C4+C3)
    w1a, w1b = w1[:, :C4], w1[:, C4:]            # concat([up(s4), s3]) split
    b1c = b1.reshape(C1, 1)
    w2_taps = jnp.transpose(w2, (2, 3, 0, 1)).reshape(9, C2, C1)
    b2c = b2.reshape(C2, 1)

    # ---- small operator matrices (built once, O(pixels^2) tiny) --------------
    Wp, Hp = W + 2, H + 4
    Lp = Hp * Wp                                 # padded-slab length
    Lslab = H * Wp                               # conv2 output-slab length

    # bilinear align_corners=True x2 upsample as a dense pixel operator
    A_h = _bilinear_matrix(Hin, H)
    A_w = _bilinear_matrix(Win, W)
    B = jnp.einsum("yp,xq->pqyx", A_h, A_w).reshape(Hin * Win, H * W)

    # dense pixel (y,x) -> padded-slab position (y+2)*Wp + (x+1)
    yy, xx = jnp.meshgrid(jnp.arange(H), jnp.arange(W), indexing="ij")
    interior_pos = ((yy + 2) * Wp + (xx + 1)).reshape(H * W)
    P = jax.nn.one_hot(interior_pos, Lp, dtype=f32)          # (H*W, Lp)
    B_pad = B @ P                                            # (Hin*Win, Lp)
    pad_mask = jnp.sum(P, axis=0, keepdims=True)             # (1, Lp)

    # conv2 output slab column y*Wp + (x+1) -> dense pixel y*W + x
    slab_pos = (yy * Wp + (xx + 1)).reshape(H * W)
    S = jax.nn.one_hot(slab_pos, Lslab, dtype=f32).T         # (Lslab, H*W)

    # 3x3 tap offsets into the padded slab (flat, row stride Wp)
    offsets = tuple((ky + 1) * Wp + kx - 1 for ky in range(3) for kx in range(3))

    # ---- single fused pallas_call -------------------------------------------
    s4f = s4.reshape(N, C4, Hin * Win)           # free contiguous views of NCHW
    s3f = s3.reshape(N, C3, H * W)

    out = pl.pallas_call(
        _make_fused_kernel(offsets, Lslab),
        out_shape=jax.ShapeDtypeStruct((N, C2, H * W), f32),
        grid=(N,),
        in_specs=[
            pl.BlockSpec((None, C4, Hin * Win), lambda n: (n, 0, 0)),
            pl.BlockSpec((None, C3, H * W), lambda n: (n, 0, 0)),
            pl.BlockSpec((Hin * Win, Lp), lambda n: (0, 0)),
            pl.BlockSpec((H * W, Lp), lambda n: (0, 0)),
            pl.BlockSpec((1, Lp), lambda n: (0, 0)),
            pl.BlockSpec((C1, C4), lambda n: (0, 0)),
            pl.BlockSpec((C1, C3), lambda n: (0, 0)),
            pl.BlockSpec((C1, 1), lambda n: (0, 0)),
            pl.BlockSpec((9, C2, C1), lambda n: (0, 0, 0)),
            pl.BlockSpec((Lslab, H * W), lambda n: (0, 0)),
            pl.BlockSpec((C2, 1), lambda n: (0, 0)),
        ],
        out_specs=pl.BlockSpec((None, C2, H * W), lambda n: (n, 0, 0)),
        scratch_shapes=[pltpu.VMEM((C1, Lp), f32)],
        compiler_params=pltpu.CompilerParams(dimension_semantics=("parallel",)),
    )(s4f, s3f, B_pad, P, pad_mask, w1a, w1b, b1c, w2_taps, S, b2c)

    return out.reshape(N, C2, H, W)


# ---------------------------------------------------------------------------
# Pure-JAX reference (independent of the kernel formulation)
# ---------------------------------------------------------------------------

def _upsample_bilinear_x2_align_corners(x):
    N, C, H, W = x.shape
    Ho, Wo = 2 * H, 2 * W

    def coords(n_in, n_out):
        if n_out == 1:
            return jnp.zeros((1,), jnp.float32)
        return jnp.arange(n_out, dtype=jnp.float32) * (n_in - 1) / (n_out - 1)

    sy, sx = coords(H, Ho), coords(W, Wo)
    y0 = jnp.clip(jnp.floor(sy).astype(jnp.int32), 0, H - 1)
    y1 = jnp.clip(y0 + 1, 0, H - 1)
    x0 = jnp.clip(jnp.floor(sx).astype(jnp.int32), 0, W - 1)
    x1 = jnp.clip(x0 + 1, 0, W - 1)
    wy = (sy - y0)[None, None, :, None]
    wx = (sx - x0)[None, None, None, :]
    g = lambda yi, xi: x[:, :, yi, :][:, :, :, xi]
    top = g(y0, x0) * (1 - wx) + g(y0, x1) * wx
    bot = g(y1, x0) * (1 - wx) + g(y1, x1) * wx
    return top * (1 - wy) + bot * wy


def reference_forward(s4, s3, params, eps=1e-5):
    up = _upsample_bilinear_x2_align_corners(s4)
    x = jnp.concatenate([up, s3], axis=1)

    def conv_bn_relu(x, w, b, gamma, beta, mean, var, pad):
        y = lax.conv_general_dilated(
            x, w, window_strides=(1, 1), padding=((pad, pad), (pad, pad)),
            dimension_numbers=("NCHW", "OIHW", "NCHW"),
            precision=lax.Precision.HIGHEST)
        y = y + b[None, :, None, None]
        y = (y - mean[None, :, None, None]) / jnp.sqrt(var[None, :, None, None] + eps)
        y = y * gamma[None, :, None, None] + beta[None, :, None, None]
        return jnp.maximum(y, 0.0)

    y = conv_bn_relu(x, params["w1"], params["b1"], params["bn1_gamma"],
                     params["bn1_beta"], params["bn1_mean"], params["bn1_var"], pad=0)
    y = conv_bn_relu(y, params["w2"], params["b2"], params["bn2_gamma"],
                     params["bn2_beta"], params["bn2_mean"], params["bn2_var"], pad=1)
    return y


if __name__ == "__main__":
    key = jax.random.PRNGKey(0)
    k1, k2, k3, k4 = jax.random.split(key, 4)

    # Base31 hard-codes 1024 concat channels (conv1_2) and 256-wide convs, so
    # the channel counts are fixed; keep spatial/batch small.
    N, C4, C3 = 2, 512, 512
    Hin = Win = 4                                   # s4: 4x4, s3: 8x8
    s4 = jax.random.normal(k1, (N, C4, Hin, Win), dtype=jnp.float32)
    s3 = jax.random.normal(k2, (N, C3, 2 * Hin, 2 * Win), dtype=jnp.float32)

    C1_out, C2_out = 256, 256
    params = dict(
        # BaseConv init: conv.weight ~ N(0, 0.01), conv.bias = 0
        w1=0.01 * jax.random.normal(k3, (C1_out, C4 + C3, 1, 1), dtype=jnp.float32),
        b1=jnp.zeros((C1_out,), jnp.float32),
        w2=0.01 * jax.random.normal(k4, (C2_out, C1_out, 3, 3), dtype=jnp.float32),
        b2=jnp.zeros((C2_out,), jnp.float32),
        # BatchNorm2d (eval mode): weight=1, bias=0, running stats at defaults
        bn1_gamma=jnp.ones((C1_out,), jnp.float32),
        bn1_beta=jnp.zeros((C1_out,), jnp.float32),
        bn1_mean=jnp.zeros((C1_out,), jnp.float32),
        bn1_var=jnp.ones((C1_out,), jnp.float32),
        bn2_gamma=jnp.ones((C2_out,), jnp.float32),
        bn2_beta=jnp.zeros((C2_out,), jnp.float32),
        bn2_mean=jnp.zeros((C2_out,), jnp.float32),
        bn2_var=jnp.ones((C2_out,), jnp.float32),
    )

    out = jax.jit(base31_forward)(s4, s3, params)
    jax.block_until_ready(out)

    ref = reference_forward(s4, s3, params)
    assert out.shape == (N, C2_out, 2 * Hin, 2 * Win), out.shape
    max_err = float(jnp.max(jnp.abs(out - ref)))
    # tolerance covers MXU f32 accumulation-order differences; real bugs are O(0.1+)
    assert jnp.allclose(out, ref, atol=1e-3, rtol=1e-3), f"mismatch vs reference: {max_err}"

    print("KERNEL_OK")
</pallas_src>

<mosaic_0001>
module attributes {stable_mosaic.version = 11 : i64} {
  func.func @kernel(%arg0: i32, %arg1: memref<1x512x16xf32, #tpu.memory_space<vmem>>, %arg2: memref<1x512x64xf32, #tpu.memory_space<vmem>>, %arg3: memref<16x120xf32, #tpu.memory_space<vmem>>, %arg4: memref<64x120xf32, #tpu.memory_space<vmem>>, %arg5: memref<1x120xf32, #tpu.memory_space<vmem>>, %arg6: memref<256x512xf32, #tpu.memory_space<vmem>>, %arg7: memref<256x512xf32, #tpu.memory_space<vmem>>, %arg8: memref<256x1xf32, #tpu.memory_space<vmem>>, %arg9: memref<9x256x256xf32, #tpu.memory_space<vmem>>, %arg10: memref<80x64xf32, #tpu.memory_space<vmem>>, %arg11: memref<256x1xf32, #tpu.memory_space<vmem>>, %arg12: memref<1x256x64xf32, #tpu.memory_space<vmem>>, %arg13: memref<256x120xf32, #tpu.memory_space<vmem>>) attributes {dimension_semantics = [#tpu.dimension_semantics<parallel>], iteration_bounds = array<i64: 2>, scalar_prefetch = 0 : i64, scratch_operands = 1 : i64, tpu.core_type = #tpu.core_type<tc>, window_params = [{transform_indices = @transform_0, window_bounds = array<i64: 1, 512, 16>}, {transform_indices = @transform_1, window_bounds = array<i64: 1, 512, 64>}, {pipeline_mode = #tpu.pipeline_mode<synchronous>, transform_indices = @transform_2, window_bounds = array<i64: 16, 120>}, {pipeline_mode = #tpu.pipeline_mode<synchronous>, transform_indices = @transform_3, window_bounds = array<i64: 64, 120>}, {pipeline_mode = #tpu.pipeline_mode<synchronous>, transform_indices = @transform_4, window_bounds = array<i64: 1, 120>}, {pipeline_mode = #tpu.pipeline_mode<synchronous>, transform_indices = @transform_5, window_bounds = array<i64: 256, 512>}, {pipeline_mode = #tpu.pipeline_mode<synchronous>, transform_indices = @transform_6, window_bounds = array<i64: 256, 512>}, {pipeline_mode = #tpu.pipeline_mode<synchronous>, transform_indices = @transform_7, window_bounds = array<i64: 256, 1>}, {pipeline_mode = #tpu.pipeline_mode<synchronous>, transform_indices = @transform_8, window_bounds = array<i64: 9, 256, 256>}, {pipeline_mode = #tpu.pipeline_mode<synchronous>, transform_indices = @transform_9, window_bounds = array<i64: 80, 64>}, {pipeline_mode = #tpu.pipeline_mode<synchronous>, transform_indices = @transform_10, window_bounds = array<i64: 256, 1>}, {transform_indices = @transform_11, window_bounds = array<i64: 1, 256, 64>}]} {
    %c0 = arith.constant 0 : index
    %c0_0 = arith.constant 0 : index
    %0 = vector.load %arg6[%c0, %c0_0] : memref<256x512xf32, #tpu.memory_space<vmem>>, vector<256x512xf32>
    %c0_1 = arith.constant 0 : index
    %c0_2 = arith.constant 0 : index
    %c0_3 = arith.constant 0 : index
    %1 = vector.load %arg1[%c0_1, %c0_2, %c0_3] : memref<1x512x16xf32, #tpu.memory_space<vmem>>, vector<1x512x16xf32>
    %2 = vector.shape_cast %1 : vector<1x512x16xf32> to vector<512x16xf32>
    %cst = arith.constant dense<0.000000e+00> : vector<256x16xf32>
    %3 = tpu.matmul %0, %2, %cst {dimension_numbers = #tpu.dot_dimension_numbers<[1], [0], [0], [1], [0, 0, 1, 1], [], []>} : vector<256x512xf32>, vector<512x16xf32>, vector<256x16xf32> -> vector<256x16xf32>
    %c0_4 = arith.constant 0 : index
    %c0_5 = arith.constant 0 : index
    %4 = vector.load %arg7[%c0_4, %c0_5] : memref<256x512xf32, #tpu.memory_space<vmem>>, vector<256x512xf32>
    %c0_6 = arith.constant 0 : index
    %c0_7 = arith.constant 0 : index
    %c0_8 = arith.constant 0 : index
    %5 = vector.load %arg2[%c0_6, %c0_7, %c0_8] : memref<1x512x64xf32, #tpu.memory_space<vmem>>, vector<1x512x64xf32>
    %6 = vector.shape_cast %5 : vector<1x512x64xf32> to vector<512x64xf32>
    %cst_9 = arith.constant dense<0.000000e+00> : vector<256x64xf32>
    %7 = tpu.matmul %4, %6, %cst_9 {dimension_numbers = #tpu.dot_dimension_numbers<[1], [0], [0], [1], [0, 0, 1, 1], [], []>} : vector<256x512xf32>, vector<512x64xf32>, vector<256x64xf32> -> vector<256x64xf32>
    %c0_10 = arith.constant 0 : index
    %c0_11 = arith.constant 0 : index
    %8 = vector.load %arg3[%c0_10, %c0_11] : memref<16x120xf32, #tpu.memory_space<vmem>>, vector<16x120xf32>
    %cst_12 = arith.constant dense<0.000000e+00> : vector<256x120xf32>
    %9 = tpu.matmul %3, %8, %cst_12 {dimension_numbers = #tpu.dot_dimension_numbers<[1], [0], [0], [1], [0, 0, 1, 1], [], []>} : vector<256x16xf32>, vector<16x120xf32>, vector<256x120xf32> -> vector<256x120xf32>
    %c0_13 = arith.constant 0 : index
    %c0_14 = arith.constant 0 : index
    %10 = vector.load %arg4[%c0_13, %c0_14] : memref<64x120xf32, #tpu.memory_space<vmem>>, vector<64x120xf32>
    %cst_15 = arith.constant dense<0.000000e+00> : vector<256x120xf32>
    %11 = tpu.matmul %7, %10, %cst_15 {dimension_numbers = #tpu.dot_dimension_numbers<[1], [0], [0], [1], [0, 0, 1, 1], [], []>} : vector<256x64xf32>, vector<64x120xf32>, vector<256x120xf32> -> vector<256x120xf32>
    %12 = arith.addf %9, %11 : vector<256x120xf32>
    %c0_16 = arith.constant 0 : index
    %c0_17 = arith.constant 0 : index
    %13 = vector.load %arg8[%c0_16, %c0_17] : memref<256x1xf32, #tpu.memory_space<vmem>>, vector<256x1xf32>
    %c0_18 = arith.constant 0 : index
    %c0_19 = arith.constant 0 : index
    %14 = vector.load %arg5[%c0_18, %c0_19] : memref<1x120xf32, #tpu.memory_space<vmem>>, vector<1x120xf32>
    %15 = vector.broadcast %13 : vector<256x1xf32> to vector<256x120xf32>
    %16 = vector.broadcast %14 : vector<1x120xf32> to vector<256x120xf32>
    %17 = arith.mulf %15, %16 : vector<256x120xf32>
    %18 = arith.addf %12, %17 : vector<256x120xf32>
    %cst_20 = arith.constant 0.000000e+00 : f32
    %19 = vector.broadcast %cst_20 : f32 to vector<256x120xf32>
    %20 = arith.maximumf %18, %19 : vector<256x120xf32>
    %c0_21 = arith.constant 0 : index
    %c0_22 = arith.constant 0 : index
    %21 = vector.load %arg13[%c0_21, %c0_22] : memref<256x120xf32, #tpu.memory_space<vmem>>, vector<256x120xf32>
    tpu.vector_store %arg13[%c0_21, %c0_22], %20 {strides = array<i32>} : memref<256x120xf32, #tpu.memory_space<vmem>>, vector<256x120xf32>,
    %c0_23 = arith.constant 0 : index
    %c0_24 = arith.constant 0 : index
    %c0_25 = arith.constant 0 : index
    %22 = vector.load %arg9[%c0_23, %c0_24, %c0_25] : memref<9x256x256xf32, #tpu.memory_space<vmem>>, vector<1x256x256xf32>
    %23 = vector.shape_cast %22 : vector<1x256x256xf32> to vector<256x256xf32>
    %c0_26 = arith.constant 0 : index
    %c9 = arith.constant 9 : index
    %24 = vector.load %arg13[%c0_26, %c9] : memref<256x120xf32, #tpu.memory_space<vmem>>, vector<256x80xf32>
    %cst_27 = arith.constant dense<0.000000e+00> : vector<256x80xf32>
    %25 = tpu.matmul %23, %24, %cst_27 {dimension_numbers = #tpu.dot_dimension_numbers<[1], [0], [0], [1], [0, 0, 1, 1], [], []>} : vector<256x256xf32>, vector<256x80xf32>, vector<256x80xf32> -> vector<256x80xf32>
    %c1 = arith.constant 1 : index
    %c0_28 = arith.constant 0 : index
    %c0_29 = arith.constant 0 : index
    %26 = vector.load %arg9[%c1, %c0_28, %c0_29] : memref<9x256x256xf32, #tpu.memory_space<vmem>>, vector<1x256x256xf32>
    %27 = vector.shape_cast %26 : vector<1x256x256xf32> to vector<256x256xf32>
    %c0_30 = arith.constant 0 : index
    %c10 = arith.constant 10 : index
    %28 = vector.load %arg13[%c0_30, %c10] : memref<256x120xf32, #tpu.memory_space<vmem>>, vector<256x80xf32>
    %cst_31 = arith.constant dense<0.000000e+00> : vector<256x80xf32>
    %29 = tpu.matmul %27, %28, %cst_31 {dimension_numbers = #tpu.dot_dimension_numbers<[1], [0], [0], [1], [0, 0, 1, 1], [], []>} : vector<256x256xf32>, vector<256x80xf32>, vector<256x80xf32> -> vector<256x80xf32>
    %30 = arith.addf %25, %29 : vector<256x80xf32>
    %c2 = arith.constant 2 : index
    %c0_32 = arith.constant 0 : index
    %c0_33 = arith.constant 0 : index
    %31 = vector.load %arg9[%c2, %c0_32, %c0_33] : memref<9x256x256xf32, #tpu.memory_space<vmem>>, vector<1x256x256xf32>
    %32 = vector.shape_cast %31 : vector<1x256x256xf32> to vector<256x256xf32>
    %c0_34 = arith.constant 0 : index
    %c11 = arith.constant 11 : index
    %33 = vector.load %arg13[%c0_34, %c11] : memref<256x120xf32, #tpu.memory_space<vmem>>, vector<256x80xf32>
    %cst_35 = arith.constant dense<0.000000e+00> : vector<256x80xf32>
    %34 = tpu.matmul %32, %33, %cst_35 {dimension_numbers = #tpu.dot_dimension_numbers<[1], [0], [0], [1], [0, 0, 1, 1], [], []>} : vector<256x256xf32>, vector<256x80xf32>, vector<256x80xf32> -> vector<256x80xf32>
    %35 = arith.addf %30, %34 : vector<256x80xf32>
    %c3 = arith.constant 3 : index
    %c0_36 = arith.constant 0 : index
    %c0_37 = arith.constant 0 : index
    %36 = vector.load %arg9[%c3, %c0_36, %c0_37] : memref<9x256x256xf32, #tpu.memory_space<vmem>>, vector<1x256x256xf32>
    %37 = vector.shape_cast %36 : vector<1x256x256xf32> to vector<256x256xf32>
    %c0_38 = arith.constant 0 : index
    %c19 = arith.constant 19 : index
    %38 = vector.load %arg13[%c0_38, %c19] : memref<256x120xf32, #tpu.memory_space<vmem>>, vector<256x80xf32>
    %cst_39 = arith.constant dense<0.000000e+00> : vector<256x80xf32>
    %39 = tpu.matmul %37, %38, %cst_39 {dimension_numbers = #tpu.dot_dimension_numbers<[1], [0], [0], [1], [0, 0, 1, 1], [], []>} : vector<256x256xf32>, vector<256x80xf32>, vector<256x80xf32> -> vector<256x80xf32>
    %40 = arith.addf %35, %39 : vector<256x80xf32>
    %c4 = arith.constant 4 : index
    %c0_40 = arith.constant 0 : index
    %c0_41 = arith.constant 0 : index
    %41 = vector.load %arg9[%c4, %c0_40, %c0_41] : memref<9x256x256xf32, #tpu.memory_space<vmem>>, vector<1x256x256xf32>
    %42 = vector.shape_cast %41 : vector<1x256x256xf32> to vector<256x256xf32>
    %c0_42 = arith.constant 0 : index
    %c20 = arith.constant 20 : index
    %43 = vector.load %arg13[%c0_42, %c20] : memref<256x120xf32, #tpu.memory_space<vmem>>, vector<256x80xf32>
    %cst_43 = arith.constant dense<0.000000e+00> : vector<256x80xf32>
    %44 = tpu.matmul %42, %43, %cst_43 {dimension_numbers = #tpu.dot_dimension_numbers<[1], [0], [0], [1], [0, 0, 1, 1], [], []>} : vector<256x256xf32>, vector<256x80xf32>, vector<256x80xf32> -> vector<256x80xf32>
    %45 = arith.addf %40, %44 : vector<256x80xf32>
    %c5 = arith.constant 5 : index
    %c0_44 = arith.constant 0 : index
    %c0_45 = arith.constant 0 : index
    %46 = vector.load %arg9[%c5, %c0_44, %c0_45] : memref<9x256x256xf32, #tpu.memory_space<vmem>>, vector<1x256x256xf32>
    %47 = vector.shape_cast %46 : vector<1x256x256xf32> to vector<256x256xf32>
    %c0_46 = arith.constant 0 : index
    %c21 = arith.constant 21 : index
    %48 = vector.load %arg13[%c0_46, %c21] : memref<256x120xf32, #tpu.memory_space<vmem>>, vector<256x80xf32>
    %cst_47 = arith.constant dense<0.000000e+00> : vector<256x80xf32>
    %49 = tpu.matmul %47, %48, %cst_47 {dimension_numbers = #tpu.dot_dimension_numbers<[1], [0], [0], [1], [0, 0, 1, 1], [], []>} : vector<256x256xf32>, vector<256x80xf32>, vector<256x80xf32> -> vector<256x80xf32>
    %50 = arith.addf %45, %49 : vector<256x80xf32>
    %c6 = arith.constant 6 : index
    %c0_48 = arith.constant 0 : index
    %c0_49 = arith.constant 0 : index
    %51 = vector.load %arg9[%c6, %c0_48, %c0_49] : memref<9x256x256xf32, #tpu.memory_space<vmem>>, vector<1x256x256xf32>
    %52 = vector.shape_cast %51 : vector<1x256x256xf32> to vector<256x256xf32>
    %c0_50 = arith.constant 0 : index
    %c29 = arith.constant 29 : index
    %53 = vector.load %arg13[%c0_50, %c29] : memref<256x120xf32, #tpu.memory_space<vmem>>, vector<256x80xf32>
    %cst_51 = arith.constant dense<0.000000e+00> : vector<256x80xf32>
    %54 = tpu.matmul %52, %53, %cst_51 {dimension_numbers = #tpu.dot_dimension_numbers<[1], [0], [0], [1], [0, 0, 1, 1], [], []>} : vector<256x256xf32>, vector<256x80xf32>, vector<256x80xf32> -> vector<256x80xf32>
    %55 = arith.addf %50, %54 : vector<256x80xf32>
    %c7 = arith.constant 7 : index
    %c0_52 = arith.constant 0 : index
    %c0_53 = arith.constant 0 : index
    %56 = vector.load %arg9[%c7, %c0_52, %c0_53] : memref<9x256x256xf32, #tpu.memory_space<vmem>>, vector<1x256x256xf32>
    %57 = vector.shape_cast %56 : vector<1x256x256xf32> to vector<256x256xf32>
    %c0_54 = arith.constant 0 : index
    %c30 = arith.constant 30 : index
    %58 = vector.load %arg13[%c0_54, %c30] : memref<256x120xf32, #tpu.memory_space<vmem>>, vector<256x80xf32>
    %cst_55 = arith.constant dense<0.000000e+00> : vector<256x80xf32>
    %59 = tpu.matmul %57, %58, %cst_55 {dimension_numbers = #tpu.dot_dimension_numbers<[1], [0], [0], [1], [0, 0, 1, 1], [], []>} : vector<256x256xf32>, vector<256x80xf32>, vector<256x80xf32> -> vector<256x80xf32>
    %60 = arith.addf %55, %59 : vector<256x80xf32>
    %c8 = arith.constant 8 : index
    %c0_56 = arith.constant 0 : index
    %c0_57 = arith.constant 0 : index
    %61 = vector.load %arg9[%c8, %c0_56, %c0_57] : memref<9x256x256xf32, #tpu.memory_space<vmem>>, vector<1x256x256xf32>
    %62 = vector.shape_cast %61 : vector<1x256x256xf32> to vector<256x256xf32>
    %c0_58 = arith.constant 0 : index
    %c31 = arith.constant 31 : index
    %63 = vector.load %arg13[%c0_58, %c31] : memref<256x120xf32, #tpu.memory_space<vmem>>, vector<256x80xf32>
    %cst_59 = arith.constant dense<0.000000e+00> : vector<256x80xf32>
    %64 = tpu.matmul %62, %63, %cst_59 {dimension_numbers = #tpu.dot_dimension_numbers<[1], [0], [0], [1], [0, 0, 1, 1], [], []>} : vector<256x256xf32>, vector<256x80xf32>, vector<256x80xf32> -> vector<256x80xf32>
    %65 = arith.addf %60, %64 : vector<256x80xf32>
    %c0_60 = arith.constant 0 : index
    %c0_61 = arith.constant 0 : index
    %66 = vector.load %arg10[%c0_60, %c0_61] : memref<80x64xf32, #tpu.memory_space<vmem>>, vector<80x64xf32>
    %cst_62 = arith.constant dense<0.000000e+00> : vector<256x64xf32>
    %67 = tpu.matmul %65, %66, %cst_62 {dimension_numbers = #tpu.dot_dimension_numbers<[1], [0], [0], [1], [0, 0, 1, 1], [], []>} : vector<256x80xf32>, vector<80x64xf32>, vector<256x64xf32> -> vector<256x64xf32>
    %c0_63 = arith.constant 0 : index
    %c0_64 = arith.constant 0 : index
    %68 = vector.load %arg11[%c0_63, %c0_64] : memref<256x1xf32, #tpu.memory_space<vmem>>, vector<256x1xf32>
    %69 = vector.broadcast %68 : vector<256x1xf32> to vector<256x64xf32>
    %70 = arith.addf %67, %69 : vector<256x64xf32>
    %cst_65 = arith.constant 0.000000e+00 : f32
    %71 = vector.broadcast %cst_65 : f32 to vector<256x64xf32>
    %72 = arith.maximumf %70, %71 : vector<256x64xf32>
    %c0_66 = arith.constant 0 : index
    %c0_67 = arith.constant 0 : index
    %c0_68 = arith.constant 0 : index
    %73 = vector.load %arg12[%c0_66, %c0_67, %c0_68] : memref<1x256x64xf32, #tpu.memory_space<vmem>>, vector<1x256x64xf32>
    %74 = vector.shape_cast %73 : vector<1x256x64xf32> to vector<256x64xf32>
    %75 = vector.shape_cast %72 : vector<256x64xf32> to vector<1x256x64xf32>
    tpu.vector_store %arg12[%c0_66, %c0_67, %c0_68], %75 {strides = array<i32>} : memref<1x256x64xf32, #tpu.memory_space<vmem>>, vector<1x256x64xf32>,
    return
  }
  func.func @transform_0(%arg0: i32) -> (i32, i32, i32) {
    %c0_i32 = arith.constant 0 : i32
    %c0_i32_0 = arith.constant 0 : i32
    %c0_i32_1 = arith.constant 0 : i32
    return %arg0, %c0_i32, %c0_i32_0 : i32, i32, i32
  }
  func.func @transform_1(%arg0: i32) -> (i32, i32, i32) {
    %c0_i32 = arith.constant 0 : i32
    %c0_i32_0 = arith.constant 0 : i32
    %c0_i32_1 = arith.constant 0 : i32
    return %arg0, %c0_i32, %c0_i32_0 : i32, i32, i32
  }
  func.func @transform_2(%arg0: i32) -> (i32, i32) {
    %c0_i32 = arith.constant 0 : i32
    %c0_i32_0 = arith.constant 0 : i32
    %c0_i32_1 = arith.constant 0 : i32
    return %c0_i32, %c0_i32_0 : i32, i32
  }
  func.func @transform_3(%arg0: i32) -> (i32, i32) {
    %c0_i32 = arith.constant 0 : i32
    %c0_i32_0 = arith.constant 0 : i32
    %c0_i32_1 = arith.constant 0 : i32
    return %c0_i32, %c0_i32_0 : i32, i32
  }
  func.func @transform_4(%arg0: i32) -> (i32, i32) {
    %c0_i32 = arith.constant 0 : i32
    %c0_i32_0 = arith.constant 0 : i32
    %c0_i32_1 = arith.constant 0 : i32
    return %c0_i32, %c0_i32_0 : i32, i32
  }
  func.func @transform_5(%arg0: i32) -> (i32, i32) {
    %c0_i32 = arith.constant 0 : i32
    %c0_i32_0 = arith.constant 0 : i32
    %c0_i32_1 = arith.constant 0 : i32
    return %c0_i32, %c0_i32_0 : i32, i32
  }
  func.func @transform_6(%arg0: i32) -> (i32, i32) {
    %c0_i32 = arith.constant 0 : i32
    %c0_i32_0 = arith.constant 0 : i32
    %c0_i32_1 = arith.constant 0 : i32
    return %c0_i32, %c0_i32_0 : i32, i32
  }
  func.func @transform_7(%arg0: i32) -> (i32, i32) {
    %c0_i32 = arith.constant 0 : i32
    %c0_i32_0 = arith.constant 0 : i32
    %c0_i32_1 = arith.constant 0 : i32
    return %c0_i32, %c0_i32_0 : i32, i32
  }
  func.func @transform_8(%arg0: i32) -> (i32, i32, i32) {
    %c0_i32 = arith.constant 0 : i32
    %c0_i32_0 = arith.constant 0 : i32
    %c0_i32_1 = arith.constant 0 : i32
    %c0_i32_2 = arith.constant 0 : i32
    return %c0_i32, %c0_i32_0, %c0_i32_1 : i32, i32, i32
  }
  func.func @transform_9(%arg0: i32) -> (i32, i32) {
    %c0_i32 = arith.constant 0 : i32
    %c0_i32_0 = arith.constant 0 : i32
    %c0_i32_1 = arith.constant 0 : i32
    return %c0_i32, %c0_i32_0 : i32, i32
  }
  func.func @transform_10(%arg0: i32) -> (i32, i32) {
    %c0_i32 = arith.constant 0 : i32
    %c0_i32_0 = arith.constant 0 : i32
    %c0_i32_1 = arith.constant 0 : i32
    return %c0_i32, %c0_i32_0 : i32, i32
  }
  func.func @transform_11(%arg0: i32) -> (i32, i32, i32) {
    %c0_i32 = arith.constant 0 : i32
    %c0_i32_0 = arith.constant 0 : i32
    %c0_i32_1 = arith.constant 0 : i32
    return %arg0, %c0_i32, %c0_i32_0 : i32, i32, i32
  }
}

</mosaic_0001>

<bundles_post_ra>
// kernel: base31_forward.1
= control target key start
LH: loop header
LB: loop body
LE: loop exit
PB: predicated region body
PF: predicated region fallthrough
CT: control target
= control target key end

     0   :  { %s10146_s17 = smov 0   ;;  %s14543_s0 = inlined_call_operand.vmem [shape: f32[2,512,16], index: 0, kind: input, shape index: {}]   ;;  %s14544_s1 = inlined_call_operand.vmem [shape: f32[2,512,64], index: 1, kind: input, shape index: {}]   ;;  %s14545_s2 = inlined_call_operand.vmem [shape: f32[16,120], index: 2, kind: input, shape index: {}]   ;;  %s14546_s3 = inlined_call_operand.vmem [shape: f32[64,120], index: 3, kind: input, shape index: {}]   ;;  %s14547_s4 = inlined_call_operand.vmem [shape: f32[1,120], index: 4, kind: input, shape index: {}]   ;;  %s14548_s5 = inlined_call_operand.vmem [shape: f32[256,512], index: 5, kind: input, shape index: {}]   ;;  %s14549_s6 = inlined_call_operand.vmem [shape: f32[256,512], index: 6, kind: input, shape index: {}]   ;;  %s14550_s7 = inlined_call_operand.vmem [shape: f32[256,1], index: 7, kind: input, shape index: {}]   ;;  %s14551_s8 = inlined_call_operand.vmem [shape: f32[9,256,256], index: 8, kind: input, shape index: {}]   ;;  %s14552_s9 = inlined_call_operand.vmem [shape: f32[80,64], index: 9, kind: input, shape index: {}]   ;;  %s14553_s10 = inlined_call_operand.vmem [shape: f32[256,1], index: 10, kind: input, shape index: {}]   ;;  %s14554_s11 = inlined_call_operand.vmem [shape: f32[2,256,64], index: 11, kind: output, shape index: {}]  }
   0x1 LB: > { %s7089_s18 = sadd.s32 4294967295, %s10073_s17   ;;  %p7093_p0 = scmp.ge.s32.totalorder %s10073_s17, 1  ;;  %s10073_s17 = sphi %s10146_s17, %s21_s17  }
   0x2   : > { %p347_p1 = scmp.lt.s32.totalorder %s10073_s17, 3 }
   0x4   : > { %p348_p2 = pnand %p7093_p0, %p347_p1 }
   0x6   : > { %351 = sbr.rel (%p348_p2) target bundleno = 2573 (0xa0d), region = 64 }
   0xd   : > { %p392_p3 = scmp.lt.s32.totalorder %s7089_s18, 1  ;;  %v408_v0 = vld [vmem:[%s14548_s5 + $0x8] sm:$0xff]  ;;  %v14555_v1 = vmov 0.0|0.0   ;;  %v407_v52 = vld [vmem:[%s14548_s5] sm:$0xff]  ;;  %vm1701_vm0 = vcmask 523264   ;;  %vm2023_vm1 = vcmask 130048  }
   0xe   : > { %8014 = vmatprep.subr.bf16.mxu0 %v14555_v1  ;;  %663 = vmatprep.mubr.f32.mxu0 %v408_v0  ;;  %v412_v54 = vld [vmem:[%s14548_s5 + $0x28] sm:$0xff]  ;;  %v411_v57 = vld [vmem:[%s14548_s5 + $0x20] sm:$0xff]  ;;  %vm2640_vm2 = vcmask 982016   ;;  %s10077_s14 = smov 119   ;;  %s10078_s19 = smov 117   ;;  %vm6636_vm3 = vcmask 654336  }
   0xf   : > { %s14642_s18 = smov (!%p392_p3, %s7089_s18), 1  ;;  %8274 = vmatprep.subr.bf16.mxu1 %v14555_v1  ;;  %v416_v59 = vld [vmem:[%s14548_s5 + $0x48] sm:$0xff]  ;;  %v415_v62 = vld [vmem:[%s14548_s5 + $0x40] sm:$0xff]  ;;  %s10079_s20 = smov 109  }
  0x10   : > { %s7711_s21 = sshll.u32 %s14642_s18, 9  ;;  %v420_v0 = vld [vmem:[%s14548_s5 + $0x68] sm:$0xff]  ;;  %s10080_s22 = smov 108  }
  0x11   : > { %s10167_s24 = scalar_lea.vmem %s14543_s0, %s7711_s21  ;;  %s10456_s27 = scalar_lea.vmem %s14544_s1, %s7711_s21 }
  0x12   : > { %v535_v2 = vld [vmem:[%s10167_s24] sm:$0xff]  ;;  %v536_v3 = vld [vmem:[%s10167_s24 + $0x8] sm:$0xff]  ;;  %v537_v4 = vld [vmem:[%s10167_s24 + $0x10] sm:$0xff]  ;;  %s10081_s23 = smov 107   ;;  %s10083_s28 = smov 118  }
  0x13   : > { %v8015_v5 = vpack.c.bf16 %v536_v3, %v535_v2  ;;  %v538_v6 = vld [vmem:[%s10167_s24 + $0x18] sm:$0xff]  ;;  %v539_v8 = vld [vmem:[%s10167_s24 + $0x20] sm:$0xff]  ;;  %v540_v9 = vld [vmem:[%s10167_s24 + $0x28] sm:$0xff]  ;;  %s10084_s16 = smov 98   ;;  %s10085_s13 = smov 97  }
  0x14   : > { %v8018_v7 = vpack.c.bf16 %v538_v6, %v537_v4  ;;  %v8021_v10 = vpack.c.bf16 %v540_v9, %v539_v8  ;;  %v541_v11 = vld [vmem:[%s10167_s24 + $0x30] sm:$0xff]  ;;  %v542_v12 = vld [vmem:[%s10167_s24 + $0x38] sm:$0xff]  ;;  %v543_v14 = vld [vmem:[%s10167_s24 + $0x40] sm:$0xff] }
  0x15   : > { %8016 = vmatpush1.bf16.msra.mxu0 %v8015_v5  ;;  %v8024_v13 = vpack.c.bf16 %v542_v12, %v541_v11  ;;  %v544_v15 = vld [vmem:[%s10167_s24 + $0x48] sm:$0xff]  ;;  %v545_v17 = vld [vmem:[%s10167_s24 + $0x50] sm:$0xff]  ;;  %v546_v18 = vld [vmem:[%s10167_s24 + $0x58] sm:$0xff] }
  0x16   : > { %8017 = vmatprep.subr.bf16.mxu0 %v14555_v1  ;;  %v8027_v16 = vpack.c.bf16 %v544_v15, %v543_v14  ;;  %v8030_v19 = vpack.c.bf16 %v546_v18, %v545_v17  ;;  %v547_v20 = vld [vmem:[%s10167_s24 + $0x60] sm:$0xff]  ;;  %v548_v21 = vld [vmem:[%s10167_s24 + $0x68] sm:$0xff]  ;;  %v549_v23 = vld [vmem:[%s10167_s24 + $0x70] sm:$0xff] }
  0x17   : > { %v8033_v22 = vpack.c.bf16 %v548_v21, %v547_v20  ;;  %v550_v24 = vld [vmem:[%s10167_s24 + $0x78] sm:$0xff]  ;;  %v551_v26 = vld [vmem:[%s10167_s24 + $0x80] sm:$0xff]  ;;  %v552_v27 = vld [vmem:[%s10167_s24 + $0x88] sm:$0xff] }
  0x18   : > { %v8036_v25 = vpack.c.bf16 %v550_v24, %v549_v23  ;;  %v8039_v28 = vpack.c.bf16 %v552_v27, %v551_v26  ;;  %v553_v29 = vld [vmem:[%s10167_s24 + $0x90] sm:$0xff]  ;;  %v554_v30 = vld [vmem:[%s10167_s24 + $0x98] sm:$0xff]  ;;  %v555_v32 = vld [vmem:[%s10167_s24 + $0xa0] sm:$0xff] }
  0x19   : > { %8019 = vmatpush1.bf16.msra.mxu0 %v8018_v7  ;;  %v8042_v31 = vpack.c.bf16 %v554_v30, %v553_v29  ;;  %v556_v33 = vld [vmem:[%s10167_s24 + $0xa8] sm:$0xff]  ;;  %v557_v35 = vld [vmem:[%s10167_s24 + $0xb0] sm:$0xff]  ;;  %v558_v36 = vld [vmem:[%s10167_s24 + $0xb8] sm:$0xff] }
  0x1a   : > { %8020 = vmatprep.subr.bf16.mxu0 %v14555_v1  ;;  %v8045_v34 = vpack.c.bf16 %v556_v33, %v555_v32  ;;  %v8048_v37 = vpack.c.bf16 %v558_v36, %v557_v35  ;;  %v559_v38 = vld [vmem:[%s10167_s24 + $0xc0] sm:$0xff]  ;;  %v560_v39 = vld [vmem:[%s10167_s24 + $0xc8] sm:$0xff]  ;;  %v561_v41 = vld [vmem:[%s10167_s24 + $0xd0] sm:$0xff] }
  0x1b   : > { %v8051_v40 = vpack.c.bf16 %v560_v39, %v559_v38  ;;  %v562_v42 = vld [vmem:[%s10167_s24 + $0xd8] sm:$0xff]  ;;  %v563_v44 = vld [vmem:[%s10167_s24 + $0xe0] sm:$0xff]  ;;  %v564_v45 = vld [vmem:[%s10167_s24 + $0xe8] sm:$0xff] }
  0x1c   : > { %v8054_v43 = vpack.c.bf16 %v562_v42, %v561_v41  ;;  %v8057_v46 = vpack.c.bf16 %v564_v45, %v563_v44  ;;  %v565_v47 = vld [vmem:[%s10167_s24 + $0xf0] sm:$0xff]  ;;  %v566_v48 = vld [vmem:[%s10167_s24 + $0xf8] sm:$0xff]  ;;  %v567_v50 = vld [vmem:[%s10167_s24 + $0x100] sm:$0xff] }
  0x1d   : > { %8022 = vmatpush1.bf16.msra.mxu0 %v8021_v10  ;;  %v8060_v49 = vpack.c.bf16 %v566_v48, %v565_v47  ;;  %v568_v51 = vld [vmem:[%s10167_s24 + $0x108] sm:$0xff]  ;;  %v569_v55 = vld [vmem:[%s10167_s24 + $0x110] sm:$0xff]  ;;  %v570_v56 = vld [vmem:[%s10167_s24 + $0x118] sm:$0xff] }
  0x1e   : > { %8023 = vmatprep.subr.bf16.mxu0 %v14555_v1  ;;  %v8063_v53 = vpack.c.bf16 %v568_v51, %v567_v50  ;;  %v8066_v58 = vpack.c.bf16 %v570_v56, %v569_v55  ;;  %v571_v60 = vld [vmem:[%s10167_s24 + $0x120] sm:$0xff]  ;;  %v572_v61 = vld [vmem:[%s10167_s24 + $0x128] sm:$0xff]  ;;  %v573_v2 = vld [vmem:[%s10167_s24 + $0x130] sm:$0xff] }
  0x1f   : > { %v8069_v63 = vpack.c.bf16 %v572_v61, %v571_v60  ;;  %v574_v3 = vld [vmem:[%s10167_s24 + $0x138] sm:$0xff]  ;;  %v419_v4 = vld [vmem:[%s14548_s5 + $0x60] sm:$0xff]  ;;  %v424_v6 = vld [vmem:[%s14548_s5 + $0x88] sm:$0xff] }
  0x20   : > { %v8072_v5 = vpack.c.bf16 %v574_v3, %v573_v2  ;;  %v575_v7 = vld [vmem:[%s10167_s24 + $0x140] sm:$0xff]  ;;  %v576_v8 = vld [vmem:[%s10167_s24 + $0x148] sm:$0xff]  ;;  %v577_v12 = vld [vmem:[%s10167_s24 + $0x150] sm:$0xff] }
  0x21   : > { %8025 = vmatpush1.bf16.msra.mxu0 %v8024_v13  ;;  %v423_v9 = vld [vmem:[%s14548_s5 + $0x80] sm:$0xff]  ;;  %v8075_v10 = vpack.c.bf16 %v576_v8, %v575_v7  ;;  %v428_v11 = vld [vmem:[%s14548_s5 + $0xa8] sm:$0xff]  ;;  %v578_v13 = vld [vmem:[%s10167_s24 + $0x158] sm:$0xff] }
  0x22   : > { %8026 = vmatprep.subr.bf16.mxu0 %v14555_v1  ;;  %v427_v14 = vld [vmem:[%s14548_s5 + $0xa0] sm:$0xff]  ;;  %v8078_v15 = vpack.c.bf16 %v578_v13, %v577_v12  ;;  %v580_v18 = vld [vmem:[%s10167_s24 + $0x168] sm:$0xff]  ;;  %v582_v23 = vld [vmem:[%s10167_s24 + $0x178] sm:$0xff] }
  0x23   : > { %v579_v17 = vld [vmem:[%s10167_s24 + $0x160] sm:$0xff]  ;;  %v436_v21 = vld [vmem:[%s14548_s5 + $0xe8] sm:$0xff]  ;;  %v585_v32 = vld [vmem:[%s10167_s24 + $0x190] sm:$0xff] }
  0x24   : > { %v8081_v20 = vpack.c.bf16 %v580_v18, %v579_v17  ;;  %v435_v24 = vld [vmem:[%s14548_s5 + $0xe0] sm:$0xff]  ;;  %v440_v26 = vld [vmem:[%s14548_s5 + $0x108] sm:$0xff]  ;;  %v586_v33 = vld [vmem:[%s10167_s24 + $0x198] sm:$0xff] }
  0x25   : > { %8028 = vmatpush1.bf16.msra.mxu0 %v8027_v16  ;;  %v432_v16 = vld [vmem:[%s14548_s5 + $0xc8] sm:$0xff]  ;;  %v583_v27 = vld [vmem:[%s10167_s24 + $0x180] sm:$0xff]  ;;  %v8090_v35 = vpack.c.bf16 %v586_v33, %v585_v32  ;;  %v589_v42 = vld [vmem:[%s10167_s24 + $0x1b0] sm:$0xff] }
  0x26   : > { %8029 = vmatprep.subr.bf16.mxu0 %v14555_v1  ;;  %v439_v29 = vld [vmem:[%s14548_s5 + $0x100] sm:$0xff]  ;;  %v448_v36 = vld [vmem:[%s14548_s5 + $0x148] sm:$0xff] }
  0x27   : > { %v588_v38 = vld [vmem:[%s10167_s24 + $0x1a8] sm:$0xff]  ;;  %v447_v39 = vld [vmem:[%s14548_s5 + $0x140] sm:$0xff] }
  0x28   : > { %v452_v41 = vld [vmem:[%s14548_s5 + $0x168] sm:$0xff]  ;;  %v451_v44 = vld [vmem:[%s14548_s5 + $0x160] sm:$0xff] }
  0x29   : > { %8031 = vmatpush1.bf16.msra.mxu0 %v8030_v19  ;;  %v431_v19 = vld [vmem:[%s14548_s5 + $0xc0] sm:$0xff]  ;;  %v592_v48 = vld [vmem:[%s10167_s24 + $0x1c8] sm:$0xff] }
  0x2a   : > { %8032 = vmatprep.subr.bf16.mxu0 %v14555_v1  ;;  %v591_v47 = vld [vmem:[%s10167_s24 + $0x1c0] sm:$0xff]  ;;  %v460_v51 = vld [vmem:[%s14548_s5 + $0x1a8] sm:$0xff] }
  0x2b   : > { %v8099_v50 = vpack.c.bf16 %v592_v48, %v591_v47  ;;  %v464_v56 = vld [vmem:[%s14548_s5 + $0x1c8] sm:$0xff]  ;;  %v479_v8 = vld [vmem:[%s14548_s5 + $0x240] sm:$0xff]  ;;  %v417_v48 = vld [vmem:[%s14548_s5 + $0x50] sm:$0xff] }
  0x2c   : > { %v468_v61 = vld [vmem:[%s14548_s5 + $0x1e8] sm:$0xff]  ;;  %v487_v12 = vld [vmem:[%s14548_s5 + $0x280] sm:$0xff] }
  0x2d   : > { %8034 = vmatpush1.bf16.msra.mxu0 %v8033_v22  ;;  %v581_v22 = vld [vmem:[%s10167_s24 + $0x170] sm:$0xff]  ;;  %v472_v3 = vld [vmem:[%s14548_s5 + $0x208] sm:$0xff]  ;;  %v499_v18 = vld [vmem:[%s14548_s5 + $0x2e0] sm:$0xff] }
  0x2e   : > { %8035 = vmatprep.subr.bf16.mxu0 %v14555_v1  ;;  %v480_v7 = vld [vmem:[%s14548_s5 + $0x248] sm:$0xff]  ;;  %v527_v32 = vld [vmem:[%s14548_s5 + $0x3c0] sm:$0xff] }
  0x2f   : > { %v492_v13 = vld [vmem:[%s14548_s5 + $0x2a8] sm:$0xff] }
  0x30   : > { %v500_v17 = vld [vmem:[%s14548_s5 + $0x2e8] sm:$0xff] }
  0x31   : > { %8037 = vmatpush1.bf16.msra.mxu0 %v8036_v25  ;;  %v8084_v25 = vpack.c.bf16 %v582_v23, %v581_v22  ;;  %v507_v22 = vld [vmem:[%s14548_s5 + $0x320] sm:$0xff]  ;;  %v512_v23 = vld [vmem:[%s14548_s5 + $0x348] sm:$0xff] }
  0x32   : > { %8038 = vmatprep.subr.bf16.mxu0 %v14555_v1  ;;  %v532_v33 = vld [vmem:[%s14548_s5 + $0x3e8] sm:$0xff] }
  0x33   : > { %v1182_v47 = vld [vmem:[%s10456_s27 + $0x28] sm:$0xff] }
  0x35   : > { %8040 = vmatpush1.bf16.msra.mxu0 %v8039_v28  ;;  %v584_v28 = vld [vmem:[%s10167_s24 + $0x188] sm:$0xff] }
  0x36   : > { %8041 = vmatprep.subr.bf16.mxu0 %v14555_v1  ;;  %v8087_v30 = vpack.c.bf16 %v584_v28, %v583_v27  ;;  %v520_v27 = vld [vmem:[%s14548_s5 + $0x388] sm:$0xff]  ;;  %v519_v28 = vld [vmem:[%s14548_s5 + $0x380] sm:$0xff] }
  0x39   : > { %8043 = vmatpush1.bf16.msra.mxu0 %v8042_v31  ;;  %v444_v31 = vld [vmem:[%s14548_s5 + $0x128] sm:$0xff] }
  0x3a   : > { %8044 = vmatprep.subr.bf16.mxu0 %v14555_v1 }
  0x3d   : > { %8046 = vmatpush1.bf16.msra.mxu0 %v8045_v34  ;;  %v443_v34 = vld [vmem:[%s14548_s5 + $0x120] sm:$0xff] }
  0x3e   : > { %8047 = vmatprep.subr.bf16.mxu0 %v14555_v1 }
  0x41   : > { %8049 = vmatpush1.bf16.msra.mxu0 %v8048_v37  ;;  %v587_v37 = vld [vmem:[%s10167_s24 + $0x1a0] sm:$0xff] }
  0x42   : > { %8050 = vmatprep.subr.bf16.mxu0 %v14555_v1 }
  0x45   : > { %8052 = vmatpush1.bf16.msra.mxu0 %v8051_v40  ;;  %v8093_v40 = vpack.c.bf16 %v588_v38, %v587_v37  ;;  %v1178_v37 = vld [vmem:[%s10456_s27 + $0x8] sm:$0xff]  ;;  %v409_v38 = vld [vmem:[%s14548_s5 + $0x10] sm:$0xff] }
  0x46   : > { %8053 = vmatprep.subr.bf16.mxu0 %v14555_v1 }
  0x49   : > { %8055 = vmatpush1.bf16.msra.mxu0 %v8054_v43  ;;  %v590_v43 = vld [vmem:[%s10167_s24 + $0x1b8] sm:$0xff] }
  0x4a   : > { %8056 = vmatprep.subr.bf16.mxu0 %v14555_v1  ;;  %v8096_v45 = vpack.c.bf16 %v590_v43, %v589_v42  ;;  %v1180_v42 = vld [vmem:[%s10456_s27 + $0x18] sm:$0xff]  ;;  %v413_v43 = vld [vmem:[%s14548_s5 + $0x30] sm:$0xff] }
  0x4d   : > { %8058 = vmatpush1.bf16.msra.mxu0 %v8057_v46  ;;  %v456_v46 = vld [vmem:[%s14548_s5 + $0x188] sm:$0xff] }
  0x4e   : > { %8059 = vmatprep.subr.bf16.mxu0 %v14555_v1 }
  0x51   : > { %8061 = vmatpush1.bf16.msra.mxu0 %v8060_v49  ;;  %v455_v49 = vld [vmem:[%s14548_s5 + $0x180] sm:$0xff] }
  0x52   : > { %8062 = vmatprep.subr.bf16.mxu0 %v14555_v1 }
  0x54   : > { %664 = vmatmul.mubr.f32.vlgmr.msra.gmra.mrb[0].mxu0 %v407_v52  ;;  %v593_v52 = vld [vmem:[%s10167_s24 + $0x1d0] sm:$0xff] }
  0x55   : > { %8064 = vmatpush1.bf16.msra.mxu0 %v8063_v53  ;;  %668 = vmatprep.mubr.f32.mxu0 %v412_v54  ;;  %v594_v53 = vld [vmem:[%s10167_s24 + $0x1d8] sm:$0xff]  ;;  %v459_v54 = vld [vmem:[%s14548_s5 + $0x1a0] sm:$0xff] }
  0x56   : > { %8065 = vmatprep.subr.bf16.mxu0 %v14555_v1  ;;  %v8102_v55 = vpack.c.bf16 %v594_v53, %v593_v52  ;;  %v1184_v52 = vld [vmem:[%s10456_s27 + $0x38] sm:$0xff]  ;;  %v421_v53 = vld [vmem:[%s14548_s5 + $0x70] sm:$0xff] }
  0x58   : > { %669 = vmatmul.mubr.f32.gmra.mrb[2].mxu0 %v411_v57  ;;  %v595_v57 = vld [vmem:[%s10167_s24 + $0x1e0] sm:$0xff] }
  0x59   : > { %673 = vmatprep.mubr.f32.mxu0 %v416_v59  ;;  %8067 = vmatpush1.bf16.msra.mxu0 %v8066_v58  ;;  %v596_v58 = vld [vmem:[%s10167_s24 + $0x1e8] sm:$0xff]  ;;  %v463_v59 = vld [vmem:[%s14548_s5 + $0x1c0] sm:$0xff] }
  0x5a   : > { %8068 = vmatprep.subr.bf16.mxu0 %v14555_v1  ;;  %v8105_v60 = vpack.c.bf16 %v596_v58, %v595_v57  ;;  %v1186_v57 = vld [vmem:[%s10456_s27 + $0x48] sm:$0xff]  ;;  %v425_v58 = vld [vmem:[%s14548_s5 + $0x90] sm:$0xff] }
  0x5c   : > { %674 = vmatmul.mubr.f32.gmra.mrb[4].mxu0 %v415_v62  ;;  %v597_v62 = vld [vmem:[%s10167_s24 + $0x1f0] sm:$0xff] }
  0x5d   : > { %678 = vmatprep.mubr.f32.mxu0 %v420_v0  ;;  %8070 = vmatpush1.bf16.msra.mxu0 %v8069_v63  ;;  %v598_v63 = vld [vmem:[%s10167_s24 + $0x1f8] sm:$0xff]  ;;  %v467_v0 = vld [vmem:[%s14548_s5 + $0x1e0] sm:$0xff]  ;;  %s7713_s24 = sshll.u32 %s14642_s18, 8 }
  0x5e   : > { %8071 = vmatprep.subr.bf16.mxu0 %v14555_v1  ;;  %v8108_v2 = vpack.c.bf16 %v598_v63, %v597_v62  ;;  %v1188_v62 = vld [vmem:[%s10456_s27 + $0x58] sm:$0xff]  ;;  %v429_v63 = vld [vmem:[%s14548_s5 + $0xb0] sm:$0xff] }
  0x60   : > { %679 = vmatmul.mubr.f32.gmra.mrb[6].mxu0 %v419_v4  ;;  %v471_v4 = vld [vmem:[%s14548_s5 + $0x200] sm:$0xff] }
  0x61   : > { %683 = vmatprep.mubr.f32.mxu0 %v424_v6  ;;  %8073 = vmatpush1.bf16.msra.mxu0 %v8072_v5  ;;  %v476_v5 = vld [vmem:[%s14548_s5 + $0x228] sm:$0xff]  ;;  %v475_v6 = vld [vmem:[%s14548_s5 + $0x220] sm:$0xff] }
  0x62   : > { %8074 = vmatprep.subr.bf16.mxu0 %v14555_v1 }
  0x64   : > { %684 = vmatmul.mubr.f32.gmra.mrb[8].mxu0 %v423_v9  ;;  %v484_v9 = vld [vmem:[%s14548_s5 + $0x268] sm:$0xff] }
  0x65   : > { %688 = vmatprep.mubr.f32.mxu0 %v428_v11  ;;  %8076 = vmatpush1.bf16.msra.mxu0 %v8075_v10  ;;  %v483_v10 = vld [vmem:[%s14548_s5 + $0x260] sm:$0xff]  ;;  %v488_v11 = vld [vmem:[%s14548_s5 + $0x288] sm:$0xff] }
  0x66   : > { %8077 = vmatprep.subr.bf16.mxu0 %v14555_v1 }
  0x68   : > { %689 = vmatmul.mubr.f32.gmra.mrb[10].mxu0 %v427_v14  ;;  %v491_v14 = vld [vmem:[%s14548_s5 + $0x2a0] sm:$0xff] }
  0x69   : > { %693 = vmatprep.mubr.f32.mxu0 %v432_v16  ;;  %8079 = vmatpush1.bf16.msra.mxu0 %v8078_v15  ;;  %v496_v15 = vld [vmem:[%s14548_s5 + $0x2c8] sm:$0xff]  ;;  %v495_v16 = vld [vmem:[%s14548_s5 + $0x2c0] sm:$0xff] }
  0x6a   : > { %8080 = vmatprep.subr.bf16.mxu0 %v14555_v1 }
  0x6c   : > { %694 = vmatmul.mubr.f32.gmra.mrb[12].mxu0 %v431_v19  ;;  %v504_v19 = vld [vmem:[%s14548_s5 + $0x308] sm:$0xff] }
  0x6d   : > { %698 = vmatprep.mubr.f32.mxu0 %v436_v21  ;;  %8082 = vmatpush1.bf16.msra.mxu0 %v8081_v20  ;;  %v503_v20 = vld [vmem:[%s14548_s5 + $0x300] sm:$0xff]  ;;  %v508_v21 = vld [vmem:[%s14548_s5 + $0x328] sm:$0xff] }
  0x6e   : > { %8083 = vmatprep.subr.bf16.mxu0 %v14555_v1 }
  0x70   : > { %699 = vmatmul.mubr.f32.gmra.mrb[14].mxu0 %v435_v24  ;;  %v511_v24 = vld [vmem:[%s14548_s5 + $0x340] sm:$0xff] }
  0x71   : > { %703 = vmatprep.mubr.f32.mxu0 %v440_v26  ;;  %8085 = vmatpush1.bf16.msra.mxu0 %v8084_v25  ;;  %v516_v25 = vld [vmem:[%s14548_s5 + $0x368] sm:$0xff]  ;;  %v515_v26 = vld [vmem:[%s14548_s5 + $0x360] sm:$0xff] }
  0x72   : > { %8086 = vmatprep.subr.bf16.mxu0 %v14555_v1 }
  0x74   : > { %704 = vmatmul.mubr.f32.gmra.mrb[16].mxu0 %v439_v29  ;;  %v524_v29 = vld [vmem:[%s14548_s5 + $0x3a8] sm:$0xff] }
  0x75   : > { %708 = vmatprep.mubr.f32.mxu0 %v444_v31  ;;  %8088 = vmatpush1.bf16.msra.mxu0 %v8087_v30  ;;  %v523_v30 = vld [vmem:[%s14548_s5 + $0x3a0] sm:$0xff]  ;;  %v528_v31 = vld [vmem:[%s14548_s5 + $0x3c8] sm:$0xff] }
  0x76   : > { %8089 = vmatprep.subr.bf16.mxu0 %v14555_v1 }
  0x78   : > { %709 = vmatmul.mubr.f32.gmra.mrb[18].mxu0 %v443_v34  ;;  %v531_v34 = vld [vmem:[%s14548_s5 + $0x3e0] sm:$0xff] }
  0x79   : > { %713 = vmatprep.mubr.f32.mxu0 %v448_v36  ;;  %8091 = vmatpush1.bf16.msra.mxu0 %v8090_v35  ;;  %v410_v35 = vld [vmem:[%s14548_s5 + $0x18] sm:$0xff]  ;;  %v1177_v36 = vld [vmem:[%s10456_s27] sm:$0xff] }
  0x7a   : > { %8092 = vmatprep.subr.bf16.mxu0 %v14555_v1 }
  0x7c   : > { %714 = vmatmul.mubr.f32.gmra.mrb[20].mxu0 %v447_v39  ;;  %v8111_v39 = vpack.c.bf16 %v1178_v37, %v1177_v36  ;;  %v462_v37 = vld [vmem:[%s14548_s5 + $0x1b8] sm:$0xff] }
  0x7d   : > { %718 = vmatprep.mubr.f32.mxu0 %v452_v41  ;;  %8094 = vmatpush1.bf16.msra.mxu0 %v8093_v40  ;;  %v414_v40 = vld [vmem:[%s14548_s5 + $0x38] sm:$0xff]  ;;  %v1179_v41 = vld [vmem:[%s10456_s27 + $0x10] sm:$0xff] }
  0x7e   : > { %8095 = vmatprep.subr.bf16.mxu0 %v14555_v1 }
  0x80   : > { %719 = vmatmul.mubr.f32.gmra.mrb[22].mxu0 %v451_v44  ;;  %v8114_v44 = vpack.c.bf16 %v1180_v42, %v1179_v41  ;;  %v466_v42 = vld [vmem:[%s14548_s5 + $0x1d8] sm:$0xff] }
  0x81   : > { %723 = vmatprep.mubr.f32.mxu0 %v456_v46  ;;  %8097 = vmatpush1.bf16.msra.mxu0 %v8096_v45  ;;  %v418_v45 = vld [vmem:[%s14548_s5 + $0x58] sm:$0xff]  ;;  %v1181_v46 = vld [vmem:[%s10456_s27 + $0x20] sm:$0xff] }
  0x82   : > { %8098 = vmatprep.subr.bf16.mxu0 %v14555_v1 }
  0x84   : > { %724 = vmatmul.mubr.f32.gmra.mrb[24].mxu0 %v455_v49  ;;  %v8117_v49 = vpack.c.bf16 %v1182_v47, %v1181_v46  ;;  %v470_v47 = vld [vmem:[%s14548_s5 + $0x1f8] sm:$0xff] }
  0x85   : > { %728 = vmatprep.mubr.f32.mxu0 %v460_v51  ;;  %8100 = vmatpush1.bf16.msra.mxu0 %v8099_v50  ;;  %v422_v50 = vld [vmem:[%s14548_s5 + $0x78] sm:$0xff]  ;;  %v1183_v51 = vld [vmem:[%s10456_s27 + $0x30] sm:$0xff] }
  0x86   : > { %8101 = vmatprep.subr.bf16.mxu0 %v14555_v1 }
  0x88   : > { %729 = vmatmul.mubr.f32.gmra.mrb[26].mxu0 %v459_v54  ;;  %v8120_v54 = vpack.c.bf16 %v1184_v52, %v1183_v51  ;;  %v474_v52 = vld [vmem:[%s14548_s5 + $0x218] sm:$0xff] }
  0x89   : > { %733 = vmatprep.mubr.f32.mxu0 %v464_v56  ;;  %8103 = vmatpush1.bf16.msra.mxu0 %v8102_v55  ;;  %v426_v55 = vld [vmem:[%s14548_s5 + $0x98] sm:$0xff]  ;;  %v1185_v56 = vld [vmem:[%s10456_s27 + $0x40] sm:$0xff] }
  0x8a   : > { %8104 = vmatprep.subr.bf16.mxu0 %v14555_v1 }
  0x8c   : > { %734 = vmatmul.mubr.f32.gmra.mrb[28].mxu0 %v463_v59  ;;  %v8123_v59 = vpack.c.bf16 %v1186_v57, %v1185_v56  ;;  %v482_v56 = vld [vmem:[%s14548_s5 + $0x258] sm:$0xff]  ;;  %v481_v57 = vld [vmem:[%s14548_s5 + $0x250] sm:$0xff] }
  0x8d   : > { %738 = vmatprep.mubr.f32.mxu0 %v468_v61  ;;  %8106 = vmatpush1.bf16.msra.mxu0 %v8105_v60  ;;  %v430_v60 = vld [vmem:[%s14548_s5 + $0xb8] sm:$0xff]  ;;  %v1187_v61 = vld [vmem:[%s10456_s27 + $0x50] sm:$0xff] }
  0x8e   : > { %8107 = vmatprep.subr.bf16.mxu0 %v14555_v1 }
  0x90   : > { %739 = vmatmul.mubr.f32.gmra.mrb[30].mxu0 %v467_v0  ;;  %v8126_v0 = vpack.c.bf16 %v1188_v62, %v1187_v61  ;;  %v489_v61 = vld [vmem:[%s14548_s5 + $0x290] sm:$0xff]  ;;  %v494_v62 = vld [vmem:[%s14548_s5 + $0x2b8] sm:$0xff] }
  0x91   : > { %743 = vmatprep.mubr.f32.mxu0 %v472_v3  ;;  %8109 = vmatpush1.bf16.msra.mxu0 %v8108_v2  ;;  %v434_v2 = vld [vmem:[%s14548_s5 + $0xd8] sm:$0xff]  ;;  %v1189_v3 = vld [vmem:[%s10456_s27 + $0x60] sm:$0xff] }
  0x92   : > { %8110 = vmatprep.subr.bf16.mxu0 %v14555_v1 }
  0x94   : > { %744 = vmatmul.mubr.f32.gmra.mrb[32].mxu0 %v471_v4  ;;  %v1190_v4 = vld [vmem:[%s10456_s27 + $0x68] sm:$0xff] }
  0x95   : > { %748 = vmatprep.mubr.f32.mxu0 %v476_v5  ;;  %v433_v5 = vld [vmem:[%s14548_s5 + $0xd0] sm:$0xff] }
  0x98   : > { %749 = vmatmul.mubr.f32.gmra.mrb[34].mxu0 %v475_v6  ;;  %v8129_v6 = vpack.c.bf16 %v1190_v4, %v1189_v3  ;;  %v502_v3 = vld [vmem:[%s14548_s5 + $0x2f8] sm:$0xff]  ;;  %v501_v4 = vld [vmem:[%s14548_s5 + $0x2f0] sm:$0xff] }
  0x99   : > { %753 = vmatprep.mubr.f32.mxu0 %v480_v7  ;;  %v438_v7 = vld [vmem:[%s14548_s5 + $0xf8] sm:$0xff] }
  0x9c   : > { %754 = vmatmul.mubr.f32.gmra.mrb[36].mxu0 %v479_v8  ;;  %v1191_v8 = vld [vmem:[%s10456_s27 + $0x70] sm:$0xff] }
  0x9d   : > { %758 = vmatprep.mubr.f32.mxu0 %v484_v9  ;;  %v1192_v9 = vld [vmem:[%s10456_s27 + $0x78] sm:$0xff] }
  0xa0   : > { %759 = vmatmul.mubr.f32.gmra.mrb[38].mxu0 %v483_v10  ;;  %v437_v10 = vld [vmem:[%s14548_s5 + $0xf0] sm:$0xff] }
  0xa1   : > { %763 = vmatprep.mubr.f32.mxu0 %v488_v11  ;;  %v8132_v11 = vpack.c.bf16 %v1192_v9, %v1191_v8  ;;  %v509_v8 = vld [vmem:[%s14548_s5 + $0x330] sm:$0xff]  ;;  %v514_v9 = vld [vmem:[%s14548_s5 + $0x358] sm:$0xff] }
  0xa4   : > { %764 = vmatmul.mubr.f32.gmra.mrb[40].mxu0 %v487_v12  ;;  %v442_v12 = vld [vmem:[%s14548_s5 + $0x118] sm:$0xff] }
  0xa5   : > { %768 = vmatprep.mubr.f32.mxu0 %v492_v13  ;;  %v1193_v13 = vld [vmem:[%s10456_s27 + $0x80] sm:$0xff] }
  0xa8   : > { %769 = vmatmul.mubr.f32.gmra.mrb[42].mxu0 %v491_v14  ;;  %v1194_v14 = vld [vmem:[%s10456_s27 + $0x88] sm:$0xff] }
  0xa9   : > { %773 = vmatprep.mubr.f32.mxu0 %v496_v15  ;;  %v441_v15 = vld [vmem:[%s14548_s5 + $0x110] sm:$0xff] }
  0xac   : > { %774 = vmatmul.mubr.f32.gmra.mrb[44].mxu0 %v495_v16  ;;  %v8135_v16 = vpack.c.bf16 %v1194_v14, %v1193_v13  ;;  %v522_v13 = vld [vmem:[%s14548_s5 + $0x398] sm:$0xff]  ;;  %v521_v14 = vld [vmem:[%s14548_s5 + $0x390] sm:$0xff] }
  0xad   : > { %778 = vmatprep.mubr.f32.mxu0 %v500_v17  ;;  %v446_v17 = vld [vmem:[%s14548_s5 + $0x138] sm:$0xff] }
  0xb0   : > { %779 = vmatmul.mubr.f32.gmra.mrb[46].mxu0 %v499_v18  ;;  %v1195_v18 = vld [vmem:[%s10456_s27 + $0x90] sm:$0xff] }
  0xb1   : > { %783 = vmatprep.mubr.f32.mxu0 %v504_v19  ;;  %v1196_v19 = vld [vmem:[%s10456_s27 + $0x98] sm:$0xff] }
  0xb4   : > { %784 = vmatmul.mubr.f32.gmra.mrb[48].mxu0 %v503_v20  ;;  %v445_v20 = vld [vmem:[%s14548_s5 + $0x130] sm:$0xff] }
  0xb5   : > { %788 = vmatprep.mubr.f32.mxu0 %v508_v21  ;;  %v8138_v21 = vpack.c.bf16 %v1196_v19, %v1195_v18  ;;  %v529_v18 = vld [vmem:[%s14548_s5 + $0x3d0] sm:$0xff]  ;;  %v534_v19 = vld [vmem:[%s14548_s5 + $0x3f8] sm:$0xff] }
  0xb8   : > { %789 = vmatmul.mubr.f32.gmra.mrb[50].mxu0 %v507_v22  ;;  %v450_v22 = vld [vmem:[%s14548_s5 + $0x158] sm:$0xff] }
  0xb9   : > { %793 = vmatprep.mubr.f32.mxu0 %v512_v23  ;;  %v1197_v23 = vld [vmem:[%s10456_s27 + $0xa0] sm:$0xff] }
  0xbc   : > { %794 = vmatmul.mubr.f32.gmra.mrb[52].mxu0 %v511_v24  ;;  %v1198_v24 = vld [vmem:[%s10456_s27 + $0xa8] sm:$0xff] }
  0xbd   : > { %798 = vmatprep.mubr.f32.mxu0 %v516_v25  ;;  %v449_v25 = vld [vmem:[%s14548_s5 + $0x150] sm:$0xff] }
  0xc0   : > { %799 = vmatmul.mubr.f32.gmra.mrb[54].mxu0 %v515_v26  ;;  %v8141_v26 = vpack.c.bf16 %v1198_v24, %v1197_v23  ;;  %v1210_v23 = vld [vmem:[%s10456_s27 + $0x108] sm:$0xff]  ;;  %v1049_v24 = vld [vmem:[%s14549_s6] sm:$0xff] }
  0xc1   : > { %803 = vmatprep.mubr.f32.mxu0 %v520_v27  ;;  %v454_v27 = vld [vmem:[%s14548_s5 + $0x178] sm:$0xff] }
  0xc4   : > { %804 = vmatmul.mubr.f32.gmra.mrb[56].mxu0 %v519_v28  ;;  %v1199_v28 = vld [vmem:[%s10456_s27 + $0xb0] sm:$0xff] }
  0xc5   : > { %808 = vmatprep.mubr.f32.mxu0 %v524_v29  ;;  %v1200_v29 = vld [vmem:[%s10456_s27 + $0xb8] sm:$0xff] }
  0xc8   : > { %809 = vmatmul.mubr.f32.gmra.mrb[58].mxu0 %v523_v30  ;;  %v453_v30 = vld [vmem:[%s14548_s5 + $0x170] sm:$0xff] }
  0xc9   : > { %813 = vmatprep.mubr.f32.mxu0 %v528_v31  ;;  %v8144_v31 = vpack.c.bf16 %v1200_v29, %v1199_v28  ;;  %v1212_v28 = vld [vmem:[%s10456_s27 + $0x118] sm:$0xff]  ;;  %v1053_v29 = vld [vmem:[%s14549_s6 + $0x20] sm:$0xff] }
  0xcc   : > { %814 = vmatmul.mubr.f32.gmra.mrb[60].mxu0 %v527_v32  ;;  %v458_v32 = vld [vmem:[%s14548_s5 + $0x198] sm:$0xff] }
  0xcd   : > { %818 = vmatprep.mubr.f32.mxu0 %v532_v33  ;;  %v1201_v33 = vld [vmem:[%s10456_s27 + $0xc0] sm:$0xff] }
  0xd0   : > { %819 = vmatmul.mubr.f32.gmra.mrb[62].mxu0 %v531_v34  ;;  %v1202_v34 = vld [vmem:[%s10456_s27 + $0xc8] sm:$0xff] }
  0xd1   : > { %888 = vmatprep.mubr.f32.mxu0 %v410_v35  ;;  %v457_v35 = vld [vmem:[%s14548_s5 + $0x190] sm:$0xff]  ;;  %v8147_v36 = vpack.c.bf16 %v1202_v34, %v1201_v33  ;;  %v1214_v33 = vld [vmem:[%s10456_s27 + $0x128] sm:$0xff]  ;;  %v1057_v34 = vld [vmem:[%s14549_s6 + $0x40] sm:$0xff] }
  0xd4   : > { %889 = vmatmul.mubr.f32.vlgmr.msra.gmra.mrb[0].mxu0 %v409_v38  ;;  %v1203_v38 = vld [vmem:[%s10456_s27 + $0xd0] sm:$0xff] }
  0xd5   : > { %8112 = vmatpush1.bf16.msra.mxu0 %v8111_v39  ;;  %893 = vmatprep.mubr.f32.mxu0 %v414_v40  ;;  %v1204_v39 = vld [vmem:[%s10456_s27 + $0xd8] sm:$0xff]  ;;  %v461_v40 = vld [vmem:[%s14548_s5 + $0x1b0] sm:$0xff] }
  0xd6   : > { %8113 = vmatprep.subr.bf16.mxu0 %v14555_v1  ;;  %v8150_v41 = vpack.c.bf16 %v1204_v39, %v1203_v38  ;;  %v1216_v38 = vld [vmem:[%s10456_s27 + $0x138] sm:$0xff]  ;;  %v1061_v39 = vld [vmem:[%s14549_s6 + $0x60] sm:$0xff] }
  0xd8   : > { %894 = vmatmul.mubr.f32.gmra.mrb[2].mxu0 %v413_v43  ;;  %v1205_v43 = vld [vmem:[%s10456_s27 + $0xe0] sm:$0xff] }
  0xd9   : > { %898 = vmatprep.mubr.f32.mxu0 %v418_v45  ;;  %8115 = vmatpush1.bf16.msra.mxu0 %v8114_v44  ;;  %v1206_v44 = vld [vmem:[%s10456_s27 + $0xe8] sm:$0xff]  ;;  %v465_v45 = vld [vmem:[%s14548_s5 + $0x1d0] sm:$0xff] }
  0xda   : > { %8116 = vmatprep.subr.bf16.mxu0 %v14555_v1  ;;  %v8153_v46 = vpack.c.bf16 %v1206_v44, %v1205_v43  ;;  %v1218_v43 = vld [vmem:[%s10456_s27 + $0x148] sm:$0xff]  ;;  %v1065_v44 = vld [vmem:[%s14549_s6 + $0x80] sm:$0xff] }
  0xdc   : > { %899 = vmatmul.mubr.f32.gmra.mrb[4].mxu0 %v417_v48  ;;  %v1207_v48 = vld [vmem:[%s10456_s27 + $0xf0] sm:$0xff] }
  0xdd   : > { %903 = vmatprep.mubr.f32.mxu0 %v422_v50  ;;  %8118 = vmatpush1.bf16.msra.mxu0 %v8117_v49  ;;  %v1208_v49 = vld [vmem:[%s10456_s27 + $0xf8] sm:$0xff]  ;;  %v469_v50 = vld [vmem:[%s14548_s5 + $0x1f0] sm:$0xff] }
  0xde   : > { %8119 = vmatprep.subr.bf16.mxu0 %v14555_v1  ;;  %v8156_v51 = vpack.c.bf16 %v1208_v49, %v1207_v48  ;;  %v1220_v48 = vld [vmem:[%s10456_s27 + $0x158] sm:$0xff]  ;;  %v1069_v49 = vld [vmem:[%s14549_s6 + $0xa0] sm:$0xff] }
  0xe0   : > { %904 = vmatmul.mubr.f32.gmra.mrb[6].mxu0 %v421_v53  ;;  %v473_v53 = vld [vmem:[%s14548_s5 + $0x210] sm:$0xff] }
  0xe1   : > { %908 = vmatprep.mubr.f32.mxu0 %v426_v55  ;;  %8121 = vmatpush1.bf16.msra.mxu0 %v8120_v54  ;;  %v478_v54 = vld [vmem:[%s14548_s5 + $0x238] sm:$0xff]  ;;  %v477_v55 = vld [vmem:[%s14548_s5 + $0x230] sm:$0xff] }
  0xe2   : > { %8122 = vmatprep.subr.bf16.mxu0 %v14555_v1 }
  0xe4   : > { %909 = vmatmul.mubr.f32.gmra.mrb[8].mxu0 %v425_v58  ;;  %v486_v58 = vld [vmem:[%s14548_s5 + $0x278] sm:$0xff] }
  0xe5   : > { %913 = vmatprep.mubr.f32.mxu0 %v430_v60  ;;  %8124 = vmatpush1.bf16.msra.mxu0 %v8123_v59  ;;  %v485_v59 = vld [vmem:[%s14548_s5 + $0x270] sm:$0xff]  ;;  %v490_v60 = vld [vmem:[%s14548_s5 + $0x298] sm:$0xff] }
  0xe6   : > { %8125 = vmatprep.subr.bf16.mxu0 %v14555_v1 }
  0xe8   : > { %914 = vmatmul.mubr.f32.gmra.mrb[10].mxu0 %v429_v63  ;;  %v493_v63 = vld [vmem:[%s14548_s5 + $0x2b0] sm:$0xff] }
  0xe9   : > { %918 = vmatprep.mubr.f32.mxu0 %v434_v2  ;;  %8127 = vmatpush1.bf16.msra.mxu0 %v8126_v0  ;;  %v498_v0 = vld [vmem:[%s14548_s5 + $0x2d8] sm:$0xff]  ;;  %v497_v2 = vld [vmem:[%s14548_s5 + $0x2d0] sm:$0xff] }
  0xea   : > { %8128 = vmatprep.subr.bf16.mxu0 %v14555_v1 }
  0xec   : > { %919 = vmatmul.mubr.f32.gmra.mrb[12].mxu0 %v433_v5  ;;  %v506_v5 = vld [vmem:[%s14548_s5 + $0x318] sm:$0xff] }
  0xed   : > { %923 = vmatprep.mubr.f32.mxu0 %v438_v7  ;;  %8130 = vmatpush1.bf16.msra.mxu0 %v8129_v6  ;;  %v505_v6 = vld [vmem:[%s14548_s5 + $0x310] sm:$0xff]  ;;  %v510_v7 = vld [vmem:[%s14548_s5 + $0x338] sm:$0xff] }
  0xee   : > { %8131 = vmatprep.subr.bf16.mxu0 %v14555_v1 }
  0xf0   : > { %924 = vmatmul.mubr.f32.gmra.mrb[14].mxu0 %v437_v10  ;;  %v513_v10 = vld [vmem:[%s14548_s5 + $0x350] sm:$0xff] }
  0xf1   : > { %928 = vmatprep.mubr.f32.mxu0 %v442_v12  ;;  %8133 = vmatpush1.bf16.msra.mxu0 %v8132_v11  ;;  %v518_v11 = vld [vmem:[%s14548_s5 + $0x378] sm:$0xff]  ;;  %v517_v12 = vld [vmem:[%s14548_s5 + $0x370] sm:$0xff] }
  0xf2   : > { %8134 = vmatprep.subr.bf16.mxu0 %v14555_v1 }
  0xf4   : > { %929 = vmatmul.mubr.f32.gmra.mrb[16].mxu0 %v441_v15  ;;  %v526_v15 = vld [vmem:[%s14548_s5 + $0x3b8] sm:$0xff] }
  0xf5   : > { %933 = vmatprep.mubr.f32.mxu0 %v446_v17  ;;  %8136 = vmatpush1.bf16.msra.mxu0 %v8135_v16  ;;  %v525_v16 = vld [vmem:[%s14548_s5 + $0x3b0] sm:$0xff]  ;;  %v530_v17 = vld [vmem:[%s14548_s5 + $0x3d8] sm:$0xff] }
  0xf6   : > { %8137 = vmatprep.subr.bf16.mxu0 %v14555_v1 }
  0xf8   : > { %934 = vmatmul.mubr.f32.gmra.mrb[18].mxu0 %v445_v20  ;;  %v533_v20 = vld [vmem:[%s14548_s5 + $0x3f0] sm:$0xff] }
  0xf9   : > { %938 = vmatprep.mubr.f32.mxu0 %v450_v22  ;;  %8139 = vmatpush1.bf16.msra.mxu0 %v8138_v21  ;;  %v1050_v21 = vld [vmem:[%s14549_s6 + $0x8] sm:$0xff]  ;;  %v1209_v22 = vld [vmem:[%s10456_s27 + $0x100] sm:$0xff] }
  0xfa   : > { %8140 = vmatprep.subr.bf16.mxu0 %v14555_v1 }
  0xfc   : > { %939 = vmatmul.mubr.f32.gmra.mrb[20].mxu0 %v449_v25  ;;  %v8159_v25 = vpack.c.bf16 %v1210_v23, %v1209_v22  ;;  %v1102_v23 = vld [vmem:[%s14549_s6 + $0x1a8] sm:$0xff] }
  0xfd   : > { %943 = vmatprep.mubr.f32.mxu0 %v454_v27  ;;  %8142 = vmatpush1.bf16.msra.mxu0 %v8141_v26  ;;  %v1054_v26 = vld [vmem:[%s14549_s6 + $0x28] sm:$0xff]  ;;  %v1211_v27 = vld [vmem:[%s10456_s27 + $0x110] sm:$0xff] }
  0xfe   : > { %8143 = vmatprep.subr.bf16.mxu0 %v14555_v1 }
 0x100   : > { %944 = vmatmul.mubr.f32.gmra.mrb[22].mxu0 %v453_v30  ;;  %v8162_v30 = vpack.c.bf16 %v1212_v28, %v1211_v27  ;;  %v1106_v28 = vld [vmem:[%s14549_s6 + $0x1c8] sm:$0xff] }
 0x101   : > { %948 = vmatprep.mubr.f32.mxu0 %v458_v32  ;;  %8145 = vmatpush1.bf16.msra.mxu0 %v8144_v31  ;;  %v1058_v31 = vld [vmem:[%s14549_s6 + $0x48] sm:$0xff]  ;;  %v1213_v32 = vld [vmem:[%s10456_s27 + $0x120] sm:$0xff] }
 0x102   : > { %8146 = vmatprep.subr.bf16.mxu0 %v14555_v1 }
 0x104   : > { %949 = vmatmul.mubr.f32.gmra.mrb[24].mxu0 %v457_v35  ;;  %v8165_v35 = vpack.c.bf16 %v1214_v33, %v1213_v32  ;;  %v1110_v33 = vld [vmem:[%s14549_s6 + $0x1e8] sm:$0xff] }
 0x105   : > { %953 = vmatprep.mubr.f32.mxu0 %v462_v37  ;;  %8148 = vmatpush1.bf16.msra.mxu0 %v8147_v36  ;;  %v1062_v36 = vld [vmem:[%s14549_s6 + $0x68] sm:$0xff]  ;;  %v1215_v37 = vld [vmem:[%s10456_s27 + $0x130] sm:$0xff] }
 0x106   : > { %8149 = vmatprep.subr.bf16.mxu0 %v14555_v1 }
 0x108   : > { %954 = vmatmul.mubr.f32.gmra.mrb[26].mxu0 %v461_v40  ;;  %v8168_v40 = vpack.c.bf16 %v1216_v38, %v1215_v37  ;;  %v1114_v38 = vld [vmem:[%s14549_s6 + $0x208] sm:$0xff] }
 0x109   : > { %958 = vmatprep.mubr.f32.mxu0 %v466_v42  ;;  %8151 = vmatpush1.bf16.msra.mxu0 %v8150_v41  ;;  %v1066_v41 = vld [vmem:[%s14549_s6 + $0x88] sm:$0xff]  ;;  %v1217_v42 = vld [vmem:[%s10456_s27 + $0x140] sm:$0xff] }
 0x10a   : > { %8152 = vmatprep.subr.bf16.mxu0 %v14555_v1 }
 0x10c   : > { %959 = vmatmul.mubr.f32.gmra.mrb[28].mxu0 %v465_v45  ;;  %v8171_v45 = vpack.c.bf16 %v1218_v43, %v1217_v42  ;;  %v1122_v42 = vld [vmem:[%s14549_s6 + $0x248] sm:$0xff]  ;;  %v1121_v43 = vld [vmem:[%s14549_s6 + $0x240] sm:$0xff] }
 0x10d   : > { %963 = vmatprep.mubr.f32.mxu0 %v470_v47  ;;  %8154 = vmatpush1.bf16.msra.mxu0 %v8153_v46  ;;  %v1070_v46 = vld [vmem:[%s14549_s6 + $0xa8] sm:$0xff]  ;;  %v1219_v47 = vld [vmem:[%s10456_s27 + $0x150] sm:$0xff] }
 0x10e   : > { %8155 = vmatprep.subr.bf16.mxu0 %v14555_v1 }
 0x110   : > { %964 = vmatmul.mubr.f32.gmra.mrb[30].mxu0 %v469_v50  ;;  %v8174_v50 = vpack.c.bf16 %v1220_v48, %v1219_v47  ;;  %v1129_v47 = vld [vmem:[%s14549_s6 + $0x280] sm:$0xff]  ;;  %v1134_v48 = vld [vmem:[%s14549_s6 + $0x2a8] sm:$0xff] }
 0x111   : > { %968 = vmatprep.mubr.f32.mxu0 %v474_v52  ;;  %8157 = vmatpush1.bf16.msra.mxu0 %v8156_v51  ;;  %v1074_v51 = vld [vmem:[%s14549_s6 + $0xc8] sm:$0xff]  ;;  %v1221_v52 = vld [vmem:[%s10456_s27 + $0x160] sm:$0xff] }
 0x112   : > { %8158 = vmatprep.subr.bf16.mxu0 %v14555_v1 }
 0x114   : > { %969 = vmatmul.mubr.f32.gmra.mrb[32].mxu0 %v473_v53  ;;  %v1222_v53 = vld [vmem:[%s10456_s27 + $0x168] sm:$0xff] }
 0x115   : > { %973 = vmatprep.mubr.f32.mxu0 %v478_v54  ;;  %v1073_v54 = vld [vmem:[%s14549_s6 + $0xc0] sm:$0xff] }
 0x118   : > { %974 = vmatmul.mubr.f32.gmra.mrb[34].mxu0 %v477_v55  ;;  %v8177_v55 = vpack.c.bf16 %v1222_v53, %v1221_v52  ;;  %v1137_v53 = vld [vmem:[%s14549_s6 + $0x2c0] sm:$0xff] }
 0x119   : > { %978 = vmatprep.mubr.f32.mxu0 %v482_v56  ;;  %v1078_v56 = vld [vmem:[%s14549_s6 + $0xe8] sm:$0xff] }
 0x11c   : > { %979 = vmatmul.mubr.f32.gmra.mrb[36].mxu0 %v481_v57  ;;  %v1223_v57 = vld [vmem:[%s10456_s27 + $0x170] sm:$0xff] }
 0x11d   : > { %983 = vmatprep.mubr.f32.mxu0 %v486_v58  ;;  %v1224_v58 = vld [vmem:[%s10456_s27 + $0x178] sm:$0xff] }
 0x120   : > { %984 = vmatmul.mubr.f32.gmra.mrb[38].mxu0 %v485_v59  ;;  %v1077_v59 = vld [vmem:[%s14549_s6 + $0xe0] sm:$0xff] }
 0x121   : > { %988 = vmatprep.mubr.f32.mxu0 %v490_v60  ;;  %v8180_v60 = vpack.c.bf16 %v1224_v58, %v1223_v57  ;;  %v1141_v57 = vld [vmem:[%s14549_s6 + $0x2e0] sm:$0xff]  ;;  %v1146_v58 = vld [vmem:[%s14549_s6 + $0x308] sm:$0xff] }
 0x124   : > { %989 = vmatmul.mubr.f32.gmra.mrb[40].mxu0 %v489_v61  ;;  %v1082_v61 = vld [vmem:[%s14549_s6 + $0x108] sm:$0xff] }
 0x125   : > { %993 = vmatprep.mubr.f32.mxu0 %v494_v62  ;;  %v1225_v62 = vld [vmem:[%s10456_s27 + $0x180] sm:$0xff] }
 0x128   : > { %994 = vmatmul.mubr.f32.gmra.mrb[42].mxu0 %v493_v63  ;;  %v1226_v63 = vld [vmem:[%s10456_s27 + $0x188] sm:$0xff] }
 0x129   : > { %998 = vmatprep.mubr.f32.mxu0 %v498_v0  ;;  %v1081_v0 = vld [vmem:[%s14549_s6 + $0x100] sm:$0xff] }
 0x12c   : > { %999 = vmatmul.mubr.f32.gmra.mrb[44].mxu0 %v497_v2  ;;  %v8183_v2 = vpack.c.bf16 %v1226_v63, %v1225_v62  ;;  %v1150_v62 = vld [vmem:[%s14549_s6 + $0x328] sm:$0xff] }
 0x12d   : > { %1003 = vmatprep.mubr.f32.mxu0 %v502_v3  ;;  %v1086_v3 = vld [vmem:[%s14549_s6 + $0x128] sm:$0xff] }
 0x130   : > { %1004 = vmatmul.mubr.f32.gmra.mrb[46].mxu0 %v501_v4  ;;  %v1227_v4 = vld [vmem:[%s10456_s27 + $0x190] sm:$0xff] }
 0x131   : > { %1008 = vmatprep.mubr.f32.mxu0 %v506_v5  ;;  %v1228_v5 = vld [vmem:[%s10456_s27 + $0x198] sm:$0xff] }
 0x134   : > { %1009 = vmatmul.mubr.f32.gmra.mrb[48].mxu0 %v505_v6  ;;  %v1085_v6 = vld [vmem:[%s14549_s6 + $0x120] sm:$0xff] }
 0x135   : > { %1013 = vmatprep.mubr.f32.mxu0 %v510_v7  ;;  %v8186_v7 = vpack.c.bf16 %v1228_v5, %v1227_v4 }
 0x138   : > { %1014 = vmatmul.mubr.f32.gmra.mrb[50].mxu0 %v509_v8  ;;  %v1090_v8 = vld [vmem:[%s14549_s6 + $0x148] sm:$0xff] }
 0x139   : > { %1018 = vmatprep.mubr.f32.mxu0 %v514_v9  ;;  %v1229_v9 = vld [vmem:[%s10456_s27 + $0x1a0] sm:$0xff] }
 0x13c   : > { %1019 = vmatmul.mubr.f32.gmra.mrb[52].mxu0 %v513_v10  ;;  %v1230_v10 = vld [vmem:[%s10456_s27 + $0x1a8] sm:$0xff] }
 0x13d   : > { %1023 = vmatprep.mubr.f32.mxu0 %v518_v11  ;;  %v1089_v11 = vld [vmem:[%s14549_s6 + $0x140] sm:$0xff] }
 0x140   : > { %1024 = vmatmul.mubr.f32.gmra.mrb[54].mxu0 %v517_v12  ;;  %v8189_v12 = vpack.c.bf16 %v1230_v10, %v1229_v9  ;;  %v1157_v10 = vld [vmem:[%s14549_s6 + $0x360] sm:$0xff] }
 0x141   : > { %1028 = vmatprep.mubr.f32.mxu0 %v522_v13  ;;  %v1094_v13 = vld [vmem:[%s14549_s6 + $0x168] sm:$0xff] }
 0x144   : > { %1029 = vmatmul.mubr.f32.gmra.mrb[56].mxu0 %v521_v14  ;;  %v1231_v14 = vld [vmem:[%s10456_s27 + $0x1b0] sm:$0xff] }
 0x145   : > { %1033 = vmatprep.mubr.f32.mxu0 %v526_v15  ;;  %v1232_v15 = vld [vmem:[%s10456_s27 + $0x1b8] sm:$0xff] }
 0x148   : > { %1034 = vmatmul.mubr.f32.gmra.mrb[58].mxu0 %v525_v16  ;;  %v1093_v16 = vld [vmem:[%s14549_s6 + $0x160] sm:$0xff] }
 0x149   : > { %1038 = vmatprep.mubr.f32.mxu0 %v530_v17  ;;  %v8192_v17 = vpack.c.bf16 %v1232_v15, %v1231_v14  ;;  %v1161_v14 = vld [vmem:[%s14549_s6 + $0x380] sm:$0xff]  ;;  %v1166_v15 = vld [vmem:[%s14549_s6 + $0x3a8] sm:$0xff] }
 0x14c   : > { %1039 = vmatmul.mubr.f32.gmra.mrb[60].mxu0 %v529_v18  ;;  %v1098_v18 = vld [vmem:[%s14549_s6 + $0x188] sm:$0xff] }
 0x14d   : > { %1043 = vmatprep.mubr.f32.mxu0 %v534_v19  ;;  %v1233_v19 = vld [vmem:[%s10456_s27 + $0x1c0] sm:$0xff] }
 0x150   : > { %1044 = vmatmul.mubr.f32.gmra.mrb[62].mxu0 %v533_v20  ;;  %v1234_v20 = vld [vmem:[%s10456_s27 + $0x1c8] sm:$0xff] }
 0x151   : > { %1305 = vmatprep.mubr.f32.mxu0 %v1050_v21  ;;  %v1097_v21 = vld [vmem:[%s14549_s6 + $0x180] sm:$0xff]  ;;  %v8195_v22 = vpack.c.bf16 %v1234_v20, %v1233_v19  ;;  %v1170_v19 = vld [vmem:[%s14549_s6 + $0x3c8] sm:$0xff] }
 0x154   : > { %1306 = vmatmul.mubr.f32.vlgmr.msra.gmra.mrb[64].mxu0 %v1049_v24  ;;  %v1235_v24 = vld [vmem:[%s10456_s27 + $0x1d0] sm:$0xff] }
 0x155   : > { %8160 = vmatpush1.bf16.msra.mxu0 %v8159_v25  ;;  %1310 = vmatprep.mubr.f32.mxu0 %v1054_v26  ;;  %v1236_v25 = vld [vmem:[%s10456_s27 + $0x1d8] sm:$0xff]  ;;  %v1101_v26 = vld [vmem:[%s14549_s6 + $0x1a0] sm:$0xff] }
 0x156   : > { %8161 = vmatprep.subr.bf16.mxu0 %v14555_v1  ;;  %v8198_v27 = vpack.c.bf16 %v1236_v25, %v1235_v24 }
 0x158   : > { %1311 = vmatmul.mubr.f32.gmra.mrb[66].mxu0 %v1053_v29  ;;  %v1237_v29 = vld [vmem:[%s10456_s27 + $0x1e0] sm:$0xff] }
 0x159   : > { %1315 = vmatprep.mubr.f32.mxu0 %v1058_v31  ;;  %8163 = vmatpush1.bf16.msra.mxu0 %v8162_v30  ;;  %v1238_v30 = vld [vmem:[%s10456_s27 + $0x1e8] sm:$0xff]  ;;  %v1105_v31 = vld [vmem:[%s14549_s6 + $0x1c0] sm:$0xff] }
 0x15a   : > { %8164 = vmatprep.subr.bf16.mxu0 %v14555_v1  ;;  %v8201_v32 = vpack.c.bf16 %v1238_v30, %v1237_v29  ;;  %v1693_v30 = vld [vmem:[%s14546_s3] sm:$0xff] }
 0x15c   : > { %1316 = vmatmul.mubr.f32.gmra.mrb[68].mxu0 %v1057_v34  ;;  %v1239_v34 = vld [vmem:[%s10456_s27 + $0x1f0] sm:$0xff] }
 0x15d   : > { %1320 = vmatprep.mubr.f32.mxu0 %v1062_v36  ;;  %8166 = vmatpush1.bf16.msra.mxu0 %v8165_v35  ;;  %v1240_v35 = vld [vmem:[%s10456_s27 + $0x1f8] sm:$0xff]  ;;  %v1109_v36 = vld [vmem:[%s14549_s6 + $0x1e0] sm:$0xff] }
 0x15e   : > { %8167 = vmatprep.subr.bf16.mxu0 %v14555_v1  ;;  %v8204_v37 = vpack.c.bf16 %v1240_v35, %v1239_v34  ;;  %v1696_v35 = vld [vmem:[%s14546_s3 + $0x18] sm:$0xff] }
 0x160   : > { %1321 = vmatmul.mubr.f32.gmra.mrb[70].mxu0 %v1061_v39  ;;  %v1113_v39 = vld [vmem:[%s14549_s6 + $0x200] sm:$0xff] }
 0x161   : > { %1325 = vmatprep.mubr.f32.mxu0 %v1066_v41  ;;  %8169 = vmatpush1.bf16.msra.mxu0 %v8168_v40  ;;  %v1118_v40 = vld [vmem:[%s14549_s6 + $0x228] sm:$0xff]  ;;  %v1117_v41 = vld [vmem:[%s14549_s6 + $0x220] sm:$0xff] }
 0x162   : > { %8170 = vmatprep.subr.bf16.mxu0 %v14555_v1 }
 0x164   : > { %1326 = vmatmul.mubr.f32.gmra.mrb[72].mxu0 %v1065_v44  ;;  %v1126_v44 = vld [vmem:[%s14549_s6 + $0x268] sm:$0xff] }
 0x165   : > { %1330 = vmatprep.mubr.f32.mxu0 %v1070_v46  ;;  %8172 = vmatpush1.bf16.msra.mxu0 %v8171_v45  ;;  %v1125_v45 = vld [vmem:[%s14549_s6 + $0x260] sm:$0xff]  ;;  %v1130_v46 = vld [vmem:[%s14549_s6 + $0x288] sm:$0xff] }
 0x166   : > { %8173 = vmatprep.subr.bf16.mxu0 %v14555_v1 }
 0x168   : > { %1331 = vmatmul.mubr.f32.gmra.mrb[74].mxu0 %v1069_v49  ;;  %v1133_v49 = vld [vmem:[%s14549_s6 + $0x2a0] sm:$0xff] }
 0x169   : > { %1335 = vmatprep.mubr.f32.mxu0 %v1074_v51  ;;  %8175 = vmatpush1.bf16.msra.mxu0 %v8174_v50  ;;  %v1138_v50 = vld [vmem:[%s14549_s6 + $0x2c8] sm:$0xff] }
 0x16a   : > { %8176 = vmatprep.subr.bf16.mxu0 %v14555_v1 }
 0x16c   : > { %1336 = vmatmul.mubr.f32.gmra.mrb[76].mxu0 %v1073_v54  ;;  %v1142_v54 = vld [vmem:[%s14549_s6 + $0x2e8] sm:$0xff] }
 0x16d   : > { %1340 = vmatprep.mubr.f32.mxu0 %v1078_v56  ;;  %8178 = vmatpush1.bf16.msra.mxu0 %v8177_v55 }
 0x16e   : > { %8179 = vmatprep.subr.bf16.mxu0 %v14555_v1 }
 0x170   : > { %1341 = vmatmul.mubr.f32.gmra.mrb[78].mxu0 %v1077_v59 }
 0x171   : > { %1345 = vmatprep.mubr.f32.mxu0 %v1082_v61  ;;  %8181 = vmatpush1.bf16.msra.mxu0 %v8180_v60  ;;  %v1145_v61 = vld [vmem:[%s14549_s6 + $0x300] sm:$0xff] }
 0x172   : > { %8182 = vmatprep.subr.bf16.mxu0 %v14555_v1 }
 0x174   : > { %1346 = vmatmul.mubr.f32.gmra.mrb[80].mxu0 %v1081_v0 }
 0x175   : > { %1350 = vmatprep.mubr.f32.mxu0 %v1086_v3  ;;  %8184 = vmatpush1.bf16.msra.mxu0 %v8183_v2  ;;  %v1149_v2 = vld [vmem:[%s14549_s6 + $0x320] sm:$0xff]  ;;  %v1154_v3 = vld [vmem:[%s14549_s6 + $0x348] sm:$0xff] }
 0x176   : > { %8185 = vmatprep.subr.bf16.mxu0 %v14555_v1 }
 0x178   : > { %1351 = vmatmul.mubr.f32.gmra.mrb[82].mxu0 %v1085_v6  ;;  %v1153_v6 = vld [vmem:[%s14549_s6 + $0x340] sm:$0xff] }
 0x179   : > { %1355 = vmatprep.mubr.f32.mxu0 %v1090_v8  ;;  %8187 = vmatpush1.bf16.msra.mxu0 %v8186_v7  ;;  %v1158_v7 = vld [vmem:[%s14549_s6 + $0x368] sm:$0xff] }
 0x17a   : > { %8188 = vmatprep.subr.bf16.mxu0 %v14555_v1 }
 0x17c   : > { %1356 = vmatmul.mubr.f32.gmra.mrb[84].mxu0 %v1089_v11  ;;  %v1162_v11 = vld [vmem:[%s14549_s6 + $0x388] sm:$0xff] }
 0x17d   : > { %1360 = vmatprep.mubr.f32.mxu0 %v1094_v13  ;;  %8190 = vmatpush1.bf16.msra.mxu0 %v8189_v12 }
 0x17e   : > { %8191 = vmatprep.subr.bf16.mxu0 %v14555_v1 }
 0x180   : > { %1361 = vmatmul.mubr.f32.gmra.mrb[86].mxu0 %v1093_v16 }
 0x181   : > { %1365 = vmatprep.mubr.f32.mxu0 %v1098_v18  ;;  %8193 = vmatpush1.bf16.msra.mxu0 %v8192_v17  ;;  %v1165_v18 = vld [vmem:[%s14549_s6 + $0x3a0] sm:$0xff] }
 0x182   : > { %8194 = vmatprep.subr.bf16.mxu0 %v14555_v1 }
 0x184   : > { %1366 = vmatmul.mubr.f32.gmra.mrb[88].mxu0 %v1097_v21 }
 0x185   : > { %1370 = vmatprep.mubr.f32.mxu0 %v1102_v23  ;;  %8196 = vmatpush1.bf16.msra.mxu0 %v8195_v22  ;;  %v1169_v22 = vld [vmem:[%s14549_s6 + $0x3c0] sm:$0xff]  ;;  %v1174_v23 = vld [vmem:[%s14549_s6 + $0x3e8] sm:$0xff] }
 0x186   : > { %8197 = vmatprep.subr.bf16.mxu0 %v14555_v1 }
 0x188   : > { %1371 = vmatmul.mubr.f32.gmra.mrb[90].mxu0 %v1101_v26  ;;  %v1173_v26 = vld [vmem:[%s14549_s6 + $0x3e0] sm:$0xff] }
 0x189   : > { %1375 = vmatprep.mubr.f32.mxu0 %v1106_v28  ;;  %8199 = vmatpush1.bf16.msra.mxu0 %v8198_v27  ;;  %v1052_v27 = vld [vmem:[%s14549_s6 + $0x18] sm:$0xff] }
 0x18a   : > { %8200 = vmatprep.subr.bf16.mxu0 %v14555_v1 }
 0x18c   : > { %1376 = vmatmul.mubr.f32.gmra.mrb[92].mxu0 %v1105_v31  ;;  %v1694_v31 = vld [vmem:[%s14546_s3 + $0x8] sm:$0xff] }
 0x18d   : > { %1380 = vmatprep.mubr.f32.mxu0 %v1110_v33  ;;  %8202 = vmatpush1.bf16.msra.mxu0 %v8201_v32  ;;  %v1695_v32 = vld [vmem:[%s14546_s3 + $0x10] sm:$0xff]  ;;  %v8206_v34 = vpack.c.bf16 %v1694_v31, %v1693_v30 }
 0x18e   : > { %8203 = vmatprep.subr.bf16.mxu0 %v14555_v1  ;;  %v1051_v33 = vld [vmem:[%s14549_s6 + $0x10] sm:$0xff] }
 0x18f   : > { %v1095_v31 = vld [vmem:[%s14549_s6 + $0x170] sm:$0xff] }
 0x190   : > { %1381 = vmatmul.mubr.f32.gmra.mrb[94].mxu0 %v1109_v36  ;;  %v1056_v36 = vld [vmem:[%s14549_s6 + $0x38] sm:$0xff] }
 0x191   : > { %1385 = vmatprep.mubr.f32.mxu0 %v1114_v38  ;;  %8205 = vmatpush1.bf16.msra.mxu0 %v8204_v37  ;;  %v8210_v37 = vpack.c.bf16 %v1696_v35, %v1695_v32  ;;  %v1100_v32 = vld [vmem:[%s14549_s6 + $0x198] sm:$0xff]  ;;  %v1099_v35 = vld [vmem:[%s14549_s6 + $0x190] sm:$0xff] }
 0x192   : > { %8207 = vmatprep.subr.bf16.mxu0 %v8206_v34 }
 0x194   : > { %1386 = vmatmul.mubr.f32.gmra.mrb[96].mxu0 %v1113_v39  ;;  %v1697_v39 = vld [vmem:[%s14546_s3 + $0x20] sm:$0xff] }
 0x195   : > { %1390 = vmatprep.mubr.f32.mxu0 %v1118_v40  ;;  %v1698_v40 = vld [vmem:[%s14546_s3 + $0x28] sm:$0xff] }
 0x198   : > { %1391 = vmatmul.mubr.f32.gmra.mrb[98].mxu0 %v1117_v41 }
 0x199   : > { %1395 = vmatprep.mubr.f32.mxu0 %v1122_v42  ;;  %v1055_v42 = vld [vmem:[%s14549_s6 + $0x30] sm:$0xff] }
 0x19c   : > { %1396 = vmatmul.mubr.f32.gmra.mrb[100].mxu0 %v1121_v43  ;;  %v1060_v43 = vld [vmem:[%s14549_s6 + $0x58] sm:$0xff] }
 0x19d   : > { %1400 = vmatprep.mubr.f32.mxu0 %v1126_v44  ;;  %v8214_v44 = vpack.c.bf16 %v1698_v40, %v1697_v39  ;;  %v1103_v40 = vld [vmem:[%s14549_s6 + $0x1b0] sm:$0xff] }
 0x1a0   : > { %1401 = vmatmul.mubr.f32.gmra.mrb[102].mxu0 %v1125_v45 }
 0x1a1   : > { %1405 = vmatprep.mubr.f32.mxu0 %v1130_v46 }
 0x1a4   : > { %1406 = vmatmul.mubr.f32.gmra.mrb[104].mxu0 %v1129_v47  ;;  %v1059_v47 = vld [vmem:[%s14549_s6 + $0x50] sm:$0xff] }
 0x1a5   : > { %1410 = vmatprep.mubr.f32.mxu0 %v1134_v48  ;;  %v1064_v48 = vld [vmem:[%s14549_s6 + $0x78] sm:$0xff] }
 0x1a7   : > { %v10883_v51 = vpop.f32.mrb[0].mxu0 }
 0x1a8   : > { %v892_v52 = vpop.f32.mrb[1].mxu0  ;;  %1411 = vmatmul.mubr.f32.gmra.mrb[106].mxu0 %v1133_v49 }
 0x1a9   : > { %1415 = vmatprep.mubr.f32.mxu0 %v1138_v50  ;;  %v1063_v52 = vld [vmem:[%s14549_s6 + $0x70] sm:$0xff] }
 0x1ab   : > { %v10891_v55 = vpop.f32.mrb[2].mxu0 }
 0x1ac   : > { %v897_v56 = vpop.f32.mrb[3].mxu0  ;;  %1416 = vmatmul.mubr.f32.gmra.mrb[108].mxu0 %v1137_v53  ;;  %v1068_v53 = vld [vmem:[%s14549_s6 + $0x98] sm:$0xff] }
 0x1ad   : > { %1420 = vmatprep.mubr.f32.mxu0 %v1142_v54 }
 0x1af   : > { %v10899_v59 = vpop.f32.mrb[4].mxu0 }
 0x1b0   : > { %v902_v60 = vpop.f32.mrb[5].mxu0  ;;  %1421 = vmatmul.mubr.f32.gmra.mrb[110].mxu0 %v1141_v57  ;;  %v1067_v57 = vld [vmem:[%s14549_s6 + $0x90] sm:$0xff] }
 0x1b1   : > { %1425 = vmatprep.mubr.f32.mxu0 %v1146_v58  ;;  %v1072_v58 = vld [vmem:[%s14549_s6 + $0xb8] sm:$0xff] }
 0x1b3   : > { %v10907_v63 = vpop.f32.mrb[6].mxu0 }
 0x1b4   : > { %v907_v0 = vpop.f32.mrb[7].mxu0  ;;  %1426 = vmatmul.mubr.f32.gmra.mrb[112].mxu0 %v1145_v61 }
 0x1b5   : > { %1430 = vmatprep.mubr.f32.mxu0 %v1150_v62  ;;  %v1071_v62 = vld [vmem:[%s14549_s6 + $0xb0] sm:$0xff]  ;;  %v1076_v0 = vld [vmem:[%s14549_s6 + $0xd8] sm:$0xff] }
 0x1b7   : > { %v10915_v4 = vpop.f32.mrb[8].mxu0 }
 0x1b8   : > { %v912_v5 = vpop.f32.mrb[9].mxu0  ;;  %1431 = vmatmul.mubr.f32.gmra.mrb[114].mxu0 %v1149_v2 }
 0x1b9   : > { %1435 = vmatprep.mubr.f32.mxu0 %v1154_v3  ;;  %v1075_v5 = vld [vmem:[%s14549_s6 + $0xd0] sm:$0xff] }
 0x1bb   : > { %v10923_v8 = vpop.f32.mrb[10].mxu0 }
 0x1bc   : > { %v917_v9 = vpop.f32.mrb[11].mxu0  ;;  %1436 = vmatmul.mubr.f32.gmra.mrb[116].mxu0 %v1153_v6  ;;  %v1080_v6 = vld [vmem:[%s14549_s6 + $0xf8] sm:$0xff] }
 0x1bd   : > { %1440 = vmatprep.mubr.f32.mxu0 %v1158_v7 }
 0x1bf   : > { %v10931_v12 = vpop.f32.mrb[12].mxu0 }
 0x1c0   : > { %v922_v13 = vpop.f32.mrb[13].mxu0  ;;  %1441 = vmatmul.mubr.f32.gmra.mrb[118].mxu0 %v1157_v10  ;;  %v1079_v10 = vld [vmem:[%s14549_s6 + $0xf0] sm:$0xff] }
 0x1c1   : > { %1445 = vmatprep.mubr.f32.mxu0 %v1162_v11  ;;  %v1084_v11 = vld [vmem:[%s14549_s6 + $0x118] sm:$0xff] }
 0x1c3   : > { %v10939_v16 = vpop.f32.mrb[14].mxu0 }
 0x1c4   : > { %v927_v17 = vpop.f32.mrb[15].mxu0  ;;  %1446 = vmatmul.mubr.f32.gmra.mrb[120].mxu0 %v1161_v14 }
 0x1c5   : > { %1450 = vmatprep.mubr.f32.mxu0 %v1166_v15  ;;  %v1083_v15 = vld [vmem:[%s14549_s6 + $0x110] sm:$0xff]  ;;  %v1088_v17 = vld [vmem:[%s14549_s6 + $0x138] sm:$0xff] }
 0x1c7   : > { %v10947_v20 = vpop.f32.mrb[16].mxu0 }
 0x1c8   : > { %v932_v21 = vpop.f32.mrb[17].mxu0  ;;  %1451 = vmatmul.mubr.f32.gmra.mrb[122].mxu0 %v1165_v18 }
 0x1c9   : > { %1455 = vmatprep.mubr.f32.mxu0 %v1170_v19  ;;  %v1087_v21 = vld [vmem:[%s14549_s6 + $0x130] sm:$0xff] }
 0x1cb   : > { %v10955_v24 = vpop.f32.mrb[18].mxu0 }
 0x1cc   : > { %v937_v25 = vpop.f32.mrb[19].mxu0  ;;  %1456 = vmatmul.mubr.f32.gmra.mrb[124].mxu0 %v1169_v22  ;;  %v1092_v22 = vld [vmem:[%s14549_s6 + $0x158] sm:$0xff] }
 0x1cd   : > { %1460 = vmatprep.mubr.f32.mxu0 %v1174_v23 }
 0x1cf   : > { %v10963_v28 = vpop.f32.mrb[20].mxu0 }
 0x1d0   : > { %v942_v29 = vpop.f32.mrb[21].mxu0  ;;  %1461 = vmatmul.mubr.f32.gmra.mrb[126].mxu0 %v1173_v26  ;;  %v1091_v26 = vld [vmem:[%s14549_s6 + $0x150] sm:$0xff] }
 0x1d1   : > { %1530 = vmatprep.mubr.f32.mxu0 %v1052_v27  ;;  %v1096_v27 = vld [vmem:[%s14549_s6 + $0x178] sm:$0xff] }
 0x1d3   : > { %v10983_v38 = vpop.f32.mrb[22].mxu0 }
 0x1d4   : > { %v947_v41 = vpop.f32.mrb[23].mxu0  ;;  %1531 = vmatmul.mubr.f32.vlgmr.msra.gmra.mrb[64].mxu0 %v1051_v33 }
 0x1d5   : > { %1535 = vmatprep.mubr.f32.mxu0 %v1056_v36  ;;  %8209 = vmatpush3.bf16.msra.mxu0 %v8206_v34  ;;  %v1104_v36 = vld [vmem:[%s14549_s6 + $0x1b8] sm:$0xff] }
 0x1d6   : > { %8211 = vmatprep.subr.bf16.mxu0 %v8210_v37  ;;  %v1108_v41 = vld [vmem:[%s14549_s6 + $0x1d8] sm:$0xff] }
 0x1d7   : > { %v10997_v45 = vpop.f32.mrb[24].mxu0 }
 0x1d8   : > { %v952_v46 = vpop.f32.mrb[25].mxu0  ;;  %1536 = vmatmul.mubr.f32.gmra.mrb[66].mxu0 %v1055_v42 }
 0x1d9   : > { %1540 = vmatprep.mubr.f32.mxu0 %v1060_v43  ;;  %8213 = vmatpush3.bf16.msra.mxu0 %v8210_v37  ;;  %v1112_v46 = vld [vmem:[%s14549_s6 + $0x1f8] sm:$0xff] }
 0x1da   : > { %8215 = vmatprep.subr.bf16.mxu0 %v8214_v44 }
 0x1db   : > { %v11005_v49 = vpop.f32.mrb[26].mxu0 }
 0x1dc   : > { %v957_v50 = vpop.f32.mrb[27].mxu0  ;;  %1541 = vmatmul.mubr.f32.gmra.mrb[68].mxu0 %v1059_v47 }
 0x1dd   : > { %1545 = vmatprep.mubr.f32.mxu0 %v1064_v48  ;;  %8217 = vmatpush3.bf16.msra.mxu0 %v8214_v44  ;;  %v1107_v44 = vld [vmem:[%s14549_s6 + $0x1d0] sm:$0xff] }
 0x1de   : > { %v1111_v50 = vld [vmem:[%s14549_s6 + $0x1f0] sm:$0xff] }
 0x1df   : > { %v11013_v54 = vpop.f32.mrb[28].mxu0 }
 0x1e0   : > { %v962_v56 = vpop.f32.mrb[29].mxu0  ;;  %1546 = vmatmul.mubr.f32.gmra.mrb[70].mxu0 %v1063_v52  ;;  %v1116_v52 = vld [vmem:[%s14549_s6 + $0x218] sm:$0xff] }
 0x1e1   : > { %1550 = vmatprep.mubr.f32.mxu0 %v1068_v53 }
 0x1e3   : > { %v11021_v60 = vpop.f32.mrb[30].mxu0 }
 0x1e4   : > { %v967_v61 = vpop.f32.mrb[31].mxu0  ;;  %1551 = vmatmul.mubr.f32.gmra.mrb[72].mxu0 %v1067_v57  ;;  %v1115_v57 = vld [vmem:[%s14549_s6 + $0x210] sm:$0xff] }
 0x1e5   : > { %1555 = vmatprep.mubr.f32.mxu0 %v1072_v58  ;;  %v1120_v58 = vld [vmem:[%s14549_s6 + $0x238] sm:$0xff] }
 0x1e7   : > { %v11029_v2 = vpop.f32.mrb[32].mxu0 }
 0x1e8   : > { %v972_v3 = vpop.f32.mrb[33].mxu0  ;;  %1556 = vmatmul.mubr.f32.gmra.mrb[74].mxu0 %v1071_v62 }
 0x1e9   : > { %1560 = vmatprep.mubr.f32.mxu0 %v1076_v0  ;;  %v1119_v0 = vld [vmem:[%s14549_s6 + $0x230] sm:$0xff]  ;;  %v1124_v3 = vld [vmem:[%s14549_s6 + $0x258] sm:$0xff] }
 0x1eb   : > { %v11037_v7 = vpop.f32.mrb[34].mxu0 }
 0x1ec   : > { %v977_v9 = vpop.f32.mrb[35].mxu0  ;;  %1561 = vmatmul.mubr.f32.gmra.mrb[76].mxu0 %v1075_v5 }
 0x1ed   : > { %1565 = vmatprep.mubr.f32.mxu0 %v1080_v6  ;;  %v1123_v9 = vld [vmem:[%s14549_s6 + $0x250] sm:$0xff] }
 0x1ef   : > { %v11045_v13 = vpop.f32.mrb[36].mxu0 }
 0x1f0   : > { %v982_v14 = vpop.f32.mrb[37].mxu0  ;;  %1566 = vmatmul.mubr.f32.gmra.mrb[78].mxu0 %v1079_v10  ;;  %v1128_v10 = vld [vmem:[%s14549_s6 + $0x278] sm:$0xff] }
 0x1f1   : > { %1570 = vmatprep.mubr.f32.mxu0 %v1084_v11 }
 0x1f3   : > { %v11053_v18 = vpop.f32.mrb[38].mxu0 }
 0x1f4   : > { %v987_v19 = vpop.f32.mrb[39].mxu0  ;;  %1571 = vmatmul.mubr.f32.gmra.mrb[80].mxu0 %v1083_v15  ;;  %v1127_v15 = vld [vmem:[%s14549_s6 + $0x270] sm:$0xff] }
 0x1f5   : > { %1575 = vmatprep.mubr.f32.mxu0 %v1088_v17  ;;  %v1132_v17 = vld [vmem:[%s14549_s6 + $0x298] sm:$0xff] }
 0x1f7   : > { %v11061_v23 = vpop.f32.mrb[40].mxu0 }
 0x1f8   : > { %v992_v25 = vpop.f32.mrb[41].mxu0  ;;  %1576 = vmatmul.mubr.f32.gmra.mrb[82].mxu0 %v1087_v21 }
 0x1f9   : > { %1580 = vmatprep.mubr.f32.mxu0 %v1092_v22  ;;  %v1131_v22 = vld [vmem:[%s14549_s6 + $0x290] sm:$0xff]  ;;  %v1136_v25 = vld [vmem:[%s14549_s6 + $0x2b8] sm:$0xff] }
 0x1fb   : > { %v11069_v29 = vpop.f32.mrb[42].mxu0 }
 0x1fc   : > { %v997_v30 = vpop.f32.mrb[43].mxu0  ;;  %1581 = vmatmul.mubr.f32.gmra.mrb[84].mxu0 %v1091_v26 }
 0x1fd   : > { %1585 = vmatprep.mubr.f32.mxu0 %v1096_v27  ;;  %v1135_v30 = vld [vmem:[%s14549_s6 + $0x2b0] sm:$0xff] }
 0x1ff   : > { %v11077_v33 = vpop.f32.mrb[44].mxu0 }
 0x200   : > { %v1002_v34 = vpop.f32.mrb[45].mxu0  ;;  %1586 = vmatmul.mubr.f32.gmra.mrb[86].mxu0 %v1095_v31  ;;  %v1699_v31 = vld [vmem:[%s14546_s3 + $0x30] sm:$0xff] }
 0x201   : > { %1590 = vmatprep.mubr.f32.mxu0 %v1100_v32  ;;  %v1700_v32 = vld [vmem:[%s14546_s3 + $0x38] sm:$0xff] }
 0x202   : > { %v1140_v34 = vld [vmem:[%s14549_s6 + $0x2d8] sm:$0xff] }
 0x203   : > { %v11085_v37 = vpop.f32.mrb[46].mxu0 }
 0x204   : > { %v1007_v39 = vpop.f32.mrb[47].mxu0  ;;  %1591 = vmatmul.mubr.f32.gmra.mrb[88].mxu0 %v1099_v35  ;;  %v8218_v35 = vpack.c.bf16 %v1700_v32, %v1699_v31 }
 0x205   : > { %1595 = vmatprep.mubr.f32.mxu0 %v1104_v36  ;;  %v1139_v36 = vld [vmem:[%s14549_s6 + $0x2d0] sm:$0xff]  ;;  %v1144_v39 = vld [vmem:[%s14549_s6 + $0x2f8] sm:$0xff] }
 0x206   : > { %8219 = vmatprep.subr.bf16.mxu0 %v8218_v35 }
 0x207   : > { %v11093_v42 = vpop.f32.mrb[48].mxu0  ;;  %8221 = vmatpush3.bf16.msra.mxu0 %v8218_v35 }
 0x208   : > { %v1012_v43 = vpop.f32.mrb[49].mxu0  ;;  %1596 = vmatmul.mubr.f32.gmra.mrb[90].mxu0 %v1103_v40  ;;  %v1143_v40 = vld [vmem:[%s14549_s6 + $0x2f0] sm:$0xff] }
 0x209   : > { %1600 = vmatprep.mubr.f32.mxu0 %v1108_v41  ;;  %v1148_v41 = vld [vmem:[%s14549_s6 + $0x318] sm:$0xff]  ;;  %v1147_v43 = vld [vmem:[%s14549_s6 + $0x310] sm:$0xff] }
 0x20b   : > { %v11101_v47 = vpop.f32.mrb[50].mxu0 }
 0x20c   : > { %v1017_v48 = vpop.f32.mrb[51].mxu0  ;;  %1601 = vmatmul.mubr.f32.gmra.mrb[92].mxu0 %v1107_v44  ;;  %v1152_v44 = vld [vmem:[%s14549_s6 + $0x338] sm:$0xff] }
 0x20d   : > { %1605 = vmatprep.mubr.f32.mxu0 %v1112_v46  ;;  %v1151_v46 = vld [vmem:[%s14549_s6 + $0x330] sm:$0xff]  ;;  %v1156_v48 = vld [vmem:[%s14549_s6 + $0x358] sm:$0xff] }
 0x20f   : > { %v11109_v53 = vpop.f32.mrb[52].mxu0 }
 0x210   : > { %v1022_v56 = vpop.f32.mrb[53].mxu0  ;;  %1606 = vmatmul.mubr.f32.gmra.mrb[94].mxu0 %v1111_v50  ;;  %v1155_v50 = vld [vmem:[%s14549_s6 + $0x350] sm:$0xff] }
 0x211   : > { %1610 = vmatprep.mubr.f32.mxu0 %v1116_v52  ;;  %v1160_v52 = vld [vmem:[%s14549_s6 + $0x378] sm:$0xff]  ;;  %v1159_v56 = vld [vmem:[%s14549_s6 + $0x370] sm:$0xff] }
 0x213   : > { %v11117_v61 = vpop.f32.mrb[54].mxu0 }
 0x214   : > { %v1027_v62 = vpop.f32.mrb[55].mxu0  ;;  %1611 = vmatmul.mubr.f32.gmra.mrb[96].mxu0 %v1115_v57  ;;  %v1164_v57 = vld [vmem:[%s14549_s6 + $0x398] sm:$0xff] }
 0x215   : > { %1615 = vmatprep.mubr.f32.mxu0 %v1120_v58  ;;  %v1163_v58 = vld [vmem:[%s14549_s6 + $0x390] sm:$0xff]  ;;  %v1168_v62 = vld [vmem:[%s14549_s6 + $0x3b8] sm:$0xff] }
 0x217   : > { %v11125_v5 = vpop.f32.mrb[56].mxu0 }
 0x218   : > { %v1032_v6 = vpop.f32.mrb[57].mxu0  ;;  %1616 = vmatmul.mubr.f32.gmra.mrb[98].mxu0 %v1119_v0  ;;  %v1167_v0 = vld [vmem:[%s14549_s6 + $0x3b0] sm:$0xff] }
 0x219   : > { %1620 = vmatprep.mubr.f32.mxu0 %v1124_v3  ;;  %v1172_v3 = vld [vmem:[%s14549_s6 + $0x3d8] sm:$0xff]  ;;  %v1171_v6 = vld [vmem:[%s14549_s6 + $0x3d0] sm:$0xff] }
 0x21b   : > { %v11133_v11 = vpop.f32.mrb[58].mxu0 }
 0x21c   : > { %v1037_v14 = vpop.f32.mrb[59].mxu0  ;;  %1621 = vmatmul.mubr.f32.gmra.mrb[100].mxu0 %v1123_v9  ;;  %v1176_v9 = vld [vmem:[%s14549_s6 + $0x3f8] sm:$0xff] }
 0x21d   : > { %1625 = vmatprep.mubr.f32.mxu0 %v1128_v10  ;;  %v1175_v10 = vld [vmem:[%s14549_s6 + $0x3f0] sm:$0xff]  ;;  %v1691_v14 = vld [vmem:[%s14545_s2] sm:$0xff] }
 0x21f   : > { %v11141_v19 = vpop.f32.mrb[60].mxu0 }
 0x220   : > { %v1042_v21 = vpop.f32.mrb[61].mxu0  ;;  %1626 = vmatmul.mubr.f32.gmra.mrb[102].mxu0 %v1127_v15  ;;  %v1692_v15 = vld [vmem:[%s14545_s2 + $0x8] sm:$0xff] }
 0x221   : > { %1630 = vmatprep.mubr.f32.mxu0 %v1132_v17  ;;  %v8222_v17 = vpack.c.bf16 %v1692_v15, %v1691_v14 }
 0x223   : > { %v11149_v26 = vpop.f32.mrb[62].mxu0  ;;  %8223 = vmatprep.subr.bf16.mxu0 %v8222_v17 }
 0x224   : > { %v1047_v27 = vpop.f32.mrb[63].mxu0  ;;  %1631 = vmatmul.mubr.f32.gmra.mrb[104].mxu0 %v1131_v22 }
 0x225   : > { %1635 = vmatprep.mubr.f32.mxu0 %v1136_v25 }
 0x228   : > { %1636 = vmatmul.mubr.f32.gmra.mrb[106].mxu0 %v1135_v30 }
 0x229   : > { %1640 = vmatprep.mubr.f32.mxu0 %v1140_v34 }
 0x22c   : > { %1641 = vmatmul.mubr.f32.gmra.mrb[108].mxu0 %v1139_v36 }
 0x22d   : > { %1645 = vmatprep.mubr.f32.mxu0 %v1144_v39  ;;  %v2345_v39 = vld [vmem:[%s14550_s7] sm:$0xff] }
 0x230   : > { %1646 = vmatmul.mubr.f32.gmra.mrb[110].mxu0 %v1143_v40  ;;  %v10076_v40 = vmov 0  }
 0x231   : > { %1650 = vmatprep.mubr.f32.mxu0 %v1148_v41  ;;  %9345 = vset.pattern.permute.xlu0 %v10076_v40 }
 0x232   : > { %9346 = vset.pattern.permute.xlu1 %v10076_v40  ;;  %2380 = vperm.xlu0 %9345, %v2345_v39   ;;  %v2360_v40 = vld [vmem:[%s14550_s7 + $0x78] sm:$0xff] }
 0x234   : > { %1651 = vmatmul.mubr.f32.gmra.mrb[112].mxu0 %v1147_v43 }
 0x235   : > { %1655 = vmatprep.mubr.f32.mxu0 %v1152_v44  ;;  %v2347_v44 = vld [vmem:[%s14550_s7 + $0x10] sm:$0xff] }
 0x236   : > { %2390 = vperm.xlu1 %9346, %v2347_v44  }
 0x238   : > { %1656 = vmatmul.mubr.f32.gmra.mrb[114].mxu0 %v1151_v46  ;;  %v2346_v46 = vld [vmem:[%s14550_s7 + $0x8] sm:$0xff] }
 0x239   : > { %1660 = vmatprep.mubr.f32.mxu0 %v1156_v48  ;;  %2385 = vperm.xlu0 %9345, %v2346_v46   ;;  %v2362_v46 = vld [vmem:[%s14550_s7 + $0x88] sm:$0xff] }
 0x23c   : > { %1661 = vmatmul.mubr.f32.gmra.mrb[116].mxu0 %v1155_v50 }
 0x23d   : > { %1665 = vmatprep.mubr.f32.mxu0 %v1160_v52  ;;  %v2348_v52 = vld [vmem:[%s14550_s7 + $0x18] sm:$0xff] }
 0x23e   : > { %2395 = vperm.xlu1 %9346, %v2348_v52  }
 0x240   : > { %1666 = vmatmul.mubr.f32.gmra.mrb[118].mxu0 %v1159_v56  ;;  %v2349_v56 = vld [vmem:[%s14550_s7 + $0x20] sm:$0xff] }
 0x241   : > { %1670 = vmatprep.mubr.f32.mxu0 %v1164_v57  ;;  %2400 = vperm.xlu0 %9345, %v2349_v56   ;;  %v2364_v56 = vld [vmem:[%s14550_s7 + $0x98] sm:$0xff] }
 0x244   : > { %1671 = vmatmul.mubr.f32.gmra.mrb[120].mxu0 %v1163_v58 }
 0x245   : > { %1675 = vmatprep.mubr.f32.mxu0 %v1168_v62  ;;  %v2350_v62 = vld [vmem:[%s14550_s7 + $0x28] sm:$0xff] }
 0x246   : > { %2405 = vperm.xlu1 %9346, %v2350_v62  }
 0x248   : > { %1676 = vmatmul.mubr.f32.gmra.mrb[122].mxu0 %v1167_v0  ;;  %v2351_v0 = vld [vmem:[%s14550_s7 + $0x30] sm:$0xff] }
 0x249   : > { %1680 = vmatprep.mubr.f32.mxu0 %v1172_v3  ;;  %2410 = vperm.xlu0 %9345, %v2351_v0   ;;  %v2366_v0 = vld [vmem:[%s14550_s7 + $0xa8] sm:$0xff] }
 0x24c   : > { %1681 = vmatmul.mubr.f32.gmra.mrb[124].mxu0 %v1171_v6 }
 0x24d   : > { %1685 = vmatprep.mubr.f32.mxu0 %v1176_v9  ;;  %v2352_v9 = vld [vmem:[%s14550_s7 + $0x38] sm:$0xff] }
 0x24e   : > { %2415 = vperm.xlu1 %9346, %v2352_v9   ;;  %v2368_v9 = vld [vmem:[%s14550_s7 + $0xb8] sm:$0xff] }
 0x250   : > { %1686 = vmatmul.mubr.f32.gmra.mrb[126].mxu0 %v1175_v10  ;;  %v2353_v10 = vld [vmem:[%s14550_s7 + $0x40] sm:$0xff] }
 0x251   : > { %2420 = vperm.xlu0 %9345, %v2353_v10  }
 0x2a7   : > { %v1532_v21 = vpop.f32.mrb[64].mxu0 }
 0x2a8   : > { %v1534_v22 = vpop.f32.mrb[65].mxu0  ;;  %7846 = vmatprep.mubr.msk.f32.mxu0 %vm1701_vm0, %v1532_v21  ;;  %v2355_v21 = vld [vmem:[%s14550_s7 + $0x50] sm:$0xff] }
 0x2a9   : > { %2430 = vperm.xlu0 %9345, %v2355_v21  }
 0x2ab   : > { %v1537_v25 = vpop.f32.mrb[66].mxu0 }
 0x2ac   : > { %v1539_v27 = vpop.f32.mrb[67].mxu0  ;;  %7847 = vmatmul.mubr.msk.f32.vlgmr.msra.gmra.mrb[128].mxu0 %vm1701_vm0, %v1537_v25 }
 0x2ad   : > { %8225 = vmatpush3.bf16.msra.mxu0 %v8222_v17  ;;  %v2354_v17 = vld [vmem:[%s14550_s7 + $0x48] sm:$0xff]  ;;  %v2356_v27 = vld [vmem:[%s14550_s7 + $0x58] sm:$0xff] }
 0x2ae   : > { %8226 = vmatprep.subr.bf16.mxu0 %v14555_v1  ;;  %2425 = vperm.xlu1 %9346, %v2354_v17   ;;  %v2370_v17 = vld [vmem:[%s14550_s7 + $0xc8] sm:$0xff] }
 0x2af   : > { %v1542_v30 = vpop.f32.mrb[68].mxu0 }
 0x2b0   : > { %v1544_v31 = vpop.f32.mrb[69].mxu0  ;;  %7849 = vmatprep.mubr.msk.f32.mxu0 %vm1701_vm0, %v1542_v30  ;;  %v2357_v30 = vld [vmem:[%s14550_s7 + $0x60] sm:$0xff] }
 0x2b1   : > { %2440 = vperm.xlu0 %9345, %v2357_v30  }
 0x2b2   : > { %2435 = vperm.xlu1 %9346, %v2356_v27   ;;  %v2372_v27 = vld [vmem:[%s14550_s7 + $0xd8] sm:$0xff] }
 0x2b3   : > { %v1547_v32 = vpop.f32.mrb[70].mxu0 }
 0x2b4   : > { %v1549_v34 = vpop.f32.mrb[71].mxu0  ;;  %7850 = vmatmul.mubr.msk.f32.gmra.mrb[130].mxu0 %vm1701_vm0, %v1547_v32 }
 0x2b5   : > { %v2358_v34 = vld [vmem:[%s14550_s7 + $0x68] sm:$0xff] }
 0x2b6   : > { %2445 = vperm.xlu1 %9346, %v2358_v34   ;;  %v2374_v34 = vld [vmem:[%s14550_s7 + $0xe8] sm:$0xff] }
 0x2b7   : > { %v1552_v35 = vpop.f32.mrb[72].mxu0 }
 0x2b8   : > { %v1554_v36 = vpop.f32.mrb[73].mxu0  ;;  %7852 = vmatprep.mubr.msk.f32.mxu0 %vm1701_vm0, %v1552_v35  ;;  %v2359_v35 = vld [vmem:[%s14550_s7 + $0x70] sm:$0xff] }
 0x2b9   : > { %2450 = vperm.xlu0 %9345, %v2359_v35  }
 0x2ba   : > { %2455 = vperm.xlu1 %9346, %v2360_v40   ;;  %v2376_v40 = vld [vmem:[%s14550_s7 + $0xf8] sm:$0xff] }
 0x2bb   : > { %v1557_v41 = vpop.f32.mrb[74].mxu0 }
 0x2bc   : > { %v1559_v43 = vpop.f32.mrb[75].mxu0  ;;  %7853 = vmatmul.mubr.msk.f32.gmra.mrb[132].mxu0 %vm1701_vm0, %v1557_v41  ;;  %v2361_v41 = vld [vmem:[%s14550_s7 + $0x80] sm:$0xff] }
 0x2bd   : > { %2460 = vperm.xlu0 %9345, %v2361_v41  }
 0x2be   : > { %2465 = vperm.xlu1 %9346, %v2362_v46  }
 0x2bf   : > { %v1562_v48 = vpop.f32.mrb[76].mxu0 }
 0x2c0   : > { %v1564_v50 = vpop.f32.mrb[77].mxu0  ;;  %7855 = vmatprep.mubr.msk.f32.mxu0 %vm1701_vm0, %v1562_v48  ;;  %v2363_v48 = vld [vmem:[%s14550_s7 + $0x90] sm:$0xff] }
 0x2c1   : > { %2470 = vperm.xlu0 %9345, %v2363_v48  }
 0x2c2   : > { %2475 = vperm.xlu1 %9346, %v2364_v56  }
 0x2c3   : > { %v1567_v57 = vpop.f32.mrb[78].mxu0 }
 0x2c4   : > { %v1569_v58 = vpop.f32.mrb[79].mxu0  ;;  %7856 = vmatmul.mubr.msk.f32.gmra.mrb[134].mxu0 %vm1701_vm0, %v1567_v57  ;;  %v2365_v57 = vld [vmem:[%s14550_s7 + $0xa0] sm:$0xff] }
 0x2c5   : > { %2480 = vperm.xlu0 %9345, %v2365_v57  }
 0x2c6   : > { %2485 = vperm.xlu1 %9346, %v2366_v0  }
 0x2c7   : > { %v1572_v3 = vpop.f32.mrb[80].mxu0 }
 0x2c8   : > { %v1574_v6 = vpop.f32.mrb[81].mxu0  ;;  %7858 = vmatprep.mubr.msk.f32.mxu0 %vm1701_vm0, %v1572_v3  ;;  %v2367_v3 = vld [vmem:[%s14550_s7 + $0xb0] sm:$0xff] }
 0x2c9   : > { %2490 = vperm.xlu0 %9345, %v2367_v3  }
 0x2ca   : > { %2495 = vperm.xlu1 %9346, %v2368_v9  }
 0x2cb   : > { %v1577_v14 = vpop.f32.mrb[82].mxu0 }
 0x2cc   : > { %v1579_v15 = vpop.f32.mrb[83].mxu0  ;;  %7859 = vmatmul.mubr.msk.f32.gmra.mrb[136].mxu0 %vm1701_vm0, %v1577_v14  ;;  %v2369_v14 = vld [vmem:[%s14550_s7 + $0xc0] sm:$0xff] }
 0x2cd   : > { %2500 = vperm.xlu0 %9345, %v2369_v14  }
 0x2ce   : > { %2505 = vperm.xlu1 %9346, %v2370_v17  }
 0x2cf   : > { %v1582_v22 = vpop.f32.mrb[84].mxu0 }
 0x2d0   : > { %v1584_v25 = vpop.f32.mrb[85].mxu0  ;;  %7861 = vmatprep.mubr.msk.f32.mxu0 %vm1701_vm0, %v1582_v22  ;;  %v2371_v22 = vld [vmem:[%s14550_s7 + $0xd0] sm:$0xff] }
 0x2d1   : > { %2510 = vperm.xlu0 %9345, %v2371_v22  }
 0x2d2   : > { %2515 = vperm.xlu1 %9346, %v2372_v27  }
 0x2d3   : > { %v1587_v31 = vpop.f32.mrb[86].mxu0 }
 0x2d4   : > { %v1589_v32 = vpop.f32.mrb[87].mxu0  ;;  %7862 = vmatmul.mubr.msk.f32.gmra.mrb[138].mxu0 %vm1701_vm0, %v1587_v31  ;;  %v2373_v31 = vld [vmem:[%s14550_s7 + $0xe0] sm:$0xff] }
 0x2d5   : > { %2520 = vperm.xlu0 %9345, %v2373_v31  }
 0x2d6   : > { %2525 = vperm.xlu1 %9346, %v2374_v34  }
 0x2d7   : > { %v1592_v36 = vpop.f32.mrb[88].mxu0 }
 0x2d8   : > { %v1594_v39 = vpop.f32.mrb[89].mxu0  ;;  %7864 = vmatprep.mubr.msk.f32.mxu0 %vm1701_vm0, %v1592_v36  ;;  %v2375_v36 = vld [vmem:[%s14550_s7 + $0xf0] sm:$0xff] }
 0x2d9   : > { %2530 = vperm.xlu0 %9345, %v2375_v36  }
 0x2da   : > { %2535 = vperm.xlu1 %9346, %v2376_v40  }
 0x2db   : > { %v1597_v43 = vpop.f32.mrb[90].mxu0 }
 0x2dc   : > { %v1599_v44 = vpop.f32.mrb[91].mxu0  ;;  %7865 = vmatmul.mubr.msk.f32.gmra.mrb[140].mxu0 %vm1701_vm0, %v1597_v43 }
 0x2df   : > { %v1602_v50 = vpop.f32.mrb[92].mxu0 }
 0x2e0   : > { %v1604_v52 = vpop.f32.mrb[93].mxu0  ;;  %7867 = vmatprep.mubr.msk.f32.mxu0 %vm1701_vm0, %v1602_v50 }
 0x2e3   : > { %v1607_v58 = vpop.f32.mrb[94].mxu0 }
 0x2e4   : > { %v1609_v62 = vpop.f32.mrb[95].mxu0  ;;  %7868 = vmatmul.mubr.msk.f32.gmra.mrb[142].mxu0 %vm1701_vm0, %v1607_v58 }
 0x2e7   : > { %v1612_v6 = vpop.f32.mrb[96].mxu0 }
 0x2e8   : > { %v1614_v10 = vpop.f32.mrb[97].mxu0  ;;  %7870 = vmatprep.mubr.msk.f32.mxu0 %vm1701_vm0, %v1612_v6 }
 0x2eb   : > { %v1617_v15 = vpop.f32.mrb[98].mxu0 }
 0x2ec   : > { %v1619_v21 = vpop.f32.mrb[99].mxu0  ;;  %7871 = vmatmul.mubr.msk.f32.gmra.mrb[144].mxu0 %vm1701_vm0, %v1617_v15 }
 0x2ef   : > { %v1622_v25 = vpop.f32.mrb[100].mxu0 }
 0x2f0   : > { %v1624_v30 = vpop.f32.mrb[101].mxu0  ;;  %7873 = vmatprep.mubr.msk.f32.mxu0 %vm1701_vm0, %v1622_v25 }
 0x2f3   : > { %v1627_v32 = vpop.f32.mrb[102].mxu0 }
 0x2f4   : > { %v1629_v35 = vpop.f32.mrb[103].mxu0  ;;  %7874 = vmatmul.mubr.msk.f32.gmra.mrb[146].mxu0 %vm1701_vm0, %v1627_v32 }
 0x2f7   : > { %v1632_v39 = vpop.f32.mrb[104].mxu0 }
 0x2f8   : > { %v1634_v41 = vpop.f32.mrb[105].mxu0  ;;  %7876 = vmatprep.mubr.msk.f32.mxu0 %vm1701_vm0, %v1632_v39 }
 0x2fb   : > { %v1637_v43 = vpop.f32.mrb[106].mxu0 }
 0x2fc   : > { %v1639_v44 = vpop.f32.mrb[107].mxu0  ;;  %7877 = vmatmul.mubr.msk.f32.gmra.mrb[148].mxu0 %vm1701_vm0, %v1637_v43 }
 0x2ff   : > { %v1642_v46 = vpop.f32.mrb[108].mxu0 }
 0x300   : > { %v1644_v48 = vpop.f32.mrb[109].mxu0  ;;  %7879 = vmatprep.mubr.msk.f32.mxu0 %vm1701_vm0, %v1642_v46 }
 0x303   : > { %v1647_v50 = vpop.f32.mrb[110].mxu0 }
 0x304   : > { %v1649_v52 = vpop.f32.mrb[111].mxu0  ;;  %7880 = vmatmul.mubr.msk.f32.gmra.mrb[150].mxu0 %vm1701_vm0, %v1647_v50 }
 0x307   : > { %v1652_v56 = vpop.f32.mrb[112].mxu0 }
 0x308   : > { %v1654_v57 = vpop.f32.mrb[113].mxu0  ;;  %7882 = vmatprep.mubr.msk.f32.mxu0 %vm1701_vm0, %v1652_v56 }
 0x30b   : > { %v1657_v58 = vpop.f32.mrb[114].mxu0 }
 0x30c   : > { %v1659_v62 = vpop.f32.mrb[115].mxu0  ;;  %7883 = vmatmul.mubr.msk.f32.gmra.mrb[152].mxu0 %vm1701_vm0, %v1657_v58 }
 0x30f   : > { %v1662_v0 = vpop.f32.mrb[116].mxu0 }
 0x310   : > { %v1664_v3 = vpop.f32.mrb[117].mxu0  ;;  %7885 = vmatprep.mubr.msk.f32.mxu0 %vm1701_vm0, %v1662_v0 }
 0x313   : > { %v1667_v6 = vpop.f32.mrb[118].mxu0 }
 0x314   : > { %v1669_v9 = vpop.f32.mrb[119].mxu0  ;;  %7886 = vmatmul.mubr.msk.f32.gmra.mrb[154].mxu0 %vm1701_vm0, %v1667_v6 }
 0x317   : > { %v1672_v10 = vpop.f32.mrb[120].mxu0 }
 0x318   : > { %v1674_v14 = vpop.f32.mrb[121].mxu0  ;;  %7888 = vmatprep.mubr.msk.f32.mxu0 %vm1701_vm0, %v1672_v10 }
 0x31b   : > { %v1677_v15 = vpop.f32.mrb[122].mxu0 }
 0x31c   : > { %v1679_v17 = vpop.f32.mrb[123].mxu0  ;;  %7889 = vmatmul.mubr.msk.f32.gmra.mrb[156].mxu0 %vm1701_vm0, %v1677_v15 }
 0x31f   : > { %v1682_v21 = vpop.f32.mrb[124].mxu0 }
 0x320   : > { %v1684_v22 = vpop.f32.mrb[125].mxu0  ;;  %7891 = vmatprep.mubr.msk.f32.mxu0 %vm1701_vm0, %v1682_v21 }
 0x323   : > { %v1687_v25 = vpop.f32.mrb[126].mxu0 }
 0x324   : > { %v1689_v27 = vpop.f32.mrb[127].mxu0  ;;  %7892 = vmatmul.mubr.msk.f32.gmra.mrb[158].mxu0 %vm1701_vm0, %v1687_v25 }
 0x325   : > { %7898 = vmatprep.mubr.msk.f32.mxu0 %vm2023_vm1, %v10883_v51  ;;  %v2381_v51 = vpop.permute.xlu0 %2380 }
 0x328   : > { %7899 = vmatmul.mubr.msk.f32.vlgmr.msra.gmra.mrb[128].mxu0 %vm2023_vm1, %v10891_v55  ;;  %v2391_v55 = vpop.permute.xlu1 %2390 }
 0x329   : > { %7901 = vmatprep.mubr.msk.f32.mxu0 %vm2023_vm1, %v10899_v59  ;;  %v2386_v59 = vpop.permute.xlu0 %2385 }
 0x32c   : > { %7902 = vmatmul.mubr.msk.f32.gmra.mrb[130].mxu0 %vm2023_vm1, %v10907_v63  ;;  %v2396_v63 = vpop.permute.xlu1 %2395 }
 0x32d   : > { %7904 = vmatprep.mubr.msk.f32.mxu0 %vm2023_vm1, %v10915_v4  ;;  %v2401_v4 = vpop.permute.xlu0 %2400 }
 0x330   : > { %7905 = vmatmul.mubr.msk.f32.gmra.mrb[132].mxu0 %vm2023_vm1, %v10923_v8  ;;  %v2406_v8 = vpop.permute.xlu1 %2405 }
 0x331   : > { %7907 = vmatprep.mubr.msk.f32.mxu0 %vm2023_vm1, %v10931_v12  ;;  %v2411_v12 = vpop.permute.xlu0 %2410 }
 0x334   : > { %7908 = vmatmul.mubr.msk.f32.gmra.mrb[134].mxu0 %vm2023_vm1, %v10939_v16  ;;  %v2416_v16 = vpop.permute.xlu1 %2415 }
 0x335   : > { %7910 = vmatprep.mubr.msk.f32.mxu0 %vm2023_vm1, %v10947_v20  ;;  %v2421_v20 = vpop.permute.xlu0 %2420 }
 0x338   : > { %7911 = vmatmul.mubr.msk.f32.gmra.mrb[136].mxu0 %vm2023_vm1, %v10955_v24  ;;  %v2426_v24 = vpop.permute.xlu1 %2425 }
 0x339   : > { %7913 = vmatprep.mubr.msk.f32.mxu0 %vm2023_vm1, %v10963_v28  ;;  %v2431_v28 = vpop.permute.xlu0 %2430 }
 0x33c   : > { %7914 = vmatmul.mubr.msk.f32.gmra.mrb[138].mxu0 %vm2023_vm1, %v10983_v38  ;;  %v2436_v38 = vpop.permute.xlu1 %2435 }
 0x33d   : > { %7916 = vmatprep.mubr.msk.f32.mxu0 %vm2023_vm1, %v10997_v45  ;;  %v11422_v45 = vld [vmem:[%s14547_s4] ss:$0 sm:$0xff] }
 0x33e   : > { %v2548_v31 = vmul.f32 %v11422_v45, %v2401_v4  ;;  %v2551_v40 = vmul.f32 %v11422_v45, %v2416_v16  ;;  %v2550_v43 = vmul.f32 %v11422_v45, %v2411_v12  ;;  %v2552_v52 = vmul.f32 %v11422_v45, %v2421_v20 }
 0x33f   : > { %v2553_v0 = vmul.f32 %v11422_v45, %v2426_v24  ;;  %v2554_v17 = vmul.f32 %v11422_v45, %v2431_v28  ;;  %v2555_v27 = vmul.f32 %v11422_v45, %v2436_v38 }
 0x340   : > { %7917 = vmatmul.mubr.msk.f32.gmra.mrb[140].mxu0 %vm2023_vm1, %v11005_v49  ;;  %v2545_v49 = vmul.f32 %v11422_v45, %v2386_v59 }
 0x341   : > { %7919 = vmatprep.mubr.msk.f32.mxu0 %vm2023_vm1, %v11013_v54  ;;  %v2544_v54 = vmul.f32 %v11422_v45, %v2381_v51 }
 0x344   : > { %7920 = vmatmul.mubr.msk.f32.gmra.mrb[142].mxu0 %vm2023_vm1, %v11021_v60  ;;  %v11426_v60 = vpop.permute.xlu0 %2440 }
 0x345   : > { %7922 = vmatprep.mubr.msk.f32.mxu0 %vm2023_vm1, %v11029_v2  ;;  %v2556_v20 = vmul.f32 %v11422_v45, %v11426_v60 }
 0x348   : > { %7923 = vmatmul.mubr.msk.f32.gmra.mrb[144].mxu0 %vm2023_vm1, %v11037_v7  ;;  %v11428_v7 = vpop.permute.xlu1 %2445 }
 0x349   : > { %7925 = vmatprep.mubr.msk.f32.mxu0 %vm2023_vm1, %v11045_v13 }
 0x34c   : > { %7926 = vmatmul.mubr.msk.f32.gmra.mrb[146].mxu0 %vm2023_vm1, %v11053_v18 }
 0x34d   : > { %7928 = vmatprep.mubr.msk.f32.mxu0 %vm2023_vm1, %v11061_v23 }
 0x350   : > { %7929 = vmatmul.mubr.msk.f32.gmra.mrb[148].mxu0 %vm2023_vm1, %v11069_v29  ;;  %v2547_v29 = vmul.f32 %v11422_v45, %v2396_v63 }
 0x351   : > { %7931 = vmatprep.mubr.msk.f32.mxu0 %vm2023_vm1, %v11077_v33 }
 0x354   : > { %7932 = vmatmul.mubr.msk.f32.gmra.mrb[150].mxu0 %vm2023_vm1, %v11085_v37  ;;  %v2546_v37 = vmul.f32 %v11422_v45, %v2391_v55 }
 0x355   : > { %7934 = vmatprep.mubr.msk.f32.mxu0 %vm2023_vm1, %v11093_v42 }
 0x358   : > { %7935 = vmatmul.mubr.msk.f32.gmra.mrb[152].mxu0 %vm2023_vm1, %v11101_v47 }
 0x359   : > { %7937 = vmatprep.mubr.msk.f32.mxu0 %vm2023_vm1, %v11109_v53 }
 0x35c   : > { %7938 = vmatmul.mubr.msk.f32.gmra.mrb[154].mxu0 %vm2023_vm1, %v11117_v61 }
 0x35d   : > { %7940 = vmatprep.mubr.msk.f32.mxu0 %vm2023_vm1, %v11125_v5  ;;  %v11433_v5 = vpop.permute.xlu0 %2450 }
 0x360   : > { %7941 = vmatmul.mubr.msk.f32.gmra.mrb[156].mxu0 %vm2023_vm1, %v11133_v11 }
 0x361   : > { %7943 = vmatprep.mubr.msk.f32.mxu0 %vm2023_vm1, %v11141_v19  ;;  %v2549_v19 = vmul.f32 %v11422_v45, %v2406_v8  ;;  %v11444_v44 = vpop.permute.xlu0 %2460 }
 0x364   : > { %7944 = vmatmul.mubr.msk.f32.gmra.mrb[158].mxu0 %vm2023_vm1, %v11149_v26  ;;  %v11437_v26 = vpop.permute.xlu1 %2455 }
 0x365   : > { %v2471_v51 = vpop.permute.xlu0 %2470 }
 0x368   : > { %v11447_v56 = vpop.permute.xlu1 %2465 }
 0x36c   : > { %v2476_v63 = vpop.permute.xlu1 %2475 }
 0x3fb   : > { %v7900_v2 = vpop.f32.mrb[128].mxu0 }
 0x3fc   : > { %v2577_v13 = vadd.f32 %v7900_v2, %v2545_v49  ;;  %v2186_v18 = vpop.f32.mrb[129].mxu0  ;;  %v2557_v49 = vmul.f32 %v11422_v45, %v11428_v7 }
 0x3fd   : > { %v2576_v23 = vadd.f32 %v2544_v54, %v2186_v18  ;;  %v2481_v18 = vpop.permute.xlu0 %2480 }
 0x3fe   : > { %v2609_v33 = vmax.f32 %v2577_v13, 0.0 }
 0x3ff   : > { %v2608_v42 = vmax.f32 %v2576_v23, 0.0  ;;  %v7903_v47 = vpop.f32.mrb[130].mxu0 }
 0x400   : > { %2642 = vst.msk [vmem:[#allocation2 + $0x8] sm:$0xff] %vm2640_vm2, %v2609_v33  ;;  %v2579_v53 = vadd.f32 %v7903_v47, %v2547_v29  ;;  %v2196_v61 = vpop.f32.mrb[131].mxu0  ;;  %v2558_v33 = vmul.f32 %v11422_v45, %v11433_v5 }
 0x401   : > { %2641 = vst.msk [vmem:[#allocation2] sm:$0xff] %vm2640_vm2, %v2608_v42  ;;  %v2578_v11 = vadd.f32 %v2546_v37, %v2196_v61  ;;  %v2486_v37 = vpop.permute.xlu1 %2485 }
 0x402   : > { %v2611_v30 = vmax.f32 %v2579_v53, 0.0  ;;  %v2559_v53 = vmul.f32 %v11422_v45, %v11437_v26 }
 0x403   : > { %v2610_v32 = vmax.f32 %v2578_v11, 0.0  ;;  %v7906_v34 = vpop.f32.mrb[132].mxu0 }
 0x404   : > { %2644 = vst.msk [vmem:[#allocation2 + $0x18] sm:$0xff] %vm2640_vm2, %v2611_v30  ;;  %v2581_v35 = vadd.f32 %v7906_v34, %v2549_v19  ;;  %v2206_v36 = vpop.f32.mrb[133].mxu0 }
 0x405   : > { %2643 = vst.msk [vmem:[#allocation2 + $0x10] sm:$0xff] %vm2640_vm2, %v2610_v32  ;;  %v2580_v39 = vadd.f32 %v2548_v31, %v2206_v36  ;;  %v2560_v32 = vmul.f32 %v11422_v45, %v11444_v44  ;;  %v2561_v36 = vmul.f32 %v11422_v45, %v11447_v56 }
 0x406   : > { %v2613_v41 = vmax.f32 %v2581_v35, 0.0 }
 0x407   : > { %v2612_v46 = vmax.f32 %v2580_v39, 0.0  ;;  %v7909_v48 = vpop.f32.mrb[134].mxu0  ;;  %v2738_v50 = vld [vmem:[#allocation2 + $0x8] sm:$0xff]  ;;  %v2491_v39 = vpop.permute.xlu0 %2490 }
 0x408   : > { %2646 = vst.msk [vmem:[#allocation2 + $0x28] sm:$0xff] %vm2640_vm2, %v2613_v41  ;;  %v2583_v57 = vadd.f32 %v7909_v48, %v2551_v40  ;;  %v2216_v58 = vpop.f32.mrb[135].mxu0  ;;  %v2737_v62 = vld [vmem:[#allocation2] sm:$0xff] }
 0x409   : > { %2645 = vst.msk [vmem:[#allocation2 + $0x20] sm:$0xff] %vm2640_vm2, %v2612_v46  ;;  %v2582_v3 = vadd.f32 %v2550_v43, %v2216_v58  ;;  %v11452_v6 = vpack.i.bf16 %v2738_v50, %v2737_v62  ;;  %v2496_v43 = vpop.permute.xlu1 %2495  ;;  %v2563_v62 = vmul.f32 %v11422_v45, %v2476_v63 }
 0x40a   : > { %v2615_v9 = vmax.f32 %v2583_v57, 0.0 }
 0x40b   : > { %v2614_v10 = vmax.f32 %v2582_v3, 0.0  ;;  %9348 = vrot.lane.b32.xlu0 %v11452_v6, %s10077_s14  ;;  %v7912_v14 = vpop.f32.mrb[136].mxu0  ;;  %v2740_v15 = vld [vmem:[#allocation2 + $0x18] sm:$0xff] }
 0x40c   : > { %2648 = vst.msk [vmem:[#allocation2 + $0x38] sm:$0xff] %vm2640_vm2, %v2615_v9  ;;  %v2585_v21 = vadd.f32 %v7912_v14, %v2553_v0  ;;  %v2226_v22 = vpop.f32.mrb[137].mxu0  ;;  %v2739_v25 = vld [vmem:[#allocation2 + $0x10] sm:$0xff] }
 0x40d   : > { %2647 = vst.msk [vmem:[#allocation2 + $0x30] sm:$0xff] %vm2640_vm2, %v2614_v10  ;;  %v2584_v55 = vadd.f32 %v2552_v52, %v2226_v22  ;;  %v11460_v59 = vpack.i.bf16 %v2740_v15, %v2739_v25  ;;  %v2562_v52 = vmul.f32 %v11422_v45, %v2471_v51  ;;  %v2501_v10 = vpop.permute.xlu0 %2500  ;;  %v2506_v22 = vpop.permute.xlu1 %2505 }
 0x40e   : > { %v2617_v4 = vmax.f32 %v2585_v21, 0.0  ;;  %v2564_v21 = vmul.f32 %v11422_v45, %v2481_v18 }
 0x40f   : > { %v2616_v8 = vmax.f32 %v2584_v55, 0.0  ;;  %9353 = vrot.lane.b32.xlu1 %v11460_v59, %s10077_s14  ;;  %v7915_v12 = vpop.f32.mrb[138].mxu0  ;;  %v2742_v16 = vld [vmem:[#allocation2 + $0x28] sm:$0xff]  ;;  %v2565_v55 = vmul.f32 %v11422_v45, %v2486_v37 }
 0x410   : > { %2650 = vst.msk [vmem:[#allocation2 + $0x48] sm:$0xff] %vm2640_vm2, %v2617_v4  ;;  %v2587_v24 = vadd.f32 %v7915_v12, %v2555_v27  ;;  %v2236_v28 = vpop.f32.mrb[139].mxu0  ;;  %v2741_v38 = vld [vmem:[#allocation2 + $0x20] sm:$0xff] }
 0x411   : > { %2649 = vst.msk [vmem:[#allocation2 + $0x40] sm:$0xff] %vm2640_vm2, %v2616_v8  ;;  %v2586_v54 = vadd.f32 %v2554_v17, %v2236_v28  ;;  %v11470_v2 = vpack.i.bf16 %v2742_v16, %v2741_v38 }
 0x412   : > { %v2619_v13 = vmax.f32 %v2587_v24, 0.0  ;;  %v2566_v24 = vmul.f32 %v11422_v45, %v2491_v39 }
 0x413   : > { %v2618_v23 = vmax.f32 %v2586_v54, 0.0  ;;  %9358 = vrot.lane.b32.xlu0 %v11470_v2, %s10077_s14  ;;  %v7918_v60 = vpop.f32.mrb[140].mxu0  ;;  %v2744_v29 = vld [vmem:[#allocation2 + $0x38] sm:$0xff]  ;;  %v2567_v54 = vmul.f32 %v11422_v45, %v2496_v43 }
 0x414   : > { %2652 = vst.msk [vmem:[#allocation2 + $0x58] sm:$0xff] %vm2640_vm2, %v2619_v13  ;;  %v2589_v7 = vadd.f32 %v7918_v60, %v2557_v49  ;;  %v2246_v42 = vpop.f32.mrb[141].mxu0  ;;  %v2743_v47 = vld [vmem:[#allocation2 + $0x30] sm:$0xff]  ;;  %v2511_v13 = vpop.permute.xlu0 %2510 }
 0x415   : > { %2651 = vst.msk [vmem:[#allocation2 + $0x50] sm:$0xff] %vm2640_vm2, %v2618_v23  ;;  %v2588_v61 = vadd.f32 %v2556_v20, %v2246_v42  ;;  %v11480_v11 = vpack.i.bf16 %v2744_v29, %v2743_v47  ;;  %v2516_v60 = vpop.permute.xlu1 %2515  ;;  %v2568_v42 = vmul.f32 %v11422_v45, %v2501_v10 }
 0x416   : > { %v2621_v19 = vmax.f32 %v2589_v7, 0.0 }
 0x417   : > { %v2620_v30 = vmax.f32 %v2588_v61, 0.0  ;;  %9363 = vrot.lane.b32.xlu1 %v11480_v11, %s10077_s14  ;;  %v7921_v5 = vpop.f32.mrb[142].mxu0  ;;  %v2746_v31 = vld [vmem:[#allocation2 + $0x48] sm:$0xff] }
 0x418   : > { %2654 = vst.msk [vmem:[#allocation2 + $0x68] sm:$0xff] %vm2640_vm2, %v2621_v19  ;;  %v2591_v34 = vadd.f32 %v7921_v5, %v2559_v53  ;;  %v2256_v35 = vpop.f32.mrb[143].mxu0  ;;  %v2745_v26 = vld [vmem:[#allocation2 + $0x40] sm:$0xff]  ;;  %v2569_v19 = vmul.f32 %v11422_v45, %v2506_v22 }
 0x419   : > { %2653 = vst.msk [vmem:[#allocation2 + $0x60] sm:$0xff] %vm2640_vm2, %v2620_v30  ;;  %v2590_v40 = vadd.f32 %v2558_v33, %v2256_v35  ;;  %v11490_v41 = vpack.i.bf16 %v2746_v31, %v2745_v26  ;;  %v2526_v39 = vpop.permute.xlu1 %2525 }
 0x41a   : > { %v2623_v46 = vmax.f32 %v2591_v34, 0.0 }
 0x41b   : > { %v2622_v48 = vmax.f32 %v2590_v40, 0.0  ;;  %9368 = vrot.lane.b32.xlu0 %v11490_v41, %s10077_s14  ;;  %v7924_v44 = vpop.f32.mrb[144].mxu0  ;;  %v2748_v50 = vld [vmem:[#allocation2 + $0x58] sm:$0xff] }
 0x41c   : > { %2656 = vst.msk [vmem:[#allocation2 + $0x78] sm:$0xff] %vm2640_vm2, %v2623_v46  ;;  %v2593_v57 = vadd.f32 %v7924_v44, %v2561_v36  ;;  %v2266_v56 = vpop.f32.mrb[145].mxu0  ;;  %v2747_v58 = vld [vmem:[#allocation2 + $0x50] sm:$0xff]  ;;  %v2570_v36 = vmul.f32 %v11422_v45, %v2511_v13 }
 0x41d   : > { %2655 = vst.msk [vmem:[#allocation2 + $0x70] sm:$0xff] %vm2640_vm2, %v2622_v48  ;;  %v2592_v0 = vadd.f32 %v2560_v32, %v2266_v56  ;;  %v11498_v3 = vpack.i.bf16 %v2748_v50, %v2747_v58  ;;  %v2521_v32 = vpop.permute.xlu0 %2520  ;;  %v2571_v48 = vmul.f32 %v11422_v45, %v2516_v60  ;;  %v2536_v22 = vpop.permute.xlu1 %2535 }
 0x41e   : > { %v2625_v9 = vmax.f32 %v2593_v57, 0.0 }
 0x41f   : > { %v2624_v14 = vmax.f32 %v2592_v0, 0.0  ;;  %9373 = vrot.lane.b32.xlu1 %v11498_v3, %s10077_s14  ;;  %v7927_v15 = vpop.f32.mrb[146].mxu0  ;;  %v2750_v17 = vld [vmem:[#allocation2 + $0x68] sm:$0xff] }
 0x420   : > { %2658 = vst.msk [vmem:[#allocation2 + $0x88] sm:$0xff] %vm2640_vm2, %v2625_v9  ;;  %v2595_v25 = vadd.f32 %v7927_v15, %v2563_v62  ;;  %v2276_v27 = vpop.f32.mrb[147].mxu0  ;;  %v2749_v51 = vld [vmem:[#allocation2 + $0x60] sm:$0xff]  ;;  %v2572_v62 = vmul.f32 %v11422_v45, %v2521_v32 }
 0x421   : > { %2657 = vst.msk [vmem:[#allocation2 + $0x80] sm:$0xff] %vm2640_vm2, %v2624_v14  ;;  %v2594_v63 = vadd.f32 %v2562_v52, %v2276_v27  ;;  %v11506_v4 = vpack.i.bf16 %v2750_v17, %v2749_v51  ;;  %v2573_v14 = vmul.f32 %v11422_v45, %v2526_v39  ;;  %v2531_v15 = vpop.permute.xlu0 %2530 }
 0x422   : > { %v2627_v8 = vmax.f32 %v2595_v25, 0.0 }
 0x423   : > { %v2626_v12 = vmax.f32 %v2594_v63, 0.0  ;;  %9378 = vrot.lane.b32.xlu0 %v11506_v4, %s10077_s14  ;;  %v7930_v16 = vpop.f32.mrb[148].mxu0  ;;  %v2752_v20 = vld [vmem:[#allocation2 + $0x78] sm:$0xff]  ;;  %v2574_v63 = vmul.f32 %v11422_v45, %v2531_v15 }
 0x424   : > { %2660 = vst.msk [vmem:[#allocation2 + $0x98] sm:$0xff] %vm2640_vm2, %v2627_v8  ;;  %v2597_v28 = vadd.f32 %v7930_v16, %v2565_v55  ;;  %v2286_v38 = vpop.f32.mrb[149].mxu0  ;;  %v2751_v49 = vld [vmem:[#allocation2 + $0x70] sm:$0xff] }
 0x425   : > { %2659 = vst.msk [vmem:[#allocation2 + $0x90] sm:$0xff] %vm2640_vm2, %v2626_v12  ;;  %v2596_v18 = vadd.f32 %v2564_v21, %v2286_v38  ;;  %v11514_v23 = vpack.i.bf16 %v2752_v20, %v2751_v49  ;;  %v2575_v20 = vmul.f32 %v11422_v45, %v2536_v22 }
 0x426   : > { %v2629_v29 = vmax.f32 %v2597_v28, 0.0 }
 0x427   : > { %v2628_v33 = vmax.f32 %v2596_v18, 0.0  ;;  %9383 = vrot.lane.b32.xlu1 %v11514_v23, %s10077_s14  ;;  %v7933_v37 = vpop.f32.mrb[150].mxu0  ;;  %v2754_v7 = vld [vmem:[#allocation2 + $0x88] sm:$0xff] }
 0x428   : > { %2662 = vst.msk [vmem:[#allocation2 + $0xa8] sm:$0xff] %vm2640_vm2, %v2629_v29  ;;  %v2599_v47 = vadd.f32 %v7933_v37, %v2567_v54  ;;  %v2296_v53 = vpop.f32.mrb[151].mxu0  ;;  %v2753_v61 = vld [vmem:[#allocation2 + $0x80] sm:$0xff] }
 0x429   : > { %2661 = vst.msk [vmem:[#allocation2 + $0xa0] sm:$0xff] %vm2640_vm2, %v2628_v33  ;;  %v2598_v30 = vadd.f32 %v2566_v24, %v2296_v53  ;;  %v11522_v5 = vpack.i.bf16 %v2754_v7, %v2753_v61 }
 0x42a   : > { %v2631_v31 = vmax.f32 %v2599_v47, 0.0 }
 0x42b   : > { %v2630_v34 = vmax.f32 %v2598_v30, 0.0  ;;  %9388 = vrot.lane.b32.xlu0 %v11522_v5, %s10077_s14  ;;  %v7936_v35 = vpop.f32.mrb[152].mxu0  ;;  %v2756_v26 = vld [vmem:[#allocation2 + $0x98] sm:$0xff]  ;;  %v2674_v30 = vld [vmem:[%s14551_s8 + $0x8] sm:$0xff] }
 0x42c   : > { %2664 = vst.msk [vmem:[#allocation2 + $0xb8] sm:$0xff] %vm2640_vm2, %v2631_v31  ;;  %v2601_v40 = vadd.f32 %v7936_v35, %v2569_v19  ;;  %v2306_v43 = vpop.f32.mrb[153].mxu0  ;;  %v2755_v46 = vld [vmem:[#allocation2 + $0x90] sm:$0xff]  ;;  %3347 = vmatprep.mubr.f32.mxu1 %v2674_v30 }
 0x42d   : > { %2663 = vst.msk [vmem:[#allocation2 + $0xb0] sm:$0xff] %vm2640_vm2, %v2630_v34  ;;  %v2600_v44 = vadd.f32 %v2568_v42, %v2306_v43  ;;  %v11530_v50 = vpack.i.bf16 %v2756_v26, %v2755_v46 }
 0x42e   : > { %v2633_v52 = vmax.f32 %v2601_v40, 0.0 }
 0x42f   : > { %v2632_v57 = vmax.f32 %v2600_v44, 0.0  ;;  %9393 = vrot.lane.b32.xlu1 %v11530_v50, %s10077_s14  ;;  %v7939_v56 = vpop.f32.mrb[154].mxu0  ;;  %v2758_v58 = vld [vmem:[#allocation2 + $0xa8] sm:$0xff] }
 0x430   : > { %2666 = vst.msk [vmem:[#allocation2 + $0xc8] sm:$0xff] %vm2640_vm2, %v2633_v52  ;;  %v2603_v0 = vadd.f32 %v7939_v56, %v2571_v48  ;;  %v2316_v9 = vpop.f32.mrb[155].mxu0  ;;  %v2757_v10 = vld [vmem:[#allocation2 + $0xa0] sm:$0xff] }
 0x431   : > { %2665 = vst.msk [vmem:[#allocation2 + $0xc0] sm:$0xff] %vm2640_vm2, %v2632_v57  ;;  %v2602_v17 = vadd.f32 %v2570_v36, %v2316_v9  ;;  %v11538_v21 = vpack.i.bf16 %v2758_v58, %v2757_v10 }
 0x432   : > { %v2635_v25 = vmax.f32 %v2603_v0, 0.0 }
 0x433   : > { %v2634_v27 = vmax.f32 %v2602_v17, 0.0  ;;  %9398 = vrot.lane.b32.xlu0 %v11538_v21, %s10077_s14  ;;  %v7942_v51 = vpop.f32.mrb[156].mxu0  ;;  %v2760_v55 = vld [vmem:[#allocation2 + $0xb8] sm:$0xff] }
 0x434   : > { %2668 = vst.msk [vmem:[#allocation2 + $0xd8] sm:$0xff] %vm2640_vm2, %v2635_v25  ;;  %v2605_v8 = vadd.f32 %v7942_v51, %v2573_v14  ;;  %v2326_v12 = vpop.f32.mrb[157].mxu0  ;;  %v2759_v16 = vld [vmem:[#allocation2 + $0xb0] sm:$0xff] }
 0x435   : > { %2667 = vst.msk [vmem:[#allocation2 + $0xd0] sm:$0xff] %vm2640_vm2, %v2634_v27  ;;  %v2604_v24 = vadd.f32 %v2572_v62, %v2326_v12  ;;  %v11546_v28 = vpack.i.bf16 %v2760_v55, %v2759_v16 }
 0x436   : > { %v2637_v38 = vmax.f32 %v2605_v8, 0.0 }
 0x437   : > { %v2636_v49 = vmax.f32 %v2604_v24, 0.0  ;;  %9403 = vrot.lane.b32.xlu1 %v11546_v28, %s10077_s14  ;;  %v7945_v54 = vpop.f32.mrb[158].mxu0  ;;  %v2762_v13 = vld [vmem:[#allocation2 + $0xc8] sm:$0xff] }
 0x438   : > { %2670 = vst.msk [vmem:[#allocation2 + $0xe8] sm:$0xff] %vm2640_vm2, %v2637_v38  ;;  %v2607_v18 = vadd.f32 %v7945_v54, %v2575_v20  ;;  %v2336_v60 = vpop.f32.mrb[159].mxu0  ;;  %v2761_v29 = vld [vmem:[#allocation2 + $0xc0] sm:$0xff] }
 0x439   : > { %2669 = vst.msk [vmem:[#allocation2 + $0xe0] sm:$0xff] %vm2640_vm2, %v2636_v49  ;;  %v2606_v45 = vadd.f32 %v2574_v63, %v2336_v60  ;;  %v11552_v33 = vpack.i.bf16 %v2762_v13, %v2761_v29 }
 0x43a   : > { %v2639_v37 = vmax.f32 %v2607_v18, 0.0 }
 0x43b   : > { %v2638_v7 = vmax.f32 %v2606_v45, 0.0  ;;  %9408 = vrot.lane.b32.xlu0 %v11552_v33, %s10077_s14  ;;  %v2764_v42 = vld [vmem:[#allocation2 + $0xd8] sm:$0xff] }
 0x43c   : > { %2672 = vst.msk [vmem:[#allocation2 + $0xf8] sm:$0xff] %vm2640_vm2, %v2639_v37  ;;  %v2763_v47 = vld [vmem:[#allocation2 + $0xd0] sm:$0xff] }
 0x43d   : > { %2671 = vst.msk [vmem:[#allocation2 + $0xf0] sm:$0xff] %vm2640_vm2, %v2638_v7  ;;  %v11558_v53 = vpack.i.bf16 %v2764_v42, %v2763_v47 }
 0x43f   : > { %9413 = vrot.lane.b32.xlu1 %v11558_v53, %s10077_s14  ;;  %v2766_v61 = vld [vmem:[#allocation2 + $0xe8] sm:$0xff] }
 0x440   : > { %v2765_v19 = vld [vmem:[#allocation2 + $0xe0] sm:$0xff] }
 0x441   : > { %v11565_v31 = vpack.i.bf16 %v2766_v61, %v2765_v19 }
 0x443   : > { %9418 = vrot.lane.b32.xlu0 %v11565_v31, %s10077_s14  ;;  %v2768_v32 = vld [vmem:[#allocation2 + $0xf8] sm:$0xff] }
 0x444   : > { %v2767_v34 = vld [vmem:[#allocation2 + $0xf0] sm:$0xff] }
 0x445   : > { %v11569_v35 = vpack.i.bf16 %v2768_v32, %v2767_v34 }
 0x447   : > { %9428 = vrot.lane.b32.xlu0 %v11452_v6, %s10078_s19  ;;  %9423 = vrot.lane.b32.xlu1 %v11569_v35, %s10077_s14  ;;  %s10082_s14 = smov 99  }
 0x44b   : > { %9438 = vrot.lane.b32.xlu0 %v11470_v2, %s10078_s19  ;;  %9433 = vrot.lane.b32.xlu1 %v11460_v59, %s10078_s19 }
 0x44f   : > { %9448 = vrot.lane.b32.xlu0 %v11490_v41, %s10078_s19  ;;  %9443 = vrot.lane.b32.xlu1 %v11480_v11, %s10078_s19 }
 0x453   : > { %9458 = vrot.lane.b32.xlu0 %v11506_v4, %s10078_s19  ;;  %9453 = vrot.lane.b32.xlu1 %v11498_v3, %s10078_s19 }
 0x457   : > { %9468 = vrot.lane.b32.xlu0 %v11522_v5, %s10078_s19  ;;  %9463 = vrot.lane.b32.xlu1 %v11514_v23, %s10078_s19 }
 0x45b   : > { %9478 = vrot.lane.b32.xlu0 %v11538_v21, %s10078_s19  ;;  %9473 = vrot.lane.b32.xlu1 %v11530_v50, %s10078_s19 }
 0x45f   : > { %9488 = vrot.lane.b32.xlu0 %v11552_v33, %s10078_s19  ;;  %9483 = vrot.lane.b32.xlu1 %v11546_v28, %s10078_s19 }
 0x463   : > { %9498 = vrot.lane.b32.xlu0 %v11565_v31, %s10078_s19  ;;  %9493 = vrot.lane.b32.xlu1 %v11558_v53, %s10078_s19 }
 0x467   : > { %9508 = vrot.lane.b32.xlu0 %v11452_v6, %s10079_s20  ;;  %9503 = vrot.lane.b32.xlu1 %v11569_v35, %s10078_s19 }
 0x46b   : > { %9518 = vrot.lane.b32.xlu0 %v11470_v2, %s10079_s20  ;;  %9513 = vrot.lane.b32.xlu1 %v11460_v59, %s10079_s20 }
 0x46f   : > { %9528 = vrot.lane.b32.xlu0 %v11490_v41, %s10079_s20  ;;  %9523 = vrot.lane.b32.xlu1 %v11480_v11, %s10079_s20 }
 0x473   : > { %9538 = vrot.lane.b32.xlu0 %v11506_v4, %s10079_s20  ;;  %9533 = vrot.lane.b32.xlu1 %v11498_v3, %s10079_s20 }
 0x477   : > { %9548 = vrot.lane.b32.xlu0 %v11522_v5, %s10079_s20  ;;  %9543 = vrot.lane.b32.xlu1 %v11514_v23, %s10079_s20 }
 0x47b   : > { %9558 = vrot.lane.b32.xlu0 %v11538_v21, %s10079_s20  ;;  %9553 = vrot.lane.b32.xlu1 %v11530_v50, %s10079_s20 }
 0x47d   : > { %v9349_v26 = vpop.permute.xlu0 %9348 }
 0x47e   : > { %v9351_v36 = vunpack.i.h.bf16 %v9349_v26  ;;  %v9350_v39 = vunpack.i.l.bf16 %v9349_v26 }
 0x47f   : > { %9568 = vrot.lane.b32.xlu0 %v11552_v33, %s10079_s20  ;;  %9563 = vrot.lane.b32.xlu1 %v11546_v28, %s10079_s20 }
 0x480   : > { %v8275_v40 = vpack.c.bf16 %v9351_v36, %v9350_v39 }
 0x481   : > { %v9354_v43 = vpop.permute.xlu1 %9353 }
 0x482   : > { %v9356_v46 = vunpack.i.h.bf16 %v9354_v43  ;;  %v9355_v48 = vunpack.i.l.bf16 %v9354_v43  ;;  %8276 = vmatpush1.bf16.msra.mxu1 %v8275_v40 }
 0x483   : > { %9578 = vrot.lane.b32.xlu0 %v11565_v31, %s10079_s20  ;;  %9573 = vrot.lane.b32.xlu1 %v11558_v53, %s10079_s20 }
 0x484   : > { %8277 = vmatprep.subr.bf16.mxu1 %v14555_v1  ;;  %v8278_v44 = vpack.c.bf16 %v9356_v46, %v9355_v48 }
 0x485   : > { %v9359_v52 = vpop.permute.xlu0 %9358 }
 0x486   : > { %v9361_v57 = vunpack.i.h.bf16 %v9359_v52  ;;  %v9360_v56 = vunpack.i.l.bf16 %v9359_v52  ;;  %8279 = vmatpush1.bf16.msra.mxu1 %v8278_v44 }
 0x487   : > { %9588 = vrot.lane.b32.xlu0 %v11452_v6, %s10080_s22  ;;  %9583 = vrot.lane.b32.xlu1 %v11569_v35, %s10079_s20 }
 0x488   : > { %8280 = vmatprep.subr.bf16.mxu1 %v14555_v1  ;;  %v8281_v58 = vpack.c.bf16 %v9361_v57, %v9360_v56 }
 0x489   : > { %v9364_v62 = vpop.permute.xlu1 %9363 }
 0x48a   : > { %v9366_v0 = vunpack.i.h.bf16 %v9364_v62  ;;  %v9365_v9 = vunpack.i.l.bf16 %v9364_v62  ;;  %8282 = vmatpush1.bf16.msra.mxu1 %v8281_v58 }
 0x48b   : > { %9598 = vrot.lane.b32.xlu0 %v11470_v2, %s10080_s22  ;;  %9593 = vrot.lane.b32.xlu1 %v11460_v59, %s10080_s22 }
 0x48c   : > { %8283 = vmatprep.subr.bf16.mxu1 %v14555_v1  ;;  %v8284_v10 = vpack.c.bf16 %v9366_v0, %v9365_v9 }
 0x48d   : > { %v9369_v14 = vpop.permute.xlu0 %9368 }
 0x48e   : > { %v9371_v15 = vunpack.i.h.bf16 %v9369_v14  ;;  %v9370_v17 = vunpack.i.l.bf16 %v9369_v14  ;;  %8285 = vmatpush1.bf16.msra.mxu1 %v8284_v10 }
 0x48f   : > { %9608 = vrot.lane.b32.xlu0 %v11490_v41, %s10080_s22  ;;  %9603 = vrot.lane.b32.xlu1 %v11480_v11, %s10080_s22 }
 0x490   : > { %8286 = vmatprep.subr.bf16.mxu1 %v14555_v1  ;;  %v8287_v22 = vpack.c.bf16 %v9371_v15, %v9370_v17 }
 0x491   : > { %v9374_v25 = vpop.permute.xlu1 %9373 }
 0x492   : > { %v9376_v27 = vunpack.i.h.bf16 %v9374_v25  ;;  %v9375_v51 = vunpack.i.l.bf16 %v9374_v25  ;;  %8288 = vmatpush1.bf16.msra.mxu1 %v8287_v22 }
 0x493   : > { %9618 = vrot.lane.b32.xlu0 %v11506_v4, %s10080_s22  ;;  %9613 = vrot.lane.b32.xlu1 %v11498_v3, %s10080_s22 }
 0x494   : > { %8289 = vmatprep.subr.bf16.mxu1 %v14555_v1  ;;  %v8290_v55 = vpack.c.bf16 %v9376_v27, %v9375_v51  ;;  %v2673_v51 = vld [vmem:[%s14551_s8] sm:$0xff] }
 0x495   : > { %v9379_v63 = vpop.permute.xlu0 %9378 }
 0x496   : > { %v9381_v8 = vunpack.i.h.bf16 %v9379_v63  ;;  %v9380_v12 = vunpack.i.l.bf16 %v9379_v63  ;;  %8291 = vmatpush1.bf16.msra.mxu1 %v8290_v55  ;;  %v2676_v55 = vld [vmem:[%s14551_s8 + $0x18] sm:$0xff] }
 0x497   : > { %9628 = vrot.lane.b32.xlu0 %v11522_v5, %s10080_s22  ;;  %9623 = vrot.lane.b32.xlu1 %v11514_v23, %s10080_s22 }
 0x498   : > { %8292 = vmatprep.subr.bf16.mxu1 %v14555_v1  ;;  %v8293_v16 = vpack.c.bf16 %v9381_v8, %v9380_v12 }
 0x499   : > { %v9384_v20 = vpop.permute.xlu1 %9383 }
 0x49a   : > { %v9386_v24 = vunpack.i.h.bf16 %v9384_v20  ;;  %v9385_v38 = vunpack.i.l.bf16 %v9384_v20  ;;  %8294 = vmatpush1.bf16.msra.mxu1 %v8293_v16 }
 0x49b   : > { %9638 = vrot.lane.b32.xlu0 %v11538_v21, %s10080_s22  ;;  %9633 = vrot.lane.b32.xlu1 %v11530_v50, %s10080_s22 }
 0x49c   : > { %8295 = vmatprep.subr.bf16.mxu1 %v14555_v1  ;;  %v8296_v49 = vpack.c.bf16 %v9386_v24, %v9385_v38  ;;  %v2675_v24 = vld [vmem:[%s14551_s8 + $0x10] sm:$0xff]  ;;  %v2678_v38 = vld [vmem:[%s14551_s8 + $0x28] sm:$0xff] }
 0x49d   : > { %v9389_v54 = vpop.permute.xlu0 %9388 }
 0x49e   : > { %v9391_v13 = vunpack.i.h.bf16 %v9389_v54  ;;  %v9390_v18 = vunpack.i.l.bf16 %v9389_v54  ;;  %8297 = vmatpush1.bf16.msra.mxu1 %v8296_v49 }
 0x49f   : > { %9648 = vrot.lane.b32.xlu0 %v11552_v33, %s10080_s22  ;;  %9643 = vrot.lane.b32.xlu1 %v11546_v28, %s10080_s22 }
 0x4a0   : > { %8298 = vmatprep.subr.bf16.mxu1 %v14555_v1  ;;  %v8299_v60 = vpack.c.bf16 %v9391_v13, %v9390_v18 }
 0x4a1   : > { %v9394_v29 = vpop.permute.xlu1 %9393 }
 0x4a2   : > { %v9396_v45 = vunpack.i.h.bf16 %v9394_v29  ;;  %v9395_v37 = vunpack.i.l.bf16 %v9394_v29  ;;  %8300 = vmatpush1.bf16.msra.mxu1 %v8299_v60  ;;  %v2677_v29 = vld [vmem:[%s14551_s8 + $0x20] sm:$0xff] }
 0x4a3   : > { %9658 = vrot.lane.b32.xlu0 %v11565_v31, %s10080_s22  ;;  %9653 = vrot.lane.b32.xlu1 %v11558_v53, %s10080_s22 }
 0x4a4   : > { %8301 = vmatprep.subr.bf16.mxu1 %v14555_v1  ;;  %v8302_v7 = vpack.c.bf16 %v9396_v45, %v9395_v37  ;;  %v2680_v45 = vld [vmem:[%s14551_s8 + $0x38] sm:$0xff] }
 0x4a5   : > { %v9399_v42 = vpop.permute.xlu0 %9398 }
 0x4a6   : > { %v9401_v47 = vunpack.i.h.bf16 %v9399_v42  ;;  %v9400_v61 = vunpack.i.l.bf16 %v9399_v42  ;;  %8303 = vmatpush1.bf16.msra.mxu1 %v8302_v7 }
 0x4a7   : > { %9668 = vrot.lane.b32.xlu0 %v11452_v6, %s10081_s23  ;;  %9663 = vrot.lane.b32.xlu1 %v11569_v35, %s10080_s22 }
 0x4a8   : > { %8304 = vmatprep.subr.bf16.mxu1 %v14555_v1  ;;  %v8305_v19 = vpack.c.bf16 %v9401_v47, %v9400_v61 }
 0x4a9   : > { %v9404_v30 = vpop.permute.xlu1 %9403 }
 0x4aa   : > { %v9406_v32 = vunpack.i.h.bf16 %v9404_v30  ;;  %v9405_v34 = vunpack.i.l.bf16 %v9404_v30  ;;  %8306 = vmatpush1.bf16.msra.mxu1 %v8305_v19  ;;  %v2679_v19 = vld [vmem:[%s14551_s8 + $0x30] sm:$0xff]  ;;  %v2682_v30 = vld [vmem:[%s14551_s8 + $0x48] sm:$0xff] }
 0x4ab   : > { %9678 = vrot.lane.b32.xlu0 %v11470_v2, %s10081_s23  ;;  %9673 = vrot.lane.b32.xlu1 %v11460_v59, %s10081_s23 }
 0x4ac   : > { %8307 = vmatprep.subr.bf16.mxu1 %v14555_v1  ;;  %v8308_v26 = vpack.c.bf16 %v9406_v32, %v9405_v34 }
 0x4ad   : > { %v9409_v36 = vpop.permute.xlu0 %9408 }
 0x4ae   : > { %v9411_v39 = vunpack.i.h.bf16 %v9409_v36  ;;  %v9410_v40 = vunpack.i.l.bf16 %v9409_v36  ;;  %8309 = vmatpush1.bf16.msra.mxu1 %v8308_v26 }
 0x4af   : > { %9688 = vrot.lane.b32.xlu0 %v11490_v41, %s10081_s23  ;;  %9683 = vrot.lane.b32.xlu1 %v11480_v11, %s10081_s23 }
 0x4b0   : > { %8310 = vmatprep.subr.bf16.mxu1 %v14555_v1  ;;  %v8311_v43 = vpack.c.bf16 %v9411_v39, %v9410_v40  ;;  %v2681_v40 = vld [vmem:[%s14551_s8 + $0x40] sm:$0xff] }
 0x4b1   : > { %v9414_v46 = vpop.permute.xlu1 %9413 }
 0x4b2   : > { %v9416_v48 = vunpack.i.h.bf16 %v9414_v46  ;;  %v9415_v44 = vunpack.i.l.bf16 %v9414_v46  ;;  %8312 = vmatpush1.bf16.msra.mxu1 %v8311_v43  ;;  %v2684_v43 = vld [vmem:[%s14551_s8 + $0x58] sm:$0xff] }
 0x4b3   : > { %9698 = vrot.lane.b32.xlu0 %v11506_v4, %s10081_s23  ;;  %9693 = vrot.lane.b32.xlu1 %v11498_v3, %s10081_s23 }
 0x4b4   : > { %8313 = vmatprep.subr.bf16.mxu1 %v14555_v1  ;;  %v8314_v52 = vpack.c.bf16 %v9416_v48, %v9415_v44 }
 0x4b5   : > { %v9419_v57 = vpop.permute.xlu0 %9418 }
 0x4b6   : > { %v9421_v56 = vunpack.i.h.bf16 %v9419_v57  ;;  %v9420_v58 = vunpack.i.l.bf16 %v9419_v57  ;;  %8315 = vmatpush1.bf16.msra.mxu1 %v8314_v52 }
 0x4b7   : > { %9708 = vrot.lane.b32.xlu0 %v11522_v5, %s10081_s23  ;;  %9703 = vrot.lane.b32.xlu1 %v11514_v23, %s10081_s23 }
 0x4b8   : > { %8316 = vmatprep.subr.bf16.mxu1 %v14555_v1  ;;  %v8317_v62 = vpack.c.bf16 %v9421_v56, %v9420_v58  ;;  %v2683_v56 = vld [vmem:[%s14551_s8 + $0x50] sm:$0xff]  ;;  %v2686_v58 = vld [vmem:[%s14551_s8 + $0x68] sm:$0xff] }
 0x4b9   : > { %v9429_v0 = vpop.permute.xlu0 %9428  ;;  %v9424_v9 = vpop.permute.xlu1 %9423 }
 0x4ba   : > { %v9426_v10 = vunpack.i.h.bf16 %v9424_v9  ;;  %v9425_v14 = vunpack.i.l.bf16 %v9424_v9  ;;  %8318 = vmatpush1.bf16.msra.mxu1 %v8317_v62  ;;  %v9431_v15 = vunpack.i.h.bf16 %v9429_v0  ;;  %v9430_v17 = vunpack.i.l.bf16 %v9429_v0 }
 0x4bb   : > { %9718 = vrot.lane.b32.xlu0 %v11538_v21, %s10081_s23  ;;  %9713 = vrot.lane.b32.xlu1 %v11530_v50, %s10081_s23 }
 0x4bc   : > { %8319 = vmatprep.subr.bf16.mxu1 %v14555_v1  ;;  %v8320_v22 = vpack.c.bf16 %v9426_v10, %v9425_v14  ;;  %v8323_v63 = vpack.c.bf16 %v9431_v15, %v9430_v17  ;;  %v2685_v15 = vld [vmem:[%s14551_s8 + $0x60] sm:$0xff]  ;;  %v2688_v17 = vld [vmem:[%s14551_s8 + $0x78] sm:$0xff] }
 0x4bd   : > { %v9439_v25 = vpop.permute.xlu0 %9438  ;;  %v9434_v27 = vpop.permute.xlu1 %9433 }
 0x4be   : > { %8321 = vmatpush1.bf16.msra.mxu1 %v8320_v22  ;;  %v9436_v8 = vunpack.i.h.bf16 %v9434_v27  ;;  %v9435_v12 = vunpack.i.l.bf16 %v9434_v27  ;;  %v9441_v49 = vunpack.i.h.bf16 %v9439_v25  ;;  %v9440_v54 = vunpack.i.l.bf16 %v9439_v25 }
 0x4bf   : > { %9728 = vrot.lane.b32.xlu0 %v11552_v33, %s10081_s23  ;;  %9723 = vrot.lane.b32.xlu1 %v11546_v28, %s10081_s23 }
 0x4c0   : > { %8322 = vmatprep.subr.bf16.mxu1 %v14555_v1  ;;  %v8326_v13 = vpack.c.bf16 %v9436_v8, %v9435_v12  ;;  %v8329_v37 = vpack.c.bf16 %v9441_v49, %v9440_v54  ;;  %v2690_v8 = vld [vmem:[%s14551_s8 + $0x88] sm:$0xff]  ;;  %v2689_v49 = vld [vmem:[%s14551_s8 + $0x80] sm:$0xff]  ;;  %v2692_v54 = vld [vmem:[%s14551_s8 + $0x98] sm:$0xff] }
 0x4c1   : > { %v9449_v16 = vpop.permute.xlu0 %9448  ;;  %v9444_v20 = vpop.permute.xlu1 %9443  ;;  %3348 = vmatmul.mubr.f32.vlgmr.msra.gmra.mrb[0].mxu1 %v2673_v51 }
 0x4c2   : > { %8324 = vmatpush1.bf16.msra.mxu1 %v8323_v63  ;;  %3352 = vmatprep.mubr.f32.mxu1 %v2676_v55  ;;  %v9446_v7 = vunpack.i.h.bf16 %v9444_v20  ;;  %v9445_v42 = vunpack.i.l.bf16 %v9444_v20  ;;  %v9451_v32 = vunpack.i.h.bf16 %v9449_v16  ;;  %v9450_v34 = vunpack.i.l.bf16 %v9449_v16  ;;  %v2687_v63 = vld [vmem:[%s14551_s8 + $0x70] sm:$0xff] }
 0x4c3   : > { %9738 = vrot.lane.b32.xlu0 %v11565_v31, %s10081_s23  ;;  %9733 = vrot.lane.b32.xlu1 %v11558_v53, %s10081_s23 }
 0x4c4   : > { %8325 = vmatprep.subr.bf16.mxu1 %v14555_v1  ;;  %v8332_v26 = vpack.c.bf16 %v9446_v7, %v9445_v42  ;;  %v8335_v46 = vpack.c.bf16 %v9451_v32, %v9450_v34  ;;  %v2694_v7 = vld [vmem:[%s14551_s8 + $0xa8] sm:$0xff]  ;;  %v2693_v32 = vld [vmem:[%s14551_s8 + $0xa0] sm:$0xff]  ;;  %v2696_v34 = vld [vmem:[%s14551_s8 + $0xb8] sm:$0xff] }
 0x4c5   : > { %v11712_v18 = vpop.permute.xlu0 %9458  ;;  %v9454_v60 = vpop.permute.xlu1 %9453  ;;  %3353 = vmatmul.mubr.f32.gmra.mrb[2].mxu1 %v2675_v24 }
 0x4c6   : > { %8327 = vmatpush1.bf16.msra.mxu1 %v8326_v13  ;;  %3357 = vmatprep.mubr.f32.mxu1 %v2678_v38  ;;  %v9456_v48 = vunpack.i.h.bf16 %v9454_v60  ;;  %v9455_v44 = vunpack.i.l.bf16 %v9454_v60  ;;  %v9461_v62 = vunpack.i.h.bf16 %v11712_v18  ;;  %v9460_v0 = vunpack.i.l.bf16 %v11712_v18 }
 0x4c7   : > { %9748 = vrot.lane.b32.xlu0 %v11452_v6, %s10082_s14  ;;  %9743 = vrot.lane.b32.xlu1 %v11569_v35, %s10081_s23 }
 0x4c8   : > { %8328 = vmatprep.subr.bf16.mxu1 %v14555_v1  ;;  %v8338_v9 = vpack.c.bf16 %v9456_v48, %v9455_v44  ;;  %v8341_v22 = vpack.c.bf16 %v9461_v62, %v9460_v0  ;;  %v2698_v48 = vld [vmem:[%s14551_s8 + $0xc8] sm:$0xff]  ;;  %v2697_v0 = vld [vmem:[%s14551_s8 + $0xc0] sm:$0xff] }
 0x4c9   : > { %v11725_v47 = vpop.permute.xlu0 %9468  ;;  %v11727_v61 = vpop.permute.xlu1 %9463  ;;  %3358 = vmatmul.mubr.f32.gmra.mrb[4].mxu1 %v2677_v29 }
 0x4ca   : > { %8330 = vmatpush1.bf16.msra.mxu1 %v8329_v37  ;;  %3362 = vmatprep.mubr.f32.mxu1 %v2680_v45  ;;  %v9466_v25 = vunpack.i.h.bf16 %v11727_v61  ;;  %v9465_v27 = vunpack.i.l.bf16 %v11727_v61  ;;  %v9471_v12 = vunpack.i.h.bf16 %v11725_v47  ;;  %v9470_v16 = vunpack.i.l.bf16 %v11725_v47  ;;  %v2691_v37 = vld [vmem:[%s14551_s8 + $0x90] sm:$0xff] }
 0x4cb   : > { %9758 = vrot.lane.b32.xlu0 %v11470_v2, %s10082_s14  ;;  %9753 = vrot.lane.b32.xlu1 %v11460_v59, %s10082_s14 }
 0x4cc   : > { %8331 = vmatprep.subr.bf16.mxu1 %v14555_v1  ;;  %v8344_v20 = vpack.c.bf16 %v9466_v25, %v9465_v27  ;;  %v8347_v13 = vpack.c.bf16 %v9471_v12, %v9470_v16  ;;  %v2699_v27 = vld [vmem:[%s14551_s8 + $0xd0] sm:$0xff] }
 0x4cd   : > { %v11740_v36 = vpop.permute.xlu0 %9478  ;;  %v11742_v39 = vpop.permute.xlu1 %9473  ;;  %3363 = vmatmul.mubr.f32.gmra.mrb[6].mxu1 %v2679_v19 }
 0x4ce   : > { %8333 = vmatpush1.bf16.msra.mxu1 %v8332_v26  ;;  %3367 = vmatprep.mubr.f32.mxu1 %v2682_v30  ;;  %v9476_v18 = vunpack.i.h.bf16 %v11742_v39  ;;  %v9475_v60 = vunpack.i.l.bf16 %v11742_v39  ;;  %v9481_v42 = vunpack.i.h.bf16 %v11740_v36  ;;  %v9480_v47 = vunpack.i.l.bf16 %v11740_v36 }
 0x4cf   : > { %9768 = vrot.lane.b32.xlu0 %v11490_v41, %s10082_s14  ;;  %9763 = vrot.lane.b32.xlu1 %v11480_v11, %s10082_s14 }
 0x4d0   : > { %8334 = vmatprep.subr.bf16.mxu1 %v14555_v1  ;;  %v8350_v61 = vpack.c.bf16 %v9476_v18, %v9475_v60  ;;  %v8353_v26 = vpack.c.bf16 %v9481_v42, %v9480_v47 }
 0x4d1   : > { %v11755_v52 = vpop.permute.xlu0 %9488  ;;  %v11757_v57 = vpop.permute.xlu1 %9483  ;;  %3368 = vmatmul.mubr.f32.gmra.mrb[8].mxu1 %v2681_v40 }
 0x4d2   : > { %8336 = vmatpush1.bf16.msra.mxu1 %v8335_v46  ;;  %3372 = vmatprep.mubr.f32.mxu1 %v2684_v43  ;;  %v9486_v36 = vunpack.i.h.bf16 %v11757_v57  ;;  %v9485_v39 = vunpack.i.l.bf16 %v11757_v57  ;;  %v2695_v46 = vld [vmem:[%s14551_s8 + $0xb0] sm:$0xff]  ;;  %v9491_v44 = vunpack.i.h.bf16 %v11755_v52  ;;  %v9490_v57 = vunpack.i.l.bf16 %v11755_v52  ;;  %v2700_v52 = vld [vmem:[%s14551_s8 + $0xd8] sm:$0xff] }
 0x4d3   : > { %9778 = vrot.lane.b32.xlu0 %v11506_v4, %s10082_s14  ;;  %9773 = vrot.lane.b32.xlu1 %v11498_v3, %s10082_s14 }
 0x4d4   : > { %8337 = vmatprep.subr.bf16.mxu1 %v14555_v1 }
 0x4d5   : > { %v11772_v10 = vpop.permute.xlu0 %9498  ;;  %v11774_v14 = vpop.permute.xlu1 %9493  ;;  %3373 = vmatmul.mubr.f32.gmra.mrb[10].mxu1 %v2683_v56  ;;  %v8356_v56 = vpack.c.bf16 %v9486_v36, %v9485_v39  ;;  %v2707_v39 = vld [vmem:[%s14551_s8 + $0x110] sm:$0xff] }
 0x4d6   : > { %8339 = vmatpush1.bf16.msra.mxu1 %v8338_v9  ;;  %3377 = vmatprep.mubr.f32.mxu1 %v2686_v58  ;;  %v8359_v9 = vpack.c.bf16 %v9491_v44, %v9490_v57  ;;  %v2709_v57 = vld [vmem:[%s14551_s8 + $0x120] sm:$0xff] }
 0x4d7   : > { %9788 = vrot.lane.b32.xlu0 %v11522_v5, %s10082_s14  ;;  %9783 = vrot.lane.b32.xlu1 %v11514_v23, %s10082_s14 }
 0x4d8   : > { %8340 = vmatprep.subr.bf16.mxu1 %v14555_v1 }
 0x4d9   : > { %v11789_v51 = vpop.permute.xlu0 %9508  ;;  %v11791_v55 = vpop.permute.xlu1 %9503  ;;  %3378 = vmatmul.mubr.f32.gmra.mrb[12].mxu1 %v2685_v15  ;;  %v9496_v15 = vunpack.i.h.bf16 %v11774_v14 }
 0x4da   : > { %8342 = vmatpush1.bf16.msra.mxu1 %v8341_v22  ;;  %3382 = vmatprep.mubr.f32.mxu1 %v2688_v17  ;;  %v9495_v17 = vunpack.i.l.bf16 %v11774_v14  ;;  %v2702_v14 = vld [vmem:[%s14551_s8 + $0xe8] sm:$0xff]  ;;  %v9505_v18 = vunpack.i.l.bf16 %v11791_v55 }
 0x4db   : > { %9798 = vrot.lane.b32.xlu0 %v11538_v21, %s10082_s14  ;;  %9793 = vrot.lane.b32.xlu1 %v11530_v50, %s10082_s14 }
 0x4dc   : > { %8343 = vmatprep.subr.bf16.mxu1 %v14555_v1  ;;  %v8362_v12 = vpack.c.bf16 %v9496_v15, %v9495_v17  ;;  %v2714_v15 = vld [vmem:[%s14551_s8 + $0x148] sm:$0xff] }
 0x4dd   : > { %v11806_v24 = vpop.permute.xlu0 %9518  ;;  %v11808_v38 = vpop.permute.xlu1 %9513  ;;  %3383 = vmatmul.mubr.f32.gmra.mrb[14].mxu1 %v2687_v63  ;;  %v9501_v63 = vunpack.i.h.bf16 %v11772_v10 }
 0x4de   : > { %8345 = vmatpush1.bf16.msra.mxu1 %v8344_v20  ;;  %3387 = vmatprep.mubr.f32.mxu1 %v2690_v8  ;;  %v9500_v8 = vunpack.i.l.bf16 %v11772_v10  ;;  %v2704_v10 = vld [vmem:[%s14551_s8 + $0xf8] sm:$0xff] }
 0x4df   : > { %9808 = vrot.lane.b32.xlu0 %v11452_v6, %s10083_s28  ;;  %9803 = vrot.lane.b32.xlu1 %v11546_v28, %s10082_s14 }
 0x4e0   : > { %8346 = vmatprep.subr.bf16.mxu1 %v14555_v1 }
 0x4e1   : > { %v11823_v29 = vpop.permute.xlu0 %9528  ;;  %v11825_v45 = vpop.permute.xlu1 %9523  ;;  %3388 = vmatmul.mubr.f32.gmra.mrb[16].mxu1 %v2689_v49  ;;  %v2701_v49 = vld [vmem:[%s14551_s8 + $0xe0] sm:$0xff] }
 0x4e2   : > { %8348 = vmatpush1.bf16.msra.mxu1 %v8347_v13  ;;  %3392 = vmatprep.mubr.f32.mxu1 %v2692_v54  ;;  %v8365_v54 = vpack.c.bf16 %v9501_v63, %v9500_v8  ;;  %v9506_v13 = vunpack.i.h.bf16 %v11791_v55  ;;  %v2706_v55 = vld [vmem:[%s14551_s8 + $0x108] sm:$0xff]  ;;  %v2716_v63 = vld [vmem:[%s14551_s8 + $0x158] sm:$0xff] }
 0x4e3   : > { %9818 = vrot.lane.b32.xlu0 %v11460_v59, %s10083_s28  ;;  %9813 = vrot.lane.b32.xlu1 %v11552_v33, %s10082_s14 }
 0x4e4   : > { %8349 = vmatprep.subr.bf16.mxu1 %v14555_v1  ;;  %v8368_v42 = vpack.c.bf16 %v9506_v13, %v9505_v18  ;;  %v2717_v18 = vld [vmem:[%s14551_s8 + $0x160] sm:$0xff] }
 0x4e5   : > { %v11840_v19 = vpop.permute.xlu0 %9538  ;;  %v11842_v30 = vpop.permute.xlu1 %9533  ;;  %3393 = vmatmul.mubr.f32.gmra.mrb[18].mxu1 %v2691_v37 }
 0x4e6   : > { %8351 = vmatpush1.bf16.msra.mxu1 %v8350_v61  ;;  %3397 = vmatprep.mubr.f32.mxu1 %v2694_v7  ;;  %v2703_v7 = vld [vmem:[%s14551_s8 + $0xf0] sm:$0xff] }
 0x4e7   : > { %9828 = vrot.lane.b32.xlu0 %v11470_v2, %s10083_s28  ;;  %9823 = vrot.lane.b32.xlu1 %v11558_v53, %s10082_s14 }
 0x4e8   : > { %8352 = vmatprep.subr.bf16.mxu1 %v14555_v1 }
 0x4e9   : > { %v11857_v40 = vpop.permute.xlu0 %9548  ;;  %v11859_v43 = vpop.permute.xlu1 %9543  ;;  %3398 = vmatmul.mubr.f32.gmra.mrb[20].mxu1 %v2693_v32  ;;  %v2705_v32 = vld [vmem:[%s14551_s8 + $0x100] sm:$0xff] }
 0x4ea   : > { %8354 = vmatpush1.bf16.msra.mxu1 %v8353_v26  ;;  %3402 = vmatprep.mubr.f32.mxu1 %v2696_v34  ;;  %v2708_v34 = vld [vmem:[%s14551_s8 + $0x118] sm:$0xff] }
 0x4eb   : > { %9838 = vrot.lane.b32.xlu0 %v11480_v11, %s10083_s28  ;;  %9833 = vrot.lane.b32.xlu1 %v11565_v31, %s10082_s14 }
 0x4ec   : > { %8355 = vmatprep.subr.bf16.mxu1 %v14555_v1 }
 0x4ed   : > { %v11874_v58 = vpop.permute.xlu0 %9558  ;;  %v11876_v62 = vpop.permute.xlu1 %9553  ;;  %3403 = vmatmul.mubr.f32.gmra.mrb[22].mxu1 %v2695_v46  ;;  %v2710_v46 = vld [vmem:[%s14551_s8 + $0x128] sm:$0xff] }
 0x4ee   : > { %8357 = vmatpush1.bf16.msra.mxu1 %v8356_v56  ;;  %3407 = vmatprep.mubr.f32.mxu1 %v2698_v48  ;;  %v2712_v56 = vld [vmem:[%s14551_s8 + $0x138] sm:$0xff] }
 0x4ef   : > { %9848 = vrot.lane.b32.xlu0 %v11490_v41, %s10083_s28  ;;  %9843 = vrot.lane.b32.xlu1 %v11569_v35, %s10082_s14 }
 0x4f0   : > { %8358 = vmatprep.subr.bf16.mxu1 %v14555_v1 }
 0x4f1   : > { %v11891_v22 = vpop.permute.xlu0 %9568  ;;  %v11893_v25 = vpop.permute.xlu1 %9563  ;;  %3408 = vmatmul.mubr.f32.gmra.mrb[24].mxu1 %v2697_v0 }
 0x4f2   : > { %8360 = vmatpush1.bf16.msra.mxu1 %v8359_v9  ;;  %3412 = vmatprep.mubr.f32.mxu1 %v2700_v52  ;;  %v2711_v9 = vld [vmem:[%s14551_s8 + $0x130] sm:$0xff] }
 0x4f3   : > { %9858 = vrot.lane.b32.xlu0 %v11506_v4, %s10083_s28  ;;  %9853 = vrot.lane.b32.xlu1 %v11498_v3, %s10083_s28 }
 0x4f4   : > { %8361 = vmatprep.subr.bf16.mxu1 %v14555_v1 }
 0x4f5   : > { %v11908_v16 = vpop.permute.xlu0 %9578  ;;  %v11910_v20 = vpop.permute.xlu1 %9573  ;;  %3413 = vmatmul.mubr.f32.gmra.mrb[26].mxu1 %v2699_v27 }
 0x4f6   : > { %8363 = vmatpush1.bf16.msra.mxu1 %v8362_v12  ;;  %3417 = vmatprep.mubr.f32.mxu1 %v2702_v14  ;;  %v2713_v14 = vld [vmem:[%s14551_s8 + $0x140] sm:$0xff] }
 0x4f7   : > { %9868 = vrot.lane.b32.xlu0 %v11522_v5, %s10083_s28  ;;  %9863 = vrot.lane.b32.xlu1 %v11514_v23, %s10083_s28 }
 0x4f8   : > { %8364 = vmatprep.subr.bf16.mxu1 %v14555_v1 }
 0x4f9   : > { %v11925_v60 = vpop.permute.xlu0 %9588  ;;  %v11927_v37 = vpop.permute.xlu1 %9583  ;;  %3418 = vmatmul.mubr.f32.gmra.mrb[28].mxu1 %v2701_v49  ;;  %v2715_v49 = vld [vmem:[%s14551_s8 + $0x150] sm:$0xff] }
 0x4fa   : > { %8366 = vmatpush1.bf16.msra.mxu1 %v8365_v54  ;;  %3422 = vmatprep.mubr.f32.mxu1 %v2704_v10  ;;  %v2718_v10 = vld [vmem:[%s14551_s8 + $0x168] sm:$0xff] }
 0x4fb   : > { %9878 = vrot.lane.b32.xlu0 %v11538_v21, %s10083_s28  ;;  %9873 = vrot.lane.b32.xlu1 %v11530_v50, %s10083_s28 }
 0x4fc   : > { %8367 = vmatprep.subr.bf16.mxu1 %v14555_v1 }
 0x4fd   : > { %v11940_v47 = vpop.permute.xlu0 %9598  ;;  %v11942_v61 = vpop.permute.xlu1 %9593  ;;  %3423 = vmatmul.mubr.f32.gmra.mrb[30].mxu1 %v2703_v7  ;;  %v2720_v7 = vld [vmem:[%s14551_s8 + $0x178] sm:$0xff] }
 0x4fe   : > { %8369 = vmatpush1.bf16.msra.mxu1 %v8368_v42  ;;  %3427 = vmatprep.mubr.f32.mxu1 %v2706_v55  ;;  %v7166_v55 = vld [vmem:[%s14551_s8 + $0x208] sm:$0xff] }
 0x4ff   : > { %9888 = vrot.lane.b32.xlu0 %v11552_v33, %s10083_s28  ;;  %9883 = vrot.lane.b32.xlu1 %v11546_v28, %s10083_s28 }
 0x500   : > { %8370 = vmatprep.subr.bf16.mxu1 %v14555_v1  ;;  %3026 = vmatprep.mubr.f32.mxu0 %v7166_v55 }
 0x501   : > { %v11955_v26 = vpop.permute.xlu0 %9608  ;;  %v11957_v36 = vpop.permute.xlu1 %9603  ;;  %3428 = vmatmul.mubr.f32.gmra.mrb[32].mxu1 %v2705_v32 }
 0x502   : > { %3432 = vmatprep.mubr.f32.mxu1 %v2708_v34  ;;  %v2719_v34 = vld [vmem:[%s14551_s8 + $0x170] sm:$0xff] }
 0x503   : > { %9898 = vrot.lane.b32.xlu0 %v11565_v31, %s10083_s28  ;;  %9893 = vrot.lane.b32.xlu1 %v11558_v53, %s10083_s28 }
 0x505   : > { %v11969_v48 = vpop.permute.xlu0 %9618  ;;  %v11971_v44 = vpop.permute.xlu1 %9613  ;;  %3433 = vmatmul.mubr.f32.gmra.mrb[34].mxu1 %v2707_v39  ;;  %v2722_v39 = vld [vmem:[%s14551_s8 + $0x188] sm:$0xff] }
 0x506   : > { %3437 = vmatprep.mubr.f32.mxu1 %v2710_v46 }
 0x507   : > { %9908 = vrot.lane.b32.xlu0 %v11452_v6, %s10084_s16  ;;  %9903 = vrot.lane.b32.xlu1 %v11569_v35, %s10083_s28 }
 0x509   : > { %v11983_v0 = vpop.permute.xlu0 %9628  ;;  %v11985_v52 = vpop.permute.xlu1 %9623  ;;  %3438 = vmatmul.mubr.f32.gmra.mrb[36].mxu1 %v2709_v57 }
 0x50a   : > { %3442 = vmatprep.mubr.f32.mxu1 %v2712_v56  ;;  %v2721_v56 = vld [vmem:[%s14551_s8 + $0x180] sm:$0xff] }
 0x50b   : > { %9918 = vrot.lane.b32.xlu0 %v11470_v2, %s10084_s16  ;;  %9913 = vrot.lane.b32.xlu1 %v11460_v59, %s10084_s16 }
 0x50d   : > { %v11997_v17 = vpop.permute.xlu0 %9638  ;;  %v11999_v27 = vpop.permute.xlu1 %9633  ;;  %3443 = vmatmul.mubr.f32.gmra.mrb[38].mxu1 %v2711_v9  ;;  %v2724_v9 = vld [vmem:[%s14551_s8 + $0x198] sm:$0xff] }
 0x50e   : > { %3447 = vmatprep.mubr.f32.mxu1 %v2714_v15 }
 0x50f   : > { %9928 = vrot.lane.b32.xlu0 %v11490_v41, %s10084_s16  ;;  %9923 = vrot.lane.b32.xlu1 %v11480_v11, %s10084_s16 }
 0x511   : > { %v12011_v8 = vpop.permute.xlu0 %9648  ;;  %v12013_v12 = vpop.permute.xlu1 %9643  ;;  %3448 = vmatmul.mubr.f32.gmra.mrb[40].mxu1 %v2713_v14 }
 0x512   : > { %3452 = vmatprep.mubr.f32.mxu1 %v2716_v63  ;;  %v2723_v63 = vld [vmem:[%s14551_s8 + $0x190] sm:$0xff] }
 0x513   : > { %9938 = vrot.lane.b32.xlu0 %v11506_v4, %s10084_s16  ;;  %9933 = vrot.lane.b32.xlu1 %v11498_v3, %s10084_s16 }
 0x515   : > { %v12025_v54 = vpop.permute.xlu0 %9658  ;;  %v12027_v13 = vpop.permute.xlu1 %9653  ;;  %3453 = vmatmul.mubr.f32.gmra.mrb[42].mxu1 %v2715_v49  ;;  %v2726_v49 = vld [vmem:[%s14551_s8 + $0x1a8] sm:$0xff] }
 0x516   : > { %3457 = vmatprep.mubr.f32.mxu1 %v2718_v10 }
 0x517   : > { %9948 = vrot.lane.b32.xlu0 %v11522_v5, %s10084_s16  ;;  %9943 = vrot.lane.b32.xlu1 %v11514_v23, %s10084_s16 }
 0x519   : > { %v12042_v42 = vpop.permute.xlu0 %9668  ;;  %v12044_v32 = vpop.permute.xlu1 %9663  ;;  %3458 = vmatmul.mubr.f32.gmra.mrb[44].mxu1 %v2717_v18 }
 0x51a   : > { %3462 = vmatprep.mubr.f32.mxu1 %v2720_v7  ;;  %v2725_v7 = vld [vmem:[%s14551_s8 + $0x1a0] sm:$0xff] }
 0x51b   : > { %9958 = vrot.lane.b32.xlu0 %v11538_v21, %s10084_s16  ;;  %9953 = vrot.lane.b32.xlu1 %v11530_v50, %s10084_s16 }
 0x51d   : > { %v12056_v46 = vpop.permute.xlu0 %9678  ;;  %v12058_v57 = vpop.permute.xlu1 %9673  ;;  %3463 = vmatmul.mubr.f32.gmra.mrb[46].mxu1 %v2719_v34 }
 0x51e   : > { %3467 = vmatprep.mubr.f32.mxu1 %v2722_v39  ;;  %v2727_v39 = vld [vmem:[%s14551_s8 + $0x1b0] sm:$0xff] }
 0x51f   : > { %9968 = vrot.lane.b32.xlu0 %v11552_v33, %s10084_s16  ;;  %9963 = vrot.lane.b32.xlu1 %v11546_v28, %s10084_s16 }
 0x521   : > { %v12070_v15 = vpop.permute.xlu0 %9688  ;;  %v12072_v14 = vpop.permute.xlu1 %9683  ;;  %3468 = vmatmul.mubr.f32.gmra.mrb[48].mxu1 %v2721_v56 }
 0x522   : > { %3472 = vmatprep.mubr.f32.mxu1 %v2724_v9 }
 0x523   : > { %9978 = vrot.lane.b32.xlu0 %v11558_v53, %s10084_s16  ;;  %9973 = vrot.lane.b32.xlu1 %v11452_v6, %s10085_s13  ;;  %v2728_v6 = vld [vmem:[%s14551_s8 + $0x1b8] sm:$0xff] }
 0x525   : > { %v12084_v10 = vpop.permute.xlu0 %9698  ;;  %v12086_v18 = vpop.permute.xlu1 %9693  ;;  %3473 = vmatmul.mubr.f32.gmra.mrb[50].mxu1 %v2723_v63  ;;  %v2729_v63 = vld [vmem:[%s14551_s8 + $0x1c0] sm:$0xff] }
 0x526   : > { %3477 = vmatprep.mubr.f32.mxu1 %v2726_v49 }
 0x527   : > { %9988 = vrot.lane.b32.xlu0 %v11565_v31, %s10084_s16  ;;  %9983 = vrot.lane.b32.xlu1 %v11460_v59, %s10085_s13  ;;  %v2730_v59 = vld [vmem:[%s14551_s8 + $0x1c8] sm:$0xff] }
 0x529   : > { %v12098_v55 = vpop.permute.xlu0 %9708  ;;  %v12100_v34 = vpop.permute.xlu1 %9703  ;;  %3478 = vmatmul.mubr.f32.gmra.mrb[52].mxu1 %v2725_v7 }
 0x52a   : > { %3482 = vmatprep.mubr.f32.mxu1 %v2728_v6  ;;  %v2731_v6 = vld [vmem:[%s14551_s8 + $0x1d0] sm:$0xff] }
 0x52b   : > { %10003 = vrot.lane.b32.xlu0 %v11569_v35, %s10084_s16  ;;  %9993 = vrot.lane.b32.xlu1 %v11470_v2, %s10085_s13  ;;  %v2732_v2 = vld [vmem:[%s14551_s8 + $0x1d8] sm:$0xff]  ;;  %s14474_s16 = scalar_lea.vmem %s14554_s11, %s7713_s24 }
 0x52d   : > { %v12112_v56 = vpop.permute.xlu0 %9718  ;;  %v12114_v9 = vpop.permute.xlu1 %9713  ;;  %3483 = vmatmul.mubr.f32.gmra.mrb[54].mxu1 %v2727_v39 }
 0x52e   : > { %3487 = vmatprep.mubr.f32.mxu1 %v2730_v59  ;;  %v2733_v59 = vld [vmem:[%s14551_s8 + $0x1e0] sm:$0xff] }
 0x52f   : > { %10008 = vrot.lane.b32.xlu0 %v11490_v41, %s10085_s13  ;;  %9998 = vrot.lane.b32.xlu1 %v11480_v11, %s10085_s13  ;;  %v2734_v11 = vld [vmem:[%s14551_s8 + $0x1e8] sm:$0xff] }
 0x531   : > { %v12126_v49 = vpop.permute.xlu0 %9728  ;;  %v12128_v7 = vpop.permute.xlu1 %9723  ;;  %3488 = vmatmul.mubr.f32.gmra.mrb[56].mxu1 %v2729_v63 }
 0x532   : > { %3492 = vmatprep.mubr.f32.mxu1 %v2732_v2  ;;  %v2735_v2 = vld [vmem:[%s14551_s8 + $0x1f0] sm:$0xff] }
 0x533   : > { %10018 = vrot.lane.b32.xlu0 %v11506_v4, %s10085_s13  ;;  %10013 = vrot.lane.b32.xlu1 %v11498_v3, %s10085_s13  ;;  %v2736_v3 = vld [vmem:[%s14551_s8 + $0x1f8] sm:$0xff] }
 0x535   : > { %v12140_v41 = vpop.permute.xlu0 %9738  ;;  %v12142_v39 = vpop.permute.xlu1 %9733  ;;  %3493 = vmatmul.mubr.f32.gmra.mrb[58].mxu1 %v2731_v6  ;;  %v9510_v6 = vunpack.i.l.bf16 %v11789_v51 }
 0x536   : > { %3497 = vmatprep.mubr.f32.mxu1 %v2734_v11 }
 0x537   : > { %10028 = vrot.lane.b32.xlu0 %v11522_v5, %s10085_s13  ;;  %10023 = vrot.lane.b32.xlu1 %v11514_v23, %s10085_s13  ;;  %v7230_v23 = vld [vmem:[%s14551_s8 + $0x408] sm:$0xff]  ;;  %v9511_v5 = vunpack.i.h.bf16 %v11789_v51 }
 0x539   : > { %v12154_v4 = vpop.permute.xlu0 %9748  ;;  %v12156_v63 = vpop.permute.xlu1 %9743  ;;  %3498 = vmatmul.mubr.f32.gmra.mrb[60].mxu1 %v2733_v59  ;;  %v8371_v51 = vpack.c.bf16 %v9511_v5, %v9510_v6  ;;  %v9520_v5 = vunpack.i.l.bf16 %v11806_v24 }
 0x53a   : > { %3502 = vmatprep.mubr.f32.mxu1 %v2736_v3  ;;  %v9516_v3 = vunpack.i.h.bf16 %v11808_v38 }
 0x53b   : > { %10038 = vrot.lane.b32.xlu0 %v11538_v21, %s10085_s13  ;;  %10033 = vrot.lane.b32.xlu1 %v11530_v50, %s10085_s13  ;;  %v7229_v21 = vld [vmem:[%s14551_s8 + $0x400] sm:$0xff]  ;;  %v7232_v50 = vld [vmem:[%s14551_s8 + $0x418] sm:$0xff] }
 0x53d   : > { %v12170_v11 = vpop.permute.xlu0 %9758  ;;  %v12172_v59 = vpop.permute.xlu1 %9753  ;;  %3503 = vmatmul.mubr.f32.gmra.mrb[62].mxu1 %v2735_v2  ;;  %v9515_v2 = vunpack.i.l.bf16 %v11808_v38  ;;  %v9521_v38 = vunpack.i.h.bf16 %v11806_v24  ;;  %v7236_v24 = vld [vmem:[%s14551_s8 + $0x438] sm:$0xff] }
 0x53e   : > { %3733 = vmatprep.mubr.f32.mxu1 %v7230_v23 }
 0x53f   : > { %10048 = vrot.lane.b32.xlu0 %v11552_v33, %s10085_s13  ;;  %10043 = vrot.lane.b32.xlu1 %v11546_v28, %s10085_s13  ;;  %v7231_v28 = vld [vmem:[%s14551_s8 + $0x410] sm:$0xff]  ;;  %v7234_v33 = vld [vmem:[%s14551_s8 + $0x428] sm:$0xff]  ;;  %v8374_v6 = vpack.c.bf16 %v9516_v3, %v9515_v2  ;;  %v8377_v3 = vpack.c.bf16 %v9521_v38, %v9520_v5  ;;  %v9526_v2 = vunpack.i.h.bf16 %v11825_v45  ;;  %v9531_v5 = vunpack.i.h.bf16 %v11823_v29 }
 0x540   : > { %v7238_v38 = vld [vmem:[%s14551_s8 + $0x448] sm:$0xff] }
 0x541   : > { %v12186_v23 = vpop.permute.xlu0 %9768  ;;  %v12188_v1 = vpop.permute.xlu1 %9763  ;;  %3734 = vmatmul.mubr.f32.vlgmr.msra.gmra.mrb[0].mxu1 %v7229_v21  ;;  %v14582_v21 = vmov 0.0|0.0  }
 0x542   : > { %8372 = vmatpush1.bf16.msra.mxu1 %v8371_v51  ;;  %3738 = vmatprep.mubr.f32.mxu1 %v7232_v50  ;;  %v6444_v50 = vld [vmem:[%s14553_s10] sm:$0xff] }
 0x543   : > { %10058 = vrot.lane.b32.xlu0 %v11565_v31, %s10085_s13  ;;  %10053 = vrot.lane.b32.xlu1 %v11558_v53, %s10085_s13  ;;  %v7233_v53 = vld [vmem:[%s14551_s8 + $0x420] sm:$0xff] }
 0x544   : > { %8373 = vmatprep.subr.bf16.mxu1 %v14582_v21 }
 0x545   : > { %v12206_v51 = vpop.permute.xlu0 %9778  ;;  %v12208_v31 = vpop.permute.xlu1 %9773  ;;  %3739 = vmatmul.mubr.f32.gmra.mrb[2].mxu1 %v7231_v28  ;;  %v6446_v28 = vld [vmem:[%s14553_s10 + $0x10] sm:$0xff] }
 0x546   : > { %14583 = vst [vmem:[#allocation3_spill] sm:$0xff] %v12206_v51  ;;  %14584 = vst [vmem:[#allocation4_spill] sm:$0xff] %v12208_v31  ;;  %8375 = vmatpush1.bf16.msra.mxu1 %v8374_v6  ;;  %3743 = vmatprep.mubr.f32.mxu1 %v7234_v33  ;;  %v9525_v51 = vunpack.i.l.bf16 %v11825_v45  ;;  %v6445_v33 = vld [vmem:[%s14553_s10 + $0x8] sm:$0xff]  ;;  %v7235_v45 = vld [vmem:[%s14551_s8 + $0x430] sm:$0xff] }
 0x547   : > { %6478 = vperm.xlu0 %9345, %v6444_v50   ;;  %10063 = vrot.lane.b32.xlu1 %v11569_v35, %s10085_s13  ;;  %v9530_v50 = vunpack.i.l.bf16 %v11823_v29  ;;  %v7237_v29 = vld [vmem:[%s14551_s8 + $0x440] sm:$0xff] }
 0x548   : > { %8376 = vmatprep.subr.bf16.mxu1 %v14582_v21 }
 0x549   : > { %v12227_v35 = vpop.permute.xlu0 %9788  ;;  %v12229_v6 = vpop.permute.xlu1 %9783  ;;  %3744 = vmatmul.mubr.f32.gmra.mrb[4].mxu1 %v7233_v53  ;;  %v6448_v53 = vld [vmem:[%s14553_s10 + $0x20] sm:$0xff] }
 0x54a   : > { %14585 = vst [vmem:[#allocation5_spill] sm:$0xff] %v12227_v35  ;;  %14586 = vst [vmem:[#allocation6_spill] sm:$0xff] %v12229_v6  ;;  %8378 = vmatpush1.bf16.msra.mxu1 %v8377_v3  ;;  %3748 = vmatprep.mubr.f32.mxu1 %v7236_v24  ;;  %v8380_v35 = vpack.c.bf16 %v9526_v2, %v9525_v51  ;;  %v6447_v24 = vld [vmem:[%s14553_s10 + $0x18] sm:$0xff]  ;;  %v8383_v2 = vpack.c.bf16 %v9531_v5, %v9530_v50  ;;  %v9541_v50 = vunpack.i.h.bf16 %v11840_v19 }
 0x54b   : > { %6488 = vperm.xlu0 %9345, %v6446_v28   ;;  %6483 = vperm.xlu1 %9346, %v6445_v33   ;;  %v7240_v51 = vld [vmem:[%s14551_s8 + $0x458] sm:$0xff]  ;;  %v9536_v33 = vunpack.i.h.bf16 %v11842_v30 }
 0x54c   : > { %8379 = vmatprep.subr.bf16.mxu1 %v14582_v21 }
 0x54d   : > { %v12246_v3 = vpop.permute.xlu0 %9798  ;;  %v12248_v28 = vpop.permute.xlu1 %9793  ;;  %3749 = vmatmul.mubr.f32.gmra.mrb[6].mxu1 %v7235_v45  ;;  %v6449_v45 = vld [vmem:[%s14553_s10 + $0x28] sm:$0xff] }
 0x54e   : > { %14587 = vst [vmem:[#allocation7_spill] sm:$0xff] %v12246_v3  ;;  %14588 = vst [vmem:[#allocation8_spill] sm:$0xff] %v12248_v28  ;;  %8381 = vmatpush1.bf16.msra.mxu1 %v8380_v35  ;;  %3753 = vmatprep.mubr.f32.mxu1 %v7238_v38  ;;  %v9535_v3 = vunpack.i.l.bf16 %v11842_v30  ;;  %v6450_v35 = vld [vmem:[%s14553_s10 + $0x30] sm:$0xff]  ;;  %v9540_v28 = vunpack.i.l.bf16 %v11840_v19  ;;  %v7242_v19 = vld [vmem:[%s14551_s8 + $0x468] sm:$0xff] }
 0x54f   : > { %6498 = vperm.xlu0 %9345, %v6448_v53   ;;  %6493 = vperm.xlu1 %9346, %v6447_v24   ;;  %v7239_v30 = vld [vmem:[%s14551_s8 + $0x450] sm:$0xff] }
 0x550   : > { %8382 = vmatprep.subr.bf16.mxu1 %v14582_v21  ;;  %v8386_v6 = vpack.c.bf16 %v9536_v33, %v9535_v3 }
 0x551   : > { %v9809_v38 = vpop.permute.xlu0 %9808  ;;  %v12265_v53 = vpop.permute.xlu1 %9803  ;;  %3754 = vmatmul.mubr.f32.gmra.mrb[8].mxu1 %v7237_v29  ;;  %v6452_v29 = vld [vmem:[%s14553_s10 + $0x40] sm:$0xff] }
 0x552   : > { %v9811_v24 = vunpack.i.h.bf16 %v9809_v38  ;;  %v9810_v5 = vunpack.i.l.bf16 %v9809_v38  ;;  %8384 = vmatpush1.bf16.msra.mxu1 %v8383_v2  ;;  %3758 = vmatprep.mubr.f32.mxu1 %v7240_v51  ;;  %v6451_v51 = vld [vmem:[%s14553_s10 + $0x38] sm:$0xff] }
 0x553   : > { %6508 = vperm.xlu0 %9345, %v6450_v35   ;;  %6503 = vperm.xlu1 %9346, %v6449_v45   ;;  %v7241_v35 = vld [vmem:[%s14551_s8 + $0x460] sm:$0xff]  ;;  %v8389_v45 = vpack.c.bf16 %v9541_v50, %v9540_v28 }
 0x554   : > { %v8227_v31 = vpack.c.bf16 %v9811_v24, %v9810_v5  ;;  %8385 = vmatprep.subr.bf16.mxu1 %v14582_v21  ;;  %v9546_v24 = vunpack.i.h.bf16 %v11859_v43  ;;  %v9545_v5 = vunpack.i.l.bf16 %v11859_v43  ;;  %v7244_v43 = vld [vmem:[%s14551_s8 + $0x478] sm:$0xff] }
 0x555   : > { %v9819_v2 = vpop.permute.xlu0 %9818  ;;  %v12279_v38 = vpop.permute.xlu1 %9813  ;;  %3759 = vmatmul.mubr.f32.gmra.mrb[10].mxu1 %v7239_v30 }
 0x556   : > { %v9821_v3 = vunpack.i.h.bf16 %v9819_v2  ;;  %v9820_v33 = vunpack.i.l.bf16 %v9819_v2  ;;  %8387 = vmatpush1.bf16.msra.mxu1 %v8386_v6  ;;  %8228 = vmatpush1.bf16.msra.mxu0 %v8227_v31  ;;  %v6454_v6 = vld [vmem:[%s14553_s10 + $0x50] sm:$0xff]  ;;  %v6453_v31 = vld [vmem:[%s14553_s10 + $0x48] sm:$0xff] }
 0x557   : > { %6518 = vperm.xlu0 %9345, %v6452_v29   ;;  %6513 = vperm.xlu1 %9346, %v6451_v51   ;;  %v7243_v51 = vld [vmem:[%s14551_s8 + $0x470] sm:$0xff] }
 0x558   : > { %v8230_v30 = vpack.c.bf16 %v9821_v3, %v9820_v33  ;;  %3763 = vmatprep.mubr.f32.mxu1 %v7242_v19  ;;  %8388 = vmatprep.subr.bf16.mxu1 %v14582_v21  ;;  %v9551_v19 = vunpack.i.h.bf16 %v11857_v40  ;;  %v9550_v3 = vunpack.i.l.bf16 %v11857_v40  ;;  %v8392_v33 = vpack.c.bf16 %v9546_v24, %v9545_v5  ;;  %v7246_v40 = vld [vmem:[%s14551_s8 + $0x488] sm:$0xff] }
 0x559   : > { %v9829_v2 = vpop.permute.xlu0 %9828  ;;  %8229 = vmatprep.subr.bf16.mxu0 %v14582_v21  ;;  %v12297_v28 = vpop.permute.xlu1 %9823  ;;  %3764 = vmatmul.mubr.f32.gmra.mrb[12].mxu1 %v7241_v35 }
 0x55a   : > { %v9831_v50 = vunpack.i.h.bf16 %v9829_v2  ;;  %v9830_v29 = vunpack.i.l.bf16 %v9829_v2  ;;  %8390 = vmatpush1.bf16.msra.mxu1 %v8389_v45  ;;  %8231 = vmatpush1.bf16.msra.mxu0 %v8230_v30  ;;  %v6456_v45 = vld [vmem:[%s14553_s10 + $0x60] sm:$0xff]  ;;  %v6455_v30 = vld [vmem:[%s14553_s10 + $0x58] sm:$0xff] }
 0x55b   : > { %6528 = vperm.xlu0 %9345, %v6454_v6   ;;  %6523 = vperm.xlu1 %9346, %v6453_v31   ;;  %v7245_v31 = vld [vmem:[%s14551_s8 + $0x480] sm:$0xff] }
 0x55c   : > { %v8233_v35 = vpack.c.bf16 %v9831_v50, %v9830_v29  ;;  %3768 = vmatprep.mubr.f32.mxu1 %v7244_v43  ;;  %8391 = vmatprep.subr.bf16.mxu1 %v14582_v21  ;;  %v8395_v43 = vpack.c.bf16 %v9551_v19, %v9550_v3  ;;  %v9556_v50 = vunpack.i.h.bf16 %v11876_v62  ;;  %v9555_v29 = vunpack.i.l.bf16 %v11876_v62  ;;  %v7248_v62 = vld [vmem:[%s14551_s8 + $0x498] sm:$0xff] }
 0x55d   : > { %v9839_v2 = vpop.permute.xlu0 %9838  ;;  %8232 = vmatprep.subr.bf16.mxu0 %v14582_v21  ;;  %v12315_v6 = vpop.permute.xlu1 %9833  ;;  %3769 = vmatmul.mubr.f32.gmra.mrb[14].mxu1 %v7243_v51 }
 0x55e   : > { %14589 = vst [vmem:[#allocation9_spill] sm:$0xff] %v12315_v6  ;;  %v9841_v24 = vunpack.i.h.bf16 %v9839_v2  ;;  %v9840_v5 = vunpack.i.l.bf16 %v9839_v2  ;;  %8393 = vmatpush1.bf16.msra.mxu1 %v8392_v33  ;;  %8234 = vmatpush1.bf16.msra.mxu0 %v8233_v35  ;;  %v6458_v33 = vld [vmem:[%s14553_s10 + $0x70] sm:$0xff]  ;;  %v6457_v35 = vld [vmem:[%s14553_s10 + $0x68] sm:$0xff] }
 0x55f   : > { %6538 = vperm.xlu0 %9345, %v6456_v45   ;;  %6533 = vperm.xlu1 %9346, %v6455_v30   ;;  %v7247_v30 = vld [vmem:[%s14551_s8 + $0x490] sm:$0xff] }
 0x560   : > { %v8236_v51 = vpack.c.bf16 %v9841_v24, %v9840_v5  ;;  %3773 = vmatprep.mubr.f32.mxu1 %v7246_v40  ;;  %8394 = vmatprep.subr.bf16.mxu1 %v14582_v21  ;;  %v9561_v40 = vunpack.i.h.bf16 %v11874_v58  ;;  %v9560_v24 = vunpack.i.l.bf16 %v11874_v58  ;;  %v8398_v5 = vpack.c.bf16 %v9556_v50, %v9555_v29  ;;  %v7250_v58 = vld [vmem:[%s14551_s8 + $0x4a8] sm:$0xff] }
 0x561   : > { %v9849_v2 = vpop.permute.xlu0 %9848  ;;  %8235 = vmatprep.subr.bf16.mxu0 %v14582_v21  ;;  %v12333_v19 = vpop.permute.xlu1 %9843  ;;  %3774 = vmatmul.mubr.f32.gmra.mrb[16].mxu1 %v7245_v31 }
 0x562   : > { %14590 = vst [vmem:[#allocation10_spill] sm:$0xff] %v12333_v19  ;;  %v9851_v3 = vunpack.i.h.bf16 %v9849_v2  ;;  %v9850_v45 = vunpack.i.l.bf16 %v9849_v2  ;;  %8396 = vmatpush1.bf16.msra.mxu1 %v8395_v43  ;;  %8237 = vmatpush1.bf16.msra.mxu0 %v8236_v51  ;;  %v6460_v43 = vld [vmem:[%s14553_s10 + $0x80] sm:$0xff]  ;;  %v6459_v51 = vld [vmem:[%s14553_s10 + $0x78] sm:$0xff] }
 0x563   : > { %6548 = vperm.xlu0 %9345, %v6458_v33   ;;  %6543 = vperm.xlu1 %9346, %v6457_v35   ;;  %v7249_v33 = vld [vmem:[%s14551_s8 + $0x4a0] sm:$0xff]  ;;  %v8401_v35 = vpack.c.bf16 %v9561_v40, %v9560_v24  ;;  %v6461_v40 = vld [vmem:[%s14553_s10 + $0x88] sm:$0xff] }
 0x564   : > { %v8239_v31 = vpack.c.bf16 %v9851_v3, %v9850_v45  ;;  %3778 = vmatprep.mubr.f32.mxu1 %v7248_v62  ;;  %8397 = vmatprep.subr.bf16.mxu1 %v14582_v21  ;;  %v9566_v62 = vunpack.i.h.bf16 %v11893_v25  ;;  %v9565_v3 = vunpack.i.l.bf16 %v11893_v25  ;;  %v7252_v25 = vld [vmem:[%s14551_s8 + $0x4b8] sm:$0xff] }
 0x565   : > { %v9859_v2 = vpop.permute.xlu0 %9858  ;;  %8238 = vmatprep.subr.bf16.mxu0 %v14582_v21  ;;  %v9854_v19 = vpop.permute.xlu1 %9853  ;;  %3779 = vmatmul.mubr.f32.gmra.mrb[18].mxu1 %v7247_v30 }
 0x566   : > { %v9856_v50 = vunpack.i.h.bf16 %v9854_v19  ;;  %v9855_v29 = vunpack.i.l.bf16 %v9854_v19  ;;  %8399 = vmatpush1.bf16.msra.mxu1 %v8398_v5  ;;  %8240 = vmatpush1.bf16.msra.mxu0 %v8239_v31  ;;  %v9861_v45 = vunpack.i.h.bf16 %v9859_v2  ;;  %v9860_v30 = vunpack.i.l.bf16 %v9859_v2  ;;  %v6462_v19 = vld [vmem:[%s14553_s10 + $0x90] sm:$0xff] }
 0x567   : > { %6558 = vperm.xlu0 %9345, %v6460_v43   ;;  %6553 = vperm.xlu1 %9346, %v6459_v51   ;;  %v7251_v31 = vld [vmem:[%s14551_s8 + $0x4b0] sm:$0xff]  ;;  %v9571_v43 = vunpack.i.h.bf16 %v11891_v22  ;;  %v9570_v51 = vunpack.i.l.bf16 %v11891_v22  ;;  %v8404_v2 = vpack.c.bf16 %v9566_v62, %v9565_v3  ;;  %v7254_v62 = vld [vmem:[%s14551_s8 + $0x4c8] sm:$0xff]  ;;  %v7253_v3 = vld [vmem:[%s14551_s8 + $0x4c0] sm:$0xff] }
 0x568   : > { %v8242_v6 = vpack.c.bf16 %v9856_v50, %v9855_v29  ;;  %3783 = vmatprep.mubr.f32.mxu1 %v7250_v58  ;;  %8400 = vmatprep.subr.bf16.mxu1 %v14582_v21  ;;  %v8245_v58 = vpack.c.bf16 %v9861_v45, %v9860_v30  ;;  %v9576_v30 = vunpack.i.h.bf16 %v11910_v20 }
 0x569   : > { %v9869_v24 = vpop.permute.xlu0 %9868  ;;  %8241 = vmatprep.subr.bf16.mxu0 %v14582_v21  ;;  %v9864_v5 = vpop.permute.xlu1 %9863  ;;  %3784 = vmatmul.mubr.f32.gmra.mrb[20].mxu1 %v7249_v33  ;;  %v6463_v33 = vld [vmem:[%s14553_s10 + $0x98] sm:$0xff]  ;;  %v8407_v45 = vpack.c.bf16 %v9571_v43, %v9570_v51  ;;  %v6465_v43 = vld [vmem:[%s14553_s10 + $0xa8] sm:$0xff] }
 0x56a   : > { %8402 = vmatpush1.bf16.msra.mxu1 %v8401_v35  ;;  %8243 = vmatpush1.bf16.msra.mxu0 %v8242_v6  ;;  %v9866_v50 = vunpack.i.h.bf16 %v9864_v5  ;;  %v9865_v29 = vunpack.i.l.bf16 %v9864_v5  ;;  %v6464_v6 = vld [vmem:[%s14553_s10 + $0xa0] sm:$0xff]  ;;  %v9870_v5 = vunpack.i.l.bf16 %v9869_v24 }
 0x56b   : > { %6568 = vperm.xlu0 %9345, %v6462_v19   ;;  %6563 = vperm.xlu1 %9346, %v6461_v40   ;;  %v9575_v19 = vunpack.i.l.bf16 %v11910_v20  ;;  %v9871_v40 = vunpack.i.h.bf16 %v9869_v24  ;;  %v7256_v20 = vld [vmem:[%s14551_s8 + $0x4d8] sm:$0xff]  ;;  %v7255_v24 = vld [vmem:[%s14551_s8 + $0x4d0] sm:$0xff] }
 0x56c   : > { %3788 = vmatprep.mubr.f32.mxu1 %v7252_v25  ;;  %8403 = vmatprep.subr.bf16.mxu1 %v14582_v21  ;;  %v8248_v25 = vpack.c.bf16 %v9866_v50, %v9865_v29  ;;  %v9580_v50 = vunpack.i.l.bf16 %v11908_v16 }
 0x56d   : > { %v12382_v35 = vpop.permute.xlu0 %9878  ;;  %v9874_v22 = vpop.permute.xlu1 %9873  ;;  %8244 = vmatprep.subr.bf16.mxu0 %v14582_v21  ;;  %3789 = vmatmul.mubr.f32.gmra.mrb[22].mxu1 %v7251_v31  ;;  %v6466_v31 = vld [vmem:[%s14553_s10 + $0xb0] sm:$0xff]  ;;  %v8410_v29 = vpack.c.bf16 %v9576_v30, %v9575_v19  ;;  %v7257_v30 = vld [vmem:[%s14551_s8 + $0x4e0] sm:$0xff] }
 0x56e   : > { %8405 = vmatpush1.bf16.msra.mxu1 %v8404_v2  ;;  %8246 = vmatpush1.bf16.msra.mxu0 %v8245_v58  ;;  %v9581_v58 = vunpack.i.h.bf16 %v11908_v16 }
 0x56f   : > { %6578 = vperm.xlu0 %9345, %v6464_v6   ;;  %6573 = vperm.xlu1 %9346, %v6463_v33   ;;  %v8251_v6 = vpack.c.bf16 %v9871_v40, %v9870_v5  ;;  %v9876_v33 = vunpack.i.h.bf16 %v9874_v22  ;;  %v9586_v40 = vunpack.i.h.bf16 %v11927_v37  ;;  %v9585_v5 = vunpack.i.l.bf16 %v11927_v37  ;;  %v7260_v37 = vld [vmem:[%s14551_s8 + $0x4f8] sm:$0xff] }
 0x570   : > { %3793 = vmatprep.mubr.f32.mxu1 %v7254_v62  ;;  %8406 = vmatprep.subr.bf16.mxu1 %v14582_v21  ;;  %v9875_v62 = vunpack.i.l.bf16 %v9874_v22  ;;  %v7258_v22 = vld [vmem:[%s14551_s8 + $0x4e8] sm:$0xff]  ;;  %v8413_v19 = vpack.c.bf16 %v9581_v58, %v9580_v50 }
 0x571   : > { %v12400_v51 = vpop.permute.xlu0 %9888  ;;  %v12402_v2 = vpop.permute.xlu1 %9883  ;;  %8247 = vmatprep.subr.bf16.mxu0 %v14582_v21  ;;  %3794 = vmatmul.mubr.f32.gmra.mrb[24].mxu1 %v7253_v3  ;;  %v6468_v3 = vld [vmem:[%s14553_s10 + $0xc0] sm:$0xff]  ;;  %v6469_v58 = vld [vmem:[%s14553_s10 + $0xc8] sm:$0xff] }
 0x572   : > { %8408 = vmatpush1.bf16.msra.mxu1 %v8407_v45  ;;  %8249 = vmatpush1.bf16.msra.mxu0 %v8248_v25  ;;  %v6467_v45 = vld [vmem:[%s14553_s10 + $0xb8] sm:$0xff] }
 0x573   : > { %6588 = vperm.xlu0 %9345, %v6466_v31   ;;  %6583 = vperm.xlu1 %9346, %v6465_v43   ;;  %v9881_v31 = vunpack.i.h.bf16 %v12382_v35  ;;  %v9880_v43 = vunpack.i.l.bf16 %v12382_v35  ;;  %v7259_v35 = vld [vmem:[%s14551_s8 + $0x4f0] sm:$0xff] }
 0x574   : > { %3798 = vmatprep.mubr.f32.mxu1 %v7256_v20  ;;  %8409 = vmatprep.subr.bf16.mxu1 %v14582_v21  ;;  %v8254_v20 = vpack.c.bf16 %v9876_v33, %v9875_v62  ;;  %v9886_v62 = vunpack.i.h.bf16 %v12402_v2 }
 0x575   : > { %v12420_v25 = vpop.permute.xlu0 %9898  ;;  %v12422_v16 = vpop.permute.xlu1 %9893  ;;  %8250 = vmatprep.subr.bf16.mxu0 %v14582_v21  ;;  %3799 = vmatmul.mubr.f32.gmra.mrb[26].mxu1 %v7255_v24  ;;  %v6470_v24 = vld [vmem:[%s14553_s10 + $0xd0] sm:$0xff]  ;;  %v8257_v33 = vpack.c.bf16 %v9881_v31, %v9880_v43  ;;  %v9891_v31 = vunpack.i.h.bf16 %v12400_v51  ;;  %v9890_v43 = vunpack.i.l.bf16 %v12400_v51 }
 0x576   : > { %8411 = vmatpush1.bf16.msra.mxu1 %v8410_v29  ;;  %8252 = vmatpush1.bf16.msra.mxu0 %v8251_v6  ;;  %v8416_v6 = vpack.c.bf16 %v9586_v40, %v9585_v5  ;;  %v7261_v40 = vld [vmem:[%s14551_s8 + $0x500] sm:$0xff]  ;;  %v7264_v5 = vld [vmem:[%s14551_s8 + $0x518] sm:$0xff]  ;;  %v7263_v51 = vld [vmem:[%s14551_s8 + $0x510] sm:$0xff] }
 0x577   : > { %6598 = vperm.xlu0 %9345, %v6468_v3   ;;  %6593 = vperm.xlu1 %9346, %v6467_v45   ;;  %v9885_v3 = vunpack.i.l.bf16 %v12402_v2  ;;  %v6472_v45 = vld [vmem:[%s14553_s10 + $0xe0] sm:$0xff]  ;;  %v7262_v2 = vld [vmem:[%s14551_s8 + $0x508] sm:$0xff] }
 0x578   : > { %3803 = vmatprep.mubr.f32.mxu1 %v7258_v22  ;;  %8412 = vmatprep.subr.bf16.mxu1 %v14582_v21  ;;  %v6471_v22 = vld [vmem:[%s14553_s10 + $0xd8] sm:$0xff] }
 0x579   : > { %v12442_v50 = vpop.permute.xlu0 %9908  ;;  %v12444_v29 = vpop.permute.xlu1 %9903  ;;  %8253 = vmatprep.subr.bf16.mxu0 %v14582_v21  ;;  %3804 = vmatmul.mubr.f32.gmra.mrb[28].mxu1 %v7257_v30 }
 0x57a   : > { %8414 = vmatpush1.bf16.msra.mxu1 %v8413_v19  ;;  %8255 = vmatpush1.bf16.msra.mxu0 %v8254_v20  ;;  %v8260_v20 = vpack.c.bf16 %v9886_v62, %v9885_v3  ;;  %v9896_v62 = vunpack.i.h.bf16 %v12422_v16  ;;  %v9895_v3 = vunpack.i.l.bf16 %v12422_v16  ;;  %v7268_v16 = vld [vmem:[%s14551_s8 + $0x538] sm:$0xff] }
 0x57b   : > { %6608 = vperm.xlu0 %9345, %v6470_v24   ;;  %6603 = vperm.xlu1 %9346, %v6469_v58   ;;  %v6474_v24 = vld [vmem:[%s14553_s10 + $0xf0] sm:$0xff]  ;;  %v6473_v58 = vld [vmem:[%s14553_s10 + $0xe8] sm:$0xff] }
 0x57c   : > { %3808 = vmatprep.mubr.f32.mxu1 %v7260_v37  ;;  %8415 = vmatprep.subr.bf16.mxu1 %v14582_v21 }
 0x57d   : > { %v12462_v30 = vpop.permute.xlu0 %9918  ;;  %v12464_v19 = vpop.permute.xlu1 %9913  ;;  %8256 = vmatprep.subr.bf16.mxu0 %v14582_v21  ;;  %3809 = vmatmul.mubr.f32.gmra.mrb[30].mxu1 %v7259_v35 }
 0x57e   : > { %8417 = vmatpush1.bf16.msra.mxu1 %v8416_v6  ;;  %8258 = vmatpush1.bf16.msra.mxu0 %v8257_v33  ;;  %v7266_v6 = vld [vmem:[%s14551_s8 + $0x528] sm:$0xff]  ;;  %v8263_v33 = vpack.c.bf16 %v9891_v31, %v9890_v43  ;;  %v9900_v31 = vunpack.i.l.bf16 %v12420_v25  ;;  %v8266_v43 = vpack.c.bf16 %v9896_v62, %v9895_v3 }
 0x57f   : > { %6618 = vperm.xlu0 %9345, %v6472_v45   ;;  %6613 = vperm.xlu1 %9346, %v6471_v22   ;;  %v6475_v45 = vld [vmem:[%s14553_s10 + $0xf8] sm:$0xff] }
 0x580   : > { %3813 = vmatprep.mubr.f32.mxu1 %v7262_v2  ;;  %8259 = vmatprep.subr.bf16.mxu0 %v14582_v21 }
 0x581   : > { %v12485_v37 = vpop.permute.xlu0 %9928  ;;  %v12487_v35 = vpop.permute.xlu1 %9923  ;;  %3814 = vmatmul.mubr.f32.gmra.mrb[32].mxu1 %v7261_v40  ;;  %8418 = vmatprep.subr.bf16.mxu1 %v14582_v21  ;;  %v7265_v40 = vld [vmem:[%s14551_s8 + $0x520] sm:$0xff] }
 0x582   : > { %8261 = vmatpush1.bf16.msra.mxu0 %v8260_v20  ;;  %3818 = vmatprep.mubr.f32.mxu1 %v7264_v5  ;;  %v9901_v5 = vunpack.i.h.bf16 %v12420_v25  ;;  %v9906_v25 = vunpack.i.h.bf16 %v12444_v29 }
 0x583   : > { %6628 = vperm.xlu0 %9345, %v6474_v24   ;;  %6623 = vperm.xlu1 %9346, %v6473_v58   ;;  %v7267_v58 = vld [vmem:[%s14551_s8 + $0x530] sm:$0xff] }
 0x584   : > { %8262 = vmatprep.subr.bf16.mxu0 %v14582_v21 }
 0x585   : > { %v12502_v22 = vpop.permute.xlu0 %9938  ;;  %v12504_v2 = vpop.permute.xlu1 %9933  ;;  %3819 = vmatmul.mubr.f32.gmra.mrb[34].mxu1 %v7263_v51  ;;  %v7270_v51 = vld [vmem:[%s14551_s8 + $0x548] sm:$0xff] }
 0x586   : > { %8264 = vmatpush1.bf16.msra.mxu0 %v8263_v33  ;;  %3823 = vmatprep.mubr.f32.mxu1 %v7266_v6  ;;  %v8269_v6 = vpack.c.bf16 %v9901_v5, %v9900_v31  ;;  %v9905_v33 = vunpack.i.l.bf16 %v12444_v29  ;;  %v7271_v31 = vld [vmem:[%s14551_s8 + $0x550] sm:$0xff] }
 0x587   : > { %6633 = vperm.xlu1 %9346, %v6475_v45   ;;  %8265 = vmatprep.subr.bf16.mxu0 %v14582_v21  ;;  %v7269_v45 = vld [vmem:[%s14551_s8 + $0x540] sm:$0xff] }
 0x589   : > { %v12515_v20 = vpop.permute.xlu0 %9948  ;;  %v12517_v24 = vpop.permute.xlu1 %9943  ;;  %3824 = vmatmul.mubr.f32.gmra.mrb[36].mxu1 %v7265_v40  ;;  %v7272_v40 = vld [vmem:[%s14551_s8 + $0x558] sm:$0xff] }
 0x58a   : > { %14591 = vst [vmem:[#allocation11_spill] sm:$0xff] %v12515_v20  ;;  %8267 = vmatpush1.bf16.msra.mxu0 %v8266_v43  ;;  %3828 = vmatprep.mubr.f32.mxu1 %v7268_v16  ;;  %v8272_v16 = vpack.c.bf16 %v9906_v25, %v9905_v33  ;;  %v7165_v43 = vld [vmem:[%s14551_s8 + $0x200] sm:$0xff] }
 0x58b   : > { %8268 = vmatprep.subr.bf16.mxu0 %v14582_v21 }
 0x58d   : > { %v12528_v62 = vpop.permute.xlu0 %9958  ;;  %v12530_v3 = vpop.permute.xlu1 %9953  ;;  %3829 = vmatmul.mubr.f32.gmra.mrb[38].mxu1 %v7267_v58  ;;  %v7274_v58 = vld [vmem:[%s14551_s8 + $0x568] sm:$0xff] }
 0x58e   : > { %14592 = vst [vmem:[#allocation12_spill] sm:$0xff] %v12528_v62  ;;  %14593 = vst [vmem:[#allocation13_spill] sm:$0xff] %v12530_v3  ;;  %8270 = vmatpush1.bf16.msra.mxu0 %v8269_v6  ;;  %3833 = vmatprep.mubr.f32.mxu1 %v7270_v51  ;;  %v9596_v62 = vunpack.i.h.bf16 %v11942_v61  ;;  %v9595_v3 = vunpack.i.l.bf16 %v11942_v61  ;;  %v9600_v61 = vunpack.i.l.bf16 %v11940_v47 }
 0x58f   : > { %8271 = vmatprep.subr.bf16.mxu0 %v14582_v21 }
 0x591   : > { %v12539_v5 = vpop.permute.xlu0 %9968  ;;  %v12541_v29 = vpop.permute.xlu1 %9963  ;;  %3834 = vmatmul.mubr.f32.gmra.mrb[40].mxu1 %v7269_v45  ;;  %v7273_v45 = vld [vmem:[%s14551_s8 + $0x560] sm:$0xff] }
 0x592   : > { %14594 = vst [vmem:[#allocation14_spill] sm:$0xff] %v12539_v5  ;;  %14595 = vst [vmem:[#allocation15_spill] sm:$0xff] %v12541_v29  ;;  %8273 = vmatpush1.bf16.msra.mxu0 %v8272_v16  ;;  %3838 = vmatprep.mubr.f32.mxu1 %v7272_v40  ;;  %v7276_v40 = vld [vmem:[%s14551_s8 + $0x578] sm:$0xff] }
 0x593   : > { %8610 = vmatprep.subr.bf16.mxu0 %v14582_v21 }
 0x595   : > { %v12553_v51 = vpop.permute.xlu0 %9978  ;;  %v9974_v6 = vpop.permute.xlu1 %9973  ;;  %3839 = vmatmul.mubr.f32.gmra.mrb[42].mxu1 %v7271_v31  ;;  %3027 = vmatmul.mubr.f32.vlgmr.msra.gmra.mrb[160].mxu0 %v7165_v43  ;;  %v7275_v43 = vld [vmem:[%s14551_s8 + $0x570] sm:$0xff] }
 0x596   : > { %14596 = vst [vmem:[#allocation16_spill] sm:$0xff] %v12553_v51  ;;  %v9976_v25 = vunpack.i.h.bf16 %v9974_v6  ;;  %v9975_v33 = vunpack.i.l.bf16 %v9974_v6  ;;  %3843 = vmatprep.mubr.f32.mxu1 %v7274_v58  ;;  %v7278_v58 = vld [vmem:[%s14551_s8 + $0x588] sm:$0xff] }
 0x598   : > { %v12561_v16 = vpack.c.bf16 %v9976_v25, %v9975_v33 }
 0x599   : > { %v12563_v5 = vpop.permute.xlu0 %9988  ;;  %v9984_v29 = vpop.permute.xlu1 %9983  ;;  %3844 = vmatmul.mubr.f32.gmra.mrb[44].mxu1 %v7273_v45 }
 0x59a   : > { %14597 = vst [vmem:[#allocation17_spill] sm:$0xff] %v12561_v16  ;;  %14598 = vst [vmem:[#allocation18_spill] sm:$0xff] %v12563_v5  ;;  %v9986_v51 = vunpack.i.h.bf16 %v9984_v29  ;;  %v9985_v31 = vunpack.i.l.bf16 %v9984_v29  ;;  %8612 = vmatpush1.bf16.msra.mxu0 %v12561_v16  ;;  %3848 = vmatprep.mubr.f32.mxu1 %v7276_v40  ;;  %v7277_v40 = vld [vmem:[%s14551_s8 + $0x580] sm:$0xff] }
 0x59b   : > { %8613 = vmatprep.subr.bf16.mxu0 %v14582_v21 }
 0x59c   : > { %v12573_v6 = vpack.c.bf16 %v9986_v51, %v9985_v31  ;;  %v7280_v51 = vld [vmem:[%s14551_s8 + $0x598] sm:$0xff] }
 0x59d   : > { %v12575_v25 = vpop.permute.xlu0 %10003  ;;  %v9994_v33 = vpop.permute.xlu1 %9993  ;;  %3849 = vmatmul.mubr.f32.gmra.mrb[46].mxu1 %v7275_v43 }
 0x59e   : > { %14599 = vst [vmem:[#allocation19_spill] sm:$0xff] %v12573_v6  ;;  %14600 = vst [vmem:[#allocation20_spill] sm:$0xff] %v12575_v25  ;;  %v9996_v29 = vunpack.i.h.bf16 %v9994_v33  ;;  %v9995_v45 = vunpack.i.l.bf16 %v9994_v33  ;;  %8615 = vmatpush1.bf16.msra.mxu0 %v12573_v6  ;;  %3853 = vmatprep.mubr.f32.mxu1 %v7278_v58  ;;  %v7279_v58 = vld [vmem:[%s14551_s8 + $0x590] sm:$0xff]  ;;  %v7282_v6 = vld [vmem:[%s14551_s8 + $0x5a8] sm:$0xff] }
 0x59f   : > { %8616 = vmatprep.subr.bf16.mxu0 %v14582_v21 }
 0x5a0   : > { %v12585_v31 = vpack.c.bf16 %v9996_v29, %v9995_v45 }
 0x5a1   : > { %v10009_v16 = vpop.permute.xlu0 %10008  ;;  %v9999_v25 = vpop.permute.xlu1 %9998  ;;  %3854 = vmatmul.mubr.f32.gmra.mrb[48].mxu1 %v7277_v40 }
 0x5a2   : > { %14601 = vst [vmem:[#allocation21_spill] sm:$0xff] %v12585_v31  ;;  %v10001_v43 = vunpack.i.h.bf16 %v9999_v25  ;;  %v10000_v33 = vunpack.i.l.bf16 %v9999_v25  ;;  %8618 = vmatpush1.bf16.msra.mxu0 %v12585_v31  ;;  %3858 = vmatprep.mubr.f32.mxu1 %v7280_v51  ;;  %v10011_v29 = vunpack.i.h.bf16 %v10009_v16  ;;  %v10010_v45 = vunpack.i.l.bf16 %v10009_v16  ;;  %v7281_v25 = vld [vmem:[%s14551_s8 + $0x5a0] sm:$0xff]  ;;  %v7284_v51 = vld [vmem:[%s14551_s8 + $0x5b8] sm:$0xff] }
 0x5a3   : > { %8619 = vmatprep.subr.bf16.mxu0 %v14582_v21 }
 0x5a4   : > { %v12595_v5 = vpack.c.bf16 %v10001_v43, %v10000_v33  ;;  %v12605_v31 = vpack.c.bf16 %v10011_v29, %v10010_v45 }
 0x5a5   : > { %v10014_v40 = vpop.permute.xlu1 %10013  ;;  %3859 = vmatmul.mubr.f32.gmra.mrb[50].mxu1 %v7279_v58  ;;  %v10019_v33 = vpop.permute.xlu0 %10018  ;;  %v7286_v58 = vld [vmem:[%s14551_s8 + $0x5c8] sm:$0xff] }
 0x5a6   : > { %14602 = vst [vmem:[#allocation22_spill] sm:$0xff] %v12595_v5  ;;  %8621 = vmatpush1.bf16.msra.mxu0 %v12595_v5  ;;  %3863 = vmatprep.mubr.f32.mxu1 %v7282_v6  ;;  %14603 = vst [vmem:[#allocation23_spill] sm:$0xff] %v12605_v31  ;;  %v10016_v16 = vunpack.i.h.bf16 %v10014_v40  ;;  %v10015_v43 = vunpack.i.l.bf16 %v10014_v40  ;;  %v7283_v6 = vld [vmem:[%s14551_s8 + $0x5b0] sm:$0xff]  ;;  %v10021_v5 = vunpack.i.h.bf16 %v10019_v33  ;;  %v10020_v29 = vunpack.i.l.bf16 %v10019_v33 }
 0x5a7   : > { %8622 = vmatprep.subr.bf16.mxu0 %v14582_v21 }
 0x5a8   : > { %v12615_v45 = vpack.c.bf16 %v10016_v16, %v10015_v43 }
 0x5a9   : > { %3864 = vmatmul.mubr.f32.gmra.mrb[52].mxu1 %v7281_v25  ;;  %v10024_v40 = vpop.permute.xlu1 %10023  ;;  %v7285_v25 = vld [vmem:[%s14551_s8 + $0x5c0] sm:$0xff]  ;;  %v10029_v43 = vpop.permute.xlu0 %10028 }
 0x5aa   : > { %8624 = vmatpush1.bf16.msra.mxu0 %v12605_v31  ;;  %3868 = vmatprep.mubr.f32.mxu1 %v7284_v51  ;;  %14604 = vst [vmem:[#allocation24_spill] sm:$0xff] %v12615_v45  ;;  %v7288_v51 = vld [vmem:[%s14551_s8 + $0x5d8] sm:$0xff]  ;;  %v12625_v31 = vpack.c.bf16 %v10021_v5, %v10020_v29  ;;  %v10026_v33 = vunpack.i.h.bf16 %v10024_v40  ;;  %v10025_v16 = vunpack.i.l.bf16 %v10024_v40  ;;  %v10030_v5 = vunpack.i.l.bf16 %v10029_v43 }
 0x5ab   : > { %8625 = vmatprep.subr.bf16.mxu0 %v14582_v21 }
 0x5ac   : > { %14605 = vst [vmem:[#allocation25_spill] sm:$0xff] %v12625_v31  ;;  %v12635_v29 = vpack.c.bf16 %v10026_v33, %v10025_v16 }
 0x5ad   : > { %3869 = vmatmul.mubr.f32.gmra.mrb[54].mxu1 %v7283_v6  ;;  %v7287_v6 = vld [vmem:[%s14551_s8 + $0x5d0] sm:$0xff]  ;;  %v10034_v40 = vpop.permute.xlu1 %10033  ;;  %v10039_v16 = vpop.permute.xlu0 %10038 }
 0x5ae   : > { %8627 = vmatpush1.bf16.msra.mxu0 %v12615_v45  ;;  %3873 = vmatprep.mubr.f32.mxu1 %v7286_v58  ;;  %v7290_v58 = vld [vmem:[%s14551_s8 + $0x5e8] sm:$0xff]  ;;  %v10031_v45 = vunpack.i.h.bf16 %v10029_v43  ;;  %14606 = vst [vmem:[#allocation26_spill] sm:$0xff] %v12635_v29  ;;  %v10036_v43 = vunpack.i.h.bf16 %v10034_v40  ;;  %v10035_v33 = vunpack.i.l.bf16 %v10034_v40  ;;  %v10040_v40 = vunpack.i.l.bf16 %v10039_v16 }
 0x5af   : > { %8628 = vmatprep.subr.bf16.mxu0 %v14582_v21 }
 0x5b1   : > { %3874 = vmatmul.mubr.f32.gmra.mrb[56].mxu1 %v7285_v25  ;;  %v7289_v25 = vld [vmem:[%s14551_s8 + $0x5e0] sm:$0xff] }
 0x5b2   : > { %8630 = vmatpush1.bf16.msra.mxu0 %v12625_v31  ;;  %3878 = vmatprep.mubr.f32.mxu1 %v7288_v51  ;;  %v7292_v51 = vld [vmem:[%s14551_s8 + $0x5f8] sm:$0xff]  ;;  %v12645_v31 = vpack.c.bf16 %v10031_v45, %v10030_v5  ;;  %v7294_v45 = vld [vmem:[%s14551_s8 + $0x608] sm:$0xff]  ;;  %v10041_v5 = vunpack.i.h.bf16 %v10039_v16 }
 0x5b3   : > { %8631 = vmatprep.subr.bf16.mxu0 %v14582_v21  ;;  %v7296_v16 = vld [vmem:[%s14551_s8 + $0x618] sm:$0xff] }
 0x5b4   : > { %14607 = vst [vmem:[#allocation27_spill] sm:$0xff] %v12645_v31  ;;  %v12666_v20 = vpack.c.bf16 %v10041_v5, %v10040_v40 }
 0x5b5   : > { %3879 = vmatmul.mubr.f32.gmra.mrb[58].mxu1 %v7287_v6  ;;  %v7291_v6 = vld [vmem:[%s14551_s8 + $0x5f0] sm:$0xff] }
 0x5b6   : > { %8633 = vmatpush1.bf16.msra.mxu0 %v12635_v29  ;;  %3883 = vmatprep.mubr.f32.mxu1 %v7290_v58  ;;  %v9591_v58 = vunpack.i.h.bf16 %v11925_v60  ;;  %v9590_v29 = vunpack.i.l.bf16 %v11925_v60 }
 0x5b7   : > { %8634 = vmatprep.subr.bf16.mxu0 %v14582_v21 }
 0x5b8   : > { %v8419_v60 = vpack.c.bf16 %v9591_v58, %v9590_v29  ;;  %v7295_v29 = vld [vmem:[%s14551_s8 + $0x610] sm:$0xff]  ;;  %v9601_v58 = vunpack.i.h.bf16 %v11940_v47  ;;  %v7297_v47 = vld [vmem:[%s14551_s8 + $0x620] sm:$0xff] }
 0x5b9   : > { %3884 = vmatmul.mubr.f32.gmra.mrb[60].mxu1 %v7289_v25  ;;  %v12657_v25 = vpack.c.bf16 %v10036_v43, %v10035_v33 }
 0x5ba   : > { %8636 = vmatpush1.bf16.msra.mxu0 %v12645_v31  ;;  %3888 = vmatprep.mubr.f32.mxu1 %v7292_v51  ;;  %v10044_v31 = vpop.permute.xlu1 %10043  ;;  %v7293_v51 = vld [vmem:[%s14551_s8 + $0x600] sm:$0xff] }
 0x5bb   : > { %8637 = vmatprep.subr.bf16.mxu0 %v14582_v21  ;;  %v10046_v43 = vunpack.i.h.bf16 %v10044_v31  ;;  %v10045_v33 = vunpack.i.l.bf16 %v10044_v31  ;;  %v8422_v31 = vpack.c.bf16 %v9596_v62, %v9595_v3  ;;  %v8425_v62 = vpack.c.bf16 %v9601_v58, %v9600_v61  ;;  %v7299_v58 = vld [vmem:[%s14551_s8 + $0x630] sm:$0xff] }
 0x5bc   : > { %v9606_v3 = vunpack.i.h.bf16 %v11957_v36  ;;  %v9610_v61 = vunpack.i.l.bf16 %v11955_v26 }
 0x5bd   : > { %3889 = vmatmul.mubr.f32.gmra.mrb[62].mxu1 %v7291_v6  ;;  %v10049_v6 = vpop.permute.xlu0 %10048  ;;  %v12678_v40 = vpack.c.bf16 %v10046_v43, %v10045_v33  ;;  %v9605_v43 = vunpack.i.l.bf16 %v11957_v36  ;;  %v9611_v36 = vunpack.i.h.bf16 %v11955_v26  ;;  %v7301_v26 = vld [vmem:[%s14551_s8 + $0x640] sm:$0xff] }
 0x5be   : > { %8639 = vmatpush1.bf16.msra.mxu0 %v12657_v25  ;;  %4151 = vmatprep.mubr.f32.mxu1 %v7294_v45  ;;  %v10051_v45 = vunpack.i.h.bf16 %v10049_v6  ;;  %v10050_v5 = vunpack.i.l.bf16 %v10049_v6 }
 0x5bf   : > { %8640 = vmatprep.subr.bf16.mxu0 %v14582_v21 }
 0x5c0   : > { %v12691_v33 = vpack.c.bf16 %v10051_v45, %v10050_v5  ;;  %v8428_v45 = vpack.c.bf16 %v9606_v3, %v9605_v43  ;;  %v8431_v3 = vpack.c.bf16 %v9611_v36, %v9610_v61  ;;  %v9616_v43 = vunpack.i.h.bf16 %v11971_v44  ;;  %v7303_v36 = vld [vmem:[%s14551_s8 + $0x650] sm:$0xff] }
 0x5c1   : > { %4152 = vmatmul.mubr.f32.vlgmr.msra.gmra.mrb[0].mxu1 %v7293_v51  ;;  %v7298_v51 = vld [vmem:[%s14551_s8 + $0x628] sm:$0xff]  ;;  %v9620_v61 = vunpack.i.l.bf16 %v11969_v48 }
 0x5c2   : > { %8420 = vmatpush1.bf16.msra.mxu1 %v8419_v60  ;;  %8642 = vmatpush1.bf16.msra.mxu0 %v12666_v20  ;;  %v10054_v60 = vpop.permute.xlu1 %10053 }
 0x5c3   : > { %4156 = vmatprep.mubr.f32.mxu1 %v7296_v16  ;;  %8421 = vmatprep.subr.bf16.mxu1 %v14582_v21  ;;  %v10056_v16 = vunpack.i.h.bf16 %v10054_v60  ;;  %v10055_v6 = vunpack.i.l.bf16 %v10054_v60 }
 0x5c4   : > { %8643 = vmatprep.subr.bf16.mxu0 %v14582_v21 }
 0x5c5   : > { %4157 = vmatmul.mubr.f32.gmra.mrb[2].mxu1 %v7295_v29  ;;  %v7300_v29 = vld [vmem:[%s14551_s8 + $0x638] sm:$0xff]  ;;  %v12704_v60 = vpack.c.bf16 %v10056_v16, %v10055_v6  ;;  %v9615_v16 = vunpack.i.l.bf16 %v11971_v44  ;;  %v9621_v44 = vunpack.i.h.bf16 %v11969_v48 }
 0x5c6   : > { %8423 = vmatpush1.bf16.msra.mxu1 %v8422_v31  ;;  %8645 = vmatpush1.bf16.msra.mxu0 %v12678_v40  ;;  %v10059_v31 = vpop.permute.xlu0 %10058  ;;  %v7308_v48 = vld [vmem:[%s14551_s8 + $0x678] sm:$0xff] }
 0x5c7   : > { %4161 = vmatprep.mubr.f32.mxu1 %v7298_v51  ;;  %8424 = vmatprep.subr.bf16.mxu1 %v14582_v21  ;;  %v10061_v5 = vunpack.i.h.bf16 %v10059_v31  ;;  %v10060_v51 = vunpack.i.l.bf16 %v10059_v31 }
 0x5c8   : > { %8646 = vmatprep.subr.bf16.mxu0 %v14582_v21 }
 0x5c9   : > { %4162 = vmatmul.mubr.f32.gmra.mrb[4].mxu1 %v7297_v47  ;;  %v7302_v47 = vld [vmem:[%s14551_s8 + $0x648] sm:$0xff]  ;;  %v12717_v6 = vpack.c.bf16 %v10061_v5, %v10060_v51 }
 0x5ca   : > { %8426 = vmatpush1.bf16.msra.mxu1 %v8425_v62  ;;  %8648 = vmatpush1.bf16.msra.mxu0 %v12691_v33  ;;  %v10064_v62 = vpop.permute.xlu1 %10063  ;;  %v7306_v51 = vld [vmem:[%s14551_s8 + $0x668] sm:$0xff] }
 0x5cb   : > { %4166 = vmatprep.mubr.f32.mxu1 %v7300_v29  ;;  %8427 = vmatprep.subr.bf16.mxu1 %v14582_v21  ;;  %v10066_v29 = vunpack.i.h.bf16 %v10064_v62  ;;  %v10065_v31 = vunpack.i.l.bf16 %v10064_v62  ;;  %v8437_v62 = vpack.c.bf16 %v9621_v44, %v9620_v61  ;;  %v9636_v61 = vunpack.i.h.bf16 %v11999_v27 }
 0x5cc   : > { %8649 = vmatprep.subr.bf16.mxu0 %v14582_v21 }
 0x5cd   : > { %4167 = vmatmul.mubr.f32.gmra.mrb[6].mxu1 %v7299_v58  ;;  %v7304_v58 = vld [vmem:[%s14551_s8 + $0x658] sm:$0xff]  ;;  %v12730_v5 = vpack.c.bf16 %v10066_v29, %v10065_v31  ;;  %v9631_v29 = vunpack.i.h.bf16 %v11983_v0  ;;  %v9630_v31 = vunpack.i.l.bf16 %v11983_v0  ;;  %v7311_v0 = vld [vmem:[%s14551_s8 + $0x690] sm:$0xff] }
 0x5ce   : > { %8429 = vmatpush1.bf16.msra.mxu1 %v8428_v45  ;;  %8651 = vmatpush1.bf16.msra.mxu0 %v12704_v60  ;;  %v8434_v45 = vpack.c.bf16 %v9616_v43, %v9615_v16  ;;  %v7307_v43 = vld [vmem:[%s14551_s8 + $0x670] sm:$0xff]  ;;  %v7310_v16 = vld [vmem:[%s14551_s8 + $0x688] sm:$0xff] }
 0x5cf   : > { %4171 = vmatprep.mubr.f32.mxu1 %v7302_v47  ;;  %8430 = vmatprep.subr.bf16.mxu1 %v14582_v21  ;;  %v7305_v47 = vld [vmem:[%s14551_s8 + $0x660] sm:$0xff]  ;;  %v8443_v44 = vpack.c.bf16 %v9631_v29, %v9630_v31  ;;  %v7318_v29 = vld [vmem:[%s14551_s8 + $0x6c8] sm:$0xff]  ;;  %v9651_v31 = vunpack.i.h.bf16 %v12011_v8 }
 0x5d0   : > { %8652 = vmatprep.subr.bf16.mxu0 %v14582_v21 }
 0x5d1   : > { %4172 = vmatmul.mubr.f32.gmra.mrb[8].mxu1 %v7301_v26  ;;  %v9626_v26 = vunpack.i.h.bf16 %v11985_v52 }
 0x5d2   : > { %8432 = vmatpush1.bf16.msra.mxu1 %v8431_v3  ;;  %8654 = vmatpush1.bf16.msra.mxu0 %v12717_v6  ;;  %v9625_v3 = vunpack.i.l.bf16 %v11985_v52  ;;  %v7309_v52 = vld [vmem:[%s14551_s8 + $0x680] sm:$0xff] }
 0x5d3   : > { %4176 = vmatprep.mubr.f32.mxu1 %v7304_v58  ;;  %8433 = vmatprep.subr.bf16.mxu1 %v14582_v21 }
 0x5d4   : > { %8655 = vmatprep.subr.bf16.mxu0 %v14582_v21  ;;  %v8440_v58 = vpack.c.bf16 %v9626_v26, %v9625_v3  ;;  %v7316_v26 = vld [vmem:[%s14551_s8 + $0x6b8] sm:$0xff] }
 0x5d5   : > { %4177 = vmatmul.mubr.f32.gmra.mrb[10].mxu1 %v7303_v36  ;;  %v7312_v36 = vld [vmem:[%s14551_s8 + $0x698] sm:$0xff] }
 0x5d6   : > { %8435 = vmatpush1.bf16.msra.mxu1 %v8434_v45  ;;  %8657 = vmatpush1.bf16.msra.mxu0 %v12730_v5  ;;  %v9635_v45 = vunpack.i.l.bf16 %v11999_v27  ;;  %v7313_v27 = vld [vmem:[%s14551_s8 + $0x6a0] sm:$0xff] }
 0x5d7   : > { %4181 = vmatprep.mubr.f32.mxu1 %v7306_v51  ;;  %8436 = vmatprep.subr.bf16.mxu1 %v14582_v21  ;;  %v7314_v51 = vld [vmem:[%s14551_s8 + $0x6a8] sm:$0xff] }
 0x5d9   : > { %4182 = vmatmul.mubr.f32.gmra.mrb[12].mxu1 %v7305_v47  ;;  %v9641_v47 = vunpack.i.h.bf16 %v11997_v17 }
 0x5da   : > { %8438 = vmatpush1.bf16.msra.mxu1 %v8437_v62  ;;  %4186 = vmatprep.mubr.f32.mxu1 %v7308_v48  ;;  %v9640_v48 = vunpack.i.l.bf16 %v11997_v17  ;;  %v8446_v62 = vpack.c.bf16 %v9636_v61, %v9635_v45  ;;  %v7315_v17 = vld [vmem:[%s14551_s8 + $0x6b0] sm:$0xff]  ;;  %v9656_v61 = vunpack.i.h.bf16 %v12027_v13  ;;  %v9655_v45 = vunpack.i.l.bf16 %v12027_v13  ;;  %v7321_v13 = vld [vmem:[%s14551_s8 + $0x6e0] sm:$0xff] }
 0x5db   : > { %8439 = vmatprep.subr.bf16.mxu1 %v14582_v21 }
 0x5dc   : > { %v8449_v3 = vpack.c.bf16 %v9641_v47, %v9640_v48  ;;  %v9660_v47 = vunpack.i.l.bf16 %v12025_v54  ;;  %v8458_v48 = vpack.c.bf16 %v9656_v61, %v9655_v45  ;;  %v7336_v61 = vld [vmem:[%s14551_s8 + $0x758] sm:$0xff]  ;;  %v7335_v45 = vld [vmem:[%s14551_s8 + $0x750] sm:$0xff] }
 0x5dd   : > { %4187 = vmatmul.mubr.f32.gmra.mrb[14].mxu1 %v7307_v43  ;;  %v9646_v43 = vunpack.i.h.bf16 %v12013_v12 }
 0x5de   : > { %8441 = vmatpush1.bf16.msra.mxu1 %v8440_v58  ;;  %4191 = vmatprep.mubr.f32.mxu1 %v7310_v16  ;;  %v9645_v16 = vunpack.i.l.bf16 %v12013_v12  ;;  %v9650_v58 = vunpack.i.l.bf16 %v12011_v8  ;;  %v7317_v12 = vld [vmem:[%s14551_s8 + $0x6c0] sm:$0xff]  ;;  %v7319_v8 = vld [vmem:[%s14551_s8 + $0x6d0] sm:$0xff] }
 0x5df   : > { %8442 = vmatprep.subr.bf16.mxu1 %v14582_v21 }
 0x5e1   : > { %4192 = vmatmul.mubr.f32.gmra.mrb[16].mxu1 %v7309_v52  ;;  %v8452_v52 = vpack.c.bf16 %v9646_v43, %v9645_v16  ;;  %v7326_v43 = vld [vmem:[%s14551_s8 + $0x708] sm:$0xff] }
 0x5e2   : > { %8444 = vmatpush1.bf16.msra.mxu1 %v8443_v44  ;;  %4196 = vmatprep.mubr.f32.mxu1 %v7312_v36  ;;  %v7320_v36 = vld [vmem:[%s14551_s8 + $0x6d8] sm:$0xff]  ;;  %v8455_v44 = vpack.c.bf16 %v9651_v31, %v9650_v58  ;;  %v7330_v31 = vld [vmem:[%s14551_s8 + $0x728] sm:$0xff]  ;;  %v7329_v58 = vld [vmem:[%s14551_s8 + $0x720] sm:$0xff] }
 0x5e3   : > { %8445 = vmatprep.subr.bf16.mxu1 %v14582_v21 }
 0x5e5   : > { %4197 = vmatmul.mubr.f32.gmra.mrb[18].mxu1 %v7311_v0  ;;  %v7322_v0 = vld [vmem:[%s14551_s8 + $0x6e8] sm:$0xff] }
 0x5e6   : > { %8447 = vmatpush1.bf16.msra.mxu1 %v8446_v62  ;;  %4201 = vmatprep.mubr.f32.mxu1 %v7314_v51  ;;  %v9661_v51 = vunpack.i.h.bf16 %v12025_v54  ;;  %v7324_v62 = vld [vmem:[%s14551_s8 + $0x6f8] sm:$0xff]  ;;  %v7323_v54 = vld [vmem:[%s14551_s8 + $0x6f0] sm:$0xff] }
 0x5e7   : > { %8448 = vmatprep.subr.bf16.mxu1 %v14582_v21 }
 0x5e9   : > { %4202 = vmatmul.mubr.f32.gmra.mrb[20].mxu1 %v7313_v27  ;;  %v8461_v27 = vpack.c.bf16 %v9661_v51, %v9660_v47  ;;  %v7340_v51 = vld [vmem:[%s14551_s8 + $0x778] sm:$0xff]  ;;  %v7339_v47 = vld [vmem:[%s14551_s8 + $0x770] sm:$0xff] }
 0x5ea   : > { %8450 = vmatpush1.bf16.msra.mxu1 %v8449_v3  ;;  %4206 = vmatprep.mubr.f32.mxu1 %v7316_v26  ;;  %v9666_v26 = vunpack.i.h.bf16 %v12044_v32  ;;  %v9665_v3 = vunpack.i.l.bf16 %v12044_v32  ;;  %v7325_v32 = vld [vmem:[%s14551_s8 + $0x700] sm:$0xff] }
 0x5eb   : > { %8451 = vmatprep.subr.bf16.mxu1 %v14582_v21 }
 0x5ec   : > { %v8464_v16 = vpack.c.bf16 %v9666_v26, %v9665_v3  ;;  %v7346_v26 = vld [vmem:[%s14551_s8 + $0x7a8] sm:$0xff]  ;;  %v7345_v3 = vld [vmem:[%s14551_s8 + $0x7a0] sm:$0xff] }
 0x5ed   : > { %4207 = vmatmul.mubr.f32.gmra.mrb[22].mxu1 %v7315_v17  ;;  %v7328_v17 = vld [vmem:[%s14551_s8 + $0x718] sm:$0xff] }
 0x5ee   : > { %8453 = vmatpush1.bf16.msra.mxu1 %v8452_v52  ;;  %4211 = vmatprep.mubr.f32.mxu1 %v7318_v29  ;;  %v7327_v29 = vld [vmem:[%s14551_s8 + $0x710] sm:$0xff]  ;;  %v7332_v52 = vld [vmem:[%s14551_s8 + $0x738] sm:$0xff] }
 0x5ef   : > { %8454 = vmatprep.subr.bf16.mxu1 %v14582_v21 }
 0x5f1   : > { %4212 = vmatmul.mubr.f32.gmra.mrb[24].mxu1 %v7317_v12  ;;  %v7331_v12 = vld [vmem:[%s14551_s8 + $0x730] sm:$0xff] }
 0x5f2   : > { %8456 = vmatpush1.bf16.msra.mxu1 %v8455_v44  ;;  %4216 = vmatprep.mubr.f32.mxu1 %v7320_v36  ;;  %v7334_v36 = vld [vmem:[%s14551_s8 + $0x748] sm:$0xff]  ;;  %v7333_v44 = vld [vmem:[%s14551_s8 + $0x740] sm:$0xff] }
 0x5f3   : > { %8457 = vmatprep.subr.bf16.mxu1 %v14582_v21 }
 0x5f5   : > { %4217 = vmatmul.mubr.f32.gmra.mrb[26].mxu1 %v7319_v8  ;;  %v7338_v8 = vld [vmem:[%s14551_s8 + $0x768] sm:$0xff] }
 0x5f6   : > { %8459 = vmatpush1.bf16.msra.mxu1 %v8458_v48  ;;  %4221 = vmatprep.mubr.f32.mxu1 %v7322_v0  ;;  %v7337_v0 = vld [vmem:[%s14551_s8 + $0x760] sm:$0xff]  ;;  %v7342_v48 = vld [vmem:[%s14551_s8 + $0x788] sm:$0xff] }
 0x5f7   : > { %8460 = vmatprep.subr.bf16.mxu1 %v14582_v21 }
 0x5f9   : > { %4222 = vmatmul.mubr.f32.gmra.mrb[28].mxu1 %v7321_v13  ;;  %v7341_v13 = vld [vmem:[%s14551_s8 + $0x780] sm:$0xff] }
 0x5fa   : > { %8462 = vmatpush1.bf16.msra.mxu1 %v8461_v27  ;;  %4226 = vmatprep.mubr.f32.mxu1 %v7324_v62  ;;  %v7344_v62 = vld [vmem:[%s14551_s8 + $0x798] sm:$0xff]  ;;  %v7343_v27 = vld [vmem:[%s14551_s8 + $0x790] sm:$0xff] }
 0x5fb   : > { %8463 = vmatprep.subr.bf16.mxu1 %v14582_v21 }
 0x5fd   : > { %4227 = vmatmul.mubr.f32.gmra.mrb[30].mxu1 %v7323_v54  ;;  %v7348_v54 = vld [vmem:[%s14551_s8 + $0x7b8] sm:$0xff] }
 0x5fe   : > { %8465 = vmatpush1.bf16.msra.mxu1 %v8464_v16  ;;  %4231 = vmatprep.mubr.f32.mxu1 %v7326_v43  ;;  %v7347_v43 = vld [vmem:[%s14551_s8 + $0x7b0] sm:$0xff]  ;;  %v7350_v16 = vld [vmem:[%s14551_s8 + $0x7c8] sm:$0xff] }
 0x5ff   : > { %8466 = vmatprep.subr.bf16.mxu1 %v14582_v21 }
 0x601   : > { %4232 = vmatmul.mubr.f32.gmra.mrb[32].mxu1 %v7325_v32  ;;  %v7349_v32 = vld [vmem:[%s14551_s8 + $0x7c0] sm:$0xff] }
 0x602   : > { %4236 = vmatprep.mubr.f32.mxu1 %v7328_v17  ;;  %v7352_v17 = vld [vmem:[%s14551_s8 + $0x7d8] sm:$0xff] }
 0x605   : > { %4237 = vmatmul.mubr.f32.gmra.mrb[34].mxu1 %v7327_v29  ;;  %v7351_v29 = vld [vmem:[%s14551_s8 + $0x7d0] sm:$0xff] }
 0x606   : > { %4241 = vmatprep.mubr.f32.mxu1 %v7330_v31  ;;  %v7354_v31 = vld [vmem:[%s14551_s8 + $0x7e8] sm:$0xff] }
 0x609   : > { %4242 = vmatmul.mubr.f32.gmra.mrb[36].mxu1 %v7329_v58  ;;  %v7353_v58 = vld [vmem:[%s14551_s8 + $0x7e0] sm:$0xff] }
 0x60a   : > { %4246 = vmatprep.mubr.f32.mxu1 %v7332_v52  ;;  %v7356_v52 = vld [vmem:[%s14551_s8 + $0x7f8] sm:$0xff] }
 0x60d   : > { %4247 = vmatmul.mubr.f32.gmra.mrb[38].mxu1 %v7331_v12  ;;  %v7355_v12 = vld [vmem:[%s14551_s8 + $0x7f0] sm:$0xff] }
 0x60e   : > { %4251 = vmatprep.mubr.f32.mxu1 %v7334_v36  ;;  %v7358_v36 = vld [vmem:[%s14551_s8 + $0x808] sm:$0xff] }
 0x611   : > { %4252 = vmatmul.mubr.f32.gmra.mrb[40].mxu1 %v7333_v44  ;;  %v9671_v44 = vunpack.i.h.bf16 %v12042_v42 }
 0x612   : > { %4256 = vmatprep.mubr.f32.mxu1 %v7336_v61  ;;  %v9670_v61 = vunpack.i.l.bf16 %v12042_v42  ;;  %v7359_v42 = vld [vmem:[%s14551_s8 + $0x810] sm:$0xff] }
 0x615   : > { %4257 = vmatmul.mubr.f32.gmra.mrb[42].mxu1 %v7335_v45  ;;  %v7357_v45 = vld [vmem:[%s14551_s8 + $0x800] sm:$0xff] }
 0x616   : > { %4261 = vmatprep.mubr.f32.mxu1 %v7338_v8  ;;  %v7360_v8 = vld [vmem:[%s14551_s8 + $0x818] sm:$0xff] }
 0x619   : > { %4262 = vmatmul.mubr.f32.gmra.mrb[44].mxu1 %v7337_v0  ;;  %v8467_v0 = vpack.c.bf16 %v9671_v44, %v9670_v61  ;;  %v9701_v44 = vunpack.i.h.bf16 %v12084_v10  ;;  %v9700_v61 = vunpack.i.l.bf16 %v12084_v10  ;;  %v7371_v10 = vld [vmem:[%s14551_s8 + $0x870] sm:$0xff] }
 0x61a   : > { %4266 = vmatprep.mubr.f32.mxu1 %v7340_v51  ;;  %v9676_v51 = vunpack.i.h.bf16 %v12058_v57 }
 0x61d   : > { %4267 = vmatmul.mubr.f32.gmra.mrb[46].mxu1 %v7339_v47  ;;  %v9675_v47 = vunpack.i.l.bf16 %v12058_v57  ;;  %v7361_v57 = vld [vmem:[%s14551_s8 + $0x820] sm:$0xff] }
 0x61e   : > { %4271 = vmatprep.mubr.f32.mxu1 %v7342_v48  ;;  %v7362_v48 = vld [vmem:[%s14551_s8 + $0x828] sm:$0xff] }
 0x621   : > { %4272 = vmatmul.mubr.f32.gmra.mrb[48].mxu1 %v7341_v13  ;;  %v9681_v13 = vunpack.i.h.bf16 %v12056_v46 }
 0x622   : > { %4276 = vmatprep.mubr.f32.mxu1 %v7344_v62  ;;  %v9680_v62 = vunpack.i.l.bf16 %v12056_v46  ;;  %v7363_v46 = vld [vmem:[%s14551_s8 + $0x830] sm:$0xff] }
 0x625   : > { %4277 = vmatmul.mubr.f32.gmra.mrb[50].mxu1 %v7343_v27  ;;  %v8470_v27 = vpack.c.bf16 %v9676_v51, %v9675_v47  ;;  %v9706_v51 = vunpack.i.h.bf16 %v12100_v34  ;;  %v9705_v47 = vunpack.i.l.bf16 %v12100_v34  ;;  %v7373_v34 = vld [vmem:[%s14551_s8 + $0x880] sm:$0xff] }
 0x626   : > { %4281 = vmatprep.mubr.f32.mxu1 %v7346_v26  ;;  %v7364_v26 = vld [vmem:[%s14551_s8 + $0x838] sm:$0xff] }
 0x629   : > { %4282 = vmatmul.mubr.f32.gmra.mrb[52].mxu1 %v7345_v3  ;;  %v8473_v3 = vpack.c.bf16 %v9681_v13, %v9680_v62  ;;  %v9710_v13 = vunpack.i.l.bf16 %v12098_v55  ;;  %v8488_v62 = vpack.c.bf16 %v9706_v51, %v9705_v47  ;;  %v7388_v51 = vld [vmem:[%s14551_s8 + $0x8f8] sm:$0xff] }
 0x62a   : > { %4286 = vmatprep.mubr.f32.mxu1 %v7348_v54  ;;  %v9686_v54 = vunpack.i.h.bf16 %v12072_v14 }
 0x62d   : > { %4287 = vmatmul.mubr.f32.gmra.mrb[54].mxu1 %v7347_v43  ;;  %v9685_v43 = vunpack.i.l.bf16 %v12072_v14  ;;  %v7365_v14 = vld [vmem:[%s14551_s8 + $0x840] sm:$0xff] }
 0x62e   : > { %4291 = vmatprep.mubr.f32.mxu1 %v7350_v16  ;;  %v7366_v16 = vld [vmem:[%s14551_s8 + $0x848] sm:$0xff] }
 0x631   : > { %4292 = vmatmul.mubr.f32.gmra.mrb[56].mxu1 %v7349_v32  ;;  %v9691_v32 = vunpack.i.h.bf16 %v12070_v15 }
 0x632   : > { %4296 = vmatprep.mubr.f32.mxu1 %v7352_v17  ;;  %v9690_v17 = vunpack.i.l.bf16 %v12070_v15  ;;  %v7367_v15 = vld [vmem:[%s14551_s8 + $0x850] sm:$0xff] }
 0x635   : > { %4297 = vmatmul.mubr.f32.gmra.mrb[58].mxu1 %v7351_v29  ;;  %v8476_v29 = vpack.c.bf16 %v9686_v54, %v9685_v43  ;;  %v7378_v54 = vld [vmem:[%s14551_s8 + $0x8a8] sm:$0xff]  ;;  %v9721_v43 = vunpack.i.h.bf16 %v12112_v56 }
 0x636   : > { %4301 = vmatprep.mubr.f32.mxu1 %v7354_v31  ;;  %v7368_v31 = vld [vmem:[%s14551_s8 + $0x858] sm:$0xff] }
 0x639   : > { %4302 = vmatmul.mubr.f32.gmra.mrb[60].mxu1 %v7353_v58  ;;  %v8479_v58 = vpack.c.bf16 %v9691_v32, %v9690_v17  ;;  %v7380_v32 = vld [vmem:[%s14551_s8 + $0x8b8] sm:$0xff] }
 0x63a   : > { %4306 = vmatprep.mubr.f32.mxu1 %v7356_v52  ;;  %v9696_v52 = vunpack.i.h.bf16 %v12086_v18 }
 0x63d   : > { %4307 = vmatmul.mubr.f32.gmra.mrb[62].mxu1 %v7355_v12  ;;  %v9695_v12 = vunpack.i.l.bf16 %v12086_v18  ;;  %v7369_v18 = vld [vmem:[%s14551_s8 + $0x860] sm:$0xff] }
 0x63e   : > { %4569 = vmatprep.mubr.f32.mxu1 %v7358_v36  ;;  %v7370_v36 = vld [vmem:[%s14551_s8 + $0x868] sm:$0xff] }
 0x641   : > { %4570 = vmatmul.mubr.f32.vlgmr.msra.gmra.mrb[0].mxu1 %v7357_v45  ;;  %v8482_v45 = vpack.c.bf16 %v9696_v52, %v9695_v12  ;;  %v9730_v52 = vunpack.i.l.bf16 %v12126_v49 }
 0x642   : > { %8468 = vmatpush1.bf16.msra.mxu1 %v8467_v0  ;;  %4574 = vmatprep.mubr.f32.mxu1 %v7360_v8  ;;  %v7372_v8 = vld [vmem:[%s14551_s8 + $0x878] sm:$0xff]  ;;  %v8485_v0 = vpack.c.bf16 %v9701_v44, %v9700_v61  ;;  %v9736_v44 = vunpack.i.h.bf16 %v12142_v39  ;;  %v9735_v61 = vunpack.i.l.bf16 %v12142_v39  ;;  %v7385_v39 = vld [vmem:[%s14551_s8 + $0x8e0] sm:$0xff] }
 0x643   : > { %8469 = vmatprep.subr.bf16.mxu1 %v14582_v21 }
 0x645   : > { %4575 = vmatmul.mubr.f32.gmra.mrb[2].mxu1 %v7359_v42  ;;  %v7374_v42 = vld [vmem:[%s14551_s8 + $0x888] sm:$0xff] }
 0x646   : > { %8471 = vmatpush1.bf16.msra.mxu1 %v8470_v27  ;;  %4579 = vmatprep.mubr.f32.mxu1 %v7362_v48  ;;  %v9711_v48 = vunpack.i.h.bf16 %v12098_v55  ;;  %v7376_v27 = vld [vmem:[%s14551_s8 + $0x898] sm:$0xff]  ;;  %v7375_v55 = vld [vmem:[%s14551_s8 + $0x890] sm:$0xff] }
 0x647   : > { %8472 = vmatprep.subr.bf16.mxu1 %v14582_v21 }
 0x649   : > { %4580 = vmatmul.mubr.f32.gmra.mrb[4].mxu1 %v7361_v57  ;;  %v8491_v57 = vpack.c.bf16 %v9711_v48, %v9710_v13  ;;  %v7390_v48 = vld [vmem:[%s14551_s8 + $0x908] sm:$0xff] }
 0x64a   : > { %8474 = vmatpush1.bf16.msra.mxu1 %v8473_v3  ;;  %4584 = vmatprep.mubr.f32.mxu1 %v7364_v26  ;;  %v9716_v26 = vunpack.i.h.bf16 %v12114_v9  ;;  %v9715_v3 = vunpack.i.l.bf16 %v12114_v9  ;;  %v7377_v9 = vld [vmem:[%s14551_s8 + $0x8a0] sm:$0xff] }
 0x64b   : > { %8475 = vmatprep.subr.bf16.mxu1 %v14582_v21 }
 0x64d   : > { %4585 = vmatmul.mubr.f32.gmra.mrb[6].mxu1 %v7363_v46  ;;  %v9720_v46 = vunpack.i.l.bf16 %v12112_v56  ;;  %v7379_v56 = vld [vmem:[%s14551_s8 + $0x8b0] sm:$0xff] }
 0x64e   : > { %8477 = vmatpush1.bf16.msra.mxu1 %v8476_v29  ;;  %4589 = vmatprep.mubr.f32.mxu1 %v7366_v16  ;;  %v8494_v16 = vpack.c.bf16 %v9716_v26, %v9715_v3  ;;  %v9726_v29 = vunpack.i.h.bf16 %v12128_v7  ;;  %v7396_v26 = vld [vmem:[%s14551_s8 + $0x938] sm:$0xff]  ;;  %v7395_v3 = vld [vmem:[%s14551_s8 + $0x930] sm:$0xff] }
 0x64f   : > { %8478 = vmatprep.subr.bf16.mxu1 %v14582_v21  ;;  %v8497_v17 = vpack.c.bf16 %v9721_v43, %v9720_v46  ;;  %v7400_v43 = vld [vmem:[%s14551_s8 + $0x958] sm:$0xff]  ;;  %v7399_v46 = vld [vmem:[%s14551_s8 + $0x950] sm:$0xff] }
 0x651   : > { %4590 = vmatmul.mubr.f32.gmra.mrb[8].mxu1 %v7365_v14  ;;  %v9725_v14 = vunpack.i.l.bf16 %v12128_v7  ;;  %v7381_v7 = vld [vmem:[%s14551_s8 + $0x8c0] sm:$0xff] }
 0x652   : > { %8480 = vmatpush1.bf16.msra.mxu1 %v8479_v58  ;;  %4594 = vmatprep.mubr.f32.mxu1 %v7368_v31  ;;  %v7382_v31 = vld [vmem:[%s14551_s8 + $0x8c8] sm:$0xff]  ;;  %v9731_v58 = vunpack.i.h.bf16 %v12126_v49  ;;  %v7383_v49 = vld [vmem:[%s14551_s8 + $0x8d0] sm:$0xff] }
 0x653   : > { %8481 = vmatprep.subr.bf16.mxu1 %v14582_v21  ;;  %v8500_v12 = vpack.c.bf16 %v9726_v29, %v9725_v14  ;;  %v7406_v29 = vld [vmem:[%s14551_s8 + $0x988] sm:$0xff]  ;;  %v7405_v14 = vld [vmem:[%s14551_s8 + $0x980] sm:$0xff] }
 0x655   : > { %4595 = vmatmul.mubr.f32.gmra.mrb[10].mxu1 %v7367_v15  ;;  %v7384_v15 = vld [vmem:[%s14551_s8 + $0x8d8] sm:$0xff] }
 0x656   : > { %8483 = vmatpush1.bf16.msra.mxu1 %v8482_v45  ;;  %4599 = vmatprep.mubr.f32.mxu1 %v7370_v36  ;;  %v8503_v36 = vpack.c.bf16 %v9731_v58, %v9730_v52  ;;  %v7386_v45 = vld [vmem:[%s14551_s8 + $0x8e8] sm:$0xff]  ;;  %v7409_v52 = vld [vmem:[%s14551_s8 + $0x9a0] sm:$0xff] }
 0x657   : > { %8484 = vmatprep.subr.bf16.mxu1 %v14582_v21  ;;  %v7410_v58 = vld [vmem:[%s14551_s8 + $0x9a8] sm:$0xff] }
 0x659   : > { %4600 = vmatmul.mubr.f32.gmra.mrb[12].mxu1 %v7369_v18  ;;  %v9741_v18 = vunpack.i.h.bf16 %v12140_v41 }
 0x65a   : > { %8486 = vmatpush1.bf16.msra.mxu1 %v8485_v0  ;;  %4604 = vmatprep.mubr.f32.mxu1 %v7372_v8  ;;  %v9740_v8 = vunpack.i.l.bf16 %v12140_v41  ;;  %v8506_v0 = vpack.c.bf16 %v9736_v44, %v9735_v61  ;;  %v7387_v41 = vld [vmem:[%s14551_s8 + $0x8f0] sm:$0xff]  ;;  %v7416_v44 = vld [vmem:[%s14551_s8 + $0x9d8] sm:$0xff] }
 0x65b   : > { %8487 = vmatprep.subr.bf16.mxu1 %v14582_v21  ;;  %v7415_v61 = vld [vmem:[%s14551_s8 + $0x9d0] sm:$0xff] }
 0x65c   : > { %v8509_v47 = vpack.c.bf16 %v9741_v18, %v9740_v8  ;;  %v7420_v18 = vld [vmem:[%s14551_s8 + $0x9f8] sm:$0xff]  ;;  %v7419_v8 = vld [vmem:[%s14551_s8 + $0x9f0] sm:$0xff] }
 0x65d   : > { %4605 = vmatmul.mubr.f32.gmra.mrb[14].mxu1 %v7371_v10  ;;  %v9746_v10 = vunpack.i.h.bf16 %v12156_v63 }
 0x65e   : > { %8489 = vmatpush1.bf16.msra.mxu1 %v8488_v62  ;;  %4609 = vmatprep.mubr.f32.mxu1 %v7374_v42  ;;  %v9745_v42 = vunpack.i.l.bf16 %v12156_v63  ;;  %v7389_v63 = vld [vmem:[%s14551_s8 + $0x900] sm:$0xff]  ;;  %v7392_v62 = vld [vmem:[%s14551_s8 + $0x918] sm:$0xff] }
 0x65f   : > { %8490 = vmatprep.subr.bf16.mxu1 %v14582_v21 }
 0x660   : > { %v8512_v13 = vpack.c.bf16 %v9746_v10, %v9745_v42  ;;  %v7424_v10 = vld [vmem:[%s14551_s8 + $0xa18] sm:$0xff] }
 0x661   : > { %4610 = vmatmul.mubr.f32.gmra.mrb[16].mxu1 %v7373_v34  ;;  %v7391_v34 = vld [vmem:[%s14551_s8 + $0x910] sm:$0xff] }
 0x662   : > { %8492 = vmatpush1.bf16.msra.mxu1 %v8491_v57  ;;  %4614 = vmatprep.mubr.f32.mxu1 %v7376_v27  ;;  %v7394_v27 = vld [vmem:[%s14551_s8 + $0x928] sm:$0xff]  ;;  %v7393_v57 = vld [vmem:[%s14551_s8 + $0x920] sm:$0xff] }
 0x663   : > { %8493 = vmatprep.subr.bf16.mxu1 %v14582_v21 }
 0x665   : > { %4615 = vmatmul.mubr.f32.gmra.mrb[18].mxu1 %v7375_v55  ;;  %v7398_v55 = vld [vmem:[%s14551_s8 + $0x948] sm:$0xff] }
 0x666   : > { %8495 = vmatpush1.bf16.msra.mxu1 %v8494_v16  ;;  %4619 = vmatprep.mubr.f32.mxu1 %v7378_v54  ;;  %v7397_v54 = vld [vmem:[%s14551_s8 + $0x940] sm:$0xff]  ;;  %v7402_v16 = vld [vmem:[%s14551_s8 + $0x968] sm:$0xff] }
 0x667   : > { %8496 = vmatprep.subr.bf16.mxu1 %v14582_v21 }
 0x669   : > { %4620 = vmatmul.mubr.f32.gmra.mrb[20].mxu1 %v7377_v9  ;;  %v7401_v9 = vld [vmem:[%s14551_s8 + $0x960] sm:$0xff] }
 0x66a   : > { %8498 = vmatpush1.bf16.msra.mxu1 %v8497_v17  ;;  %4624 = vmatprep.mubr.f32.mxu1 %v7380_v32  ;;  %v7404_v32 = vld [vmem:[%s14551_s8 + $0x978] sm:$0xff]  ;;  %v7403_v17 = vld [vmem:[%s14551_s8 + $0x970] sm:$0xff] }
 0x66b   : > { %8499 = vmatprep.subr.bf16.mxu1 %v14582_v21 }
 0x66d   : > { %4625 = vmatmul.mubr.f32.gmra.mrb[22].mxu1 %v7379_v56  ;;  %v7408_v56 = vld [vmem:[%s14551_s8 + $0x998] sm:$0xff] }
 0x66e   : > { %8501 = vmatpush1.bf16.msra.mxu1 %v8500_v12  ;;  %4629 = vmatprep.mubr.f32.mxu1 %v7382_v31  ;;  %v7407_v31 = vld [vmem:[%s14551_s8 + $0x990] sm:$0xff]  ;;  %v7412_v12 = vld [vmem:[%s14551_s8 + $0x9b8] sm:$0xff] }
 0x66f   : > { %8502 = vmatprep.subr.bf16.mxu1 %v14582_v21 }
 0x671   : > { %4630 = vmatmul.mubr.f32.gmra.mrb[24].mxu1 %v7381_v7  ;;  %v7411_v7 = vld [vmem:[%s14551_s8 + $0x9b0] sm:$0xff] }
 0x672   : > { %8504 = vmatpush1.bf16.msra.mxu1 %v8503_v36  ;;  %4634 = vmatprep.mubr.f32.mxu1 %v7384_v15  ;;  %v7414_v15 = vld [vmem:[%s14551_s8 + $0x9c8] sm:$0xff]  ;;  %v7413_v36 = vld [vmem:[%s14551_s8 + $0x9c0] sm:$0xff] }
 0x673   : > { %8505 = vmatprep.subr.bf16.mxu1 %v14582_v21 }
 0x675   : > { %4635 = vmatmul.mubr.f32.gmra.mrb[26].mxu1 %v7383_v49  ;;  %v7418_v49 = vld [vmem:[%s14551_s8 + $0x9e8] sm:$0xff] }
 0x676   : > { %8507 = vmatpush1.bf16.msra.mxu1 %v8506_v0  ;;  %4639 = vmatprep.mubr.f32.mxu1 %v7386_v45  ;;  %v7417_v45 = vld [vmem:[%s14551_s8 + $0x9e0] sm:$0xff]  ;;  %v7422_v0 = vld [vmem:[%s14551_s8 + $0xa08] sm:$0xff] }
 0x677   : > { %8508 = vmatprep.subr.bf16.mxu1 %v14582_v21 }
 0x679   : > { %4640 = vmatmul.mubr.f32.gmra.mrb[28].mxu1 %v7385_v39  ;;  %v9751_v39 = vunpack.i.h.bf16 %v12154_v4 }
 0x67a   : > { %8510 = vmatpush1.bf16.msra.mxu1 %v8509_v47  ;;  %4644 = vmatprep.mubr.f32.mxu1 %v7388_v51  ;;  %v9750_v51 = vunpack.i.l.bf16 %v12154_v4  ;;  %v7421_v47 = vld [vmem:[%s14551_s8 + $0xa00] sm:$0xff]  ;;  %v7423_v4 = vld [vmem:[%s14551_s8 + $0xa10] sm:$0xff] }
 0x67b   : > { %8511 = vmatprep.subr.bf16.mxu1 %v14582_v21 }
 0x67c   : > { %v8515_v42 = vpack.c.bf16 %v9751_v39, %v9750_v51  ;;  %v7436_v39 = vld [vmem:[%s14551_s8 + $0xa78] sm:$0xff] }
 0x67d   : > { %4645 = vmatmul.mubr.f32.gmra.mrb[30].mxu1 %v7387_v41  ;;  %v9756_v41 = vunpack.i.h.bf16 %v12172_v59 }
 0x67e   : > { %8513 = vmatpush1.bf16.msra.mxu1 %v8512_v13  ;;  %4649 = vmatprep.mubr.f32.mxu1 %v7390_v48  ;;  %v9755_v48 = vunpack.i.l.bf16 %v12172_v59  ;;  %v7426_v13 = vld [vmem:[%s14551_s8 + $0xa28] sm:$0xff]  ;;  %v7425_v59 = vld [vmem:[%s14551_s8 + $0xa20] sm:$0xff] }
 0x67f   : > { %8514 = vmatprep.subr.bf16.mxu1 %v14582_v21 }
 0x681   : > { %4650 = vmatmul.mubr.f32.gmra.mrb[32].mxu1 %v7389_v63  ;;  %v9761_v63 = vunpack.i.h.bf16 %v12170_v11 }
 0x682   : > { %4654 = vmatprep.mubr.f32.mxu1 %v7392_v62  ;;  %v9760_v62 = vunpack.i.l.bf16 %v12170_v11  ;;  %v7428_v11 = vld [vmem:[%s14551_s8 + $0xa38] sm:$0xff] }
 0x685   : > { %4655 = vmatmul.mubr.f32.gmra.mrb[34].mxu1 %v7391_v34  ;;  %v8518_v34 = vpack.c.bf16 %v9756_v41, %v9755_v48  ;;  %v7435_v41 = vld [vmem:[%s14551_s8 + $0xa70] sm:$0xff]  ;;  %v7178_v48 = vld [vmem:[%s14551_s8 + $0x268] sm:$0xff] }
 0x686   : > { %4659 = vmatprep.mubr.f32.mxu1 %v7394_v27  ;;  %v7168_v27 = vld [vmem:[%s14551_s8 + $0x218] sm:$0xff] }
 0x687   : > { %3031 = vmatprep.mubr.f32.mxu0 %v7168_v27  ;;  %v7437_v27 = vld [vmem:[%s14551_s8 + $0xa80] sm:$0xff] }
 0x689   : > { %4660 = vmatmul.mubr.f32.gmra.mrb[36].mxu1 %v7393_v57  ;;  %v7167_v57 = vld [vmem:[%s14551_s8 + $0x210] sm:$0xff] }
 0x68a   : > { %4664 = vmatprep.mubr.f32.mxu1 %v7396_v26  ;;  %v8521_v26 = vpack.c.bf16 %v9761_v63, %v9760_v62  ;;  %3032 = vmatmul.mubr.f32.gmra.mrb[162].mxu0 %v7167_v57  ;;  %v14611_v63 = vld [vmem:[#allocation5_spill] sm:$0xff]  ;;  %v7180_v57 = vld [vmem:[%s14551_s8 + $0x278] sm:$0xff] }
 0x68b   : > { %v9791_v62 = vunpack.i.h.bf16 %v14611_v63 }
 0x68d   : > { %4665 = vmatmul.mubr.f32.gmra.mrb[38].mxu1 %v7395_v3  ;;  %v9766_v3 = vunpack.i.h.bf16 %v12188_v1 }
 0x68e   : > { %4669 = vmatprep.mubr.f32.mxu1 %v7398_v55  ;;  %v9765_v55 = vunpack.i.l.bf16 %v12188_v1  ;;  %v7430_v1 = vld [vmem:[%s14551_s8 + $0xa48] sm:$0xff] }
 0x691   : > { %4670 = vmatmul.mubr.f32.gmra.mrb[40].mxu1 %v7397_v54  ;;  %v7427_v54 = vld [vmem:[%s14551_s8 + $0xa30] sm:$0xff] }
 0x692   : > { %4674 = vmatprep.mubr.f32.mxu1 %v7400_v43  ;;  %v7170_v43 = vld [vmem:[%s14551_s8 + $0x228] sm:$0xff] }
 0x693   : > { %3036 = vmatprep.mubr.f32.mxu0 %v7170_v43 }
 0x695   : > { %4675 = vmatmul.mubr.f32.gmra.mrb[42].mxu1 %v7399_v46  ;;  %v7169_v46 = vld [vmem:[%s14551_s8 + $0x220] sm:$0xff] }
 0x696   : > { %4679 = vmatprep.mubr.f32.mxu1 %v7402_v16  ;;  %v9771_v16 = vunpack.i.h.bf16 %v12186_v23  ;;  %3037 = vmatmul.mubr.f32.gmra.mrb[164].mxu0 %v7169_v46  ;;  %v7439_v46 = vld [vmem:[%s14551_s8 + $0xa90] sm:$0xff] }
 0x699   : > { %4680 = vmatmul.mubr.f32.gmra.mrb[44].mxu1 %v7401_v9  ;;  %v9770_v9 = vunpack.i.l.bf16 %v12186_v23  ;;  %v7432_v23 = vld [vmem:[%s14551_s8 + $0xa58] sm:$0xff] }
 0x69a   : > { %4684 = vmatprep.mubr.f32.mxu1 %v7404_v32  ;;  %v8524_v32 = vpack.c.bf16 %v9766_v3, %v9765_v55  ;;  %v14612_v55 = vld [vmem:[#allocation8_spill] sm:$0xff] }
 0x69b   : > { %v9795_v43 = vunpack.i.l.bf16 %v14612_v55 }
 0x69d   : > { %4685 = vmatmul.mubr.f32.gmra.mrb[46].mxu1 %v7403_v17  ;;  %v7429_v17 = vld [vmem:[%s14551_s8 + $0xa40] sm:$0xff] }
 0x69e   : > { %4689 = vmatprep.mubr.f32.mxu1 %v7406_v29  ;;  %v7172_v29 = vld [vmem:[%s14551_s8 + $0x238] sm:$0xff] }
 0x69f   : > { %3041 = vmatprep.mubr.f32.mxu0 %v7172_v29 }
 0x6a1   : > { %4690 = vmatmul.mubr.f32.gmra.mrb[48].mxu1 %v7405_v14  ;;  %v7171_v14 = vld [vmem:[%s14551_s8 + $0x230] sm:$0xff] }
 0x6a2   : > { %4694 = vmatprep.mubr.f32.mxu1 %v7408_v56  ;;  %v8527_v56 = vpack.c.bf16 %v9771_v16, %v9770_v9  ;;  %3042 = vmatmul.mubr.f32.gmra.mrb[166].mxu0 %v7171_v14  ;;  %v7181_v16 = vld [vmem:[%s14551_s8 + $0x280] sm:$0xff]  ;;  %v7442_v9 = vld [vmem:[%s14551_s8 + $0xaa8] sm:$0xff] }
 0x6a5   : > { %4695 = vmatmul.mubr.f32.gmra.mrb[50].mxu1 %v7407_v31  ;;  %v14608_v31 = vld [vmem:[#allocation4_spill] sm:$0xff] }
 0x6a6   : > { %4699 = vmatprep.mubr.f32.mxu1 %v7410_v58  ;;  %v9776_v58 = vunpack.i.h.bf16 %v14608_v31 }
 0x6a9   : > { %4700 = vmatmul.mubr.f32.gmra.mrb[52].mxu1 %v7409_v52  ;;  %v9775_v52 = vunpack.i.l.bf16 %v14608_v31  ;;  %v7183_v31 = vld [vmem:[%s14551_s8 + $0x290] sm:$0xff] }
 0x6aa   : > { %4704 = vmatprep.mubr.f32.mxu1 %v7412_v12  ;;  %v7431_v12 = vld [vmem:[%s14551_s8 + $0xa50] sm:$0xff] }
 0x6ad   : > { %4705 = vmatmul.mubr.f32.gmra.mrb[54].mxu1 %v7411_v7  ;;  %v7174_v7 = vld [vmem:[%s14551_s8 + $0x248] sm:$0xff] }
 0x6ae   : > { %4709 = vmatprep.mubr.f32.mxu1 %v7414_v15  ;;  %v7173_v15 = vld [vmem:[%s14551_s8 + $0x240] sm:$0xff]  ;;  %3046 = vmatprep.mubr.f32.mxu0 %v7174_v7  ;;  %v9805_v7 = vunpack.i.l.bf16 %v12265_v53 }
 0x6af   : > { %3047 = vmatmul.mubr.f32.gmra.mrb[168].mxu0 %v7173_v15  ;;  %v7443_v15 = vld [vmem:[%s14551_s8 + $0xab0] sm:$0xff] }
 0x6b1   : > { %4710 = vmatmul.mubr.f32.gmra.mrb[56].mxu1 %v7413_v36  ;;  %v7434_v36 = vld [vmem:[%s14551_s8 + $0xa68] sm:$0xff] }
 0x6b2   : > { %4714 = vmatprep.mubr.f32.mxu1 %v7416_v44  ;;  %v14609_v44 = vld [vmem:[#allocation3_spill] sm:$0xff] }
 0x6b5   : > { %4715 = vmatmul.mubr.f32.gmra.mrb[58].mxu1 %v7415_v61  ;;  %v9781_v61 = vunpack.i.h.bf16 %v14609_v44 }
 0x6b6   : > { %4719 = vmatprep.mubr.f32.mxu1 %v7418_v49  ;;  %v9780_v49 = vunpack.i.l.bf16 %v14609_v44  ;;  %v7185_v44 = vld [vmem:[%s14551_s8 + $0x2a0] sm:$0xff] }
 0x6b8   : > { %v8533_v51 = vpack.c.bf16 %v9781_v61, %v9780_v49  ;;  %v9816_v49 = vunpack.i.h.bf16 %v12279_v38 }
 0x6b9   : > { %4720 = vmatmul.mubr.f32.gmra.mrb[60].mxu1 %v7417_v45  ;;  %v8530_v45 = vpack.c.bf16 %v9776_v58, %v9775_v52  ;;  %v7444_v58 = vld [vmem:[%s14551_s8 + $0xab8] sm:$0xff] }
 0x6ba   : > { %4724 = vmatprep.mubr.f32.mxu1 %v7420_v18  ;;  %v7433_v18 = vld [vmem:[%s14551_s8 + $0xa60] sm:$0xff] }
 0x6bd   : > { %4725 = vmatmul.mubr.f32.gmra.mrb[62].mxu1 %v7419_v8  ;;  %v7176_v8 = vld [vmem:[%s14551_s8 + $0x258] sm:$0xff] }
 0x6be   : > { %4987 = vmatprep.mubr.f32.mxu1 %v7422_v0  ;;  %v7175_v0 = vld [vmem:[%s14551_s8 + $0x250] sm:$0xff]  ;;  %3051 = vmatprep.mubr.f32.mxu0 %v7176_v8  ;;  %v7188_v8 = vld [vmem:[%s14551_s8 + $0x2b8] sm:$0xff] }
 0x6bf   : > { %3052 = vmatmul.mubr.f32.gmra.mrb[170].mxu0 %v7175_v0  ;;  %v7187_v0 = vld [vmem:[%s14551_s8 + $0x2b0] sm:$0xff] }
 0x6c0   : > { %3056 = vmatprep.mubr.f32.mxu0 %v7178_v48 }
 0x6c1   : > { %4988 = vmatmul.mubr.f32.vlgmr.msra.gmra.mrb[0].mxu1 %v7421_v47  ;;  %v14610_v47 = vld [vmem:[#allocation6_spill] sm:$0xff] }
 0x6c2   : > { %8516 = vmatpush1.bf16.msra.mxu1 %v8515_v42  ;;  %4992 = vmatprep.mubr.f32.mxu1 %v7424_v10  ;;  %v9786_v10 = vunpack.i.h.bf16 %v14610_v47  ;;  %v9785_v42 = vunpack.i.l.bf16 %v14610_v47  ;;  %v9825_v47 = vunpack.i.l.bf16 %v12297_v28 }
 0x6c3   : > { %8517 = vmatprep.subr.bf16.mxu1 %v14582_v21 }
 0x6c5   : > { %4993 = vmatmul.mubr.f32.gmra.mrb[2].mxu1 %v7423_v4  ;;  %v7177_v4 = vld [vmem:[%s14551_s8 + $0x260] sm:$0xff] }
 0x6c6   : > { %8519 = vmatpush1.bf16.msra.mxu1 %v8518_v34  ;;  %4997 = vmatprep.mubr.f32.mxu1 %v7426_v13  ;;  %v7438_v13 = vld [vmem:[%s14551_s8 + $0xa88] sm:$0xff]  ;;  %v9790_v34 = vunpack.i.l.bf16 %v14611_v63 }
 0x6c7   : > { %8520 = vmatprep.subr.bf16.mxu1 %v14582_v21  ;;  %3057 = vmatmul.mubr.f32.gmra.mrb[172].mxu0 %v7177_v4  ;;  %v14614_v4 = vld [vmem:[#allocation9_spill] sm:$0xff] }
 0x6c8   : > { %3061 = vmatprep.mubr.f32.mxu0 %v7180_v57  ;;  %v8539_v3 = vpack.c.bf16 %v9791_v62, %v9790_v34  ;;  %v9835_v63 = vunpack.i.l.bf16 %v14614_v4  ;;  %v7449_v62 = vld [vmem:[%s14551_s8 + $0xae0] sm:$0xff]  ;;  %v7192_v34 = vld [vmem:[%s14551_s8 + $0x2d8] sm:$0xff] }
 0x6c9   : > { %4998 = vmatmul.mubr.f32.gmra.mrb[4].mxu1 %v7425_v59  ;;  %v8536_v59 = vpack.c.bf16 %v9786_v10, %v9785_v42  ;;  %v7447_v10 = vld [vmem:[%s14551_s8 + $0xad0] sm:$0xff]  ;;  %v7190_v42 = vld [vmem:[%s14551_s8 + $0x2c8] sm:$0xff] }
 0x6ca   : > { %8522 = vmatpush1.bf16.msra.mxu1 %v8521_v26  ;;  %5002 = vmatprep.mubr.f32.mxu1 %v7428_v11  ;;  %v7179_v11 = vld [vmem:[%s14551_s8 + $0x270] sm:$0xff]  ;;  %v7440_v26 = vld [vmem:[%s14551_s8 + $0xa98] sm:$0xff] }
 0x6cb   : > { %8523 = vmatprep.subr.bf16.mxu1 %v14582_v21  ;;  %3062 = vmatmul.mubr.f32.gmra.mrb[174].mxu0 %v7179_v11  ;;  %v14615_v11 = vld [vmem:[#allocation10_spill] sm:$0xff] }
 0x6cd   : > { %5003 = vmatmul.mubr.f32.gmra.mrb[6].mxu1 %v7427_v54  ;;  %v9796_v54 = vunpack.i.h.bf16 %v14612_v55  ;;  %v7451_v55 = vld [vmem:[%s14551_s8 + $0xaf0] sm:$0xff] }
 0x6ce   : > { %8525 = vmatpush1.bf16.msra.mxu1 %v8524_v32  ;;  %5007 = vmatprep.mubr.f32.mxu1 %v7430_v1  ;;  %v7182_v1 = vld [vmem:[%s14551_s8 + $0x288] sm:$0xff]  ;;  %v14613_v32 = vld [vmem:[#allocation7_spill] sm:$0xff] }
 0x6cf   : > { %8526 = vmatprep.subr.bf16.mxu1 %v14582_v21  ;;  %3066 = vmatprep.mubr.f32.mxu0 %v7182_v1  ;;  %v9800_v29 = vunpack.i.l.bf16 %v14613_v32  ;;  %v8542_v14 = vpack.c.bf16 %v9796_v54, %v9795_v43  ;;  %v7194_v54 = vld [vmem:[%s14551_s8 + $0x2e8] sm:$0xff]  ;;  %v7193_v43 = vld [vmem:[%s14551_s8 + $0x2e0] sm:$0xff] }
 0x6d0   : > { %3067 = vmatmul.mubr.f32.gmra.mrb[176].mxu0 %v7181_v16  ;;  %v7453_v16 = vld [vmem:[%s14551_s8 + $0xb00] sm:$0xff] }
 0x6d1   : > { %5008 = vmatmul.mubr.f32.gmra.mrb[8].mxu1 %v7429_v17  ;;  %v9801_v17 = vunpack.i.h.bf16 %v14613_v32  ;;  %v7195_v32 = vld [vmem:[%s14551_s8 + $0x2f0] sm:$0xff] }
 0x6d2   : > { %8528 = vmatpush1.bf16.msra.mxu1 %v8527_v56  ;;  %5012 = vmatprep.mubr.f32.mxu1 %v7432_v23  ;;  %v7441_v23 = vld [vmem:[%s14551_s8 + $0xaa0] sm:$0xff]  ;;  %v7184_v56 = vld [vmem:[%s14551_s8 + $0x298] sm:$0xff] }
 0x6d3   : > { %8529 = vmatprep.subr.bf16.mxu1 %v14582_v21  ;;  %3071 = vmatprep.mubr.f32.mxu0 %v7184_v56  ;;  %v8545_v52 = vpack.c.bf16 %v9801_v17, %v9800_v29  ;;  %v7456_v17 = vld [vmem:[%s14551_s8 + $0xb18] sm:$0xff]  ;;  %v7198_v29 = vld [vmem:[%s14551_s8 + $0x308] sm:$0xff] }
 0x6d4   : > { %3072 = vmatmul.mubr.f32.gmra.mrb[178].mxu0 %v7183_v31  ;;  %v7458_v56 = vld [vmem:[%s14551_s8 + $0xb28] sm:$0xff]  ;;  %v7200_v31 = vld [vmem:[%s14551_s8 + $0x318] sm:$0xff] }
 0x6d5   : > { %5013 = vmatmul.mubr.f32.gmra.mrb[10].mxu1 %v7431_v12  ;;  %v9806_v12 = vunpack.i.h.bf16 %v12265_v53  ;;  %v7446_v53 = vld [vmem:[%s14551_s8 + $0xac8] sm:$0xff] }
 0x6d6   : > { %8531 = vmatpush1.bf16.msra.mxu1 %v8530_v45  ;;  %5017 = vmatprep.mubr.f32.mxu1 %v7434_v36  ;;  %v7186_v36 = vld [vmem:[%s14551_s8 + $0x2a8] sm:$0xff]  ;;  %v9815_v45 = vunpack.i.l.bf16 %v12279_v38  ;;  %v7448_v38 = vld [vmem:[%s14551_s8 + $0xad8] sm:$0xff] }
 0x6d7   : > { %8532 = vmatprep.subr.bf16.mxu1 %v14582_v21  ;;  %3076 = vmatprep.mubr.f32.mxu0 %v7186_v36  ;;  %v8548_v61 = vpack.c.bf16 %v9806_v12, %v9805_v7  ;;  %v7460_v12 = vld [vmem:[%s14551_s8 + $0xb38] sm:$0xff]  ;;  %v7202_v7 = vld [vmem:[%s14551_s8 + $0x328] sm:$0xff]  ;;  %v7459_v36 = vld [vmem:[%s14551_s8 + $0xb30] sm:$0xff] }
 0x6d8   : > { %3077 = vmatmul.mubr.f32.gmra.mrb[180].mxu0 %v7185_v44  ;;  %v7462_v44 = vld [vmem:[%s14551_s8 + $0xb48] sm:$0xff] }
 0x6d9   : > { %5018 = vmatmul.mubr.f32.gmra.mrb[12].mxu1 %v7433_v18  ;;  %v7445_v18 = vld [vmem:[%s14551_s8 + $0xac0] sm:$0xff]  ;;  %3081 = vmatprep.mubr.f32.mxu0 %v7188_v8 }
 0x6da   : > { %8534 = vmatpush1.bf16.msra.mxu1 %v8533_v51  ;;  %5022 = vmatprep.mubr.f32.mxu1 %v7436_v39  ;;  %v8551_v39 = vpack.c.bf16 %v9816_v49, %v9815_v45  ;;  %v9826_v51 = vunpack.i.h.bf16 %v12297_v28  ;;  %v7450_v28 = vld [vmem:[%s14551_s8 + $0xae8] sm:$0xff]  ;;  %v7461_v49 = vld [vmem:[%s14551_s8 + $0xb40] sm:$0xff]  ;;  %v7464_v45 = vld [vmem:[%s14551_s8 + $0xb58] sm:$0xff] }
 0x6db   : > { %8535 = vmatprep.subr.bf16.mxu1 %v14582_v21  ;;  %v7205_v8 = vld [vmem:[%s14551_s8 + $0x340] sm:$0xff] }
 0x6dc   : > { %3082 = vmatmul.mubr.f32.gmra.mrb[182].mxu0 %v7187_v0  ;;  %v8554_v48 = vpack.c.bf16 %v9826_v51, %v9825_v47  ;;  %v7463_v0 = vld [vmem:[%s14551_s8 + $0xb50] sm:$0xff]  ;;  %v7465_v47 = vld [vmem:[%s14551_s8 + $0xb60] sm:$0xff] }
 0x6dd   : > { %5023 = vmatmul.mubr.f32.gmra.mrb[14].mxu1 %v7435_v41  ;;  %v7189_v41 = vld [vmem:[%s14551_s8 + $0x2c0] sm:$0xff]  ;;  %3086 = vmatprep.mubr.f32.mxu0 %v7190_v42  ;;  %v7207_v51 = vld [vmem:[%s14551_s8 + $0x350] sm:$0xff]  ;;  %v7210_v42 = vld [vmem:[%s14551_s8 + $0x368] sm:$0xff] }
 0x6de   : > { %8537 = vmatpush1.bf16.msra.mxu1 %v8536_v59  ;;  %5027 = vmatprep.mubr.f32.mxu1 %v7438_v13  ;;  %v9836_v13 = vunpack.i.h.bf16 %v14614_v4  ;;  %v7191_v59 = vld [vmem:[%s14551_s8 + $0x2d0] sm:$0xff]  ;;  %v7212_v4 = vld [vmem:[%s14551_s8 + $0x378] sm:$0xff] }
 0x6df   : > { %8538 = vmatprep.subr.bf16.mxu1 %v14582_v21 }
 0x6e0   : > { %3087 = vmatmul.mubr.f32.gmra.mrb[184].mxu0 %v7189_v41  ;;  %v8557_v57 = vpack.c.bf16 %v9836_v13, %v9835_v63  ;;  %v7209_v41 = vld [vmem:[%s14551_s8 + $0x360] sm:$0xff]  ;;  %v7211_v13 = vld [vmem:[%s14551_s8 + $0x370] sm:$0xff] }
 0x6e1   : > { %5028 = vmatmul.mubr.f32.gmra.mrb[16].mxu1 %v7437_v27  ;;  %v7452_v27 = vld [vmem:[%s14551_s8 + $0xaf8] sm:$0xff]  ;;  %3091 = vmatprep.mubr.f32.mxu0 %v7192_v34  ;;  %v7469_v63 = vld [vmem:[%s14551_s8 + $0xb80] sm:$0xff]  ;;  %v7214_v34 = vld [vmem:[%s14551_s8 + $0x388] sm:$0xff] }
 0x6e2   : > { %8540 = vmatpush1.bf16.msra.mxu1 %v8539_v3  ;;  %5032 = vmatprep.mubr.f32.mxu1 %v7440_v26  ;;  %v9846_v26 = vunpack.i.h.bf16 %v14615_v11  ;;  %v9845_v3 = vunpack.i.l.bf16 %v14615_v11  ;;  %v7216_v11 = vld [vmem:[%s14551_s8 + $0x398] sm:$0xff] }
 0x6e3   : > { %8541 = vmatprep.subr.bf16.mxu1 %v14582_v21 }
 0x6e4   : > { %3092 = vmatmul.mubr.f32.gmra.mrb[186].mxu0 %v7191_v59  ;;  %v8560_v1 = vpack.c.bf16 %v9846_v26, %v9845_v3  ;;  %v7213_v59 = vld [vmem:[%s14551_s8 + $0x380] sm:$0xff]  ;;  %v7215_v26 = vld [vmem:[%s14551_s8 + $0x390] sm:$0xff] }
 0x6e5   : > { %5033 = vmatmul.mubr.f32.gmra.mrb[18].mxu1 %v7439_v46  ;;  %v7454_v46 = vld [vmem:[%s14551_s8 + $0xb08] sm:$0xff]  ;;  %3096 = vmatprep.mubr.f32.mxu0 %v7194_v54  ;;  %v7473_v3 = vld [vmem:[%s14551_s8 + $0xba0] sm:$0xff] }
 0x6e6   : > { %8543 = vmatpush1.bf16.msra.mxu1 %v8542_v14  ;;  %5037 = vmatprep.mubr.f32.mxu1 %v7442_v9  ;;  %v7196_v9 = vld [vmem:[%s14551_s8 + $0x2f8] sm:$0xff]  ;;  %v7197_v14 = vld [vmem:[%s14551_s8 + $0x300] sm:$0xff]  ;;  %v7218_v54 = vld [vmem:[%s14551_s8 + $0x3a8] sm:$0xff] }
 0x6e7   : > { %8544 = vmatprep.subr.bf16.mxu1 %v14582_v21 }
 0x6e8   : > { %3097 = vmatmul.mubr.f32.gmra.mrb[188].mxu0 %v7193_v43  ;;  %v7217_v43 = vld [vmem:[%s14551_s8 + $0x3a0] sm:$0xff] }
 0x6e9   : > { %5038 = vmatmul.mubr.f32.gmra.mrb[20].mxu1 %v7441_v23  ;;  %3101 = vmatprep.mubr.f32.mxu0 %v7196_v9  ;;  %v7455_v23 = vld [vmem:[%s14551_s8 + $0xb10] sm:$0xff] }
 0x6ea   : > { %8546 = vmatpush1.bf16.msra.mxu1 %v8545_v52  ;;  %5042 = vmatprep.mubr.f32.mxu1 %v7444_v58  ;;  %v7199_v58 = vld [vmem:[%s14551_s8 + $0x310] sm:$0xff]  ;;  %v7457_v52 = vld [vmem:[%s14551_s8 + $0xb20] sm:$0xff] }
 0x6eb   : > { %8547 = vmatprep.subr.bf16.mxu1 %v14582_v21  ;;  %v7219_v9 = vld [vmem:[%s14551_s8 + $0x3b0] sm:$0xff] }
 0x6ec   : > { %3102 = vmatmul.mubr.f32.gmra.mrb[190].mxu0 %v7195_v32  ;;  %v7477_v32 = vld [vmem:[%s14551_s8 + $0xbc0] sm:$0xff] }
 0x6ed   : > { %5043 = vmatmul.mubr.f32.gmra.mrb[22].mxu1 %v7443_v15  ;;  %3106 = vmatprep.mubr.f32.mxu0 %v7198_v29  ;;  %v7201_v15 = vld [vmem:[%s14551_s8 + $0x320] sm:$0xff]  ;;  %v7222_v29 = vld [vmem:[%s14551_s8 + $0x3c8] sm:$0xff] }
 0x6ee   : > { %8549 = vmatpush1.bf16.msra.mxu1 %v8548_v61  ;;  %5047 = vmatprep.mubr.f32.mxu1 %v7446_v53  ;;  %v7204_v53 = vld [vmem:[%s14551_s8 + $0x338] sm:$0xff]  ;;  %v7203_v61 = vld [vmem:[%s14551_s8 + $0x330] sm:$0xff] }
 0x6ef   : > { %8550 = vmatprep.subr.bf16.mxu1 %v14582_v21 }
 0x6f0   : > { %3107 = vmatmul.mubr.f32.gmra.mrb[192].mxu0 %v7197_v14  ;;  %v7221_v14 = vld [vmem:[%s14551_s8 + $0x3c0] sm:$0xff] }
 0x6f1   : > { %5048 = vmatmul.mubr.f32.gmra.mrb[24].mxu1 %v7445_v18  ;;  %3111 = vmatprep.mubr.f32.mxu0 %v7200_v31  ;;  %v7206_v18 = vld [vmem:[%s14551_s8 + $0x348] sm:$0xff]  ;;  %v7224_v31 = vld [vmem:[%s14551_s8 + $0x3d8] sm:$0xff] }
 0x6f2   : > { %8552 = vmatpush1.bf16.msra.mxu1 %v8551_v39  ;;  %5052 = vmatprep.mubr.f32.mxu1 %v7448_v38  ;;  %v7466_v38 = vld [vmem:[%s14551_s8 + $0xb68] sm:$0xff]  ;;  %v7208_v39 = vld [vmem:[%s14551_s8 + $0x358] sm:$0xff] }
 0x6f3   : > { %8553 = vmatprep.subr.bf16.mxu1 %v14582_v21 }
 0x6f4   : > { %3112 = vmatmul.mubr.f32.gmra.mrb[194].mxu0 %v7199_v58  ;;  %v7223_v58 = vld [vmem:[%s14551_s8 + $0x3d0] sm:$0xff] }
 0x6f5   : > { %5053 = vmatmul.mubr.f32.gmra.mrb[26].mxu1 %v7447_v10  ;;  %3116 = vmatprep.mubr.f32.mxu0 %v7202_v7  ;;  %v7468_v10 = vld [vmem:[%s14551_s8 + $0xb78] sm:$0xff]  ;;  %v7226_v7 = vld [vmem:[%s14551_s8 + $0x3e8] sm:$0xff] }
 0x6f6   : > { %8555 = vmatpush1.bf16.msra.mxu1 %v8554_v48  ;;  %5057 = vmatprep.mubr.f32.mxu1 %v7450_v28  ;;  %v7467_v28 = vld [vmem:[%s14551_s8 + $0xb70] sm:$0xff]  ;;  %v7470_v48 = vld [vmem:[%s14551_s8 + $0xb88] sm:$0xff] }
 0x6f7   : > { %8556 = vmatprep.subr.bf16.mxu1 %v14582_v21 }
 0x6f8   : > { %3117 = vmatmul.mubr.f32.gmra.mrb[196].mxu0 %v7201_v15  ;;  %v7225_v15 = vld [vmem:[%s14551_s8 + $0x3e0] sm:$0xff] }
 0x6f9   : > { %5058 = vmatmul.mubr.f32.gmra.mrb[28].mxu1 %v7449_v62  ;;  %3121 = vmatprep.mubr.f32.mxu0 %v7204_v53  ;;  %v7472_v62 = vld [vmem:[%s14551_s8 + $0xb98] sm:$0xff]  ;;  %v9911_v53 = vunpack.i.h.bf16 %v12442_v50 }
 0x6fa   : > { %8558 = vmatpush1.bf16.msra.mxu1 %v8557_v57  ;;  %5062 = vmatprep.mubr.f32.mxu1 %v7452_v27  ;;  %v7471_v27 = vld [vmem:[%s14551_s8 + $0xb90] sm:$0xff]  ;;  %v7474_v57 = vld [vmem:[%s14551_s8 + $0xba8] sm:$0xff] }
 0x6fb   : > { %8559 = vmatprep.subr.bf16.mxu1 %v14582_v21 }
 0x6fc   : > { %3122 = vmatmul.mubr.f32.gmra.mrb[198].mxu0 %v7203_v61  ;;  %v9910_v61 = vunpack.i.l.bf16 %v12442_v50  ;;  %v7488_v50 = vld [vmem:[%s14551_s8 + $0xc18] sm:$0xff] }
 0x6fd   : > { %5063 = vmatmul.mubr.f32.gmra.mrb[30].mxu1 %v7451_v55  ;;  %3126 = vmatprep.mubr.f32.mxu0 %v7206_v18  ;;  %v7476_v55 = vld [vmem:[%s14551_s8 + $0xbb8] sm:$0xff]  ;;  %v7485_v18 = vld [vmem:[%s14551_s8 + $0xc00] sm:$0xff] }
 0x6fe   : > { %8561 = vmatpush1.bf16.msra.mxu1 %v8560_v1  ;;  %5067 = vmatprep.mubr.f32.mxu1 %v7454_v46  ;;  %v7475_v46 = vld [vmem:[%s14551_s8 + $0xbb0] sm:$0xff]  ;;  %v7478_v1 = vld [vmem:[%s14551_s8 + $0xbc8] sm:$0xff] }
 0x6ff   : > { %8562 = vmatprep.subr.bf16.mxu1 %v14582_v21 }
 0x700   : > { %3127 = vmatmul.mubr.f32.gmra.mrb[200].mxu0 %v7205_v8  ;;  %v8563_v8 = vpack.c.bf16 %v9911_v53, %v9910_v61 }
 0x701   : > { %5068 = vmatmul.mubr.f32.gmra.mrb[32].mxu1 %v7453_v16  ;;  %3131 = vmatprep.mubr.f32.mxu0 %v7208_v39  ;;  %v7220_v16 = vld [vmem:[%s14551_s8 + $0x3b8] sm:$0xff]  ;;  %v7487_v39 = vld [vmem:[%s14551_s8 + $0xc10] sm:$0xff] }
 0x702   : > { %5072 = vmatprep.mubr.f32.mxu1 %v7456_v17  ;;  %v7480_v17 = vld [vmem:[%s14551_s8 + $0xbd8] sm:$0xff] }
 0x704   : > { %3132 = vmatmul.mubr.f32.gmra.mrb[202].mxu0 %v7207_v51  ;;  %v7614_v51 = vld [vmem:[%s14551_s8 + $0x1008] sm:$0xff] }
 0x705   : > { %5073 = vmatmul.mubr.f32.gmra.mrb[34].mxu1 %v7455_v23  ;;  %3136 = vmatprep.mubr.f32.mxu0 %v7210_v42  ;;  %v7479_v23 = vld [vmem:[%s14551_s8 + $0xbd0] sm:$0xff]  ;;  %v9920_v42 = vunpack.i.l.bf16 %v12462_v30 }
 0x706   : > { %5077 = vmatprep.mubr.f32.mxu1 %v7458_v56  ;;  %v7482_v56 = vld [vmem:[%s14551_s8 + $0xbe8] sm:$0xff] }
 0x708   : > { %3137 = vmatmul.mubr.f32.gmra.mrb[204].mxu0 %v7209_v41 }
 0x709   : > { %5078 = vmatmul.mubr.f32.gmra.mrb[36].mxu1 %v7457_v52  ;;  %3141 = vmatprep.mubr.f32.mxu0 %v7212_v4  ;;  %v7481_v52 = vld [vmem:[%s14551_s8 + $0xbe0] sm:$0xff]  ;;  %v7615_v4 = vld [vmem:[%s14551_s8 + $0x1010] sm:$0xff] }
 0x70a   : > { %5082 = vmatprep.mubr.f32.mxu1 %v7460_v12  ;;  %v7484_v12 = vld [vmem:[%s14551_s8 + $0xbf8] sm:$0xff] }
 0x70c   : > { %3142 = vmatmul.mubr.f32.gmra.mrb[206].mxu0 %v7211_v13 }
 0x70d   : > { %5083 = vmatmul.mubr.f32.gmra.mrb[38].mxu1 %v7459_v36  ;;  %3146 = vmatprep.mubr.f32.mxu0 %v7214_v34  ;;  %v7483_v36 = vld [vmem:[%s14551_s8 + $0xbf0] sm:$0xff] }
 0x70e   : > { %5087 = vmatprep.mubr.f32.mxu1 %v7462_v44  ;;  %v7486_v44 = vld [vmem:[%s14551_s8 + $0xc08] sm:$0xff]  ;;  %v7491_v34 = vld [vmem:[%s14551_s8 + $0xc30] sm:$0xff] }
 0x710   : > { %3147 = vmatmul.mubr.f32.gmra.mrb[208].mxu0 %v7213_v59  ;;  %v7618_v59 = vld [vmem:[%s14551_s8 + $0x1028] sm:$0xff] }
 0x711   : > { %5088 = vmatmul.mubr.f32.gmra.mrb[40].mxu1 %v7461_v49  ;;  %3151 = vmatprep.mubr.f32.mxu0 %v7216_v11  ;;  %v7228_v49 = vld [vmem:[%s14551_s8 + $0x3f8] sm:$0xff]  ;;  %v9930_v11 = vunpack.i.l.bf16 %v12485_v37 }
 0x712   : > { %5092 = vmatprep.mubr.f32.mxu1 %v7464_v45  ;;  %v7227_v45 = vld [vmem:[%s14551_s8 + $0x3f0] sm:$0xff] }
 0x714   : > { %3152 = vmatmul.mubr.f32.gmra.mrb[210].mxu0 %v7215_v26 }
 0x715   : > { %5093 = vmatmul.mubr.f32.gmra.mrb[42].mxu1 %v7463_v0  ;;  %3156 = vmatprep.mubr.f32.mxu0 %v7218_v54  ;;  %v9916_v0 = vunpack.i.h.bf16 %v12464_v19  ;;  %v7619_v54 = vld [vmem:[%s14551_s8 + $0x1030] sm:$0xff] }
 0x716   : > { %5097 = vmatprep.mubr.f32.mxu1 %v7466_v38  ;;  %v9915_v38 = vunpack.i.l.bf16 %v12464_v19  ;;  %v7490_v19 = vld [vmem:[%s14551_s8 + $0xc28] sm:$0xff] }
 0x718   : > { %3157 = vmatmul.mubr.f32.gmra.mrb[212].mxu0 %v7217_v43  ;;  %v8566_v41 = vpack.c.bf16 %v9916_v0, %v9915_v38  ;;  %v14617_v38 = vld [vmem:[#allocation13_spill] sm:$0xff] }
 0x719   : > { %5098 = vmatmul.mubr.f32.gmra.mrb[44].mxu1 %v7465_v47  ;;  %3161 = vmatprep.mubr.f32.mxu0 %v7220_v16  ;;  %v7613_v47 = vld [vmem:[%s14551_s8 + $0x1000] sm:$0xff]  ;;  %v7495_v16 = vld [vmem:[%s14551_s8 + $0xc50] sm:$0xff] }
 0x71a   : > { %5102 = vmatprep.mubr.f32.mxu1 %v7468_v10  ;;  %v9921_v10 = vunpack.i.h.bf16 %v12462_v30  ;;  %v7492_v30 = vld [vmem:[%s14551_s8 + $0xc38] sm:$0xff] }
 0x71c   : > { %3162 = vmatmul.mubr.f32.gmra.mrb[214].mxu0 %v7219_v9  ;;  %v8569_v13 = vpack.c.bf16 %v9921_v10, %v9920_v42  ;;  %v7622_v9 = vld [vmem:[%s14551_s8 + $0x1048] sm:$0xff]  ;;  %v7629_v10 = vld [vmem:[%s14551_s8 + $0x1080] sm:$0xff] }
 0x71d   : > { %5103 = vmatmul.mubr.f32.gmra.mrb[46].mxu1 %v7467_v28  ;;  %3166 = vmatprep.mubr.f32.mxu0 %v7222_v29  ;;  %v7489_v28 = vld [vmem:[%s14551_s8 + $0xc20] sm:$0xff]  ;;  %v9940_v29 = vunpack.i.l.bf16 %v12502_v22  ;;  %v7506_v42 = vld [vmem:[%s14551_s8 + $0xca8] sm:$0xff] }
 0x71e   : > { %5107 = vmatprep.mubr.f32.mxu1 %v7470_v48  ;;  %v7616_v48 = vld [vmem:[%s14551_s8 + $0x1018] sm:$0xff] }
 0x720   : > { %3167 = vmatmul.mubr.f32.gmra.mrb[216].mxu0 %v7221_v14 }
 0x721   : > { %5108 = vmatmul.mubr.f32.gmra.mrb[48].mxu1 %v7469_v63  ;;  %3171 = vmatprep.mubr.f32.mxu0 %v7224_v31  ;;  %v9926_v63 = vunpack.i.h.bf16 %v12487_v35  ;;  %v7623_v31 = vld [vmem:[%s14551_s8 + $0x1050] sm:$0xff] }
 0x722   : > { %5112 = vmatprep.mubr.f32.mxu1 %v7472_v62  ;;  %v9925_v62 = vunpack.i.l.bf16 %v12487_v35  ;;  %v7494_v35 = vld [vmem:[%s14551_s8 + $0xc48] sm:$0xff] }
 0x724   : > { %3172 = vmatmul.mubr.f32.gmra.mrb[218].mxu0 %v7223_v58  ;;  %v8572_v26 = vpack.c.bf16 %v9926_v63, %v9925_v62  ;;  %v7631_v63 = vld [vmem:[%s14551_s8 + $0x1090] sm:$0xff]  ;;  %v7508_v62 = vld [vmem:[%s14551_s8 + $0xcb8] sm:$0xff] }
 0x725   : > { %5113 = vmatmul.mubr.f32.gmra.mrb[50].mxu1 %v7471_v27  ;;  %3176 = vmatprep.mubr.f32.mxu0 %v7226_v7  ;;  %v7617_v27 = vld [vmem:[%s14551_s8 + $0x1020] sm:$0xff]  ;;  %v7499_v7 = vld [vmem:[%s14551_s8 + $0xc70] sm:$0xff] }
 0x726   : > { %5117 = vmatprep.mubr.f32.mxu1 %v7474_v57  ;;  %v9931_v57 = vunpack.i.h.bf16 %v12485_v37  ;;  %v7496_v37 = vld [vmem:[%s14551_s8 + $0xc58] sm:$0xff] }
 0x728   : > { %3177 = vmatmul.mubr.f32.gmra.mrb[220].mxu0 %v7225_v15  ;;  %v8575_v43 = vpack.c.bf16 %v9931_v57, %v9930_v11  ;;  %v7626_v15 = vld [vmem:[%s14551_s8 + $0x1068] sm:$0xff]  ;;  %v7507_v57 = vld [vmem:[%s14551_s8 + $0xcb0] sm:$0xff] }
 0x729   : > { %5118 = vmatmul.mubr.f32.gmra.mrb[52].mxu1 %v7473_v3  ;;  %3181 = vmatprep.mubr.f32.mxu0 %v7228_v49  ;;  %v7493_v3 = vld [vmem:[%s14551_s8 + $0xc40] sm:$0xff]  ;;  %v7634_v11 = vld [vmem:[%s14551_s8 + $0x10a8] sm:$0xff] }
 0x72a   : > { %5122 = vmatprep.mubr.f32.mxu1 %v7476_v55  ;;  %v7620_v55 = vld [vmem:[%s14551_s8 + $0x1038] sm:$0xff] }
 0x72c   : > { %3182 = vmatmul.mubr.f32.gmra.mrb[222].mxu0 %v7227_v45  ;;  %v7501_v45 = vld [vmem:[%s14551_s8 + $0xc80] sm:$0xff] }
 0x72d   : > { %5123 = vmatmul.mubr.f32.gmra.mrb[54].mxu1 %v7475_v46  ;;  %6241 = vmatprep.mubr.f32.mxu0 %v7614_v51  ;;  %v9936_v46 = vunpack.i.h.bf16 %v12504_v2  ;;  %v9955_v51 = vunpack.i.l.bf16 %v14617_v38 }
 0x72e   : > { %5127 = vmatprep.mubr.f32.mxu1 %v7478_v1  ;;  %v9935_v1 = vunpack.i.l.bf16 %v12504_v2  ;;  %v7498_v2 = vld [vmem:[%s14551_s8 + $0xc68] sm:$0xff] }
 0x730   : > { %6242 = vmatmul.mubr.f32.vlgmr.msra.gmra.mrb[224].mxu0 %v7613_v47  ;;  %v8578_v14 = vpack.c.bf16 %v9936_v46, %v9935_v1  ;;  %v7503_v47 = vld [vmem:[%s14551_s8 + $0xc90] sm:$0xff]  ;;  %v7509_v46 = vld [vmem:[%s14551_s8 + $0xcc0] sm:$0xff]  ;;  %v7636_v1 = vld [vmem:[%s14551_s8 + $0x10b8] sm:$0xff] }
 0x731   : > { %5128 = vmatmul.mubr.f32.gmra.mrb[56].mxu1 %v7477_v32  ;;  %6246 = vmatprep.mubr.f32.mxu0 %v7616_v48  ;;  %v7621_v32 = vld [vmem:[%s14551_s8 + $0x1040] sm:$0xff] }
 0x732   : > { %5132 = vmatprep.mubr.f32.mxu1 %v7480_v17  ;;  %v9941_v17 = vunpack.i.h.bf16 %v12502_v22  ;;  %v7500_v22 = vld [vmem:[%s14551_s8 + $0xc78] sm:$0xff] }
 0x734   : > { %6247 = vmatmul.mubr.f32.gmra.mrb[226].mxu0 %v7615_v4  ;;  %v8581_v58 = vpack.c.bf16 %v9941_v17, %v9940_v29 }
 0x735   : > { %5133 = vmatmul.mubr.f32.gmra.mrb[58].mxu1 %v7479_v23  ;;  %6251 = vmatprep.mubr.f32.mxu0 %v7618_v59  ;;  %v7497_v23 = vld [vmem:[%s14551_s8 + $0xc60] sm:$0xff] }
 0x736   : > { %5137 = vmatprep.mubr.f32.mxu1 %v7482_v56  ;;  %v7624_v56 = vld [vmem:[%s14551_s8 + $0x1058] sm:$0xff]  ;;  %v14619_v59 = vld [vmem:[#allocation15_spill] sm:$0xff] }
 0x738   : > { %6252 = vmatmul.mubr.f32.gmra.mrb[228].mxu0 %v7617_v27  ;;  %v9966_v27 = vunpack.i.h.bf16 %v14619_v59 }
 0x739   : > { %5138 = vmatmul.mubr.f32.gmra.mrb[60].mxu1 %v7481_v52  ;;  %6256 = vmatprep.mubr.f32.mxu0 %v7620_v55  ;;  %v9946_v52 = vunpack.i.h.bf16 %v12517_v24  ;;  %v14620_v55 = vld [vmem:[#allocation14_spill] sm:$0xff] }
 0x73a   : > { %5142 = vmatprep.mubr.f32.mxu1 %v7484_v12  ;;  %v9945_v12 = vunpack.i.l.bf16 %v12517_v24  ;;  %v7502_v24 = vld [vmem:[%s14551_s8 + $0xc88] sm:$0xff] }
 0x73c   : > { %6257 = vmatmul.mubr.f32.gmra.mrb[230].mxu0 %v7619_v54  ;;  %v8584_v49 = vpack.c.bf16 %v9946_v52, %v9945_v12  ;;  %v9971_v54 = vunpack.i.h.bf16 %v14620_v55 }
 0x73d   : > { %5143 = vmatmul.mubr.f32.gmra.mrb[62].mxu1 %v7483_v36  ;;  %6261 = vmatprep.mubr.f32.mxu0 %v7622_v9  ;;  %v7625_v36 = vld [vmem:[%s14551_s8 + $0x1060] sm:$0xff]  ;;  %v7512_v9 = vld [vmem:[%s14551_s8 + $0xcd8] sm:$0xff] }
 0x73e   : > { %5405 = vmatprep.mubr.f32.mxu1 %v7486_v44  ;;  %v14616_v44 = vld [vmem:[#allocation11_spill] sm:$0xff] }
 0x73f   : > { %v9951_v53 = vunpack.i.h.bf16 %v14616_v44  ;;  %v9950_v61 = vunpack.i.l.bf16 %v14616_v44 }
 0x740   : > { %6262 = vmatmul.mubr.f32.gmra.mrb[232].mxu0 %v7621_v32 }
 0x741   : > { %5406 = vmatmul.mubr.f32.vlgmr.msra.gmra.mrb[0].mxu1 %v7485_v18  ;;  %6266 = vmatprep.mubr.f32.mxu0 %v7624_v56  ;;  %v7628_v18 = vld [vmem:[%s14551_s8 + $0x1078] sm:$0xff]  ;;  %v8587_v0 = vpack.c.bf16 %v9951_v53, %v9950_v61  ;;  %v7637_v56 = vld [vmem:[%s14551_s8 + $0x10c0] sm:$0xff]  ;;  %v14623_v53 = vld [vmem:[#allocation20_spill] sm:$0xff] }
 0x742   : > { %8564 = vmatpush1.bf16.msra.mxu1 %v8563_v8  ;;  %5410 = vmatprep.mubr.f32.mxu1 %v7488_v50  ;;  %v7627_v50 = vld [vmem:[%s14551_s8 + $0x1070] sm:$0xff]  ;;  %v7504_v8 = vld [vmem:[%s14551_s8 + $0xc98] sm:$0xff]  ;;  %v10006_v61 = vunpack.i.h.bf16 %v14623_v53 }
 0x743   : > { %8565 = vmatprep.subr.bf16.mxu1 %v14582_v21 }
 0x744   : > { %6267 = vmatmul.mubr.f32.gmra.mrb[234].mxu0 %v7623_v31  ;;  %v7514_v31 = vld [vmem:[%s14551_s8 + $0xce8] sm:$0xff] }
 0x745   : > { %5411 = vmatmul.mubr.f32.gmra.mrb[2].mxu1 %v7487_v39  ;;  %6271 = vmatprep.mubr.f32.mxu0 %v7626_v15  ;;  %v9956_v39 = vunpack.i.h.bf16 %v14617_v38  ;;  %v7640_v15 = vld [vmem:[%s14551_s8 + $0x10d8] sm:$0xff]  ;;  %v7517_v38 = vld [vmem:[%s14551_s8 + $0xd00] sm:$0xff] }
 0x746   : > { %8567 = vmatpush1.bf16.msra.mxu1 %v8566_v41  ;;  %5415 = vmatprep.mubr.f32.mxu1 %v7490_v19  ;;  %v7630_v19 = vld [vmem:[%s14551_s8 + $0x1088] sm:$0xff] }
 0x747   : > { %8568 = vmatprep.subr.bf16.mxu1 %v14582_v21  ;;  %v14618_v41 = vld [vmem:[#allocation12_spill] sm:$0xff]  ;;  %v8590_v4 = vpack.c.bf16 %v9956_v39, %v9955_v51  ;;  %v7644_v39 = vld [vmem:[%s14551_s8 + $0x10f8] sm:$0xff]  ;;  %v7643_v51 = vld [vmem:[%s14551_s8 + $0x10f0] sm:$0xff] }
 0x748   : > { %6272 = vmatmul.mubr.f32.gmra.mrb[236].mxu0 %v7625_v36  ;;  %v9960_v48 = vunpack.i.l.bf16 %v14618_v41  ;;  %v7639_v36 = vld [vmem:[%s14551_s8 + $0x10d0] sm:$0xff] }
 0x749   : > { %5416 = vmatmul.mubr.f32.gmra.mrb[4].mxu1 %v7489_v28  ;;  %6276 = vmatprep.mubr.f32.mxu0 %v7628_v18  ;;  %v9961_v28 = vunpack.i.h.bf16 %v14618_v41  ;;  %v7642_v18 = vld [vmem:[%s14551_s8 + $0x10e8] sm:$0xff] }
 0x74a   : > { %8570 = vmatpush1.bf16.msra.mxu1 %v8569_v13  ;;  %5420 = vmatprep.mubr.f32.mxu1 %v7492_v30  ;;  %v7505_v30 = vld [vmem:[%s14551_s8 + $0xca0] sm:$0xff]  ;;  %v7632_v13 = vld [vmem:[%s14551_s8 + $0x1098] sm:$0xff]  ;;  %v7522_v41 = vld [vmem:[%s14551_s8 + $0xd28] sm:$0xff] }
 0x74b   : > { %8571 = vmatprep.subr.bf16.mxu1 %v14582_v21 }
 0x74c   : > { %6277 = vmatmul.mubr.f32.gmra.mrb[238].mxu0 %v7627_v50  ;;  %v7641_v50 = vld [vmem:[%s14551_s8 + $0x10e0] sm:$0xff] }
 0x74d   : > { %5421 = vmatmul.mubr.f32.gmra.mrb[6].mxu1 %v7491_v34  ;;  %6281 = vmatprep.mubr.f32.mxu0 %v7630_v19  ;;  %v8593_v34 = vpack.c.bf16 %v9961_v28, %v9960_v48  ;;  %v7646_v19 = vld [vmem:[%s14551_s8 + $0x1108] sm:$0xff]  ;;  %v7648_v28 = vld [vmem:[%s14551_s8 + $0x1118] sm:$0xff]  ;;  %v7647_v48 = vld [vmem:[%s14551_s8 + $0x1110] sm:$0xff] }
 0x74e   : > { %8573 = vmatpush1.bf16.msra.mxu1 %v8572_v26  ;;  %5425 = vmatprep.mubr.f32.mxu1 %v7494_v35  ;;  %v9965_v35 = vunpack.i.l.bf16 %v14619_v59  ;;  %v7633_v26 = vld [vmem:[%s14551_s8 + $0x10a0] sm:$0xff]  ;;  %v7652_v59 = vld [vmem:[%s14551_s8 + $0x1138] sm:$0xff] }
 0x74f   : > { %8574 = vmatprep.subr.bf16.mxu1 %v14582_v21 }
 0x750   : > { %6282 = vmatmul.mubr.f32.gmra.mrb[240].mxu0 %v7629_v10  ;;  %v7645_v10 = vld [vmem:[%s14551_s8 + $0x1100] sm:$0xff] }
 0x751   : > { %5426 = vmatmul.mubr.f32.gmra.mrb[8].mxu1 %v7493_v3  ;;  %6286 = vmatprep.mubr.f32.mxu0 %v7632_v13  ;;  %v7510_v3 = vld [vmem:[%s14551_s8 + $0xcc8] sm:$0xff] }
 0x752   : > { %8576 = vmatpush1.bf16.msra.mxu1 %v8575_v43  ;;  %5430 = vmatprep.mubr.f32.mxu1 %v7496_v37  ;;  %v9970_v37 = vunpack.i.l.bf16 %v14620_v55  ;;  %v8596_v43 = vpack.c.bf16 %v9966_v27, %v9965_v35  ;;  %v7650_v13 = vld [vmem:[%s14551_s8 + $0x1128] sm:$0xff]  ;;  %v7651_v27 = vld [vmem:[%s14551_s8 + $0x1130] sm:$0xff]  ;;  %v7525_v35 = vld [vmem:[%s14551_s8 + $0xd40] sm:$0xff] }
 0x753   : > { %8577 = vmatprep.subr.bf16.mxu1 %v14582_v21  ;;  %v7530_v55 = vld [vmem:[%s14551_s8 + $0xd68] sm:$0xff] }
 0x754   : > { %6287 = vmatmul.mubr.f32.gmra.mrb[242].mxu0 %v7631_v63  ;;  %v8599_v32 = vpack.c.bf16 %v9971_v54, %v9970_v37  ;;  %v7649_v63 = vld [vmem:[%s14551_s8 + $0x1120] sm:$0xff]  ;;  %v7656_v54 = vld [vmem:[%s14551_s8 + $0x1158] sm:$0xff]  ;;  %v7655_v37 = vld [vmem:[%s14551_s8 + $0x1150] sm:$0xff] }
 0x755   : > { %5431 = vmatmul.mubr.f32.gmra.mrb[10].mxu1 %v7495_v16  ;;  %6291 = vmatprep.mubr.f32.mxu0 %v7634_v11  ;;  %v7635_v16 = vld [vmem:[%s14551_s8 + $0x10b0] sm:$0xff]  ;;  %v7654_v11 = vld [vmem:[%s14551_s8 + $0x1148] sm:$0xff] }
 0x756   : > { %8579 = vmatpush1.bf16.msra.mxu1 %v8578_v14  ;;  %5435 = vmatprep.mubr.f32.mxu1 %v7498_v2  ;;  %v14621_v2 = vld [vmem:[#allocation16_spill] sm:$0xff]  ;;  %v7511_v14 = vld [vmem:[%s14551_s8 + $0xcd0] sm:$0xff] }
 0x757   : > { %8580 = vmatprep.subr.bf16.mxu1 %v14582_v21  ;;  %v9981_v17 = vunpack.i.h.bf16 %v14621_v2  ;;  %v9980_v29 = vunpack.i.l.bf16 %v14621_v2  ;;  %v7660_v2 = vld [vmem:[%s14551_s8 + $0x1178] sm:$0xff] }
 0x758   : > { %6292 = vmatmul.mubr.f32.gmra.mrb[244].mxu0 %v7633_v26  ;;  %v7653_v26 = vld [vmem:[%s14551_s8 + $0x1140] sm:$0xff] }
 0x759   : > { %5436 = vmatmul.mubr.f32.gmra.mrb[12].mxu1 %v7497_v23  ;;  %6296 = vmatprep.mubr.f32.mxu0 %v7636_v1  ;;  %v7638_v23 = vld [vmem:[%s14551_s8 + $0x10c8] sm:$0xff] }
 0x75a   : > { %8582 = vmatpush1.bf16.msra.mxu1 %v8581_v58  ;;  %5440 = vmatprep.mubr.f32.mxu1 %v7500_v22  ;;  %v8602_v22 = vpack.c.bf16 %v9981_v17, %v9980_v29  ;;  %v14622_v58 = vld [vmem:[#allocation18_spill] sm:$0xff]  ;;  %v7658_v1 = vld [vmem:[%s14551_s8 + $0x1168] sm:$0xff]  ;;  %v7659_v17 = vld [vmem:[%s14551_s8 + $0x1170] sm:$0xff] }
 0x75b   : > { %8583 = vmatprep.subr.bf16.mxu1 %v14582_v21  ;;  %v9991_v52 = vunpack.i.h.bf16 %v14622_v58  ;;  %v9990_v12 = vunpack.i.l.bf16 %v14622_v58  ;;  %v7533_v29 = vld [vmem:[%s14551_s8 + $0xd80] sm:$0xff]  ;;  %v7539_v58 = vld [vmem:[%s14551_s8 + $0xdb0] sm:$0xff] }
 0x75c   : > { %6297 = vmatmul.mubr.f32.gmra.mrb[246].mxu0 %v7635_v16  ;;  %v7657_v16 = vld [vmem:[%s14551_s8 + $0x1160] sm:$0xff] }
 0x75d   : > { %5441 = vmatmul.mubr.f32.gmra.mrb[14].mxu1 %v7499_v7  ;;  %6301 = vmatprep.mubr.f32.mxu0 %v7638_v23  ;;  %v7513_v7 = vld [vmem:[%s14551_s8 + $0xce0] sm:$0xff]  ;;  %v8605_v44 = vpack.c.bf16 %v9991_v52, %v9990_v12  ;;  %v7535_v23 = vld [vmem:[%s14551_s8 + $0xd90] sm:$0xff]  ;;  %v7542_v52 = vld [vmem:[%s14551_s8 + $0xdc8] sm:$0xff] }
 0x75e   : > { %8585 = vmatpush1.bf16.msra.mxu1 %v8584_v49  ;;  %5445 = vmatprep.mubr.f32.mxu1 %v7502_v24  ;;  %v7516_v24 = vld [vmem:[%s14551_s8 + $0xcf8] sm:$0xff]  ;;  %v10005_v49 = vunpack.i.l.bf16 %v14623_v53  ;;  %v7541_v12 = vld [vmem:[%s14551_s8 + $0xdc0] sm:$0xff]  ;;  %v7547_v53 = vld [vmem:[%s14551_s8 + $0xdf0] sm:$0xff] }
 0x75f   : > { %8586 = vmatprep.subr.bf16.mxu1 %v14582_v21 }
 0x760   : > { %6302 = vmatmul.mubr.f32.gmra.mrb[248].mxu0 %v7637_v56  ;;  %v7538_v56 = vld [vmem:[%s14551_s8 + $0xda8] sm:$0xff] }
 0x761   : > { %5446 = vmatmul.mubr.f32.gmra.mrb[16].mxu1 %v7501_v45  ;;  %6306 = vmatprep.mubr.f32.mxu0 %v7640_v15  ;;  %v7515_v45 = vld [vmem:[%s14551_s8 + $0xcf0] sm:$0xff] }
 0x762   : > { %8588 = vmatpush1.bf16.msra.mxu1 %v8587_v0  ;;  %5450 = vmatprep.mubr.f32.mxu1 %v7504_v8  ;;  %v7518_v8 = vld [vmem:[%s14551_s8 + $0xd08] sm:$0xff]  ;;  %v8608_v0 = vpack.c.bf16 %v10006_v61, %v10005_v49  ;;  %v7543_v15 = vld [vmem:[%s14551_s8 + $0xdd0] sm:$0xff]  ;;  %v7549_v49 = vld [vmem:[%s14551_s8 + $0xe00] sm:$0xff] }
 0x763   : > { %8589 = vmatprep.subr.bf16.mxu1 %v14582_v21  ;;  %v7550_v61 = vld [vmem:[%s14551_s8 + $0xe08] sm:$0xff] }
 0x764   : > { %6307 = vmatmul.mubr.f32.gmra.mrb[250].mxu0 %v7639_v36  ;;  %v7546_v36 = vld [vmem:[%s14551_s8 + $0xde8] sm:$0xff] }
 0x765   : > { %5451 = vmatmul.mubr.f32.gmra.mrb[18].mxu1 %v7503_v47  ;;  %6311 = vmatprep.mubr.f32.mxu0 %v7642_v18  ;;  %v7520_v47 = vld [vmem:[%s14551_s8 + $0xd18] sm:$0xff]  ;;  %v13978_v18 = vpop.f32.mrb[160].mxu0 }
 0x766   : > { %8591 = vmatpush1.bf16.msra.mxu1 %v8590_v4  ;;  %5455 = vmatprep.mubr.f32.mxu1 %v7506_v42  ;;  %v7519_v42 = vld [vmem:[%s14551_s8 + $0xd10] sm:$0xff]  ;;  %v7521_v4 = vld [vmem:[%s14551_s8 + $0xd20] sm:$0xff] }
 0x767   : > { %8592 = vmatprep.subr.bf16.mxu1 %v14582_v21 }
 0x768   : > { %6312 = vmatmul.mubr.f32.gmra.mrb[252].mxu0 %v7641_v50  ;;  %v14624_v50 = vld [vmem:[#allocation17_spill] sm:$0xff] }
 0x769   : > { %5456 = vmatmul.mubr.f32.gmra.mrb[20].mxu1 %v7505_v30  ;;  %6316 = vmatprep.mubr.f32.mxu0 %v7644_v39  ;;  %v7524_v30 = vld [vmem:[%s14551_s8 + $0xd38] sm:$0xff] }
 0x76a   : > { %8594 = vmatpush1.bf16.msra.mxu1 %v8593_v34  ;;  %5460 = vmatprep.mubr.f32.mxu1 %v7508_v62  ;;  %v7523_v62 = vld [vmem:[%s14551_s8 + $0xd30] sm:$0xff]  ;;  %v7526_v34 = vld [vmem:[%s14551_s8 + $0xd48] sm:$0xff] }
 0x76b   : > { %8595 = vmatprep.subr.bf16.mxu1 %v14582_v21 }
 0x76c   : > { %6317 = vmatmul.mubr.f32.gmra.mrb[254].mxu0 %v7643_v51  ;;  %v14625_v51 = vld [vmem:[#allocation19_spill] sm:$0xff] }
 0x76d   : > { %5461 = vmatmul.mubr.f32.gmra.mrb[22].mxu1 %v7507_v57  ;;  %6321 = vmatprep.mubr.f32.mxu0 %v7646_v19  ;;  %v7528_v57 = vld [vmem:[%s14551_s8 + $0xd58] sm:$0xff] }
 0x76e   : > { %8597 = vmatpush1.bf16.msra.mxu1 %v8596_v43  ;;  %5465 = vmatprep.mubr.f32.mxu1 %v7510_v3  ;;  %v7527_v3 = vld [vmem:[%s14551_s8 + $0xd50] sm:$0xff]  ;;  %v7529_v43 = vld [vmem:[%s14551_s8 + $0xd60] sm:$0xff] }
 0x76f   : > { %8598 = vmatprep.subr.bf16.mxu1 %v14582_v21 }
 0x770   : > { %6322 = vmatmul.mubr.f32.gmra.mrb[0].mxu0 %v7645_v10  ;;  %v7556_v10 = vld [vmem:[%s14551_s8 + $0xe38] sm:$0xff] }
 0x771   : > { %5466 = vmatmul.mubr.f32.gmra.mrb[24].mxu1 %v7509_v46  ;;  %6326 = vmatprep.mubr.f32.mxu0 %v7648_v28  ;;  %v7532_v46 = vld [vmem:[%s14551_s8 + $0xd78] sm:$0xff]  ;;  %v7555_v28 = vld [vmem:[%s14551_s8 + $0xe30] sm:$0xff] }
 0x772   : > { %8600 = vmatpush1.bf16.msra.mxu1 %v8599_v32  ;;  %5470 = vmatprep.mubr.f32.mxu1 %v7512_v9  ;;  %v7531_v9 = vld [vmem:[%s14551_s8 + $0xd70] sm:$0xff]  ;;  %v7534_v32 = vld [vmem:[%s14551_s8 + $0xd88] sm:$0xff] }
 0x773   : > { %8601 = vmatprep.subr.bf16.mxu1 %v14582_v21 }
 0x774   : > { %6327 = vmatmul.mubr.f32.gmra.mrb[2].mxu0 %v7647_v48 }
 0x775   : > { %5471 = vmatmul.mubr.f32.gmra.mrb[26].mxu1 %v7511_v14  ;;  %6331 = vmatprep.mubr.f32.mxu0 %v7650_v13  ;;  %v7536_v14 = vld [vmem:[%s14551_s8 + $0xd98] sm:$0xff] }
 0x776   : > { %8603 = vmatpush1.bf16.msra.mxu1 %v8602_v22  ;;  %5475 = vmatprep.mubr.f32.mxu1 %v7514_v31  ;;  %v7537_v31 = vld [vmem:[%s14551_s8 + $0xda0] sm:$0xff]  ;;  %v7540_v22 = vld [vmem:[%s14551_s8 + $0xdb8] sm:$0xff] }
 0x777   : > { %8604 = vmatprep.subr.bf16.mxu1 %v14582_v21  ;;  %v14627_v13 = vld [vmem:[#allocation22_spill] sm:$0xff] }
 0x778   : > { %6332 = vmatmul.mubr.f32.gmra.mrb[4].mxu0 %v7649_v63  ;;  %v7557_v63 = vld [vmem:[%s14551_s8 + $0xe40] sm:$0xff] }
 0x779   : > { %5476 = vmatmul.mubr.f32.gmra.mrb[28].mxu1 %v7513_v7  ;;  %6336 = vmatprep.mubr.f32.mxu0 %v7652_v59  ;;  %v7544_v7 = vld [vmem:[%s14551_s8 + $0xdd8] sm:$0xff] }
 0x77a   : > { %8606 = vmatpush1.bf16.msra.mxu1 %v8605_v44  ;;  %5480 = vmatprep.mubr.f32.mxu1 %v7516_v24  ;;  %v7545_v24 = vld [vmem:[%s14551_s8 + $0xde0] sm:$0xff]  ;;  %v7548_v44 = vld [vmem:[%s14551_s8 + $0xdf8] sm:$0xff] }
 0x77b   : > { %8607 = vmatprep.subr.bf16.mxu1 %v14582_v21 }
 0x77c   : > { %6337 = vmatmul.mubr.f32.gmra.mrb[6].mxu0 %v7651_v27  ;;  %v14628_v27 = vld [vmem:[#allocation23_spill] sm:$0xff] }
 0x77d   : > { %5481 = vmatmul.mubr.f32.gmra.mrb[30].mxu1 %v7515_v45  ;;  %6341 = vmatprep.mubr.f32.mxu0 %v7654_v11  ;;  %v7552_v45 = vld [vmem:[%s14551_s8 + $0xe18] sm:$0xff]  ;;  %v7562_v11 = vld [vmem:[%s14551_s8 + $0xe68] sm:$0xff] }
 0x77e   : > { %8609 = vmatpush1.bf16.msra.mxu1 %v8608_v0  ;;  %5485 = vmatprep.mubr.f32.mxu1 %v7518_v8  ;;  %v7551_v8 = vld [vmem:[%s14551_s8 + $0xe10] sm:$0xff]  ;;  %v3030_v0 = vpop.f32.mrb[161].mxu0 }
 0x77f   : > { %8678 = vmatprep.subr.bf16.mxu1 %v14582_v21  ;;  %v13988_v39 = vpop.f32.mrb[162].mxu0 }
 0x780   : > { %6342 = vmatmul.mubr.f32.gmra.mrb[8].mxu0 %v7653_v26  ;;  %v3035_v19 = vpop.f32.mrb[163].mxu0 }
 0x781   : > { %5486 = vmatmul.mubr.f32.gmra.mrb[32].mxu1 %v7517_v38  ;;  %6346 = vmatprep.mubr.f32.mxu0 %v7656_v54  ;;  %v7554_v38 = vld [vmem:[%s14551_s8 + $0xe28] sm:$0xff] }
 0x782   : > { %5490 = vmatprep.mubr.f32.mxu1 %v7520_v47  ;;  %v7553_v47 = vld [vmem:[%s14551_s8 + $0xe20] sm:$0xff] }
 0x784   : > { %6347 = vmatmul.mubr.f32.gmra.mrb[10].mxu0 %v7655_v37  ;;  %v7564_v37 = vld [vmem:[%s14551_s8 + $0xe78] sm:$0xff] }
 0x785   : > { %5491 = vmatmul.mubr.f32.gmra.mrb[34].mxu1 %v7519_v42  ;;  %6351 = vmatprep.mubr.f32.mxu0 %v7658_v1  ;;  %v13998_v42 = vpop.f32.mrb[164].mxu0  ;;  %v7563_v1 = vld [vmem:[%s14551_s8 + $0xe70] sm:$0xff] }
 0x786   : > { %5495 = vmatprep.mubr.f32.mxu1 %v7522_v41  ;;  %v14626_v41 = vld [vmem:[#allocation21_spill] sm:$0xff]  ;;  %v3040_v48 = vpop.f32.mrb[165].mxu0 }
 0x787   : > { %v7574_v48 = vld [vmem:[%s14551_s8 + $0xec8] sm:$0xff] }
 0x788   : > { %6352 = vmatmul.mubr.f32.gmra.mrb[12].mxu0 %v7657_v16 }
 0x789   : > { %5496 = vmatmul.mubr.f32.gmra.mrb[36].mxu1 %v7521_v4  ;;  %6356 = vmatprep.mubr.f32.mxu0 %v7660_v2  ;;  %v7558_v4 = vld [vmem:[%s14551_s8 + $0xe48] sm:$0xff]  ;;  %v6434_v2 = vld [vmem:[%s14552_s9] sm:$0xff] }
 0x78a   : > { %5500 = vmatprep.mubr.f32.mxu1 %v7524_v30  ;;  %v14008_v30 = vpop.f32.mrb[166].mxu0 }
 0x78c   : > { %6357 = vmatmul.mubr.f32.gmra.mrb[14].mxu0 %v7659_v17  ;;  %v6435_v17 = vld [vmem:[%s14552_s9 + $0x8] sm:$0xff] }
 0x78d   : > { %5501 = vmatmul.mubr.f32.gmra.mrb[38].mxu1 %v7523_v62  ;;  %v3045_v62 = vpop.f32.mrb[167].mxu0 }
 0x78e   : > { %5505 = vmatprep.mubr.f32.mxu1 %v7526_v34  ;;  %v7560_v34 = vld [vmem:[%s14551_s8 + $0xe58] sm:$0xff]  ;;  %v14018_v59 = vpop.f32.mrb[168].mxu0 }
 0x791   : > { %5506 = vmatmul.mubr.f32.gmra.mrb[40].mxu1 %v7525_v35  ;;  %v7559_v35 = vld [vmem:[%s14551_s8 + $0xe50] sm:$0xff] }
 0x792   : > { %5510 = vmatprep.mubr.f32.mxu1 %v7528_v57  ;;  %v3050_v57 = vpop.f32.mrb[169].mxu0 }
 0x793   : > { %v14028_v26 = vpop.f32.mrb[170].mxu0 }
 0x794   : > { %v3055_v54 = vpop.f32.mrb[171].mxu0 }
 0x795   : > { %5511 = vmatmul.mubr.f32.gmra.mrb[42].mxu1 %v7527_v3  ;;  %v14629_v3 = vld [vmem:[#allocation24_spill] sm:$0xff] }
 0x796   : > { %5515 = vmatprep.mubr.f32.mxu1 %v7530_v55  ;;  %v7561_v55 = vld [vmem:[%s14551_s8 + $0xe60] sm:$0xff] }
 0x799   : > { %5516 = vmatmul.mubr.f32.gmra.mrb[44].mxu1 %v7529_v43 }
 0x79a   : > { %5520 = vmatprep.mubr.f32.mxu1 %v7532_v46  ;;  %v14038_v43 = vpop.f32.mrb[172].mxu0  ;;  %v14630_v46 = vld [vmem:[#allocation25_spill] sm:$0xff] }
 0x79b   : > { %v3060_v16 = vpop.f32.mrb[173].mxu0 }
 0x79d   : > { %5521 = vmatmul.mubr.f32.gmra.mrb[46].mxu1 %v7531_v9  ;;  %v7566_v9 = vld [vmem:[%s14551_s8 + $0xe88] sm:$0xff] }
 0x79e   : > { %5525 = vmatprep.mubr.f32.mxu1 %v7534_v32  ;;  %v14048_v32 = vpop.f32.mrb[174].mxu0 }
 0x7a1   : > { %5526 = vmatmul.mubr.f32.gmra.mrb[48].mxu1 %v7533_v29  ;;  %v6436_v29 = vld [vmem:[%s14552_s9 + $0x10] sm:$0xff] }
 0x7a2   : > { %5530 = vmatprep.mubr.f32.mxu1 %v7536_v14  ;;  %v14631_v14 = vld [vmem:[#allocation26_spill] sm:$0xff] }
 0x7a5   : > { %5531 = vmatmul.mubr.f32.gmra.mrb[50].mxu1 %v7535_v23  ;;  %v7565_v23 = vld [vmem:[%s14551_s8 + $0xe80] sm:$0xff] }
 0x7a6   : > { %5535 = vmatprep.mubr.f32.mxu1 %v7538_v56  ;;  %v3065_v56 = vpop.f32.mrb[175].mxu0 }
 0x7a9   : > { %5536 = vmatmul.mubr.f32.gmra.mrb[52].mxu1 %v7537_v31  ;;  %v8658_v31 = vpack.c.bf16 %v6435_v17, %v6434_v2 }
 0x7aa   : > { %5540 = vmatprep.mubr.f32.mxu1 %v7540_v22  ;;  %v6437_v22 = vld [vmem:[%s14552_s9 + $0x18] sm:$0xff] }
 0x7ab   : > { %8659 = vmatprep.subr.bf16.mxu0 %v8658_v31 }
 0x7ac   : > { %8661 = vmatpush3.bf16.msra.mxu0 %v8658_v31 }
 0x7ad   : > { %5541 = vmatmul.mubr.f32.gmra.mrb[54].mxu1 %v7539_v58  ;;  %v7568_v58 = vld [vmem:[%s14551_s8 + $0xe98] sm:$0xff] }
 0x7ae   : > { %5545 = vmatprep.mubr.f32.mxu1 %v7542_v52  ;;  %v14070_v52 = vpop.f32.mrb[176].mxu0 }
 0x7b1   : > { %5546 = vmatmul.mubr.f32.gmra.mrb[56].mxu1 %v7541_v12  ;;  %v8662_v12 = vpack.c.bf16 %v6437_v22, %v6436_v29  ;;  %v7582_v29 = vld [vmem:[%s14551_s8 + $0xf08] sm:$0xff] }
 0x7b2   : > { %5550 = vmatprep.mubr.f32.mxu1 %v7544_v7  ;;  %v3070_v7 = vpop.f32.mrb[177].mxu0 }
 0x7b3   : > { %8663 = vmatprep.subr.bf16.mxu0 %v8662_v12 }
 0x7b4   : > { %8665 = vmatpush3.bf16.msra.mxu0 %v8662_v12 }
 0x7b5   : > { %5551 = vmatmul.mubr.f32.gmra.mrb[58].mxu1 %v7543_v15  ;;  %v6438_v15 = vld [vmem:[%s14552_s9 + $0x20] sm:$0xff] }
 0x7b6   : > { %5555 = vmatprep.mubr.f32.mxu1 %v7546_v36  ;;  %v6439_v36 = vld [vmem:[%s14552_s9 + $0x28] sm:$0xff] }
 0x7b9   : > { %5556 = vmatmul.mubr.f32.gmra.mrb[60].mxu1 %v7545_v24  ;;  %v14078_v24 = vpop.f32.mrb[178].mxu0 }
 0x7ba   : > { %5560 = vmatprep.mubr.f32.mxu1 %v7548_v44  ;;  %v14632_v44 = vld [vmem:[#allocation27_spill] sm:$0xff] }
 0x7bd   : > { %5561 = vmatmul.mubr.f32.gmra.mrb[62].mxu1 %v7547_v53  ;;  %v7567_v53 = vld [vmem:[%s14551_s8 + $0xe90] sm:$0xff] }
 0x7be   : > { %5823 = vmatprep.mubr.f32.mxu1 %v7550_v61  ;;  %v3075_v61 = vpop.f32.mrb[179].mxu0 }
 0x7bf   : > { %v7585_v61 = vld [vmem:[%s14551_s8 + $0xf20] sm:$0xff] }
 0x7c1   : > { %5824 = vmatmul.mubr.f32.vlgmr.msra.gmra.mrb[0].mxu1 %v7549_v49  ;;  %v7570_v49 = vld [vmem:[%s14551_s8 + $0xea8] sm:$0xff] }
 0x7c2   : > { %8694 = vmatpush1.bf16.msra.mxu1 %v14624_v50  ;;  %5828 = vmatprep.mubr.f32.mxu1 %v7552_v45  ;;  %v14088_v45 = vpop.f32.mrb[180].mxu0  ;;  %v8666_v50 = vpack.c.bf16 %v6439_v36, %v6438_v15  ;;  %v7586_v15 = vld [vmem:[%s14551_s8 + $0xf28] sm:$0xff] }
 0x7c3   : > { %8679 = vmatprep.subr.bf16.mxu1 %v14582_v21 }
 0x7c4   : > { %8667 = vmatprep.subr.bf16.mxu0 %v8666_v50 }
 0x7c5   : > { %5829 = vmatmul.mubr.f32.gmra.mrb[2].mxu1 %v7551_v8  ;;  %v3080_v8 = vpop.f32.mrb[181].mxu0  ;;  %8669 = vmatpush3.bf16.msra.mxu0 %v8666_v50  ;;  %v7588_v50 = vld [vmem:[%s14551_s8 + $0xf38] sm:$0xff] }
 0x7c6   : > { %8695 = vmatpush1.bf16.msra.mxu1 %v14625_v51  ;;  %5833 = vmatprep.mubr.f32.mxu1 %v7554_v38  ;;  %v14090_v0 = vpop.f32.mrb[182].mxu0  ;;  %v7569_v38 = vld [vmem:[%s14551_s8 + $0xea0] sm:$0xff] }
 0x7c7   : > { %8680 = vmatprep.subr.bf16.mxu1 %v14582_v21  ;;  %v3085_v51 = vpop.f32.mrb[183].mxu0 }
 0x7c8   : > { %v14100_v19 = vpop.f32.mrb[184].mxu0  ;;  %v7587_v51 = vld [vmem:[%s14551_s8 + $0xf30] sm:$0xff] }
 0x7c9   : > { %5834 = vmatmul.mubr.f32.gmra.mrb[4].mxu1 %v7553_v47  ;;  %v7572_v47 = vld [vmem:[%s14551_s8 + $0xeb8] sm:$0xff] }
 0x7ca   : > { %8696 = vmatpush1.bf16.msra.mxu1 %v14626_v41  ;;  %5838 = vmatprep.mubr.f32.mxu1 %v7556_v10  ;;  %v3090_v10 = vpop.f32.mrb[185].mxu0 }
 0x7cb   : > { %8681 = vmatprep.subr.bf16.mxu1 %v14582_v21  ;;  %v14102_v41 = vpop.f32.mrb[186].mxu0 }
 0x7cd   : > { %5839 = vmatmul.mubr.f32.gmra.mrb[6].mxu1 %v7555_v28  ;;  %v3095_v28 = vpop.f32.mrb[187].mxu0 }
 0x7ce   : > { %8697 = vmatpush1.bf16.msra.mxu1 %v14627_v13  ;;  %5843 = vmatprep.mubr.f32.mxu1 %v7558_v4  ;;  %v14112_v4 = vpop.f32.mrb[188].mxu0  ;;  %v7589_v28 = vld [vmem:[%s14551_s8 + $0xf40] sm:$0xff] }
 0x7cf   : > { %8682 = vmatprep.subr.bf16.mxu1 %v14582_v21  ;;  %v3100_v13 = vpop.f32.mrb[189].mxu0 }
 0x7d1   : > { %5844 = vmatmul.mubr.f32.gmra.mrb[8].mxu1 %v7557_v63  ;;  %v14114_v63 = vpop.f32.mrb[190].mxu0 }
 0x7d2   : > { %8698 = vmatpush1.bf16.msra.mxu1 %v14628_v27  ;;  %5848 = vmatprep.mubr.f32.mxu1 %v7560_v34  ;;  %v3105_v62 = vpop.f32.mrb[191].mxu0  ;;  %v7576_v34 = vld [vmem:[%s14551_s8 + $0xed8] sm:$0xff] }
 0x7d3   : > { %8683 = vmatprep.subr.bf16.mxu1 %v14582_v21  ;;  %v14124_v27 = vpop.f32.mrb[192].mxu0  ;;  %v7591_v62 = vld [vmem:[%s14551_s8 + $0xf50] sm:$0xff] }
 0x7d5   : > { %5849 = vmatmul.mubr.f32.gmra.mrb[10].mxu1 %v7559_v35  ;;  %v3110_v35 = vpop.f32.mrb[193].mxu0 }
 0x7d6   : > { %8699 = vmatpush1.bf16.msra.mxu1 %v14629_v3  ;;  %5853 = vmatprep.mubr.f32.mxu1 %v7562_v11  ;;  %v14126_v57 = vpop.f32.mrb[194].mxu0  ;;  %v7578_v3 = vld [vmem:[%s14551_s8 + $0xee8] sm:$0xff] }
 0x7d7   : > { %8684 = vmatprep.subr.bf16.mxu1 %v14582_v21  ;;  %v3115_v11 = vpop.f32.mrb[195].mxu0 }
 0x7d8   : > { %v6440_v11 = vld [vmem:[%s14552_s9 + $0x30] sm:$0xff] }
 0x7d9   : > { %5854 = vmatmul.mubr.f32.gmra.mrb[12].mxu1 %v7561_v55  ;;  %v14136_v55 = vpop.f32.mrb[196].mxu0 }
 0x7da   : > { %8700 = vmatpush1.bf16.msra.mxu1 %v14630_v46  ;;  %5858 = vmatprep.mubr.f32.mxu1 %v7564_v37  ;;  %v3120_v54 = vpop.f32.mrb[197].mxu0 }
 0x7db   : > { %8685 = vmatprep.subr.bf16.mxu1 %v14582_v21  ;;  %v14138_v37 = vpop.f32.mrb[198].mxu0 }
 0x7dc   : > { %v3125_v46 = vpop.f32.mrb[199].mxu0 }
 0x7dd   : > { %5859 = vmatmul.mubr.f32.gmra.mrb[14].mxu1 %v7563_v1  ;;  %v7580_v1 = vld [vmem:[%s14551_s8 + $0xef8] sm:$0xff]  ;;  %v14148_v16 = vpop.f32.mrb[200].mxu0 }
 0x7de   : > { %8701 = vmatpush1.bf16.msra.mxu1 %v14631_v14  ;;  %5863 = vmatprep.mubr.f32.mxu1 %v7566_v9  ;;  %v3130_v9 = vpop.f32.mrb[201].mxu0  ;;  %v7596_v46 = vld [vmem:[%s14551_s8 + $0xf78] sm:$0xff] }
 0x7df   : > { %8686 = vmatprep.subr.bf16.mxu1 %v14582_v21  ;;  %v14150_v2 = vpop.f32.mrb[202].mxu0 }
 0x7e0   : > { %v3135_v17 = vpop.f32.mrb[203].mxu0 }
 0x7e1   : > { %5864 = vmatmul.mubr.f32.gmra.mrb[16].mxu1 %v7565_v23  ;;  %v14160_v14 = vpop.f32.mrb[204].mxu0  ;;  %v6443_v17 = vld [vmem:[%s14552_s9 + $0x48] sm:$0xff] }
 0x7e2   : > { %8702 = vmatpush1.bf16.msra.mxu1 %v14632_v44  ;;  %5868 = vmatprep.mubr.f32.mxu1 %v7568_v58  ;;  %v3140_v23 = vpop.f32.mrb[205].mxu0 }
 0x7e3   : > { %8687 = vmatprep.subr.bf16.mxu1 %v14582_v21  ;;  %v14162_v56 = vpop.f32.mrb[206].mxu0  ;;  %v7595_v23 = vld [vmem:[%s14551_s8 + $0xf70] sm:$0xff] }
 0x7e4   : > { %v3145_v31 = vpop.f32.mrb[207].mxu0 }
 0x7e5   : > { %5869 = vmatmul.mubr.f32.gmra.mrb[18].mxu1 %v7567_v53  ;;  %v14171_v22 = vpop.f32.mrb[208].mxu0 }
 0x7e6   : > { %8703 = vmatpush1.bf16.msra.mxu1 %v12657_v25  ;;  %5873 = vmatprep.mubr.f32.mxu1 %v7570_v49  ;;  %v7571_v25 = vld [vmem:[%s14551_s8 + $0xeb0] sm:$0xff]  ;;  %v3150_v58 = vpop.f32.mrb[209].mxu0 }
 0x7e7   : > { %8688 = vmatprep.subr.bf16.mxu1 %v14582_v21  ;;  %v14173_v12 = vpop.f32.mrb[210].mxu0  ;;  %v7597_v58 = vld [vmem:[%s14551_s8 + $0xf80] sm:$0xff] }
 0x7e8   : > { %v3155_v7 = vpop.f32.mrb[211].mxu0 }
 0x7e9   : > { %5874 = vmatmul.mubr.f32.gmra.mrb[20].mxu1 %v7569_v38 }
 0x7ea   : > { %8704 = vmatpush1.bf16.msra.mxu1 %v12666_v20  ;;  %5878 = vmatprep.mubr.f32.mxu1 %v7572_v47  ;;  %v7573_v20 = vld [vmem:[%s14551_s8 + $0xec0] sm:$0xff]  ;;  %v7590_v47 = vld [vmem:[%s14551_s8 + $0xf48] sm:$0xff] }
 0x7eb   : > { %8689 = vmatprep.subr.bf16.mxu1 %v14582_v21  ;;  %v14181_v36 = vpop.f32.mrb[212].mxu0 }
 0x7ec   : > { %v3160_v44 = vpop.f32.mrb[213].mxu0 }
 0x7ed   : > { %5879 = vmatmul.mubr.f32.gmra.mrb[22].mxu1 %v7571_v25  ;;  %v7599_v44 = vld [vmem:[%s14551_s8 + $0xf90] sm:$0xff] }
 0x7ee   : > { %8705 = vmatpush1.bf16.msra.mxu1 %v12678_v40  ;;  %5883 = vmatprep.mubr.f32.mxu1 %v7574_v48  ;;  %v7575_v40 = vld [vmem:[%s14551_s8 + $0xed0] sm:$0xff]  ;;  %v7592_v48 = vld [vmem:[%s14551_s8 + $0xf58] sm:$0xff] }
 0x7ef   : > { %8690 = vmatprep.subr.bf16.mxu1 %v14582_v21  ;;  %v14183_v53 = vpop.f32.mrb[214].mxu0 }
 0x7f0   : > { %v3165_v49 = vpop.f32.mrb[215].mxu0 }
 0x7f1   : > { %5884 = vmatmul.mubr.f32.gmra.mrb[24].mxu1 %v7573_v20 }
 0x7f2   : > { %8706 = vmatpush1.bf16.msra.mxu1 %v12691_v33  ;;  %5888 = vmatprep.mubr.f32.mxu1 %v7576_v34  ;;  %v7577_v33 = vld [vmem:[%s14551_s8 + $0xee0] sm:$0xff]  ;;  %v7594_v34 = vld [vmem:[%s14551_s8 + $0xf68] sm:$0xff] }
 0x7f3   : > { %8691 = vmatprep.subr.bf16.mxu1 %v14582_v21  ;;  %v14191_v8 = vpop.f32.mrb[216].mxu0 }
 0x7f4   : > { %14633 = vst [vmem:[#allocation4_spill] sm:$0xff] %v14191_v8  ;;  %v3170_v38 = vpop.f32.mrb[217].mxu0 }
 0x7f5   : > { %5889 = vmatmul.mubr.f32.gmra.mrb[26].mxu1 %v7575_v40  ;;  %v7601_v38 = vld [vmem:[%s14551_s8 + $0xfa0] sm:$0xff] }
 0x7f6   : > { %8707 = vmatpush1.bf16.msra.mxu1 %v12704_v60  ;;  %5893 = vmatprep.mubr.f32.mxu1 %v7578_v3  ;;  %v7579_v60 = vld [vmem:[%s14551_s8 + $0xef0] sm:$0xff]  ;;  %v6441_v3 = vld [vmem:[%s14552_s9 + $0x38] sm:$0xff] }
 0x7f7   : > { %8692 = vmatprep.subr.bf16.mxu1 %v14582_v21  ;;  %v14199_v10 = vpop.f32.mrb[218].mxu0  ;;  %v8670_v54 = vpack.c.bf16 %v6441_v3, %v6440_v11 }
 0x7f8   : > { %14634 = vst [vmem:[#allocation3_spill] sm:$0xff] %v14199_v10  ;;  %v3175_v25 = vpop.f32.mrb[219].mxu0 }
 0x7f9   : > { %5894 = vmatmul.mubr.f32.gmra.mrb[28].mxu1 %v7577_v33  ;;  %v7593_v33 = vld [vmem:[%s14551_s8 + $0xf60] sm:$0xff]  ;;  %8671 = vmatprep.subr.bf16.mxu0 %v8670_v54 }
 0x7fa   : > { %8708 = vmatpush1.bf16.msra.mxu1 %v12717_v6  ;;  %5898 = vmatprep.mubr.f32.mxu1 %v7580_v1  ;;  %v7581_v6 = vld [vmem:[%s14551_s8 + $0xf00] sm:$0xff] }
 0x7fb   : > { %8693 = vmatprep.subr.bf16.mxu1 %v14582_v21  ;;  %v7584_v21 = vld [vmem:[%s14551_s8 + $0xf18] sm:$0xff]  ;;  %v14207_v13 = vpop.f32.mrb[220].mxu0  ;;  %8673 = vmatpush3.bf16.msra.mxu0 %v8670_v54  ;;  %v7607_v54 = vld [vmem:[%s14551_s8 + $0xfd0] sm:$0xff] }
 0x7fc   : > { %14635 = vst [vmem:[#allocation6_spill] sm:$0xff] %v14207_v13  ;;  %v3180_v20 = vpop.f32.mrb[221].mxu0 }
 0x7fd   : > { %5899 = vmatmul.mubr.f32.gmra.mrb[30].mxu1 %v7579_v60  ;;  %v6442_v60 = vld [vmem:[%s14552_s9 + $0x40] sm:$0xff] }
 0x7fe   : > { %8709 = vmatpush1.bf16.msra.mxu1 %v12730_v5  ;;  %5903 = vmatprep.mubr.f32.mxu1 %v7582_v29  ;;  %v7583_v5 = vld [vmem:[%s14551_s8 + $0xf10] sm:$0xff]  ;;  %v8674_v29 = vpack.c.bf16 %v6443_v17, %v6442_v60  ;;  %v7609_v60 = vld [vmem:[%s14551_s8 + $0xfe0] sm:$0xff]  ;;  %v7612_v17 = vld [vmem:[%s14551_s8 + $0xff8] sm:$0xff] }
 0x7ff   : > { %v14215_v35 = vpop.f32.mrb[222].mxu0 }
 0x800   : > { %14636 = vst [vmem:[#allocation5_spill] sm:$0xff] %v14215_v35  ;;  %v3185_v40 = vpop.f32.mrb[223].mxu0  ;;  %8675 = vmatprep.subr.bf16.mxu0 %v8674_v29 }
 0x801   : > { %5904 = vmatmul.mubr.f32.gmra.mrb[32].mxu1 %v7581_v6  ;;  %v7598_v6 = vld [vmem:[%s14551_s8 + $0xf88] sm:$0xff]  ;;  %8677 = vmatpush3.bf16.msra.mxu0 %v8674_v29  ;;  %v7608_v40 = vld [vmem:[%s14551_s8 + $0xfd8] sm:$0xff] }
 0x802   : > { %5908 = vmatprep.mubr.f32.mxu1 %v7584_v21 }
 0x803   : > { %v14229_v1 = vpop.f32.mrb[224].mxu0 }
 0x804   : > { %v6245_v9 = vpop.f32.mrb[225].mxu0 }
 0x805   : > { %5909 = vmatmul.mubr.f32.gmra.mrb[34].mxu1 %v7583_v5  ;;  %v7600_v5 = vld [vmem:[%s14551_s8 + $0xf98] sm:$0xff] }
 0x806   : > { %5913 = vmatprep.mubr.f32.mxu1 %v7586_v15 }
 0x807   : > { %v14243_v31 = vpop.f32.mrb[226].mxu0 }
 0x808   : > { %v6250_v21 = vpop.f32.mrb[227].mxu0 }
 0x809   : > { %5914 = vmatmul.mubr.f32.gmra.mrb[36].mxu1 %v7585_v61  ;;  %v7602_v61 = vld [vmem:[%s14551_s8 + $0xfa8] sm:$0xff] }
 0x80a   : > { %5918 = vmatprep.mubr.f32.mxu1 %v7588_v50  ;;  %v7662_v21 = vld [vmem:[%s14551_s8 + $0x1188] sm:$0xff] }
 0x80b   : > { %v14251_v7 = vpop.f32.mrb[228].mxu0 }
 0x80c   : > { %v6255_v15 = vpop.f32.mrb[229].mxu0 }
 0x80d   : > { %5919 = vmatmul.mubr.f32.gmra.mrb[38].mxu1 %v7587_v51  ;;  %v7604_v51 = vld [vmem:[%s14551_s8 + $0xfb8] sm:$0xff]  ;;  %v7661_v15 = vld [vmem:[%s14551_s8 + $0x1180] sm:$0xff] }
 0x80e   : > { %5923 = vmatprep.mubr.f32.mxu1 %v7590_v47 }
 0x80f   : > { %v14259_v49 = vpop.f32.mrb[230].mxu0 }
 0x810   : > { %v6260_v50 = vpop.f32.mrb[231].mxu0 }
 0x811   : > { %5924 = vmatmul.mubr.f32.gmra.mrb[40].mxu1 %v7589_v28  ;;  %v7603_v28 = vld [vmem:[%s14551_s8 + $0xfb0] sm:$0xff] }
 0x812   : > { %5928 = vmatprep.mubr.f32.mxu1 %v7592_v48  ;;  %v7606_v48 = vld [vmem:[%s14551_s8 + $0xfc8] sm:$0xff] }
 0x813   : > { %v14267_v47 = vpop.f32.mrb[232].mxu0 }
 0x814   : > { %v6265_v25 = vpop.f32.mrb[233].mxu0 }
 0x815   : > { %5929 = vmatmul.mubr.f32.gmra.mrb[42].mxu1 %v7591_v62 }
 0x816   : > { %5933 = vmatprep.mubr.f32.mxu1 %v7594_v34  ;;  %v7605_v34 = vld [vmem:[%s14551_s8 + $0xfc0] sm:$0xff] }
 0x817   : > { %v14275_v20 = vpop.f32.mrb[234].mxu0 }
 0x818   : > { %v6270_v62 = vpop.f32.mrb[235].mxu0 }
 0x819   : > { %5934 = vmatmul.mubr.f32.gmra.mrb[44].mxu1 %v7593_v33  ;;  %v7610_v33 = vld [vmem:[%s14551_s8 + $0xfe8] sm:$0xff]  ;;  %v7668_v62 = vld [vmem:[%s14551_s8 + $0x11b8] sm:$0xff] }
 0x81a   : > { %5938 = vmatprep.mubr.f32.mxu1 %v7596_v46 }
 0x81b   : > { %v14283_v11 = vpop.f32.mrb[236].mxu0 }
 0x81c   : > { %v6275_v3 = vpop.f32.mrb[237].mxu0 }
 0x81d   : > { %5939 = vmatmul.mubr.f32.gmra.mrb[46].mxu1 %v7595_v23  ;;  %v7667_v3 = vld [vmem:[%s14551_s8 + $0x11b0] sm:$0xff] }
 0x81e   : > { %5943 = vmatprep.mubr.f32.mxu1 %v7598_v6  ;;  %v7611_v6 = vld [vmem:[%s14551_s8 + $0xff0] sm:$0xff] }
 0x81f   : > { %v14291_v46 = vpop.f32.mrb[238].mxu0 }
 0x820   : > { %v6280_v9 = vpop.f32.mrb[239].mxu0 }
 0x821   : > { %5944 = vmatmul.mubr.f32.gmra.mrb[48].mxu1 %v7597_v58 }
 0x822   : > { %5948 = vmatprep.mubr.f32.mxu1 %v7600_v5 }
 0x823   : > { %v14299_v29 = vpop.f32.mrb[240].mxu0 }
 0x824   : > { %v6285_v23 = vpop.f32.mrb[241].mxu0 }
 0x825   : > { %5949 = vmatmul.mubr.f32.gmra.mrb[50].mxu1 %v7599_v44  ;;  %v7664_v44 = vld [vmem:[%s14551_s8 + $0x1198] sm:$0xff] }
 0x826   : > { %5953 = vmatprep.mubr.f32.mxu1 %v7602_v61 }
 0x827   : > { %v14307_v58 = vpop.f32.mrb[242].mxu0 }
 0x828   : > { %v6290_v5 = vpop.f32.mrb[243].mxu0 }
 0x829   : > { %5954 = vmatmul.mubr.f32.gmra.mrb[52].mxu1 %v7601_v38  ;;  %v7663_v38 = vld [vmem:[%s14551_s8 + $0x1190] sm:$0xff]  ;;  %v7674_v5 = vld [vmem:[%s14551_s8 + $0x11e8] sm:$0xff] }
 0x82a   : > { %5958 = vmatprep.mubr.f32.mxu1 %v7604_v51  ;;  %v7666_v51 = vld [vmem:[%s14551_s8 + $0x11a8] sm:$0xff] }
 0x82b   : > { %v14315_v61 = vpop.f32.mrb[244].mxu0 }
 0x82c   : > { %v6295_v50 = vpop.f32.mrb[245].mxu0 }
 0x82d   : > { %5959 = vmatmul.mubr.f32.gmra.mrb[54].mxu1 %v7603_v28  ;;  %v7673_v50 = vld [vmem:[%s14551_s8 + $0x11e0] sm:$0xff] }
 0x82e   : > { %5963 = vmatprep.mubr.f32.mxu1 %v7606_v48  ;;  %v7665_v48 = vld [vmem:[%s14551_s8 + $0x11a0] sm:$0xff] }
 0x82f   : > { %v14323_v25 = vpop.f32.mrb[246].mxu0 }
 0x830   : > { %v6300_v28 = vpop.f32.mrb[247].mxu0 }
 0x831   : > { %5964 = vmatmul.mubr.f32.gmra.mrb[56].mxu1 %v7605_v34 }
 0x832   : > { %5968 = vmatprep.mubr.f32.mxu1 %v7608_v40 }
 0x833   : > { %v14331_v34 = vpop.f32.mrb[248].mxu0 }
 0x834   : > { %v6305_v40 = vpop.f32.mrb[249].mxu0 }
 0x835   : > { %5969 = vmatmul.mubr.f32.gmra.mrb[58].mxu1 %v7607_v54  ;;  %v7670_v54 = vld [vmem:[%s14551_s8 + $0x11c8] sm:$0xff] }
 0x836   : > { %5973 = vmatprep.mubr.f32.mxu1 %v7610_v33 }
 0x837   : > { %v14339_v33 = vpop.f32.mrb[250].mxu0 }
 0x838   : > { %v6310_v9 = vpop.f32.mrb[251].mxu0 }
 0x839   : > { %5974 = vmatmul.mubr.f32.gmra.mrb[60].mxu1 %v7609_v60  ;;  %v7669_v60 = vld [vmem:[%s14551_s8 + $0x11c0] sm:$0xff] }
 0x83a   : > { %5978 = vmatprep.mubr.f32.mxu1 %v7612_v17  ;;  %v7672_v17 = vld [vmem:[%s14551_s8 + $0x11d8] sm:$0xff] }
 0x83b   : > { %v14347_v23 = vpop.f32.mrb[252].mxu0 }
 0x83d   : > { %5979 = vmatmul.mubr.f32.gmra.mrb[62].mxu1 %v7611_v6  ;;  %v6315_v6 = vpop.f32.mrb[253].mxu0 }
 0x83e   : > { %6361 = vmatprep.mubr.f32.mxu1 %v7662_v21  ;;  %v7671_v21 = vld [vmem:[%s14551_s8 + $0x11d0] sm:$0xff] }
 0x841   : > { %6362 = vmatmul.mubr.f32.vlgmr.msra.gmra.mrb[48].mxu1 %v7661_v15  ;;  %v14355_v15 = vpop.f32.mrb[254].mxu0 }
 0x842   : > { %6366 = vmatprep.mubr.f32.mxu1 %v7664_v44  ;;  %v6320_v44 = vpop.f32.mrb[255].mxu0 }
 0x845   : > { %6367 = vmatmul.mubr.f32.gmra.mrb[50].mxu1 %v7663_v38  ;;  %v7676_v38 = vld [vmem:[%s14551_s8 + $0x11f8] sm:$0xff] }
 0x846   : > { %6371 = vmatprep.mubr.f32.mxu1 %v7666_v51  ;;  %v14363_v51 = vpop.f32.mrb[0].mxu0 }
 0x847   : > { %v6325_v28 = vpop.f32.mrb[1].mxu0 }
 0x849   : > { %6372 = vmatmul.mubr.f32.gmra.mrb[52].mxu1 %v7665_v48  ;;  %v7675_v48 = vld [vmem:[%s14551_s8 + $0x11f0] sm:$0xff] }
 0x84a   : > { %6376 = vmatprep.mubr.f32.mxu1 %v7668_v62  ;;  %v14368_v62 = vpop.f32.mrb[2].mxu0 }
 0x84b   : > { %v6330_v40 = vpop.f32.mrb[3].mxu0 }
 0x84d   : > { %6377 = vmatmul.mubr.f32.gmra.mrb[54].mxu1 %v7667_v3  ;;  %v14370_v3 = vpop.f32.mrb[4].mxu0 }
 0x84e   : > { %6381 = vmatprep.mubr.f32.mxu1 %v7670_v54  ;;  %v6335_v54 = vpop.f32.mrb[5].mxu0 }
 0x84f   : > { %v14372_v9 = vpop.f32.mrb[6].mxu0 }
 0x851   : > { %6382 = vmatmul.mubr.f32.gmra.mrb[56].mxu1 %v7669_v60  ;;  %v6340_v60 = vpop.f32.mrb[7].mxu0 }
 0x852   : > { %6386 = vmatprep.mubr.f32.mxu1 %v7672_v17 }
 0x853   : > { %v14374_v17 = vpop.f32.mrb[8].mxu0 }
 0x854   : > { %v6345_v6 = vpop.f32.mrb[9].mxu0 }
 0x855   : > { %6387 = vmatmul.mubr.f32.gmra.mrb[58].mxu1 %v7671_v21 }
 0x856   : > { %6391 = vmatprep.mubr.f32.mxu1 %v7674_v5 }
 0x857   : > { %v14376_v21 = vpop.f32.mrb[10].mxu0 }
 0x858   : > { %v6350_v5 = vpop.f32.mrb[11].mxu0 }
 0x859   : > { %6392 = vmatmul.mubr.f32.gmra.mrb[60].mxu1 %v7673_v50 }
 0x85a   : > { %6396 = vmatprep.mubr.f32.mxu1 %v7676_v38 }
 0x85b   : > { %v14378_v44 = vpop.f32.mrb[12].mxu0 }
 0x85c   : > { %v6355_v50 = vpop.f32.mrb[13].mxu0 }
 0x85d   : > { %6397 = vmatmul.mubr.f32.gmra.mrb[62].mxu1 %v7675_v48 }
 0x85f   : > { %v14380_v38 = vpop.f32.mrb[14].mxu0 }
 0x860   : > { %v6360_v28 = vpop.f32.mrb[15].mxu0 }
 0x894   : > { %v5825_v40 = vpop.f32.mrb[0].mxu1 }
 0x895   : > { %v8710_v48 = vadd.f32 %v5825_v40, %v13978_v18  ;;  %v5827_v35 = vpop.f32.mrb[1].mxu1 }
 0x897   : > { %v8711_v54 = vadd.f32 %v8710_v48, %v14229_v1 }
 0x898   : > { %v5830_v60 = vpop.f32.mrb[2].mxu1 }
 0x899   : > { %v8712_v13 = vadd.f32 %v5830_v60, %v13988_v39  ;;  %v5832_v6 = vpop.f32.mrb[3].mxu1  ;;  %7966 = vmatprep.mubr.msk.f32.mxu0 %vm6636_vm3, %v8711_v54 }
 0x89b   : > { %v8713_v5 = vadd.f32 %v8712_v13, %v14243_v31 }
 0x89c   : > { %v5835_v10 = vpop.f32.mrb[4].mxu1 }
 0x89d   : > { %v8714_v50 = vadd.f32 %v5835_v10, %v13998_v42  ;;  %v5837_v8 = vpop.f32.mrb[5].mxu1  ;;  %7967 = vmatmul.mubr.msk.f32.vlgmr.msra.gmra.mrb[16].mxu0 %vm6636_vm3, %v8713_v5 }
 0x89f   : > { %v8715_v18 = vadd.f32 %v8714_v50, %v14251_v7 }
 0x8a0   : > { %v5840_v35 = vpop.f32.mrb[6].mxu1 }
 0x8a1   : > { %v8716_v28 = vadd.f32 %v5840_v35, %v14008_v30  ;;  %v5842_v1 = vpop.f32.mrb[7].mxu1  ;;  %7969 = vmatprep.mubr.msk.f32.mxu0 %vm6636_vm3, %v8715_v18 }
 0x8a3   : > { %v8717_v39 = vadd.f32 %v8716_v28, %v14259_v49 }
 0x8a4   : > { %v5845_v40 = vpop.f32.mrb[8].mxu1 }
 0x8a5   : > { %v8718_v48 = vadd.f32 %v5845_v40, %v14018_v59  ;;  %v5847_v13 = vpop.f32.mrb[9].mxu1  ;;  %7970 = vmatmul.mubr.msk.f32.gmra.mrb[18].mxu0 %vm6636_vm3, %v8717_v39 }
 0x8a7   : > { %v8719_v42 = vadd.f32 %v8718_v48, %v14267_v47 }
 0x8a8   : > { %v5850_v8 = vpop.f32.mrb[10].mxu1 }
 0x8a9   : > { %v8720_v10 = vadd.f32 %v5850_v8, %v14028_v26  ;;  %v5852_v31 = vpop.f32.mrb[11].mxu1  ;;  %7972 = vmatprep.mubr.msk.f32.mxu0 %vm6636_vm3, %v8719_v42 }
 0x8ab   : > { %v8721_v30 = vadd.f32 %v8720_v10, %v14275_v20 }
 0x8ac   : > { %v5855_v7 = vpop.f32.mrb[12].mxu1 }
 0x8ad   : > { %v8722_v54 = vadd.f32 %v5855_v7, %v14038_v43  ;;  %v5857_v49 = vpop.f32.mrb[13].mxu1  ;;  %7973 = vmatmul.mubr.msk.f32.gmra.mrb[20].mxu0 %vm6636_vm3, %v8721_v30 }
 0x8af   : > { %v8723_v59 = vadd.f32 %v8722_v54, %v14283_v11 }
 0x8b0   : > { %v5860_v60 = vpop.f32.mrb[14].mxu1 }
 0x8b1   : > { %v8724_v6 = vadd.f32 %v5860_v60, %v14048_v32  ;;  %v5862_v47 = vpop.f32.mrb[15].mxu1  ;;  %7975 = vmatprep.mubr.msk.f32.mxu0 %vm6636_vm3, %v8723_v59 }
 0x8b3   : > { %v8725_v26 = vadd.f32 %v8724_v6, %v14291_v46 }
 0x8b4   : > { %v5865_v5 = vpop.f32.mrb[16].mxu1 }
 0x8b5   : > { %v8726_v50 = vadd.f32 %v5865_v5, %v14070_v52  ;;  %v5867_v20 = vpop.f32.mrb[17].mxu1  ;;  %7976 = vmatmul.mubr.msk.f32.gmra.mrb[22].mxu0 %vm6636_vm3, %v8725_v26 }
 0x8b7   : > { %v8727_v43 = vadd.f32 %v8726_v50, %v14299_v29 }
 0x8b8   : > { %v5870_v18 = vpop.f32.mrb[18].mxu1 }
 0x8b9   : > { %v8728_v35 = vadd.f32 %v5870_v18, %v14078_v24  ;;  %v5872_v11 = vpop.f32.mrb[19].mxu1  ;;  %7978 = vmatprep.mubr.msk.f32.mxu0 %vm6636_vm3, %v8727_v43 }
 0x8bb   : > { %v8729_v32 = vadd.f32 %v8728_v35, %v14307_v58 }
 0x8bc   : > { %v5875_v28 = vpop.f32.mrb[20].mxu1 }
 0x8bd   : > { %v8730_v1 = vadd.f32 %v5875_v28, %v14088_v45  ;;  %v5877_v46 = vpop.f32.mrb[21].mxu1  ;;  %7979 = vmatmul.mubr.msk.f32.gmra.mrb[24].mxu0 %vm6636_vm3, %v8729_v32 }
 0x8bf   : > { %v8731_v52 = vadd.f32 %v8730_v1, %v14315_v61 }
 0x8c0   : > { %v5880_v39 = vpop.f32.mrb[22].mxu1 }
 0x8c1   : > { %v8732_v40 = vadd.f32 %v5880_v39, %v14090_v0  ;;  %v5882_v29 = vpop.f32.mrb[23].mxu1  ;;  %7981 = vmatprep.mubr.msk.f32.mxu0 %vm6636_vm3, %v8731_v52 }
 0x8c3   : > { %v8733_v24 = vadd.f32 %v8732_v40, %v14323_v25 }
 0x8c4   : > { %v5885_v48 = vpop.f32.mrb[24].mxu1 }
 0x8c5   : > { %v8734_v13 = vadd.f32 %v5885_v48, %v14100_v19  ;;  %v5887_v58 = vpop.f32.mrb[25].mxu1  ;;  %7982 = vmatmul.mubr.msk.f32.gmra.mrb[26].mxu0 %vm6636_vm3, %v8733_v24  ;;  %v14637_v48 = vld [vmem:[#allocation4_spill] sm:$0xff] }
 0x8c7   : > { %v8735_v45 = vadd.f32 %v8734_v13, %v14331_v34 }
 0x8c8   : > { %v5890_v42 = vpop.f32.mrb[26].mxu1 }
 0x8c9   : > { %v8736_v8 = vadd.f32 %v5890_v42, %v14102_v41  ;;  %v5892_v61 = vpop.f32.mrb[27].mxu1  ;;  %7984 = vmatprep.mubr.msk.f32.mxu0 %vm6636_vm3, %v8735_v45  ;;  %v14638_v45 = vld [vmem:[#allocation3_spill] sm:$0xff] }
 0x8ca   : > { %v14639_v61 = vld [vmem:[#allocation6_spill] sm:$0xff] }
 0x8cb   : > { %v8737_v0 = vadd.f32 %v8736_v8, %v14339_v33 }
 0x8cc   : > { %v5895_v10 = vpop.f32.mrb[28].mxu1 }
 0x8cd   : > { %v8738_v31 = vadd.f32 %v5895_v10, %v14112_v4  ;;  %v5897_v25 = vpop.f32.mrb[29].mxu1  ;;  %7985 = vmatmul.mubr.msk.f32.gmra.mrb[28].mxu0 %vm6636_vm3, %v8737_v0 }
 0x8cf   : > { %v8739_v19 = vadd.f32 %v8738_v31, %v14347_v23  ;;  %v14640_v31 = vld [vmem:[#allocation5_spill] sm:$0xff] }
 0x8d0   : > { %v5900_v30 = vpop.f32.mrb[30].mxu1 }
 0x8d1   : > { %v8740_v7 = vadd.f32 %v5900_v30, %v14114_v63  ;;  %v5902_v34 = vpop.f32.mrb[31].mxu1  ;;  %7987 = vmatprep.mubr.msk.f32.mxu0 %vm6636_vm3, %v8739_v19  ;;  %v6484_v30 = vpop.permute.xlu1 %6483 }
 0x8d2   : > { %v6479_v34 = vpop.permute.xlu0 %6478 }
 0x8d3   : > { %v8741_v41 = vadd.f32 %v8740_v7, %v14355_v15 }
 0x8d4   : > { %v5905_v54 = vpop.f32.mrb[32].mxu1 }
 0x8d5   : > { %v8742_v49 = vadd.f32 %v5905_v54, %v14124_v27  ;;  %v5907_v33 = vpop.f32.mrb[33].mxu1  ;;  %7988 = vmatmul.mubr.msk.f32.gmra.mrb[30].mxu0 %vm6636_vm3, %v8741_v41 }
 0x8d7   : > { %v8743_v4 = vadd.f32 %v8742_v49, %v14363_v51 }
 0x8d8   : > { %v5910_v59 = vpop.f32.mrb[34].mxu1 }
 0x8d9   : > { %v8744_v60 = vadd.f32 %v5910_v59, %v14126_v57  ;;  %v5912_v23 = vpop.f32.mrb[35].mxu1  ;;  %7990 = vmatprep.mubr.msk.f32.mxu0 %vm6636_vm3, %v8743_v4  ;;  %v6494_v59 = vpop.permute.xlu1 %6493 }
 0x8da   : > { %v6489_v23 = vpop.permute.xlu0 %6488 }
 0x8db   : > { %v8745_v63 = vadd.f32 %v8744_v60, %v14368_v62 }
 0x8dc   : > { %v5915_v6 = vpop.f32.mrb[36].mxu1 }
 0x8dd   : > { %v8746_v47 = vadd.f32 %v5915_v6, %v14136_v55  ;;  %v5917_v15 = vpop.f32.mrb[37].mxu1  ;;  %7991 = vmatmul.mubr.msk.f32.gmra.mrb[32].mxu0 %vm6636_vm3, %v8745_v63 }
 0x8df   : > { %v8747_v27 = vadd.f32 %v8746_v47, %v14370_v3 }
 0x8e0   : > { %v5920_v26 = vpop.f32.mrb[38].mxu1 }
 0x8e1   : > { %v8748_v5 = vadd.f32 %v5920_v26, %v14138_v37  ;;  %v5922_v51 = vpop.f32.mrb[39].mxu1  ;;  %7993 = vmatprep.mubr.msk.f32.mxu0 %vm6636_vm3, %v8747_v27  ;;  %v6504_v26 = vpop.permute.xlu1 %6503 }
 0x8e2   : > { %v6499_v51 = vpop.permute.xlu0 %6498 }
 0x8e3   : > { %v8749_v57 = vadd.f32 %v8748_v5, %v14372_v9 }
 0x8e4   : > { %v5925_v50 = vpop.f32.mrb[40].mxu1 }
 0x8e5   : > { %v8750_v20 = vadd.f32 %v5925_v50, %v14148_v16  ;;  %v5927_v62 = vpop.f32.mrb[41].mxu1  ;;  %7994 = vmatmul.mubr.msk.f32.gmra.mrb[34].mxu0 %vm6636_vm3, %v8749_v57 }
 0x8e7   : > { %v8751_v55 = vadd.f32 %v8750_v20, %v14374_v17 }
 0x8e8   : > { %v5930_v43 = vpop.f32.mrb[42].mxu1 }
 0x8e9   : > { %v8752_v18 = vadd.f32 %v5930_v43, %v14150_v2  ;;  %v5932_v3 = vpop.f32.mrb[43].mxu1  ;;  %7996 = vmatprep.mubr.msk.f32.mxu0 %vm6636_vm3, %v8751_v55  ;;  %v6514_v43 = vpop.permute.xlu1 %6513 }
 0x8ea   : > { %v6509_v3 = vpop.permute.xlu0 %6508 }
 0x8eb   : > { %v8753_v37 = vadd.f32 %v8752_v18, %v14376_v21 }
 0x8ec   : > { %v5935_v35 = vpop.f32.mrb[44].mxu1 }
 0x8ed   : > { %v8754_v11 = vadd.f32 %v5935_v35, %v14160_v14  ;;  %v5937_v9 = vpop.f32.mrb[45].mxu1  ;;  %7997 = vmatmul.mubr.msk.f32.gmra.mrb[36].mxu0 %vm6636_vm3, %v8753_v37 }
 0x8ef   : > { %v8755_v16 = vadd.f32 %v8754_v11, %v14378_v44 }
 0x8f0   : > { %v5940_v32 = vpop.f32.mrb[46].mxu1 }
 0x8f1   : > { %v8756_v28 = vadd.f32 %v5940_v32, %v14162_v56  ;;  %v5942_v17 = vpop.f32.mrb[47].mxu1  ;;  %7999 = vmatprep.mubr.msk.f32.mxu0 %vm6636_vm3, %v8755_v16  ;;  %v6524_v32 = vpop.permute.xlu1 %6523 }
 0x8f2   : > { %v6519_v17 = vpop.permute.xlu0 %6518 }
 0x8f3   : > { %v8757_v2 = vadd.f32 %v8756_v28, %v14380_v38 }
 0x8f5   : > { %8000 = vmatmul.mubr.msk.f32.gmra.mrb[38].mxu0 %vm6636_vm3, %v8757_v2 }
 0x914   : > { %v6363_v1 = vpop.f32.mrb[48].mxu1 }
 0x915   : > { %v8758_v21 = vadd.f32 %v6363_v1, %v14171_v22  ;;  %v6365_v46 = vpop.f32.mrb[49].mxu1 }
 0x917   : > { %8002 = vmatprep.mubr.msk.f32.mxu0 %vm6636_vm3, %v8758_v21 }
 0x918   : > { %v6368_v14 = vpop.f32.mrb[50].mxu1 }
 0x919   : > { %v8759_v52 = vadd.f32 %v6368_v14, %v14173_v12  ;;  %v6370_v44 = vpop.f32.mrb[51].mxu1 }
 0x91b   : > { %8003 = vmatmul.mubr.msk.f32.gmra.mrb[40].mxu0 %vm6636_vm3, %v8759_v52  ;;  %v6534_v52 = vpop.permute.xlu1 %6533 }
 0x91c   : > { %v6373_v56 = vpop.f32.mrb[52].mxu1 }
 0x91d   : > { %v8760_v39 = vadd.f32 %v6373_v56, %v14181_v36  ;;  %v6375_v40 = vpop.f32.mrb[53].mxu1  ;;  %v6529_v56 = vpop.permute.xlu0 %6528 }
 0x91f   : > { %8005 = vmatprep.mubr.msk.f32.mxu0 %vm6636_vm3, %v8760_v39 }
 0x920   : > { %v6378_v38 = vpop.f32.mrb[54].mxu1 }
 0x921   : > { %v8761_v29 = vadd.f32 %v6378_v38, %v14183_v53  ;;  %v6380_v24 = vpop.f32.mrb[55].mxu1 }
 0x923   : > { %8006 = vmatmul.mubr.msk.f32.gmra.mrb[42].mxu0 %vm6636_vm3, %v8761_v29 }
 0x924   : > { %v6383_v22 = vpop.f32.mrb[56].mxu1 }
 0x925   : > { %v8762_v13 = vadd.f32 %v6383_v22, %v14637_v48  ;;  %v6385_v12 = vpop.f32.mrb[57].mxu1  ;;  %v6544_v22 = vpop.permute.xlu1 %6543 }
 0x927   : > { %8008 = vmatprep.mubr.msk.f32.mxu0 %vm6636_vm3, %v8762_v13  ;;  %v6539_v13 = vpop.permute.xlu0 %6538 }
 0x928   : > { %v6388_v58 = vpop.f32.mrb[58].mxu1 }
 0x929   : > { %v8763_v42 = vadd.f32 %v6388_v58, %v14638_v45  ;;  %v6390_v36 = vpop.f32.mrb[59].mxu1 }
 0x92b   : > { %8009 = vmatmul.mubr.msk.f32.gmra.mrb[44].mxu0 %vm6636_vm3, %v8763_v42 }
 0x92c   : > { %v6393_v8 = vpop.f32.mrb[60].mxu1 }
 0x92d   : > { %v8764_v0 = vadd.f32 %v6393_v8, %v14639_v61  ;;  %v6395_v53 = vpop.f32.mrb[61].mxu1  ;;  %v6554_v8 = vpop.permute.xlu1 %6553 }
 0x92f   : > { %8011 = vmatprep.mubr.msk.f32.mxu0 %vm6636_vm3, %v8764_v0  ;;  %v6549_v0 = vpop.permute.xlu0 %6548 }
 0x930   : > { %v6398_v10 = vpop.f32.mrb[62].mxu1 }
 0x931   : > { %v8765_v25 = vadd.f32 %v6398_v10, %v14640_v31  ;;  %v6400_v19 = vpop.f32.mrb[63].mxu1 }
 0x933   : > { %8012 = vmatmul.mubr.msk.f32.gmra.mrb[46].mxu0 %vm6636_vm3, %v8765_v25 }
 0x970   : > { %v7968_v7 = vpop.f32.mrb[16].mxu0 }
 0x971   : > { %v6805_v41 = vadd.f32 %v7968_v7, %v6484_v30  ;;  %v6799_v54 = vpop.f32.mrb[17].mxu0  ;;  %v6564_v30 = vpop.permute.xlu1 %6563 }
 0x972   : > { %v6800_v49 = vadd.f32 %v6799_v54, %v6479_v34  ;;  %v6559_v34 = vpop.permute.xlu0 %6558 }
 0x973   : > { %v6959_v33 = vmax.f32 %v6805_v41, 0.0 }
 0x974   : > { %v6958_v4 = vmax.f32 %v6800_v49, 0.0 }
 0x975   : > { %6991 = vst.msk [vmem:[%s14474_s16 + $0x8] sm:$0xff] %vm1701_vm0, %v6959_v33 }
 0x976   : > { %6990 = vst.msk [vmem:[%s14474_s16] sm:$0xff] %vm1701_vm0, %v6958_v4 }
 0x978   : > { %v7971_v60 = vpop.f32.mrb[18].mxu0 }
 0x979   : > { %v6815_v63 = vadd.f32 %v7971_v60, %v6494_v59  ;;  %v6809_v6 = vpop.f32.mrb[19].mxu0  ;;  %v6574_v59 = vpop.permute.xlu1 %6573 }
 0x97a   : > { %v6810_v47 = vadd.f32 %v6809_v6, %v6489_v23  ;;  %v6569_v23 = vpop.permute.xlu0 %6568 }
 0x97b   : > { %v6961_v15 = vmax.f32 %v6815_v63, 0.0 }
 0x97c   : > { %v6960_v27 = vmax.f32 %v6810_v47, 0.0 }
 0x97d   : > { %6993 = vst.msk [vmem:[%s14474_s16 + $0x18] sm:$0xff] %vm1701_vm0, %v6961_v15 }
 0x97e   : > { %6992 = vst.msk [vmem:[%s14474_s16 + $0x10] sm:$0xff] %vm1701_vm0, %v6960_v27 }
 0x980   : > { %v7974_v5 = vpop.f32.mrb[20].mxu0 }
 0x981   : > { %v6825_v57 = vadd.f32 %v7974_v5, %v6504_v26  ;;  %v6819_v50 = vpop.f32.mrb[21].mxu0  ;;  %v6584_v26 = vpop.permute.xlu1 %6583 }
 0x982   : > { %v6820_v20 = vadd.f32 %v6819_v50, %v6499_v51  ;;  %v6579_v51 = vpop.permute.xlu0 %6578 }
 0x983   : > { %v6963_v62 = vmax.f32 %v6825_v57, 0.0 }
 0x984   : > { %v6962_v55 = vmax.f32 %v6820_v20, 0.0 }
 0x985   : > { %6995 = vst.msk [vmem:[%s14474_s16 + $0x28] sm:$0xff] %vm1701_vm0, %v6963_v62 }
 0x986   : > { %6994 = vst.msk [vmem:[%s14474_s16 + $0x20] sm:$0xff] %vm1701_vm0, %v6962_v55 }
 0x988   : > { %v7977_v18 = vpop.f32.mrb[22].mxu0 }
 0x989   : > { %v6835_v37 = vadd.f32 %v7977_v18, %v6514_v43  ;;  %v6829_v35 = vpop.f32.mrb[23].mxu0  ;;  %v6594_v43 = vpop.permute.xlu1 %6593 }
 0x98a   : > { %v6830_v11 = vadd.f32 %v6829_v35, %v6509_v3  ;;  %v6589_v3 = vpop.permute.xlu0 %6588 }
 0x98b   : > { %v6965_v9 = vmax.f32 %v6835_v37, 0.0 }
 0x98c   : > { %v6964_v16 = vmax.f32 %v6830_v11, 0.0 }
 0x98d   : > { %6997 = vst.msk [vmem:[%s14474_s16 + $0x38] sm:$0xff] %vm1701_vm0, %v6965_v9 }
 0x98e   : > { %6996 = vst.msk [vmem:[%s14474_s16 + $0x30] sm:$0xff] %vm1701_vm0, %v6964_v16 }
 0x990   : > { %v7980_v28 = vpop.f32.mrb[24].mxu0 }
 0x991   : > { %v6845_v2 = vadd.f32 %v7980_v28, %v6524_v32  ;;  %v6839_v1 = vpop.f32.mrb[25].mxu0  ;;  %v6604_v32 = vpop.permute.xlu1 %6603 }
 0x992   : > { %v6840_v21 = vadd.f32 %v6839_v1, %v6519_v17  ;;  %v6599_v17 = vpop.permute.xlu0 %6598 }
 0x993   : > { %v6967_v46 = vmax.f32 %v6845_v2, 0.0 }
 0x994   : > { %v6966_v14 = vmax.f32 %v6840_v21, 0.0 }
 0x995   : > { %6999 = vst.msk [vmem:[%s14474_s16 + $0x48] sm:$0xff] %vm1701_vm0, %v6967_v46 }
 0x996   : > { %6998 = vst.msk [vmem:[%s14474_s16 + $0x40] sm:$0xff] %vm1701_vm0, %v6966_v14 }
 0x998   : > { %v7983_v44 = vpop.f32.mrb[26].mxu0 }
 0x999   : > { %v6855_v39 = vadd.f32 %v7983_v44, %v6534_v52  ;;  %v6849_v40 = vpop.f32.mrb[27].mxu0  ;;  %v6614_v52 = vpop.permute.xlu1 %6613 }
 0x99a   : > { %v6850_v38 = vadd.f32 %v6849_v40, %v6529_v56  ;;  %v6609_v56 = vpop.permute.xlu0 %6608 }
 0x99b   : > { %v6969_v29 = vmax.f32 %v6855_v39, 0.0 }
 0x99c   : > { %v6968_v24 = vmax.f32 %v6850_v38, 0.0 }
 0x99d   : > { %7001 = vst.msk [vmem:[%s14474_s16 + $0x58] sm:$0xff] %vm1701_vm0, %v6969_v29 }
 0x99e   : > { %7000 = vst.msk [vmem:[%s14474_s16 + $0x50] sm:$0xff] %vm1701_vm0, %v6968_v24 }
 0x9a0   : > { %v7986_v48 = vpop.f32.mrb[28].mxu0 }
 0x9a1   : > { %v6865_v12 = vadd.f32 %v7986_v48, %v6544_v22  ;;  %v6859_v58 = vpop.f32.mrb[29].mxu0  ;;  %v6624_v22 = vpop.permute.xlu1 %6623 }
 0x9a2   : > { %v6860_v45 = vadd.f32 %v6859_v58, %v6539_v13  ;;  %v6619_v13 = vpop.permute.xlu0 %6618 }
 0x9a3   : > { %v6971_v42 = vmax.f32 %v6865_v12, 0.0 }
 0x9a4   : > { %v6970_v36 = vmax.f32 %v6860_v45, 0.0 }
 0x9a5   : > { %7003 = vst.msk [vmem:[%s14474_s16 + $0x68] sm:$0xff] %vm1701_vm0, %v6971_v42 }
 0x9a6   : > { %7002 = vst.msk [vmem:[%s14474_s16 + $0x60] sm:$0xff] %vm1701_vm0, %v6970_v36 }
 0x9a8   : > { %v7989_v61 = vpop.f32.mrb[30].mxu0 }
 0x9a9   : > { %v6875_v53 = vadd.f32 %v7989_v61, %v6554_v8  ;;  %v6869_v10 = vpop.f32.mrb[31].mxu0  ;;  %v6634_v8 = vpop.permute.xlu1 %6633 }
 0x9aa   : > { %v6870_v31 = vadd.f32 %v6869_v10, %v6549_v0  ;;  %v6629_v0 = vpop.permute.xlu0 %6628 }
 0x9ab   : > { %v6973_v25 = vmax.f32 %v6875_v53, 0.0 }
 0x9ac   : > { %v6972_v19 = vmax.f32 %v6870_v31, 0.0 }
 0x9ad   : > { %7005 = vst.msk [vmem:[%s14474_s16 + $0x78] sm:$0xff] %vm1701_vm0, %v6973_v25 }
 0x9ae   : > { %7004 = vst.msk [vmem:[%s14474_s16 + $0x70] sm:$0xff] %vm1701_vm0, %v6972_v19 }
 0x9b0   : > { %v7992_v7 = vpop.f32.mrb[32].mxu0 }
 0x9b1   : > { %v6885_v41 = vadd.f32 %v7992_v7, %v6564_v30  ;;  %v6879_v54 = vpop.f32.mrb[33].mxu0 }
 0x9b2   : > { %v6880_v49 = vadd.f32 %v6879_v54, %v6559_v34 }
 0x9b3   : > { %v6975_v33 = vmax.f32 %v6885_v41, 0.0 }
 0x9b4   : > { %v6974_v4 = vmax.f32 %v6880_v49, 0.0 }
 0x9b5   : > { %7007 = vst.msk [vmem:[%s14474_s16 + $0x88] sm:$0xff] %vm1701_vm0, %v6975_v33 }
 0x9b6   : > { %7006 = vst.msk [vmem:[%s14474_s16 + $0x80] sm:$0xff] %vm1701_vm0, %v6974_v4 }
 0x9b8   : > { %v7995_v60 = vpop.f32.mrb[34].mxu0 }
 0x9b9   : > { %v6895_v63 = vadd.f32 %v7995_v60, %v6574_v59  ;;  %v6889_v6 = vpop.f32.mrb[35].mxu0 }
 0x9ba   : > { %v6890_v47 = vadd.f32 %v6889_v6, %v6569_v23 }
 0x9bb   : > { %v6977_v15 = vmax.f32 %v6895_v63, 0.0 }
 0x9bc   : > { %v6976_v27 = vmax.f32 %v6890_v47, 0.0 }
 0x9bd   : > { %7009 = vst.msk [vmem:[%s14474_s16 + $0x98] sm:$0xff] %vm1701_vm0, %v6977_v15 }
 0x9be   : > { %7008 = vst.msk [vmem:[%s14474_s16 + $0x90] sm:$0xff] %vm1701_vm0, %v6976_v27 }
 0x9c0   : > { %v7998_v5 = vpop.f32.mrb[36].mxu0 }
 0x9c1   : > { %v6905_v57 = vadd.f32 %v7998_v5, %v6584_v26  ;;  %v6899_v50 = vpop.f32.mrb[37].mxu0 }
 0x9c2   : > { %v6900_v20 = vadd.f32 %v6899_v50, %v6579_v51 }
 0x9c3   : > { %v6979_v62 = vmax.f32 %v6905_v57, 0.0 }
 0x9c4   : > { %v6978_v55 = vmax.f32 %v6900_v20, 0.0 }
 0x9c5   : > { %7011 = vst.msk [vmem:[%s14474_s16 + $0xa8] sm:$0xff] %vm1701_vm0, %v6979_v62 }
 0x9c6   : > { %7010 = vst.msk [vmem:[%s14474_s16 + $0xa0] sm:$0xff] %vm1701_vm0, %v6978_v55 }
 0x9c8   : > { %v8001_v18 = vpop.f32.mrb[38].mxu0 }
 0x9c9   : > { %v6915_v37 = vadd.f32 %v8001_v18, %v6594_v43  ;;  %v6909_v35 = vpop.f32.mrb[39].mxu0 }
 0x9ca   : > { %v6910_v11 = vadd.f32 %v6909_v35, %v6589_v3 }
 0x9cb   : > { %v6981_v9 = vmax.f32 %v6915_v37, 0.0 }
 0x9cc   : > { %v6980_v16 = vmax.f32 %v6910_v11, 0.0 }
 0x9cd   : > { %7013 = vst.msk [vmem:[%s14474_s16 + $0xb8] sm:$0xff] %vm1701_vm0, %v6981_v9 }
 0x9ce   : > { %7012 = vst.msk [vmem:[%s14474_s16 + $0xb0] sm:$0xff] %vm1701_vm0, %v6980_v16 }
 0x9ee   : > { %v8004_v28 = vpop.f32.mrb[40].mxu0 }
 0x9ef   : > { %v6925_v2 = vadd.f32 %v8004_v28, %v6604_v32  ;;  %v6919_v1 = vpop.f32.mrb[41].mxu0 }
 0x9f0   : > { %v6920_v21 = vadd.f32 %v6919_v1, %v6599_v17 }
 0x9f1   : > { %v6983_v46 = vmax.f32 %v6925_v2, 0.0 }
 0x9f2   : > { %v6982_v14 = vmax.f32 %v6920_v21, 0.0 }
 0x9f3   : > { %7015 = vst.msk [vmem:[%s14474_s16 + $0xc8] sm:$0xff] %vm1701_vm0, %v6983_v46 }
 0x9f4   : > { %7014 = vst.msk [vmem:[%s14474_s16 + $0xc0] sm:$0xff] %vm1701_vm0, %v6982_v14 }
 0x9f6   : > { %v8007_v44 = vpop.f32.mrb[42].mxu0 }
 0x9f7   : > { %v6935_v39 = vadd.f32 %v8007_v44, %v6614_v52  ;;  %v6929_v40 = vpop.f32.mrb[43].mxu0 }
 0x9f8   : > { %v6930_v38 = vadd.f32 %v6929_v40, %v6609_v56 }
 0x9f9   : > { %v6985_v29 = vmax.f32 %v6935_v39, 0.0 }
 0x9fa   : > { %v6984_v24 = vmax.f32 %v6930_v38, 0.0 }
 0x9fb   : > { %7017 = vst.msk [vmem:[%s14474_s16 + $0xd8] sm:$0xff] %vm1701_vm0, %v6985_v29 }
 0x9fc   : > { %7016 = vst.msk [vmem:[%s14474_s16 + $0xd0] sm:$0xff] %vm1701_vm0, %v6984_v24 }
 0x9fe   : > { %v8010_v48 = vpop.f32.mrb[44].mxu0 }
 0x9ff   : > { %v6945_v12 = vadd.f32 %v8010_v48, %v6624_v22  ;;  %v6939_v58 = vpop.f32.mrb[45].mxu0 }
 0xa00   : > { %v6940_v45 = vadd.f32 %v6939_v58, %v6619_v13 }
 0xa01   : > { %v6987_v42 = vmax.f32 %v6945_v12, 0.0 }
 0xa02   : > { %v6986_v36 = vmax.f32 %v6940_v45, 0.0 }
 0xa03   : > { %7019 = vst.msk [vmem:[%s14474_s16 + $0xe8] sm:$0xff] %vm1701_vm0, %v6987_v42 }
 0xa04   : > { %7018 = vst.msk [vmem:[%s14474_s16 + $0xe0] sm:$0xff] %vm1701_vm0, %v6986_v36 }
 0xa06   : > { %v8013_v61 = vpop.f32.mrb[46].mxu0 }
 0xa07   : > { %v6955_v53 = vadd.f32 %v8013_v61, %v6634_v8  ;;  %v6949_v10 = vpop.f32.mrb[47].mxu0 }
 0xa08   : > { %v6950_v31 = vadd.f32 %v6949_v10, %v6629_v0 }
 0xa09   : > { %v6989_v25 = vmax.f32 %v6955_v53, 0.0 }
 0xa0a   : > { %v6988_v19 = vmax.f32 %v6950_v31, 0.0 }
 0xa0b   : > { %7021 = vst.msk [vmem:[%s14474_s16 + $0xf8] sm:$0xff] %vm1701_vm0, %v6989_v25 }
 0xa0c   : > { %7020 = vst.msk [vmem:[%s14474_s16 + $0xf0] sm:$0xff] %vm1701_vm0, %v6988_v19 }
 0xa0d PF: > { %s21_s17 = sadd.s32 1, %s10073_s17  }
 0xa0e   : > { %p18_p4 = scmp.ge.s32.totalorder %s21_s17, 4  }
 0xa10   :  { %20 = sbr.rel (!%p18_p4) target bundleno = 1 (0x1), region = 105 }

</bundles_post_ra>
